<compile_context>
chip_gen: v5e
topology: v5e:2x2
jax: 0.10.0
libtpu: 0.0.40
codegen_flags: <defaults>
</compile_context>

<pallas_src>
import math
import jax
import jax.numpy as jnp
from jax.experimental import pallas as pl
from jax.experimental.pallas import tpu as pltpu

# ---------------- config (small, structurally faithful) ----------------
D_MODEL = 128          # original: 768
N_HEADS = 4            # original: 12
D_K = D_V = 32         # original: 64
D_FF = 256             # original: 768*4
N_LAYERS = 2           # original: 6
MAX_LEN = 16           # original: 30
N_SEGMENTS = 2
VOCAB_SIZE = 4         # {'[PAD]':0, '[CLS]':1, '[SEP]':2, '[MASK]':3}
LN_EPS = 1e-5
NEG_INF = -1e9
LANE_PAD = 128         # lane-dense padding for the tiny head outputs
HEAD_ROWS = 8          # sublane-dense padding: row 0 = classifier, rows 1..P = LM


# ---------------- in-kernel helpers (f32 math, v5e-safe) ----------------
def _layer_norm(x, g, b):
    mu = jnp.mean(x, axis=-1, keepdims=True)
    var = jnp.mean((x - mu) ** 2, axis=-1, keepdims=True)
    return (x - mu) * jax.lax.rsqrt(var + LN_EPS) * g + b


def _gelu(x):
    # exact (erf-based) gelu, matching the reference
    # (tanh-approx would move this to the EUP slot but changes numerics)
    return x * 0.5 * (1.0 + jax.lax.erf(x / math.sqrt(2.0)))


# ---------------- fused Pallas kernel (one batch BLOCK per grid step) ----------------
def bert_kernel(ids_ref, seg_ref, keypad_ref, mpos_ref,
                pos_ref, tok_tab_ref, seg_tab_ref, emb_g_ref, emb_b_ref,
                wq_ref, bq_ref, wk_ref, bk_ref, wv_ref, bv_ref,
                woh_ref, bo_ref, lng_ref, lnb_ref,
                w1_ref, b1_ref, w2_ref, b2_ref,
                fc_w_ref, fc_b_ref, cls_w_ref, cls_b_ref,
                lin_w_ref, lin_b_ref, dec_w_ref,
                out_ref):
    BB, S, _ = ids_ref.shape          # BB batch elements per block
    P = mpos_ref.shape[1]
    M = BB * S                        # folded matmul M dimension
    scale = 1.0 / math.sqrt(D_K)

    # ---- embeddings in-kernel: tok/seg via select-sum over tiny tables + pos + LN ----
    ids = ids_ref[...]                # (BB, S, 1) int32
    seg = seg_ref[...]                # (BB, S, 1) int32
    e = jnp.zeros((BB, S, D_MODEL), jnp.float32)
    for v in range(VOCAB_SIZE):
        e = e + jnp.where(ids == v, tok_tab_ref[v:v + 1, :], 0.0)
    for g in range(N_SEGMENTS):
        e = e + jnp.where(seg == g, seg_tab_ref[g:g + 1, :], 0.0)
    e = e + pos_ref[...][None, :, :]                                  # (BB, S, D)
    x = _layer_norm(e, emb_g_ref[...], emb_b_ref[...]).reshape(M, D_MODEL)

    # key-pad mask vectors, one (1, S) bool per batch element (no (S,S) mask DMA)
    pad = [keypad_ref[b] > 0.5 for b in range(BB)]

    # ---- encoder layers (statically unrolled; stacked weights stay VMEM-resident) ----
    for l in range(N_LAYERS):
        xb = x.astype(jnp.bfloat16)                                   # (M, D)
        q = jnp.dot(xb, wq_ref[l], preferred_element_type=jnp.float32) + bq_ref[l]
        k = jnp.dot(xb, wk_ref[l], preferred_element_type=jnp.float32) + bk_ref[l]
        v = jnp.dot(xb, wv_ref[l], preferred_element_type=jnp.float32) + bv_ref[l]

        # fold 1/sqrt(d_k) into q: one (M, H*Dk) multiply instead of H*S^2 per layer
        qb = (q * scale).astype(jnp.bfloat16)
        kb = k.astype(jnp.bfloat16)
        vb = v.astype(jnp.bfloat16)

        attn_rows = []
        for b in range(BB):
            qh = qb[b * S:(b + 1) * S].reshape(S, N_HEADS, D_K).transpose(1, 0, 2)
            kh = kb[b * S:(b + 1) * S].reshape(S, N_HEADS, D_K).transpose(1, 0, 2)
            vh = vb[b * S:(b + 1) * S].reshape(S, N_HEADS, D_V).transpose(1, 0, 2)

            s = jnp.einsum('hqd,hkd->hqk', qh, kh,
                           preferred_element_type=jnp.float32)        # (H, S, S)
            s = jnp.where(pad[b][None], NEG_INF, s)   # masked_fill_(attn_mask, -1e9)
            s = s - jnp.max(s, axis=-1, keepdims=True)
            p = jnp.exp(s)
            p = p * pl.reciprocal(jnp.sum(p, axis=-1, keepdims=True), approx=True)

            ctx = jnp.einsum('hqk,hkd->hqd', p.astype(jnp.bfloat16), vh,
                             preferred_element_type=jnp.float32)      # (H, S, Dv)
            # per-head output projection (weight stored head-major (H, Dv, D)):
            # no (H,S,Dv)->(S,H*Dv) transpose / lane-merge relayout
            ao = jnp.einsum('hqd,hde->hqe', ctx.astype(jnp.bfloat16), woh_ref[l],
                            preferred_element_type=jnp.float32)       # (H, S, D)
            acc = ao[0]
            for h in range(1, N_HEADS):
                acc = acc + ao[h]
            attn_rows.append(acc)                                     # (S, D)

        attn = jnp.concatenate(attn_rows, axis=0) + bo_ref[l]         # (M, D)
        h1 = _layer_norm(attn + x, lng_ref[l], lnb_ref[l])

        f = _gelu(jnp.dot(h1.astype(jnp.bfloat16), w1_ref[l],
                          preferred_element_type=jnp.float32) + b1_ref[l])
        x = jnp.dot(f.astype(jnp.bfloat16), w2_ref[l],
                    preferred_element_type=jnp.float32) + b2_ref[l]
        # NOTE: no residual / second LayerNorm after the FFN — matches the reference
        # PoswiseFeedForwardNet (fc2(gelu(fc1(x))) only).

    x3 = x.reshape(BB, S, D_MODEL)

    # ---- pooled CLS head: Linear -> Dropout -> Tanh -> classifier (batched over BB) ----
    # TODO(synk): nn.Dropout(0.5) is stochastic in train mode; implemented as identity.
    cls = x3[:, 0:1, :].reshape(BB, D_MODEL).astype(jnp.bfloat16)     # (BB, D)
    pooled = jnp.tanh(jnp.dot(cls, fc_w_ref[...],
                              preferred_element_type=jnp.float32) + fc_b_ref[...])
    clsf = (jnp.dot(pooled.astype(jnp.bfloat16), cls_w_ref[...],
                    preferred_element_type=jnp.float32) + cls_b_ref[...])  # (BB, 128)

    # ---- masked-LM head: one-hot gather of masked positions, gelu(Linear), tied decoder ----
    onehot = (mpos_ref[...] ==
              jax.lax.broadcasted_iota(jnp.int32, (BB, P, S), 2)).astype(jnp.bfloat16)
    hm = jnp.einsum('bps,bsd->bpd', onehot, x3.astype(jnp.bfloat16),
                    preferred_element_type=jnp.float32).reshape(BB * P, D_MODEL)
    hm = _gelu(jnp.dot(hm.astype(jnp.bfloat16), lin_w_ref[...],
                       preferred_element_type=jnp.float32) + lin_b_ref[...])
    lm = jnp.dot(hm.astype(jnp.bfloat16), dec_w_ref[...],
                 preferred_element_type=jnp.float32).reshape(BB, P, LANE_PAD)

    # ---- single lane-dense (BB, 8, 128) output slab: row0=classifier, rows 1..P=LM ----
    parts = [clsf.reshape(BB, 1, LANE_PAD), lm]
    pad_rows = HEAD_ROWS - 1 - P
    if pad_rows > 0:
        parts.append(jnp.zeros((BB, pad_rows, LANE_PAD), jnp.float32))
    out_ref[...] = jnp.concatenate(parts, axis=1)


# ---------------- pallas_call wrapper ----------------
LAYER_PARAM_ORDER = ['wq', 'bq', 'wk', 'bk', 'wv', 'bv', 'wo_h', 'bo',
                     'ln_g', 'ln_b', 'w1', 'b1', 'w2', 'b2']


def bert_fused_call(input_ids, segment_ids, masked_pos, params, batch_block=2):
    B, S = input_ids.shape
    P = masked_pos.shape[1]
    assert B % batch_block == 0, "batch must be divisible by batch_block"
    assert 1 + P <= HEAD_ROWS
    BB = batch_block
    NB = B // BB                      # >=2 keeps both v7x TensorCores busy

    # tiny integer / mask side inputs (embedding tables live in-kernel)
    ids3 = input_ids.astype(jnp.int32)[:, :, None]                    # (B, S, 1)
    seg3 = segment_ids.astype(jnp.int32)[:, :, None]                  # (B, S, 1)
    keypad = (input_ids == 0).astype(jnp.float32)[:, None, :]         # (B, 1, S)
    mpos = masked_pos.astype(jnp.int32)[:, :, None]                   # (B, P, 1)
    pos = params['pos_embed'][:S]                                     # (S, D)

    def const_spec(a):                # resident across the batch grid
        n = a.ndim
        return pl.BlockSpec(a.shape, lambda i, _n=n: (0,) * _n)

    def batch_spec(a):                # BB batch elements per grid step
        n = a.ndim
        return pl.BlockSpec((BB,) + a.shape[1:],
                            lambda i, _n=n: (i,) + (0,) * (_n - 1))

    lp = params['layers']
    const_args = ([pos, params['tok_embed'], params['seg_embed'],
                   params['emb_ln_g'], params['emb_ln_b']]
                  + [lp[name] for name in LAYER_PARAM_ORDER]
                  + [params['fc_w'], params['fc_b'],
                     params['cls_w_pad'], params['cls_b_pad'],
                     params['lin_w'], params['lin_b'], params['dec_wT_pad']])

    in_specs = ([batch_spec(ids3), batch_spec(seg3),
                 batch_spec(keypad), batch_spec(mpos)]
                + [const_spec(a) for a in const_args])

    out_shape = jax.ShapeDtypeStruct((B, HEAD_ROWS, LANE_PAD), jnp.float32)
    out_specs = pl.BlockSpec((BB, HEAD_ROWS, LANE_PAD), lambda i: (i, 0, 0))

    out = pl.pallas_call(
        bert_kernel,
        out_shape=out_shape,
        grid=(NB,),
        in_specs=in_specs,
        out_specs=out_specs,
        compiler_params=pltpu.CompilerParams(
            dimension_semantics=("parallel",),
            vmem_limit_bytes=32 * 1024 * 1024),
    )(ids3, seg3, keypad, mpos, *const_args)

    logits_clsf = out[:, 0, :2]                                       # (B, 2)
    logits_lm = out[:, 1:1 + P, :VOCAB_SIZE]                          # (B, P, V)
    return logits_lm, logits_clsf


# ---------------- parameters ----------------
def init_params(key):
    keys = iter(jax.random.split(key, 16))

    def nrm(shape, scale=0.02):
        return scale * jax.random.normal(next(keys), shape, dtype=jnp.float32)

    params = dict(
        tok_embed=nrm((VOCAB_SIZE, D_MODEL)),               # f32; gathered in-kernel
        pos_embed=nrm((MAX_LEN, D_MODEL)),
        seg_embed=nrm((N_SEGMENTS, D_MODEL)),
        emb_ln_g=jnp.ones((1, D_MODEL), jnp.float32),
        emb_ln_b=jnp.zeros((1, D_MODEL), jnp.float32),
        fc_w=nrm((D_MODEL, D_MODEL)).astype(jnp.bfloat16),
        fc_b=jnp.zeros((1, D_MODEL), jnp.float32),
        lin_w=nrm((D_MODEL, D_MODEL)).astype(jnp.bfloat16),
        lin_b=jnp.zeros((1, D_MODEL), jnp.float32),
    )
    # classifier weights, zero-padded to 128 lanes for dense stores (slice [:2] outside)
    cls_w = nrm((D_MODEL, 2))
    params['cls_w_pad'] = (jnp.zeros((D_MODEL, LANE_PAD), jnp.float32)
                           .at[:, :2].set(cls_w).astype(jnp.bfloat16))
    params['cls_b_pad'] = jnp.zeros((1, LANE_PAD), jnp.float32)
    # fc2.weight tied to tok_embed.weight (no bias); forward-only tie, lane-padded to 128
    params['dec_wT_pad'] = (jnp.zeros((D_MODEL, LANE_PAD), jnp.float32)
                            .at[:, :VOCAB_SIZE].set(params['tok_embed'].T)
                            .astype(jnp.bfloat16))

    L = N_LAYERS
    # NOTE: the PyTorch reference builds a fresh nn.Linear / nn.LayerNorm inside
    # MultiHeadAttention.forward on every call; here they are deterministic per layer.
    params['layers'] = dict(
        wq=nrm((L, D_MODEL, N_HEADS * D_K)).astype(jnp.bfloat16),
        bq=jnp.zeros((L, 1, N_HEADS * D_K), jnp.float32),
        wk=nrm((L, D_MODEL, N_HEADS * D_K)).astype(jnp.bfloat16),
        bk=jnp.zeros((L, 1, N_HEADS * D_K), jnp.float32),
        wv=nrm((L, D_MODEL, N_HEADS * D_V)).astype(jnp.bfloat16),
        bv=jnp.zeros((L, 1, N_HEADS * D_V), jnp.float32),
        # output projection stored head-major (H, Dv, D): per-head batched dot + sum
        wo_h=nrm((L, N_HEADS, D_V, D_MODEL)).astype(jnp.bfloat16),
        bo=jnp.zeros((L, 1, D_MODEL), jnp.float32),
        ln_g=jnp.ones((L, 1, D_MODEL), jnp.float32),
        ln_b=jnp.zeros((L, 1, D_MODEL), jnp.float32),
        w1=nrm((L, D_MODEL, D_FF)).astype(jnp.bfloat16),
        b1=jnp.zeros((L, 1, D_FF), jnp.float32),
        w2=nrm((L, D_FF, D_MODEL)).astype(jnp.bfloat16),
        b2=jnp.zeros((L, 1, D_MODEL), jnp.float32),
    )
    return params


# ---------------- full forward ----------------
def bert_forward(params, input_ids, segment_ids, masked_pos, batch_block=2):
    return bert_fused_call(input_ids, segment_ids, masked_pos, params,
                           batch_block=batch_block)


# ---------------- demo ----------------
if __name__ == "__main__":
    key = jax.random.PRNGKey(0)
    kp, k1, k2 = jax.random.split(key, 3)

    B, S, P = 4, 16, 4        # B=4 with batch_block=2 -> grid=(2,), M=32 per matmul
    params = init_params(kp)

    body = jax.random.randint(k1, (B, S), 1, VOCAB_SIZE)        # tokens in {1,2,3}
    input_ids = body.at[:, 0].set(1)                            # [CLS]
    input_ids = input_ids.at[:, -3:].set(0)                     # PAD tail (exercises mask)
    input_ids = input_ids.astype(jnp.int32)

    segment_ids = jnp.concatenate(
        [jnp.zeros((B, S // 2), jnp.int32), jnp.ones((B, S - S // 2), jnp.int32)], axis=1)

    masked_pos = jax.random.randint(k2, (B, P), 1, S - 3).astype(jnp.int32)

    logits_lm, logits_clsf = bert_forward(params, input_ids, segment_ids, masked_pos,
                                          batch_block=2)
    jax.block_until_ready((logits_lm, logits_clsf))

    assert logits_lm.shape == (B, P, VOCAB_SIZE)
    assert logits_clsf.shape == (B, 2)
    assert bool(jnp.all(jnp.isfinite(logits_lm))) and bool(jnp.all(jnp.isfinite(logits_clsf)))
    print("KERNEL_OK")
</pallas_src>

<mosaic_0001>
module attributes {stable_mosaic.version = 11 : i64} {
  func.func @bert_kernel(%arg0: i32, %arg1: memref<2x16x1xi32, #tpu.memory_space<vmem>>, %arg2: memref<2x16x1xi32, #tpu.memory_space<vmem>>, %arg3: memref<2x1x16xf32, #tpu.memory_space<vmem>>, %arg4: memref<2x4x1xi32, #tpu.memory_space<vmem>>, %arg5: memref<16x128xf32, #tpu.memory_space<vmem>>, %arg6: memref<4x128xf32, #tpu.memory_space<vmem>>, %arg7: memref<2x128xf32, #tpu.memory_space<vmem>>, %arg8: memref<1x128xf32, #tpu.memory_space<vmem>>, %arg9: memref<1x128xf32, #tpu.memory_space<vmem>>, %arg10: memref<2x128x128xbf16, #tpu.memory_space<vmem>>, %arg11: memref<2x1x128xf32, #tpu.memory_space<vmem>>, %arg12: memref<2x128x128xbf16, #tpu.memory_space<vmem>>, %arg13: memref<2x1x128xf32, #tpu.memory_space<vmem>>, %arg14: memref<2x128x128xbf16, #tpu.memory_space<vmem>>, %arg15: memref<2x1x128xf32, #tpu.memory_space<vmem>>, %arg16: memref<2x4x32x128xbf16, #tpu.memory_space<vmem>>, %arg17: memref<2x1x128xf32, #tpu.memory_space<vmem>>, %arg18: memref<2x1x128xf32, #tpu.memory_space<vmem>>, %arg19: memref<2x1x128xf32, #tpu.memory_space<vmem>>, %arg20: memref<2x128x256xbf16, #tpu.memory_space<vmem>>, %arg21: memref<2x1x256xf32, #tpu.memory_space<vmem>>, %arg22: memref<2x256x128xbf16, #tpu.memory_space<vmem>>, %arg23: memref<2x1x128xf32, #tpu.memory_space<vmem>>, %arg24: memref<128x128xbf16, #tpu.memory_space<vmem>>, %arg25: memref<1x128xf32, #tpu.memory_space<vmem>>, %arg26: memref<128x128xbf16, #tpu.memory_space<vmem>>, %arg27: memref<1x128xf32, #tpu.memory_space<vmem>>, %arg28: memref<128x128xbf16, #tpu.memory_space<vmem>>, %arg29: memref<1x128xf32, #tpu.memory_space<vmem>>, %arg30: memref<128x128xbf16, #tpu.memory_space<vmem>>, %arg31: memref<2x8x128xf32, #tpu.memory_space<vmem>>) attributes {dimension_semantics = [#tpu.dimension_semantics<parallel>], iteration_bounds = array<i64: 2>, scalar_prefetch = 0 : i64, scratch_operands = 0 : i64, tpu.core_type = #tpu.core_type<tc>, window_params = [{transform_indices = @transform_0, window_bounds = array<i64: 2, 16, 1>}, {transform_indices = @transform_1, window_bounds = array<i64: 2, 16, 1>}, {transform_indices = @transform_2, window_bounds = array<i64: 2, 1, 16>}, {transform_indices = @transform_3, window_bounds = array<i64: 2, 4, 1>}, {pipeline_mode = #tpu.pipeline_mode<synchronous>, transform_indices = @transform_4, window_bounds = array<i64: 16, 128>}, {pipeline_mode = #tpu.pipeline_mode<synchronous>, transform_indices = @transform_5, window_bounds = array<i64: 4, 128>}, {pipeline_mode = #tpu.pipeline_mode<synchronous>, transform_indices = @transform_6, window_bounds = array<i64: 2, 128>}, {pipeline_mode = #tpu.pipeline_mode<synchronous>, transform_indices = @transform_7, window_bounds = array<i64: 1, 128>}, {pipeline_mode = #tpu.pipeline_mode<synchronous>, transform_indices = @transform_8, window_bounds = array<i64: 1, 128>}, {pipeline_mode = #tpu.pipeline_mode<synchronous>, transform_indices = @transform_9, window_bounds = array<i64: 2, 128, 128>}, {pipeline_mode = #tpu.pipeline_mode<synchronous>, transform_indices = @transform_10, window_bounds = array<i64: 2, 1, 128>}, {pipeline_mode = #tpu.pipeline_mode<synchronous>, transform_indices = @transform_11, window_bounds = array<i64: 2, 128, 128>}, {pipeline_mode = #tpu.pipeline_mode<synchronous>, transform_indices = @transform_12, window_bounds = array<i64: 2, 1, 128>}, {pipeline_mode = #tpu.pipeline_mode<synchronous>, transform_indices = @transform_13, window_bounds = array<i64: 2, 128, 128>}, {pipeline_mode = #tpu.pipeline_mode<synchronous>, transform_indices = @transform_14, window_bounds = array<i64: 2, 1, 128>}, {pipeline_mode = #tpu.pipeline_mode<synchronous>, transform_indices = @transform_15, window_bounds = array<i64: 2, 4, 32, 128>}, {pipeline_mode = #tpu.pipeline_mode<synchronous>, transform_indices = @transform_16, window_bounds = array<i64: 2, 1, 128>}, {pipeline_mode = #tpu.pipeline_mode<synchronous>, transform_indices = @transform_17, window_bounds = array<i64: 2, 1, 128>}, {pipeline_mode = #tpu.pipeline_mode<synchronous>, transform_indices = @transform_18, window_bounds = array<i64: 2, 1, 128>}, {pipeline_mode = #tpu.pipeline_mode<synchronous>, transform_indices = @transform_19, window_bounds = array<i64: 2, 128, 256>}, {pipeline_mode = #tpu.pipeline_mode<synchronous>, transform_indices = @transform_20, window_bounds = array<i64: 2, 1, 256>}, {pipeline_mode = #tpu.pipeline_mode<synchronous>, transform_indices = @transform_21, window_bounds = array<i64: 2, 256, 128>}, {pipeline_mode = #tpu.pipeline_mode<synchronous>, transform_indices = @transform_22, window_bounds = array<i64: 2, 1, 128>}, {pipeline_mode = #tpu.pipeline_mode<synchronous>, transform_indices = @transform_23, window_bounds = array<i64: 128, 128>}, {pipeline_mode = #tpu.pipeline_mode<synchronous>, transform_indices = @transform_24, window_bounds = array<i64: 1, 128>}, {pipeline_mode = #tpu.pipeline_mode<synchronous>, transform_indices = @transform_25, window_bounds = array<i64: 128, 128>}, {pipeline_mode = #tpu.pipeline_mode<synchronous>, transform_indices = @transform_26, window_bounds = array<i64: 1, 128>}, {pipeline_mode = #tpu.pipeline_mode<synchronous>, transform_indices = @transform_27, window_bounds = array<i64: 128, 128>}, {pipeline_mode = #tpu.pipeline_mode<synchronous>, transform_indices = @transform_28, window_bounds = array<i64: 1, 128>}, {pipeline_mode = #tpu.pipeline_mode<synchronous>, transform_indices = @transform_29, window_bounds = array<i64: 128, 128>}, {transform_indices = @transform_30, window_bounds = array<i64: 2, 8, 128>}]} {
    %c0 = arith.constant 0 : index
    %c0_0 = arith.constant 0 : index
    %c0_1 = arith.constant 0 : index
    %0 = vector.load %arg1[%c0, %c0_0, %c0_1] : memref<2x16x1xi32, #tpu.memory_space<vmem>>, vector<2x16x1xi32>
    %c0_2 = arith.constant 0 : index
    %c0_3 = arith.constant 0 : index
    %c0_4 = arith.constant 0 : index
    %1 = vector.load %arg2[%c0_2, %c0_3, %c0_4] : memref<2x16x1xi32, #tpu.memory_space<vmem>>, vector<2x16x1xi32>
    %cst = arith.constant 0.000000e+00 : f32
    %2 = vector.broadcast %cst : f32 to vector<2x16x128xf32>
    %c0_i32 = arith.constant 0 : i32
    %3 = vector.broadcast %c0_i32 : i32 to vector<2x16x1xi32>
    %4 = arith.cmpi eq, %0, %3 : vector<2x16x1xi32>
    %c0_5 = arith.constant 0 : index
    %c0_6 = arith.constant 0 : index
    %5 = vector.load %arg6[%c0_5, %c0_6] : memref<4x128xf32, #tpu.memory_space<vmem>>, vector<1x128xf32>
    %cst_7 = arith.constant 0.000000e+00 : f32
    %6 = vector.shape_cast %4 : vector<2x16x1xi1> to vector<2x16x1xi1>
    %7 = vector.broadcast %6 : vector<2x16x1xi1> to vector<2x16x128xi1>
    %8 = vector.shape_cast %5 : vector<1x128xf32> to vector<1x1x128xf32>
    %9 = vector.broadcast %8 : vector<1x1x128xf32> to vector<2x16x128xf32>
    %10 = vector.broadcast %cst_7 : f32 to vector<2x16x128xf32>
    %11 = arith.select %7, %9, %10 : vector<2x16x128xi1>, vector<2x16x128xf32>
    %12 = arith.addf %2, %11 : vector<2x16x128xf32>
    %c1_i32 = arith.constant 1 : i32
    %13 = vector.broadcast %c1_i32 : i32 to vector<2x16x1xi32>
    %14 = arith.cmpi eq, %0, %13 : vector<2x16x1xi32>
    %c1 = arith.constant 1 : index
    %c0_8 = arith.constant 0 : index
    %15 = vector.load %arg6[%c1, %c0_8] : memref<4x128xf32, #tpu.memory_space<vmem>>, vector<1x128xf32>
    %cst_9 = arith.constant 0.000000e+00 : f32
    %16 = vector.shape_cast %14 : vector<2x16x1xi1> to vector<2x16x1xi1>
    %17 = vector.broadcast %16 : vector<2x16x1xi1> to vector<2x16x128xi1>
    %18 = vector.shape_cast %15 : vector<1x128xf32> to vector<1x1x128xf32>
    %19 = vector.broadcast %18 : vector<1x1x128xf32> to vector<2x16x128xf32>
    %20 = vector.broadcast %cst_9 : f32 to vector<2x16x128xf32>
    %21 = arith.select %17, %19, %20 : vector<2x16x128xi1>, vector<2x16x128xf32>
    %22 = arith.addf %12, %21 : vector<2x16x128xf32>
    %c2_i32 = arith.constant 2 : i32
    %23 = vector.broadcast %c2_i32 : i32 to vector<2x16x1xi32>
    %24 = arith.cmpi eq, %0, %23 : vector<2x16x1xi32>
    %c2 = arith.constant 2 : index
    %c0_10 = arith.constant 0 : index
    %25 = vector.load %arg6[%c2, %c0_10] : memref<4x128xf32, #tpu.memory_space<vmem>>, vector<1x128xf32>
    %cst_11 = arith.constant 0.000000e+00 : f32
    %26 = vector.shape_cast %24 : vector<2x16x1xi1> to vector<2x16x1xi1>
    %27 = vector.broadcast %26 : vector<2x16x1xi1> to vector<2x16x128xi1>
    %28 = vector.shape_cast %25 : vector<1x128xf32> to vector<1x1x128xf32>
    %29 = vector.broadcast %28 : vector<1x1x128xf32> to vector<2x16x128xf32>
    %30 = vector.broadcast %cst_11 : f32 to vector<2x16x128xf32>
    %31 = arith.select %27, %29, %30 : vector<2x16x128xi1>, vector<2x16x128xf32>
    %32 = arith.addf %22, %31 : vector<2x16x128xf32>
    %c3_i32 = arith.constant 3 : i32
    %33 = vector.broadcast %c3_i32 : i32 to vector<2x16x1xi32>
    %34 = arith.cmpi eq, %0, %33 : vector<2x16x1xi32>
    %c3 = arith.constant 3 : index
    %c0_12 = arith.constant 0 : index
    %35 = vector.load %arg6[%c3, %c0_12] : memref<4x128xf32, #tpu.memory_space<vmem>>, vector<1x128xf32>
    %cst_13 = arith.constant 0.000000e+00 : f32
    %36 = vector.shape_cast %34 : vector<2x16x1xi1> to vector<2x16x1xi1>
    %37 = vector.broadcast %36 : vector<2x16x1xi1> to vector<2x16x128xi1>
    %38 = vector.shape_cast %35 : vector<1x128xf32> to vector<1x1x128xf32>
    %39 = vector.broadcast %38 : vector<1x1x128xf32> to vector<2x16x128xf32>
    %40 = vector.broadcast %cst_13 : f32 to vector<2x16x128xf32>
    %41 = arith.select %37, %39, %40 : vector<2x16x128xi1>, vector<2x16x128xf32>
    %42 = arith.addf %32, %41 : vector<2x16x128xf32>
    %c0_i32_14 = arith.constant 0 : i32
    %43 = vector.broadcast %c0_i32_14 : i32 to vector<2x16x1xi32>
    %44 = arith.cmpi eq, %1, %43 : vector<2x16x1xi32>
    %c0_15 = arith.constant 0 : index
    %c0_16 = arith.constant 0 : index
    %45 = vector.load %arg7[%c0_15, %c0_16] : memref<2x128xf32, #tpu.memory_space<vmem>>, vector<1x128xf32>
    %cst_17 = arith.constant 0.000000e+00 : f32
    %46 = vector.shape_cast %44 : vector<2x16x1xi1> to vector<2x16x1xi1>
    %47 = vector.broadcast %46 : vector<2x16x1xi1> to vector<2x16x128xi1>
    %48 = vector.shape_cast %45 : vector<1x128xf32> to vector<1x1x128xf32>
    %49 = vector.broadcast %48 : vector<1x1x128xf32> to vector<2x16x128xf32>
    %50 = vector.broadcast %cst_17 : f32 to vector<2x16x128xf32>
    %51 = arith.select %47, %49, %50 : vector<2x16x128xi1>, vector<2x16x128xf32>
    %52 = arith.addf %42, %51 : vector<2x16x128xf32>
    %c1_i32_18 = arith.constant 1 : i32
    %53 = vector.broadcast %c1_i32_18 : i32 to vector<2x16x1xi32>
    %54 = arith.cmpi eq, %1, %53 : vector<2x16x1xi32>
    %c1_19 = arith.constant 1 : index
    %c0_20 = arith.constant 0 : index
    %55 = vector.load %arg7[%c1_19, %c0_20] : memref<2x128xf32, #tpu.memory_space<vmem>>, vector<1x128xf32>
    %cst_21 = arith.constant 0.000000e+00 : f32
    %56 = vector.shape_cast %54 : vector<2x16x1xi1> to vector<2x16x1xi1>
    %57 = vector.broadcast %56 : vector<2x16x1xi1> to vector<2x16x128xi1>
    %58 = vector.shape_cast %55 : vector<1x128xf32> to vector<1x1x128xf32>
    %59 = vector.broadcast %58 : vector<1x1x128xf32> to vector<2x16x128xf32>
    %60 = vector.broadcast %cst_21 : f32 to vector<2x16x128xf32>
    %61 = arith.select %57, %59, %60 : vector<2x16x128xi1>, vector<2x16x128xf32>
    %62 = arith.addf %52, %61 : vector<2x16x128xf32>
    %c0_22 = arith.constant 0 : index
    %c0_23 = arith.constant 0 : index
    %63 = vector.load %arg5[%c0_22, %c0_23] : memref<16x128xf32, #tpu.memory_space<vmem>>, vector<16x128xf32>
    %64 = vector.shape_cast %63 : vector<16x128xf32> to vector<1x16x128xf32>
    %65 = vector.broadcast %64 : vector<1x16x128xf32> to vector<2x16x128xf32>
    %66 = arith.addf %62, %65 : vector<2x16x128xf32>
    %c0_24 = arith.constant 0 : index
    %c0_25 = arith.constant 0 : index
    %67 = vector.load %arg8[%c0_24, %c0_25] : memref<1x128xf32, #tpu.memory_space<vmem>>, vector<1x128xf32>
    %c0_26 = arith.constant 0 : index
    %c0_27 = arith.constant 0 : index
    %68 = vector.load %arg9[%c0_26, %c0_27] : memref<1x128xf32, #tpu.memory_space<vmem>>, vector<1x128xf32>
    %cst_28 = arith.constant dense<0.000000e+00> : vector<2x16xf32>
    %69 = vector.multi_reduction <add>, %66, %cst_28 [2] : vector<2x16x128xf32> to vector<2x16xf32>
    %70 = vector.shape_cast %69 : vector<2x16xf32> to vector<2x16x1xf32>
    %cst_29 = arith.constant 1.280000e+02 : f32
    %71 = vector.broadcast %cst_29 : f32 to vector<2x16x1xf32>
    %72 = arith.divf %70, %71 : vector<2x16x1xf32>
    %73 = vector.broadcast %72 : vector<2x16x1xf32> to vector<2x16x128xf32>
    %74 = arith.subf %66, %73 : vector<2x16x128xf32>
    %75 = arith.mulf %74, %74 : vector<2x16x128xf32>
    %cst_30 = arith.constant dense<0.000000e+00> : vector<2x16xf32>
    %76 = vector.multi_reduction <add>, %75, %cst_30 [2] : vector<2x16x128xf32> to vector<2x16xf32>
    %77 = vector.shape_cast %76 : vector<2x16xf32> to vector<2x16x1xf32>
    %cst_31 = arith.constant 1.280000e+02 : f32
    %78 = vector.broadcast %cst_31 : f32 to vector<2x16x1xf32>
    %79 = arith.divf %77, %78 : vector<2x16x1xf32>
    %80 = vector.broadcast %72 : vector<2x16x1xf32> to vector<2x16x128xf32>
    %81 = arith.subf %66, %80 : vector<2x16x128xf32>
    %cst_32 = arith.constant 9.99999974E-6 : f32
    %82 = vector.broadcast %cst_32 : f32 to vector<2x16x1xf32>
    %83 = arith.addf %79, %82 : vector<2x16x1xf32>
    %84 = math.rsqrt %83 : vector<2x16x1xf32>
    %85 = vector.broadcast %84 : vector<2x16x1xf32> to vector<2x16x128xf32>
    %86 = arith.mulf %81, %85 : vector<2x16x128xf32>
    %87 = vector.shape_cast %67 : vector<1x128xf32> to vector<1x1x128xf32>
    %88 = vector.broadcast %87 : vector<1x1x128xf32> to vector<2x16x128xf32>
    %89 = arith.mulf %86, %88 : vector<2x16x128xf32>
    %90 = vector.shape_cast %68 : vector<1x128xf32> to vector<1x1x128xf32>
    %91 = vector.broadcast %90 : vector<1x1x128xf32> to vector<2x16x128xf32>
    %92 = arith.addf %89, %91 : vector<2x16x128xf32>
    %93 = vector.shape_cast %92 : vector<2x16x128xf32> to vector<32x128xf32>
    %c0_33 = arith.constant 0 : index
    %c0_34 = arith.constant 0 : index
    %c0_35 = arith.constant 0 : index
    %94 = vector.load %arg3[%c0_33, %c0_34, %c0_35] : memref<2x1x16xf32, #tpu.memory_space<vmem>>, vector<1x1x16xf32>
    %95 = vector.shape_cast %94 : vector<1x1x16xf32> to vector<1x16xf32>
    %cst_36 = arith.constant 5.000000e-01 : f32
    %96 = vector.broadcast %cst_36 : f32 to vector<1x16xf32>
    %97 = arith.cmpf ogt, %95, %96 : vector<1x16xf32>
    %c1_37 = arith.constant 1 : index
    %c0_38 = arith.constant 0 : index
    %c0_39 = arith.constant 0 : index
    %98 = vector.load %arg3[%c1_37, %c0_38, %c0_39] : memref<2x1x16xf32, #tpu.memory_space<vmem>>, vector<1x1x16xf32>
    %99 = vector.shape_cast %98 : vector<1x1x16xf32> to vector<1x16xf32>
    %cst_40 = arith.constant 5.000000e-01 : f32
    %100 = vector.broadcast %cst_40 : f32 to vector<1x16xf32>
    %101 = arith.cmpf ogt, %99, %100 : vector<1x16xf32>
    %102 = arith.truncf %93 : vector<32x128xf32> to vector<32x128xbf16>
    %c0_41 = arith.constant 0 : index
    %c0_42 = arith.constant 0 : index
    %c0_43 = arith.constant 0 : index
    %103 = vector.load %arg10[%c0_41, %c0_42, %c0_43] : memref<2x128x128xbf16, #tpu.memory_space<vmem>>, vector<1x128x128xbf16>
    %104 = vector.shape_cast %103 : vector<1x128x128xbf16> to vector<128x128xbf16>
    %cst_44 = arith.constant dense<0.000000e+00> : vector<32x128xf32>
    %105 = tpu.matmul %102, %104, %cst_44 {dimension_numbers = #tpu.dot_dimension_numbers<[1], [0], [0], [1], [0, 0, 1, 1], [], []>} : vector<32x128xbf16>, vector<128x128xbf16>, vector<32x128xf32> -> vector<32x128xf32>
    %c0_45 = arith.constant 0 : index
    %c0_46 = arith.constant 0 : index
    %c0_47 = arith.constant 0 : index
    %106 = vector.load %arg11[%c0_45, %c0_46, %c0_47] : memref<2x1x128xf32, #tpu.memory_space<vmem>>, vector<1x1x128xf32>
    %107 = vector.shape_cast %106 : vector<1x1x128xf32> to vector<1x128xf32>
    %108 = vector.broadcast %107 : vector<1x128xf32> to vector<32x128xf32>
    %109 = arith.addf %105, %108 : vector<32x128xf32>
    %c0_48 = arith.constant 0 : index
    %c0_49 = arith.constant 0 : index
    %c0_50 = arith.constant 0 : index
    %110 = vector.load %arg12[%c0_48, %c0_49, %c0_50] : memref<2x128x128xbf16, #tpu.memory_space<vmem>>, vector<1x128x128xbf16>
    %111 = vector.shape_cast %110 : vector<1x128x128xbf16> to vector<128x128xbf16>
    %cst_51 = arith.constant dense<0.000000e+00> : vector<32x128xf32>
    %112 = tpu.matmul %102, %111, %cst_51 {dimension_numbers = #tpu.dot_dimension_numbers<[1], [0], [0], [1], [0, 0, 1, 1], [], []>} : vector<32x128xbf16>, vector<128x128xbf16>, vector<32x128xf32> -> vector<32x128xf32>
    %c0_52 = arith.constant 0 : index
    %c0_53 = arith.constant 0 : index
    %c0_54 = arith.constant 0 : index
    %113 = vector.load %arg13[%c0_52, %c0_53, %c0_54] : memref<2x1x128xf32, #tpu.memory_space<vmem>>, vector<1x1x128xf32>
    %114 = vector.shape_cast %113 : vector<1x1x128xf32> to vector<1x128xf32>
    %115 = vector.broadcast %114 : vector<1x128xf32> to vector<32x128xf32>
    %116 = arith.addf %112, %115 : vector<32x128xf32>
    %c0_55 = arith.constant 0 : index
    %c0_56 = arith.constant 0 : index
    %c0_57 = arith.constant 0 : index
    %117 = vector.load %arg14[%c0_55, %c0_56, %c0_57] : memref<2x128x128xbf16, #tpu.memory_space<vmem>>, vector<1x128x128xbf16>
    %118 = vector.shape_cast %117 : vector<1x128x128xbf16> to vector<128x128xbf16>
    %cst_58 = arith.constant dense<0.000000e+00> : vector<32x128xf32>
    %119 = tpu.matmul %102, %118, %cst_58 {dimension_numbers = #tpu.dot_dimension_numbers<[1], [0], [0], [1], [0, 0, 1, 1], [], []>} : vector<32x128xbf16>, vector<128x128xbf16>, vector<32x128xf32> -> vector<32x128xf32>
    %c0_59 = arith.constant 0 : index
    %c0_60 = arith.constant 0 : index
    %c0_61 = arith.constant 0 : index
    %120 = vector.load %arg15[%c0_59, %c0_60, %c0_61] : memref<2x1x128xf32, #tpu.memory_space<vmem>>, vector<1x1x128xf32>
    %121 = vector.shape_cast %120 : vector<1x1x128xf32> to vector<1x128xf32>
    %122 = vector.broadcast %121 : vector<1x128xf32> to vector<32x128xf32>
    %123 = arith.addf %119, %122 : vector<32x128xf32>
    %cst_62 = arith.constant 0.176776692 : f32
    %124 = vector.broadcast %cst_62 : f32 to vector<32x128xf32>
    %125 = arith.mulf %109, %124 : vector<32x128xf32>
    %126 = arith.truncf %125 : vector<32x128xf32> to vector<32x128xbf16>
    %127 = arith.truncf %116 : vector<32x128xf32> to vector<32x128xbf16>
    %128 = arith.truncf %123 : vector<32x128xf32> to vector<32x128xbf16>
    %129 = vector.extract_strided_slice %126 {offsets = [0, 0], sizes = [16, 128], strides = [1, 1]} : vector<32x128xbf16> to vector<16x128xbf16>
    %130 = vector.shape_cast %129 : vector<16x128xbf16> to vector<16x4x32xbf16>
    %131 = tpu.transpose %130, [1, 0, 2] : vector<16x4x32xbf16> -> vector<4x16x32xbf16>
    %132 = vector.extract_strided_slice %127 {offsets = [0, 0], sizes = [16, 128], strides = [1, 1]} : vector<32x128xbf16> to vector<16x128xbf16>
    %133 = vector.shape_cast %132 : vector<16x128xbf16> to vector<16x4x32xbf16>
    %134 = tpu.transpose %133, [1, 0, 2] : vector<16x4x32xbf16> -> vector<4x16x32xbf16>
    %135 = vector.extract_strided_slice %128 {offsets = [0, 0], sizes = [16, 128], strides = [1, 1]} : vector<32x128xbf16> to vector<16x128xbf16>
    %136 = vector.shape_cast %135 : vector<16x128xbf16> to vector<16x4x32xbf16>
    %137 = tpu.transpose %136, [1, 0, 2] : vector<16x4x32xbf16> -> vector<4x16x32xbf16>
    "tpu.trace_start"() <{level = 10 : i32, message = "hqd,hkd->hqk"}> : () -> ()
    %cst_63 = arith.constant dense<0.000000e+00> : vector<4x16x16xf32>
    %138 = tpu.matmul %131, %134, %cst_63 {dimension_numbers = #tpu.dot_dimension_numbers<[2], [2], [1], [1], [0, 0, 0, 1, 1, 1], [0], [0]>} : vector<4x16x32xbf16>, vector<4x16x32xbf16>, vector<4x16x16xf32> -> vector<4x16x16xf32>
    "tpu.trace_stop"() : () -> ()
    %139 = vector.shape_cast %97 : vector<1x16xi1> to vector<1x1x16xi1>
    %cst_64 = arith.constant -1.000000e+09 : f32
    %140 = vector.shape_cast %139 : vector<1x1x16xi1> to vector<1x1x16xi1>
    %141 = vector.broadcast %140 : vector<1x1x16xi1> to vector<4x16x16xi1>
    %142 = vector.broadcast %cst_64 : f32 to vector<4x16x16xf32>
    %143 = arith.select %141, %142, %138 : vector<4x16x16xi1>, vector<4x16x16xf32>
    %cst_65 = arith.constant dense<0xFF800000> : vector<4x16xf32>
    %144 = vector.multi_reduction <maximumf>, %143, %cst_65 [2] : vector<4x16x16xf32> to vector<4x16xf32>
    %145 = vector.shape_cast %144 : vector<4x16xf32> to vector<4x16x1xf32>
    %146 = vector.broadcast %145 : vector<4x16x1xf32> to vector<4x16x16xf32>
    %147 = arith.subf %143, %146 : vector<4x16x16xf32>
    %148 = math.exp %147 : vector<4x16x16xf32>
    %cst_66 = arith.constant dense<0.000000e+00> : vector<4x16xf32>
    %149 = vector.multi_reduction <add>, %148, %cst_66 [2] : vector<4x16x16xf32> to vector<4x16xf32>
    %150 = vector.shape_cast %149 : vector<4x16xf32> to vector<4x16x1xf32>
    %151 = tpu.reciprocal %150 {approx = true} : vector<4x16x1xf32> -> vector<4x16x1xf32>
    %152 = vector.broadcast %151 : vector<4x16x1xf32> to vector<4x16x16xf32>
    %153 = arith.mulf %148, %152 : vector<4x16x16xf32>
    %154 = arith.truncf %153 : vector<4x16x16xf32> to vector<4x16x16xbf16>
    "tpu.trace_start"() <{level = 10 : i32, message = "hqk,hkd->hqd"}> : () -> ()
    %cst_67 = arith.constant dense<0.000000e+00> : vector<4x16x32xf32>
    %155 = tpu.matmul %154, %137, %cst_67 {dimension_numbers = #tpu.dot_dimension_numbers<[2], [1], [1], [2], [0, 0, 0, 1, 1, 2], [0], [0]>} : vector<4x16x16xbf16>, vector<4x16x32xbf16>, vector<4x16x32xf32> -> vector<4x16x32xf32>
    "tpu.trace_stop"() : () -> ()
    %156 = arith.truncf %155 : vector<4x16x32xf32> to vector<4x16x32xbf16>
    %c0_68 = arith.constant 0 : index
    %c0_69 = arith.constant 0 : index
    %c0_70 = arith.constant 0 : index
    %c0_71 = arith.constant 0 : index
    %157 = vector.load %arg16[%c0_68, %c0_69, %c0_70, %c0_71] : memref<2x4x32x128xbf16, #tpu.memory_space<vmem>>, vector<1x4x32x128xbf16>
    %158 = vector.shape_cast %157 : vector<1x4x32x128xbf16> to vector<4x32x128xbf16>
    "tpu.trace_start"() <{level = 10 : i32, message = "hqd,hde->hqe"}> : () -> ()
    %cst_72 = arith.constant dense<0.000000e+00> : vector<4x16x128xf32>
    %159 = tpu.matmul %156, %158, %cst_72 {dimension_numbers = #tpu.dot_dimension_numbers<[2], [1], [1], [2], [0, 0, 0, 1, 1, 2], [0], [0]>} : vector<4x16x32xbf16>, vector<4x32x128xbf16>, vector<4x16x128xf32> -> vector<4x16x128xf32>
    "tpu.trace_stop"() : () -> ()
    %160 = vector.extract_strided_slice %159 {offsets = [0, 0, 0], sizes = [1, 16, 128], strides = [1, 1, 1]} : vector<4x16x128xf32> to vector<1x16x128xf32>
    %161 = vector.shape_cast %160 : vector<1x16x128xf32> to vector<16x128xf32>
    %162 = vector.extract_strided_slice %159 {offsets = [1, 0, 0], sizes = [1, 16, 128], strides = [1, 1, 1]} : vector<4x16x128xf32> to vector<1x16x128xf32>
    %163 = vector.shape_cast %162 : vector<1x16x128xf32> to vector<16x128xf32>
    %164 = arith.addf %161, %163 : vector<16x128xf32>
    %165 = vector.extract_strided_slice %159 {offsets = [2, 0, 0], sizes = [1, 16, 128], strides = [1, 1, 1]} : vector<4x16x128xf32> to vector<1x16x128xf32>
    %166 = vector.shape_cast %165 : vector<1x16x128xf32> to vector<16x128xf32>
    %167 = arith.addf %164, %166 : vector<16x128xf32>
    %168 = vector.extract_strided_slice %159 {offsets = [3, 0, 0], sizes = [1, 16, 128], strides = [1, 1, 1]} : vector<4x16x128xf32> to vector<1x16x128xf32>
    %169 = vector.shape_cast %168 : vector<1x16x128xf32> to vector<16x128xf32>
    %170 = arith.addf %167, %169 : vector<16x128xf32>
    %171 = vector.extract_strided_slice %126 {offsets = [16, 0], sizes = [16, 128], strides = [1, 1]} : vector<32x128xbf16> to vector<16x128xbf16>
    %172 = vector.shape_cast %171 : vector<16x128xbf16> to vector<16x4x32xbf16>
    %173 = tpu.transpose %172, [1, 0, 2] : vector<16x4x32xbf16> -> vector<4x16x32xbf16>
    %174 = vector.extract_strided_slice %127 {offsets = [16, 0], sizes = [16, 128], strides = [1, 1]} : vector<32x128xbf16> to vector<16x128xbf16>
    %175 = vector.shape_cast %174 : vector<16x128xbf16> to vector<16x4x32xbf16>
    %176 = tpu.transpose %175, [1, 0, 2] : vector<16x4x32xbf16> -> vector<4x16x32xbf16>
    %177 = vector.extract_strided_slice %128 {offsets = [16, 0], sizes = [16, 128], strides = [1, 1]} : vector<32x128xbf16> to vector<16x128xbf16>
    %178 = vector.shape_cast %177 : vector<16x128xbf16> to vector<16x4x32xbf16>
    %179 = tpu.transpose %178, [1, 0, 2] : vector<16x4x32xbf16> -> vector<4x16x32xbf16>
    "tpu.trace_start"() <{level = 10 : i32, message = "hqd,hkd->hqk"}> : () -> ()
    %cst_73 = arith.constant dense<0.000000e+00> : vector<4x16x16xf32>
    %180 = tpu.matmul %173, %176, %cst_73 {dimension_numbers = #tpu.dot_dimension_numbers<[2], [2], [1], [1], [0, 0, 0, 1, 1, 1], [0], [0]>} : vector<4x16x32xbf16>, vector<4x16x32xbf16>, vector<4x16x16xf32> -> vector<4x16x16xf32>
    "tpu.trace_stop"() : () -> ()
    %181 = vector.shape_cast %101 : vector<1x16xi1> to vector<1x1x16xi1>
    %cst_74 = arith.constant -1.000000e+09 : f32
    %182 = vector.shape_cast %181 : vector<1x1x16xi1> to vector<1x1x16xi1>
    %183 = vector.broadcast %182 : vector<1x1x16xi1> to vector<4x16x16xi1>
    %184 = vector.broadcast %cst_74 : f32 to vector<4x16x16xf32>
    %185 = arith.select %183, %184, %180 : vector<4x16x16xi1>, vector<4x16x16xf32>
    %cst_75 = arith.constant dense<0xFF800000> : vector<4x16xf32>
    %186 = vector.multi_reduction <maximumf>, %185, %cst_75 [2] : vector<4x16x16xf32> to vector<4x16xf32>
    %187 = vector.shape_cast %186 : vector<4x16xf32> to vector<4x16x1xf32>
    %188 = vector.broadcast %187 : vector<4x16x1xf32> to vector<4x16x16xf32>
    %189 = arith.subf %185, %188 : vector<4x16x16xf32>
    %190 = math.exp %189 : vector<4x16x16xf32>
    %cst_76 = arith.constant dense<0.000000e+00> : vector<4x16xf32>
    %191 = vector.multi_reduction <add>, %190, %cst_76 [2] : vector<4x16x16xf32> to vector<4x16xf32>
    %192 = vector.shape_cast %191 : vector<4x16xf32> to vector<4x16x1xf32>
    %193 = tpu.reciprocal %192 {approx = true} : vector<4x16x1xf32> -> vector<4x16x1xf32>
    %194 = vector.broadcast %193 : vector<4x16x1xf32> to vector<4x16x16xf32>
    %195 = arith.mulf %190, %194 : vector<4x16x16xf32>
    %196 = arith.truncf %195 : vector<4x16x16xf32> to vector<4x16x16xbf16>
    "tpu.trace_start"() <{level = 10 : i32, message = "hqk,hkd->hqd"}> : () -> ()
    %cst_77 = arith.constant dense<0.000000e+00> : vector<4x16x32xf32>
    %197 = tpu.matmul %196, %179, %cst_77 {dimension_numbers = #tpu.dot_dimension_numbers<[2], [1], [1], [2], [0, 0, 0, 1, 1, 2], [0], [0]>} : vector<4x16x16xbf16>, vector<4x16x32xbf16>, vector<4x16x32xf32> -> vector<4x16x32xf32>
    "tpu.trace_stop"() : () -> ()
    %198 = arith.truncf %197 : vector<4x16x32xf32> to vector<4x16x32xbf16>
    %c0_78 = arith.constant 0 : index
    %c0_79 = arith.constant 0 : index
    %c0_80 = arith.constant 0 : index
    %c0_81 = arith.constant 0 : index
    %199 = vector.load %arg16[%c0_78, %c0_79, %c0_80, %c0_81] : memref<2x4x32x128xbf16, #tpu.memory_space<vmem>>, vector<1x4x32x128xbf16>
    %200 = vector.shape_cast %199 : vector<1x4x32x128xbf16> to vector<4x32x128xbf16>
    "tpu.trace_start"() <{level = 10 : i32, message = "hqd,hde->hqe"}> : () -> ()
    %cst_82 = arith.constant dense<0.000000e+00> : vector<4x16x128xf32>
    %201 = tpu.matmul %198, %200, %cst_82 {dimension_numbers = #tpu.dot_dimension_numbers<[2], [1], [1], [2], [0, 0, 0, 1, 1, 2], [0], [0]>} : vector<4x16x32xbf16>, vector<4x32x128xbf16>, vector<4x16x128xf32> -> vector<4x16x128xf32>
    "tpu.trace_stop"() : () -> ()
    %202 = vector.extract_strided_slice %201 {offsets = [0, 0, 0], sizes = [1, 16, 128], strides = [1, 1, 1]} : vector<4x16x128xf32> to vector<1x16x128xf32>
    %203 = vector.shape_cast %202 : vector<1x16x128xf32> to vector<16x128xf32>
    %204 = vector.extract_strided_slice %201 {offsets = [1, 0, 0], sizes = [1, 16, 128], strides = [1, 1, 1]} : vector<4x16x128xf32> to vector<1x16x128xf32>
    %205 = vector.shape_cast %204 : vector<1x16x128xf32> to vector<16x128xf32>
    %206 = arith.addf %203, %205 : vector<16x128xf32>
    %207 = vector.extract_strided_slice %201 {offsets = [2, 0, 0], sizes = [1, 16, 128], strides = [1, 1, 1]} : vector<4x16x128xf32> to vector<1x16x128xf32>
    %208 = vector.shape_cast %207 : vector<1x16x128xf32> to vector<16x128xf32>
    %209 = arith.addf %206, %208 : vector<16x128xf32>
    %210 = vector.extract_strided_slice %201 {offsets = [3, 0, 0], sizes = [1, 16, 128], strides = [1, 1, 1]} : vector<4x16x128xf32> to vector<1x16x128xf32>
    %211 = vector.shape_cast %210 : vector<1x16x128xf32> to vector<16x128xf32>
    %212 = arith.addf %209, %211 : vector<16x128xf32>
    %213 = tpu.concatenate %170, %212 in 0 : vector<16x128xf32>, vector<16x128xf32> -> vector<32x128xf32>
    %c0_83 = arith.constant 0 : index
    %c0_84 = arith.constant 0 : index
    %c0_85 = arith.constant 0 : index
    %214 = vector.load %arg17[%c0_83, %c0_84, %c0_85] : memref<2x1x128xf32, #tpu.memory_space<vmem>>, vector<1x1x128xf32>
    %215 = vector.shape_cast %214 : vector<1x1x128xf32> to vector<1x128xf32>
    %216 = vector.broadcast %215 : vector<1x128xf32> to vector<32x128xf32>
    %217 = arith.addf %213, %216 : vector<32x128xf32>
    %218 = arith.addf %217, %93 : vector<32x128xf32>
    %c0_86 = arith.constant 0 : index
    %c0_87 = arith.constant 0 : index
    %c0_88 = arith.constant 0 : index
    %219 = vector.load %arg18[%c0_86, %c0_87, %c0_88] : memref<2x1x128xf32, #tpu.memory_space<vmem>>, vector<1x1x128xf32>
    %220 = vector.shape_cast %219 : vector<1x1x128xf32> to vector<1x128xf32>
    %c0_89 = arith.constant 0 : index
    %c0_90 = arith.constant 0 : index
    %c0_91 = arith.constant 0 : index
    %221 = vector.load %arg19[%c0_89, %c0_90, %c0_91] : memref<2x1x128xf32, #tpu.memory_space<vmem>>, vector<1x1x128xf32>
    %222 = vector.shape_cast %221 : vector<1x1x128xf32> to vector<1x128xf32>
    %cst_92 = arith.constant dense<0.000000e+00> : vector<32xf32>
    %223 = vector.multi_reduction <add>, %218, %cst_92 [1] : vector<32x128xf32> to vector<32xf32>
    %224 = vector.shape_cast %223 : vector<32xf32> to vector<32x1xf32>
    %cst_93 = arith.constant 1.280000e+02 : f32
    %225 = vector.broadcast %cst_93 : f32 to vector<32x1xf32>
    %226 = arith.divf %224, %225 : vector<32x1xf32>
    %227 = vector.broadcast %226 : vector<32x1xf32> to vector<32x128xf32>
    %228 = arith.subf %218, %227 : vector<32x128xf32>
    %229 = arith.mulf %228, %228 : vector<32x128xf32>
    %cst_94 = arith.constant dense<0.000000e+00> : vector<32xf32>
    %230 = vector.multi_reduction <add>, %229, %cst_94 [1] : vector<32x128xf32> to vector<32xf32>
    %231 = vector.shape_cast %230 : vector<32xf32> to vector<32x1xf32>
    %cst_95 = arith.constant 1.280000e+02 : f32
    %232 = vector.broadcast %cst_95 : f32 to vector<32x1xf32>
    %233 = arith.divf %231, %232 : vector<32x1xf32>
    %234 = vector.broadcast %226 : vector<32x1xf32> to vector<32x128xf32>
    %235 = arith.subf %218, %234 : vector<32x128xf32>
    %cst_96 = arith.constant 9.99999974E-6 : f32
    %236 = vector.broadcast %cst_96 : f32 to vector<32x1xf32>
    %237 = arith.addf %233, %236 : vector<32x1xf32>
    %238 = math.rsqrt %237 : vector<32x1xf32>
    %239 = vector.broadcast %238 : vector<32x1xf32> to vector<32x128xf32>
    %240 = arith.mulf %235, %239 : vector<32x128xf32>
    %241 = vector.broadcast %220 : vector<1x128xf32> to vector<32x128xf32>
    %242 = arith.mulf %240, %241 : vector<32x128xf32>
    %243 = vector.broadcast %222 : vector<1x128xf32> to vector<32x128xf32>
    %244 = arith.addf %242, %243 : vector<32x128xf32>
    %245 = arith.truncf %244 : vector<32x128xf32> to vector<32x128xbf16>
    %c0_97 = arith.constant 0 : index
    %c0_98 = arith.constant 0 : index
    %c0_99 = arith.constant 0 : index
    %246 = vector.load %arg20[%c0_97, %c0_98, %c0_99] : memref<2x128x256xbf16, #tpu.memory_space<vmem>>, vector<1x128x256xbf16>
    %247 = vector.shape_cast %246 : vector<1x128x256xbf16> to vector<128x256xbf16>
    %cst_100 = arith.constant dense<0.000000e+00> : vector<32x256xf32>
    %248 = tpu.matmul %245, %247, %cst_100 {dimension_numbers = #tpu.dot_dimension_numbers<[1], [0], [0], [1], [0, 0, 1, 1], [], []>} : vector<32x128xbf16>, vector<128x256xbf16>, vector<32x256xf32> -> vector<32x256xf32>
    %c0_101 = arith.constant 0 : index
    %c0_102 = arith.constant 0 : index
    %c0_103 = arith.constant 0 : index
    %249 = vector.load %arg21[%c0_101, %c0_102, %c0_103] : memref<2x1x256xf32, #tpu.memory_space<vmem>>, vector<1x1x256xf32>
    %250 = vector.shape_cast %249 : vector<1x1x256xf32> to vector<1x256xf32>
    %251 = vector.broadcast %250 : vector<1x256xf32> to vector<32x256xf32>
    %252 = arith.addf %248, %251 : vector<32x256xf32>
    %cst_104 = arith.constant 5.000000e-01 : f32
    %253 = vector.broadcast %cst_104 : f32 to vector<32x256xf32>
    %254 = arith.mulf %252, %253 : vector<32x256xf32>
    %cst_105 = arith.constant 1.41421354 : f32
    %255 = vector.broadcast %cst_105 : f32 to vector<32x256xf32>
    %256 = arith.divf %252, %255 : vector<32x256xf32>
    %257 = math.erf %256 : vector<32x256xf32>
    %cst_106 = arith.constant 1.000000e+00 : f32
    %258 = vector.broadcast %cst_106 : f32 to vector<32x256xf32>
    %259 = arith.addf %258, %257 : vector<32x256xf32>
    %260 = arith.mulf %254, %259 : vector<32x256xf32>
    %261 = arith.truncf %260 : vector<32x256xf32> to vector<32x256xbf16>
    %c0_107 = arith.constant 0 : index
    %c0_108 = arith.constant 0 : index
    %c0_109 = arith.constant 0 : index
    %262 = vector.load %arg22[%c0_107, %c0_108, %c0_109] : memref<2x256x128xbf16, #tpu.memory_space<vmem>>, vector<1x256x128xbf16>
    %263 = vector.shape_cast %262 : vector<1x256x128xbf16> to vector<256x128xbf16>
    %cst_110 = arith.constant dense<0.000000e+00> : vector<32x128xf32>
    %264 = tpu.matmul %261, %263, %cst_110 {dimension_numbers = #tpu.dot_dimension_numbers<[1], [0], [0], [1], [0, 0, 1, 1], [], []>} : vector<32x256xbf16>, vector<256x128xbf16>, vector<32x128xf32> -> vector<32x128xf32>
    %c0_111 = arith.constant 0 : index
    %c0_112 = arith.constant 0 : index
    %c0_113 = arith.constant 0 : index
    %265 = vector.load %arg23[%c0_111, %c0_112, %c0_113] : memref<2x1x128xf32, #tpu.memory_space<vmem>>, vector<1x1x128xf32>
    %266 = vector.shape_cast %265 : vector<1x1x128xf32> to vector<1x128xf32>
    %267 = vector.broadcast %266 : vector<1x128xf32> to vector<32x128xf32>
    %268 = arith.addf %264, %267 : vector<32x128xf32>
    %269 = arith.truncf %268 : vector<32x128xf32> to vector<32x128xbf16>
    %c1_114 = arith.constant 1 : index
    %c0_115 = arith.constant 0 : index
    %c0_116 = arith.constant 0 : index
    %270 = vector.load %arg10[%c1_114, %c0_115, %c0_116] : memref<2x128x128xbf16, #tpu.memory_space<vmem>>, vector<1x128x128xbf16>
    %271 = vector.shape_cast %270 : vector<1x128x128xbf16> to vector<128x128xbf16>
    %cst_117 = arith.constant dense<0.000000e+00> : vector<32x128xf32>
    %272 = tpu.matmul %269, %271, %cst_117 {dimension_numbers = #tpu.dot_dimension_numbers<[1], [0], [0], [1], [0, 0, 1, 1], [], []>} : vector<32x128xbf16>, vector<128x128xbf16>, vector<32x128xf32> -> vector<32x128xf32>
    %c1_118 = arith.constant 1 : index
    %c0_119 = arith.constant 0 : index
    %c0_120 = arith.constant 0 : index
    %273 = vector.load %arg11[%c1_118, %c0_119, %c0_120] : memref<2x1x128xf32, #tpu.memory_space<vmem>>, vector<1x1x128xf32>
    %274 = vector.shape_cast %273 : vector<1x1x128xf32> to vector<1x128xf32>
    %275 = vector.broadcast %274 : vector<1x128xf32> to vector<32x128xf32>
    %276 = arith.addf %272, %275 : vector<32x128xf32>
    %c1_121 = arith.constant 1 : index
    %c0_122 = arith.constant 0 : index
    %c0_123 = arith.constant 0 : index
    %277 = vector.load %arg12[%c1_121, %c0_122, %c0_123] : memref<2x128x128xbf16, #tpu.memory_space<vmem>>, vector<1x128x128xbf16>
    %278 = vector.shape_cast %277 : vector<1x128x128xbf16> to vector<128x128xbf16>
    %cst_124 = arith.constant dense<0.000000e+00> : vector<32x128xf32>
    %279 = tpu.matmul %269, %278, %cst_124 {dimension_numbers = #tpu.dot_dimension_numbers<[1], [0], [0], [1], [0, 0, 1, 1], [], []>} : vector<32x128xbf16>, vector<128x128xbf16>, vector<32x128xf32> -> vector<32x128xf32>
    %c1_125 = arith.constant 1 : index
    %c0_126 = arith.constant 0 : index
    %c0_127 = arith.constant 0 : index
    %280 = vector.load %arg13[%c1_125, %c0_126, %c0_127] : memref<2x1x128xf32, #tpu.memory_space<vmem>>, vector<1x1x128xf32>
    %281 = vector.shape_cast %280 : vector<1x1x128xf32> to vector<1x128xf32>
    %282 = vector.broadcast %281 : vector<1x128xf32> to vector<32x128xf32>
    %283 = arith.addf %279, %282 : vector<32x128xf32>
    %c1_128 = arith.constant 1 : index
    %c0_129 = arith.constant 0 : index
    %c0_130 = arith.constant 0 : index
    %284 = vector.load %arg14[%c1_128, %c0_129, %c0_130] : memref<2x128x128xbf16, #tpu.memory_space<vmem>>, vector<1x128x128xbf16>
    %285 = vector.shape_cast %284 : vector<1x128x128xbf16> to vector<128x128xbf16>
    %cst_131 = arith.constant dense<0.000000e+00> : vector<32x128xf32>
    %286 = tpu.matmul %269, %285, %cst_131 {dimension_numbers = #tpu.dot_dimension_numbers<[1], [0], [0], [1], [0, 0, 1, 1], [], []>} : vector<32x128xbf16>, vector<128x128xbf16>, vector<32x128xf32> -> vector<32x128xf32>
    %c1_132 = arith.constant 1 : index
    %c0_133 = arith.constant 0 : index
    %c0_134 = arith.constant 0 : index
    %287 = vector.load %arg15[%c1_132, %c0_133, %c0_134] : memref<2x1x128xf32, #tpu.memory_space<vmem>>, vector<1x1x128xf32>
    %288 = vector.shape_cast %287 : vector<1x1x128xf32> to vector<1x128xf32>
    %289 = vector.broadcast %288 : vector<1x128xf32> to vector<32x128xf32>
    %290 = arith.addf %286, %289 : vector<32x128xf32>
    %cst_135 = arith.constant 0.176776692 : f32
    %291 = vector.broadcast %cst_135 : f32 to vector<32x128xf32>
    %292 = arith.mulf %276, %291 : vector<32x128xf32>
    %293 = arith.truncf %292 : vector<32x128xf32> to vector<32x128xbf16>
    %294 = arith.truncf %283 : vector<32x128xf32> to vector<32x128xbf16>
    %295 = arith.truncf %290 : vector<32x128xf32> to vector<32x128xbf16>
    %296 = vector.extract_strided_slice %293 {offsets = [0, 0], sizes = [16, 128], strides = [1, 1]} : vector<32x128xbf16> to vector<16x128xbf16>
    %297 = vector.shape_cast %296 : vector<16x128xbf16> to vector<16x4x32xbf16>
    %298 = tpu.transpose %297, [1, 0, 2] : vector<16x4x32xbf16> -> vector<4x16x32xbf16>
    %299 = vector.extract_strided_slice %294 {offsets = [0, 0], sizes = [16, 128], strides = [1, 1]} : vector<32x128xbf16> to vector<16x128xbf16>
    %300 = vector.shape_cast %299 : vector<16x128xbf16> to vector<16x4x32xbf16>
    %301 = tpu.transpose %300, [1, 0, 2] : vector<16x4x32xbf16> -> vector<4x16x32xbf16>
    %302 = vector.extract_strided_slice %295 {offsets = [0, 0], sizes = [16, 128], strides = [1, 1]} : vector<32x128xbf16> to vector<16x128xbf16>
    %303 = vector.shape_cast %302 : vector<16x128xbf16> to vector<16x4x32xbf16>
    %304 = tpu.transpose %303, [1, 0, 2] : vector<16x4x32xbf16> -> vector<4x16x32xbf16>
    "tpu.trace_start"() <{level = 10 : i32, message = "hqd,hkd->hqk"}> : () -> ()
    %cst_136 = arith.constant dense<0.000000e+00> : vector<4x16x16xf32>
    %305 = tpu.matmul %298, %301, %cst_136 {dimension_numbers = #tpu.dot_dimension_numbers<[2], [2], [1], [1], [0, 0, 0, 1, 1, 1], [0], [0]>} : vector<4x16x32xbf16>, vector<4x16x32xbf16>, vector<4x16x16xf32> -> vector<4x16x16xf32>
    "tpu.trace_stop"() : () -> ()
    %306 = vector.shape_cast %97 : vector<1x16xi1> to vector<1x1x16xi1>
    %cst_137 = arith.constant -1.000000e+09 : f32
    %307 = vector.shape_cast %306 : vector<1x1x16xi1> to vector<1x1x16xi1>
    %308 = vector.broadcast %307 : vector<1x1x16xi1> to vector<4x16x16xi1>
    %309 = vector.broadcast %cst_137 : f32 to vector<4x16x16xf32>
    %310 = arith.select %308, %309, %305 : vector<4x16x16xi1>, vector<4x16x16xf32>
    %cst_138 = arith.constant dense<0xFF800000> : vector<4x16xf32>
    %311 = vector.multi_reduction <maximumf>, %310, %cst_138 [2] : vector<4x16x16xf32> to vector<4x16xf32>
    %312 = vector.shape_cast %311 : vector<4x16xf32> to vector<4x16x1xf32>
    %313 = vector.broadcast %312 : vector<4x16x1xf32> to vector<4x16x16xf32>
    %314 = arith.subf %310, %313 : vector<4x16x16xf32>
    %315 = math.exp %314 : vector<4x16x16xf32>
    %cst_139 = arith.constant dense<0.000000e+00> : vector<4x16xf32>
    %316 = vector.multi_reduction <add>, %315, %cst_139 [2] : vector<4x16x16xf32> to vector<4x16xf32>
    %317 = vector.shape_cast %316 : vector<4x16xf32> to vector<4x16x1xf32>
    %318 = tpu.reciprocal %317 {approx = true} : vector<4x16x1xf32> -> vector<4x16x1xf32>
    %319 = vector.broadcast %318 : vector<4x16x1xf32> to vector<4x16x16xf32>
    %320 = arith.mulf %315, %319 : vector<4x16x16xf32>
    %321 = arith.truncf %320 : vector<4x16x16xf32> to vector<4x16x16xbf16>
    "tpu.trace_start"() <{level = 10 : i32, message = "hqk,hkd->hqd"}> : () -> ()
    %cst_140 = arith.constant dense<0.000000e+00> : vector<4x16x32xf32>
    %322 = tpu.matmul %321, %304, %cst_140 {dimension_numbers = #tpu.dot_dimension_numbers<[2], [1], [1], [2], [0, 0, 0, 1, 1, 2], [0], [0]>} : vector<4x16x16xbf16>, vector<4x16x32xbf16>, vector<4x16x32xf32> -> vector<4x16x32xf32>
    "tpu.trace_stop"() : () -> ()
    %323 = arith.truncf %322 : vector<4x16x32xf32> to vector<4x16x32xbf16>
    %c1_141 = arith.constant 1 : index
    %c0_142 = arith.constant 0 : index
    %c0_143 = arith.constant 0 : index
    %c0_144 = arith.constant 0 : index
    %324 = vector.load %arg16[%c1_141, %c0_142, %c0_143, %c0_144] : memref<2x4x32x128xbf16, #tpu.memory_space<vmem>>, vector<1x4x32x128xbf16>
    %325 = vector.shape_cast %324 : vector<1x4x32x128xbf16> to vector<4x32x128xbf16>
    "tpu.trace_start"() <{level = 10 : i32, message = "hqd,hde->hqe"}> : () -> ()
    %cst_145 = arith.constant dense<0.000000e+00> : vector<4x16x128xf32>
    %326 = tpu.matmul %323, %325, %cst_145 {dimension_numbers = #tpu.dot_dimension_numbers<[2], [1], [1], [2], [0, 0, 0, 1, 1, 2], [0], [0]>} : vector<4x16x32xbf16>, vector<4x32x128xbf16>, vector<4x16x128xf32> -> vector<4x16x128xf32>
    "tpu.trace_stop"() : () -> ()
    %327 = vector.extract_strided_slice %326 {offsets = [0, 0, 0], sizes = [1, 16, 128], strides = [1, 1, 1]} : vector<4x16x128xf32> to vector<1x16x128xf32>
    %328 = vector.shape_cast %327 : vector<1x16x128xf32> to vector<16x128xf32>
    %329 = vector.extract_strided_slice %326 {offsets = [1, 0, 0], sizes = [1, 16, 128], strides = [1, 1, 1]} : vector<4x16x128xf32> to vector<1x16x128xf32>
    %330 = vector.shape_cast %329 : vector<1x16x128xf32> to vector<16x128xf32>
    %331 = arith.addf %328, %330 : vector<16x128xf32>
    %332 = vector.extract_strided_slice %326 {offsets = [2, 0, 0], sizes = [1, 16, 128], strides = [1, 1, 1]} : vector<4x16x128xf32> to vector<1x16x128xf32>
    %333 = vector.shape_cast %332 : vector<1x16x128xf32> to vector<16x128xf32>
    %334 = arith.addf %331, %333 : vector<16x128xf32>
    %335 = vector.extract_strided_slice %326 {offsets = [3, 0, 0], sizes = [1, 16, 128], strides = [1, 1, 1]} : vector<4x16x128xf32> to vector<1x16x128xf32>
    %336 = vector.shape_cast %335 : vector<1x16x128xf32> to vector<16x128xf32>
    %337 = arith.addf %334, %336 : vector<16x128xf32>
    %338 = vector.extract_strided_slice %293 {offsets = [16, 0], sizes = [16, 128], strides = [1, 1]} : vector<32x128xbf16> to vector<16x128xbf16>
    %339 = vector.shape_cast %338 : vector<16x128xbf16> to vector<16x4x32xbf16>
    %340 = tpu.transpose %339, [1, 0, 2] : vector<16x4x32xbf16> -> vector<4x16x32xbf16>
    %341 = vector.extract_strided_slice %294 {offsets = [16, 0], sizes = [16, 128], strides = [1, 1]} : vector<32x128xbf16> to vector<16x128xbf16>
    %342 = vector.shape_cast %341 : vector<16x128xbf16> to vector<16x4x32xbf16>
    %343 = tpu.transpose %342, [1, 0, 2] : vector<16x4x32xbf16> -> vector<4x16x32xbf16>
    %344 = vector.extract_strided_slice %295 {offsets = [16, 0], sizes = [16, 128], strides = [1, 1]} : vector<32x128xbf16> to vector<16x128xbf16>
    %345 = vector.shape_cast %344 : vector<16x128xbf16> to vector<16x4x32xbf16>
    %346 = tpu.transpose %345, [1, 0, 2] : vector<16x4x32xbf16> -> vector<4x16x32xbf16>
    "tpu.trace_start"() <{level = 10 : i32, message = "hqd,hkd->hqk"}> : () -> ()
    %cst_146 = arith.constant dense<0.000000e+00> : vector<4x16x16xf32>
    %347 = tpu.matmul %340, %343, %cst_146 {dimension_numbers = #tpu.dot_dimension_numbers<[2], [2], [1], [1], [0, 0, 0, 1, 1, 1], [0], [0]>} : vector<4x16x32xbf16>, vector<4x16x32xbf16>, vector<4x16x16xf32> -> vector<4x16x16xf32>
    "tpu.trace_stop"() : () -> ()
    %348 = vector.shape_cast %101 : vector<1x16xi1> to vector<1x1x16xi1>
    %cst_147 = arith.constant -1.000000e+09 : f32
    %349 = vector.shape_cast %348 : vector<1x1x16xi1> to vector<1x1x16xi1>
    %350 = vector.broadcast %349 : vector<1x1x16xi1> to vector<4x16x16xi1>
    %351 = vector.broadcast %cst_147 : f32 to vector<4x16x16xf32>
    %352 = arith.select %350, %351, %347 : vector<4x16x16xi1>, vector<4x16x16xf32>
    %cst_148 = arith.constant dense<0xFF800000> : vector<4x16xf32>
    %353 = vector.multi_reduction <maximumf>, %352, %cst_148 [2] : vector<4x16x16xf32> to vector<4x16xf32>
    %354 = vector.shape_cast %353 : vector<4x16xf32> to vector<4x16x1xf32>
    %355 = vector.broadcast %354 : vector<4x16x1xf32> to vector<4x16x16xf32>
    %356 = arith.subf %352, %355 : vector<4x16x16xf32>
    %357 = math.exp %356 : vector<4x16x16xf32>
    %cst_149 = arith.constant dense<0.000000e+00> : vector<4x16xf32>
    %358 = vector.multi_reduction <add>, %357, %cst_149 [2] : vector<4x16x16xf32> to vector<4x16xf32>
    %359 = vector.shape_cast %358 : vector<4x16xf32> to vector<4x16x1xf32>
    %360 = tpu.reciprocal %359 {approx = true} : vector<4x16x1xf32> -> vector<4x16x1xf32>
    %361 = vector.broadcast %360 : vector<4x16x1xf32> to vector<4x16x16xf32>
    %362 = arith.mulf %357, %361 : vector<4x16x16xf32>
    %363 = arith.truncf %362 : vector<4x16x16xf32> to vector<4x16x16xbf16>
    "tpu.trace_start"() <{level = 10 : i32, message = "hqk,hkd->hqd"}> : () -> ()
    %cst_150 = arith.constant dense<0.000000e+00> : vector<4x16x32xf32>
    %364 = tpu.matmul %363, %346, %cst_150 {dimension_numbers = #tpu.dot_dimension_numbers<[2], [1], [1], [2], [0, 0, 0, 1, 1, 2], [0], [0]>} : vector<4x16x16xbf16>, vector<4x16x32xbf16>, vector<4x16x32xf32> -> vector<4x16x32xf32>
    "tpu.trace_stop"() : () -> ()
    %365 = arith.truncf %364 : vector<4x16x32xf32> to vector<4x16x32xbf16>
    %c1_151 = arith.constant 1 : index
    %c0_152 = arith.constant 0 : index
    %c0_153 = arith.constant 0 : index
    %c0_154 = arith.constant 0 : index
    %366 = vector.load %arg16[%c1_151, %c0_152, %c0_153, %c0_154] : memref<2x4x32x128xbf16, #tpu.memory_space<vmem>>, vector<1x4x32x128xbf16>
    %367 = vector.shape_cast %366 : vector<1x4x32x128xbf16> to vector<4x32x128xbf16>
    "tpu.trace_start"() <{level = 10 : i32, message = "hqd,hde->hqe"}> : () -> ()
    %cst_155 = arith.constant dense<0.000000e+00> : vector<4x16x128xf32>
    %368 = tpu.matmul %365, %367, %cst_155 {dimension_numbers = #tpu.dot_dimension_numbers<[2], [1], [1], [2], [0, 0, 0, 1, 1, 2], [0], [0]>} : vector<4x16x32xbf16>, vector<4x32x128xbf16>, vector<4x16x128xf32> -> vector<4x16x128xf32>
    "tpu.trace_stop"() : () -> ()
    %369 = vector.extract_strided_slice %368 {offsets = [0, 0, 0], sizes = [1, 16, 128], strides = [1, 1, 1]} : vector<4x16x128xf32> to vector<1x16x128xf32>
    %370 = vector.shape_cast %369 : vector<1x16x128xf32> to vector<16x128xf32>
    %371 = vector.extract_strided_slice %368 {offsets = [1, 0, 0], sizes = [1, 16, 128], strides = [1, 1, 1]} : vector<4x16x128xf32> to vector<1x16x128xf32>
    %372 = vector.shape_cast %371 : vector<1x16x128xf32> to vector<16x128xf32>
    %373 = arith.addf %370, %372 : vector<16x128xf32>
    %374 = vector.extract_strided_slice %368 {offsets = [2, 0, 0], sizes = [1, 16, 128], strides = [1, 1, 1]} : vector<4x16x128xf32> to vector<1x16x128xf32>
    %375 = vector.shape_cast %374 : vector<1x16x128xf32> to vector<16x128xf32>
    %376 = arith.addf %373, %375 : vector<16x128xf32>
    %377 = vector.extract_strided_slice %368 {offsets = [3, 0, 0], sizes = [1, 16, 128], strides = [1, 1, 1]} : vector<4x16x128xf32> to vector<1x16x128xf32>
    %378 = vector.shape_cast %377 : vector<1x16x128xf32> to vector<16x128xf32>
    %379 = arith.addf %376, %378 : vector<16x128xf32>
    %380 = tpu.concatenate %337, %379 in 0 : vector<16x128xf32>, vector<16x128xf32> -> vector<32x128xf32>
    %c1_156 = arith.constant 1 : index
    %c0_157 = arith.constant 0 : index
    %c0_158 = arith.constant 0 : index
    %381 = vector.load %arg17[%c1_156, %c0_157, %c0_158] : memref<2x1x128xf32, #tpu.memory_space<vmem>>, vector<1x1x128xf32>
    %382 = vector.shape_cast %381 : vector<1x1x128xf32> to vector<1x128xf32>
    %383 = vector.broadcast %382 : vector<1x128xf32> to vector<32x128xf32>
    %384 = arith.addf %380, %383 : vector<32x128xf32>
    %385 = arith.addf %384, %268 : vector<32x128xf32>
    %c1_159 = arith.constant 1 : index
    %c0_160 = arith.constant 0 : index
    %c0_161 = arith.constant 0 : index
    %386 = vector.load %arg18[%c1_159, %c0_160, %c0_161] : memref<2x1x128xf32, #tpu.memory_space<vmem>>, vector<1x1x128xf32>
    %387 = vector.shape_cast %386 : vector<1x1x128xf32> to vector<1x128xf32>
    %c1_162 = arith.constant 1 : index
    %c0_163 = arith.constant 0 : index
    %c0_164 = arith.constant 0 : index
    %388 = vector.load %arg19[%c1_162, %c0_163, %c0_164] : memref<2x1x128xf32, #tpu.memory_space<vmem>>, vector<1x1x128xf32>
    %389 = vector.shape_cast %388 : vector<1x1x128xf32> to vector<1x128xf32>
    %cst_165 = arith.constant dense<0.000000e+00> : vector<32xf32>
    %390 = vector.multi_reduction <add>, %385, %cst_165 [1] : vector<32x128xf32> to vector<32xf32>
    %391 = vector.shape_cast %390 : vector<32xf32> to vector<32x1xf32>
    %cst_166 = arith.constant 1.280000e+02 : f32
    %392 = vector.broadcast %cst_166 : f32 to vector<32x1xf32>
    %393 = arith.divf %391, %392 : vector<32x1xf32>
    %394 = vector.broadcast %393 : vector<32x1xf32> to vector<32x128xf32>
    %395 = arith.subf %385, %394 : vector<32x128xf32>
    %396 = arith.mulf %395, %395 : vector<32x128xf32>
    %cst_167 = arith.constant dense<0.000000e+00> : vector<32xf32>
    %397 = vector.multi_reduction <add>, %396, %cst_167 [1] : vector<32x128xf32> to vector<32xf32>
    %398 = vector.shape_cast %397 : vector<32xf32> to vector<32x1xf32>
    %cst_168 = arith.constant 1.280000e+02 : f32
    %399 = vector.broadcast %cst_168 : f32 to vector<32x1xf32>
    %400 = arith.divf %398, %399 : vector<32x1xf32>
    %401 = vector.broadcast %393 : vector<32x1xf32> to vector<32x128xf32>
    %402 = arith.subf %385, %401 : vector<32x128xf32>
    %cst_169 = arith.constant 9.99999974E-6 : f32
    %403 = vector.broadcast %cst_169 : f32 to vector<32x1xf32>
    %404 = arith.addf %400, %403 : vector<32x1xf32>
    %405 = math.rsqrt %404 : vector<32x1xf32>
    %406 = vector.broadcast %405 : vector<32x1xf32> to vector<32x128xf32>
    %407 = arith.mulf %402, %406 : vector<32x128xf32>
    %408 = vector.broadcast %387 : vector<1x128xf32> to vector<32x128xf32>
    %409 = arith.mulf %407, %408 : vector<32x128xf32>
    %410 = vector.broadcast %389 : vector<1x128xf32> to vector<32x128xf32>
    %411 = arith.addf %409, %410 : vector<32x128xf32>
    %412 = arith.truncf %411 : vector<32x128xf32> to vector<32x128xbf16>
    %c1_170 = arith.constant 1 : index
    %c0_171 = arith.constant 0 : index
    %c0_172 = arith.constant 0 : index
    %413 = vector.load %arg20[%c1_170, %c0_171, %c0_172] : memref<2x128x256xbf16, #tpu.memory_space<vmem>>, vector<1x128x256xbf16>
    %414 = vector.shape_cast %413 : vector<1x128x256xbf16> to vector<128x256xbf16>
    %cst_173 = arith.constant dense<0.000000e+00> : vector<32x256xf32>
    %415 = tpu.matmul %412, %414, %cst_173 {dimension_numbers = #tpu.dot_dimension_numbers<[1], [0], [0], [1], [0, 0, 1, 1], [], []>} : vector<32x128xbf16>, vector<128x256xbf16>, vector<32x256xf32> -> vector<32x256xf32>
    %c1_174 = arith.constant 1 : index
    %c0_175 = arith.constant 0 : index
    %c0_176 = arith.constant 0 : index
    %416 = vector.load %arg21[%c1_174, %c0_175, %c0_176] : memref<2x1x256xf32, #tpu.memory_space<vmem>>, vector<1x1x256xf32>
    %417 = vector.shape_cast %416 : vector<1x1x256xf32> to vector<1x256xf32>
    %418 = vector.broadcast %417 : vector<1x256xf32> to vector<32x256xf32>
    %419 = arith.addf %415, %418 : vector<32x256xf32>
    %cst_177 = arith.constant 5.000000e-01 : f32
    %420 = vector.broadcast %cst_177 : f32 to vector<32x256xf32>
    %421 = arith.mulf %419, %420 : vector<32x256xf32>
    %cst_178 = arith.constant 1.41421354 : f32
    %422 = vector.broadcast %cst_178 : f32 to vector<32x256xf32>
    %423 = arith.divf %419, %422 : vector<32x256xf32>
    %424 = math.erf %423 : vector<32x256xf32>
    %cst_179 = arith.constant 1.000000e+00 : f32
    %425 = vector.broadcast %cst_179 : f32 to vector<32x256xf32>
    %426 = arith.addf %425, %424 : vector<32x256xf32>
    %427 = arith.mulf %421, %426 : vector<32x256xf32>
    %428 = arith.truncf %427 : vector<32x256xf32> to vector<32x256xbf16>
    %c1_180 = arith.constant 1 : index
    %c0_181 = arith.constant 0 : index
    %c0_182 = arith.constant 0 : index
    %429 = vector.load %arg22[%c1_180, %c0_181, %c0_182] : memref<2x256x128xbf16, #tpu.memory_space<vmem>>, vector<1x256x128xbf16>
    %430 = vector.shape_cast %429 : vector<1x256x128xbf16> to vector<256x128xbf16>
    %cst_183 = arith.constant dense<0.000000e+00> : vector<32x128xf32>
    %431 = tpu.matmul %428, %430, %cst_183 {dimension_numbers = #tpu.dot_dimension_numbers<[1], [0], [0], [1], [0, 0, 1, 1], [], []>} : vector<32x256xbf16>, vector<256x128xbf16>, vector<32x128xf32> -> vector<32x128xf32>
    %c1_184 = arith.constant 1 : index
    %c0_185 = arith.constant 0 : index
    %c0_186 = arith.constant 0 : index
    %432 = vector.load %arg23[%c1_184, %c0_185, %c0_186] : memref<2x1x128xf32, #tpu.memory_space<vmem>>, vector<1x1x128xf32>
    %433 = vector.shape_cast %432 : vector<1x1x128xf32> to vector<1x128xf32>
    %434 = vector.broadcast %433 : vector<1x128xf32> to vector<32x128xf32>
    %435 = arith.addf %431, %434 : vector<32x128xf32>
    %436 = vector.shape_cast %435 : vector<32x128xf32> to vector<2x16x128xf32>
    %437 = vector.extract_strided_slice %436 {offsets = [0, 0, 0], sizes = [2, 1, 128], strides = [1, 1, 1]} : vector<2x16x128xf32> to vector<2x1x128xf32>
    %438 = vector.shape_cast %437 : vector<2x1x128xf32> to vector<2x128xf32>
    %439 = arith.truncf %438 : vector<2x128xf32> to vector<2x128xbf16>
    %c0_187 = arith.constant 0 : index
    %c0_188 = arith.constant 0 : index
    %440 = vector.load %arg24[%c0_187, %c0_188] : memref<128x128xbf16, #tpu.memory_space<vmem>>, vector<128x128xbf16>
    %cst_189 = arith.constant dense<0.000000e+00> : vector<2x128xf32>
    %441 = tpu.matmul %439, %440, %cst_189 {dimension_numbers = #tpu.dot_dimension_numbers<[1], [0], [0], [1], [0, 0, 1, 1], [], []>} : vector<2x128xbf16>, vector<128x128xbf16>, vector<2x128xf32> -> vector<2x128xf32>
    %c0_190 = arith.constant 0 : index
    %c0_191 = arith.constant 0 : index
    %442 = vector.load %arg25[%c0_190, %c0_191] : memref<1x128xf32, #tpu.memory_space<vmem>>, vector<1x128xf32>
    %443 = vector.broadcast %442 : vector<1x128xf32> to vector<2x128xf32>
    %444 = arith.addf %441, %443 : vector<2x128xf32>
    %445 = math.tanh %444 : vector<2x128xf32>
    %446 = arith.truncf %445 : vector<2x128xf32> to vector<2x128xbf16>
    %c0_192 = arith.constant 0 : index
    %c0_193 = arith.constant 0 : index
    %447 = vector.load %arg26[%c0_192, %c0_193] : memref<128x128xbf16, #tpu.memory_space<vmem>>, vector<128x128xbf16>
    %cst_194 = arith.constant dense<0.000000e+00> : vector<2x128xf32>
    %448 = tpu.matmul %446, %447, %cst_194 {dimension_numbers = #tpu.dot_dimension_numbers<[1], [0], [0], [1], [0, 0, 1, 1], [], []>} : vector<2x128xbf16>, vector<128x128xbf16>, vector<2x128xf32> -> vector<2x128xf32>
    %c0_195 = arith.constant 0 : index
    %c0_196 = arith.constant 0 : index
    %449 = vector.load %arg27[%c0_195, %c0_196] : memref<1x128xf32, #tpu.memory_space<vmem>>, vector<1x128xf32>
    %450 = vector.broadcast %449 : vector<1x128xf32> to vector<2x128xf32>
    %451 = arith.addf %448, %450 : vector<2x128xf32>
    %c0_197 = arith.constant 0 : index
    %c0_198 = arith.constant 0 : index
    %c0_199 = arith.constant 0 : index
    %452 = vector.load %arg4[%c0_197, %c0_198, %c0_199] : memref<2x4x1xi32, #tpu.memory_space<vmem>>, vector<2x4x1xi32>
    %453 = tpu.iota {dimensions = array<i32: 2>} : vector<2x4x16xi32>
    %454 = vector.broadcast %452 : vector<2x4x1xi32> to vector<2x4x16xi32>
    %455 = arith.cmpi eq, %454, %453 : vector<2x4x16xi32>
    %456 = arith.extui %455 : vector<2x4x16xi1> to vector<2x4x16xi32>
    %457 = arith.sitofp %456 : vector<2x4x16xi32> to vector<2x4x16xf32>
    %458 = arith.truncf %457 : vector<2x4x16xf32> to vector<2x4x16xbf16>
    %459 = arith.truncf %436 : vector<2x16x128xf32> to vector<2x16x128xbf16>
    "tpu.trace_start"() <{level = 10 : i32, message = "bps,bsd->bpd"}> : () -> ()
    %cst_200 = arith.constant dense<0.000000e+00> : vector<2x4x128xf32>
    %460 = tpu.matmul %458, %459, %cst_200 {dimension_numbers = #tpu.dot_dimension_numbers<[2], [1], [1], [2], [0, 0, 0, 1, 1, 2], [0], [0]>} : vector<2x4x16xbf16>, vector<2x16x128xbf16>, vector<2x4x128xf32> -> vector<2x4x128xf32>
    "tpu.trace_stop"() : () -> ()
    %461 = vector.shape_cast %460 : vector<2x4x128xf32> to vector<8x128xf32>
    %462 = arith.truncf %461 : vector<8x128xf32> to vector<8x128xbf16>
    %c0_201 = arith.constant 0 : index
    %c0_202 = arith.constant 0 : index
    %463 = vector.load %arg28[%c0_201, %c0_202] : memref<128x128xbf16, #tpu.memory_space<vmem>>, vector<128x128xbf16>
    %cst_203 = arith.constant dense<0.000000e+00> : vector<8x128xf32>
    %464 = tpu.matmul %462, %463, %cst_203 {dimension_numbers = #tpu.dot_dimension_numbers<[1], [0], [0], [1], [0, 0, 1, 1], [], []>} : vector<8x128xbf16>, vector<128x128xbf16>, vector<8x128xf32> -> vector<8x128xf32>
    %c0_204 = arith.constant 0 : index
    %c0_205 = arith.constant 0 : index
    %465 = vector.load %arg29[%c0_204, %c0_205] : memref<1x128xf32, #tpu.memory_space<vmem>>, vector<1x128xf32>
    %466 = vector.broadcast %465 : vector<1x128xf32> to vector<8x128xf32>
    %467 = arith.addf %464, %466 : vector<8x128xf32>
    %cst_206 = arith.constant 5.000000e-01 : f32
    %468 = vector.broadcast %cst_206 : f32 to vector<8x128xf32>
    %469 = arith.mulf %467, %468 : vector<8x128xf32>
    %cst_207 = arith.constant 1.41421354 : f32
    %470 = vector.broadcast %cst_207 : f32 to vector<8x128xf32>
    %471 = arith.divf %467, %470 : vector<8x128xf32>
    %472 = math.erf %471 : vector<8x128xf32>
    %cst_208 = arith.constant 1.000000e+00 : f32
    %473 = vector.broadcast %cst_208 : f32 to vector<8x128xf32>
    %474 = arith.addf %473, %472 : vector<8x128xf32>
    %475 = arith.mulf %469, %474 : vector<8x128xf32>
    %476 = arith.truncf %475 : vector<8x128xf32> to vector<8x128xbf16>
    %c0_209 = arith.constant 0 : index
    %c0_210 = arith.constant 0 : index
    %477 = vector.load %arg30[%c0_209, %c0_210] : memref<128x128xbf16, #tpu.memory_space<vmem>>, vector<128x128xbf16>
    %cst_211 = arith.constant dense<0.000000e+00> : vector<8x128xf32>
    %478 = tpu.matmul %476, %477, %cst_211 {dimension_numbers = #tpu.dot_dimension_numbers<[1], [0], [0], [1], [0, 0, 1, 1], [], []>} : vector<8x128xbf16>, vector<128x128xbf16>, vector<8x128xf32> -> vector<8x128xf32>
    %479 = vector.shape_cast %478 : vector<8x128xf32> to vector<2x4x128xf32>
    %480 = vector.shape_cast %451 : vector<2x128xf32> to vector<2x1x128xf32>
    %cst_212 = arith.constant 0.000000e+00 : f32
    %481 = vector.broadcast %cst_212 : f32 to vector<2x3x128xf32>
    %482 = tpu.concatenate %480, %479, %481 in 1 : vector<2x1x128xf32>, vector<2x4x128xf32>, vector<2x3x128xf32> -> vector<2x8x128xf32>
    %c0_213 = arith.constant 0 : index
    %c0_214 = arith.constant 0 : index
    %c0_215 = arith.constant 0 : index
    %483 = vector.load %arg31[%c0_213, %c0_214, %c0_215] : memref<2x8x128xf32, #tpu.memory_space<vmem>>, vector<2x8x128xf32>
    tpu.vector_store %arg31[%c0_213, %c0_214, %c0_215], %482 {strides = array<i32>} : memref<2x8x128xf32, #tpu.memory_space<vmem>>, vector<2x8x128xf32>,
    return
  }
  func.func @transform_0(%arg0: i32) -> (i32, i32, i32) {
    %c0_i32 = arith.constant 0 : i32
    %c0_i32_0 = arith.constant 0 : i32
    %c0_i32_1 = arith.constant 0 : i32
    return %arg0, %c0_i32, %c0_i32_0 : i32, i32, i32
  }
  func.func @transform_1(%arg0: i32) -> (i32, i32, i32) {
    %c0_i32 = arith.constant 0 : i32
    %c0_i32_0 = arith.constant 0 : i32
    %c0_i32_1 = arith.constant 0 : i32
    return %arg0, %c0_i32, %c0_i32_0 : i32, i32, i32
  }
  func.func @transform_2(%arg0: i32) -> (i32, i32, i32) {
    %c0_i32 = arith.constant 0 : i32
    %c0_i32_0 = arith.constant 0 : i32
    %c0_i32_1 = arith.constant 0 : i32
    return %arg0, %c0_i32, %c0_i32_0 : i32, i32, i32
  }
  func.func @transform_3(%arg0: i32) -> (i32, i32, i32) {
    %c0_i32 = arith.constant 0 : i32
    %c0_i32_0 = arith.constant 0 : i32
    %c0_i32_1 = arith.constant 0 : i32
    return %arg0, %c0_i32, %c0_i32_0 : i32, i32, i32
  }
  func.func @transform_4(%arg0: i32) -> (i32, i32) {
    %c0_i32 = arith.constant 0 : i32
    %c0_i32_0 = arith.constant 0 : i32
    %c0_i32_1 = arith.constant 0 : i32
    return %c0_i32, %c0_i32_0 : i32, i32
  }
  func.func @transform_5(%arg0: i32) -> (i32, i32) {
    %c0_i32 = arith.constant 0 : i32
    %c0_i32_0 = arith.constant 0 : i32
    %c0_i32_1 = arith.constant 0 : i32
    return %c0_i32, %c0_i32_0 : i32, i32
  }
  func.func @transform_6(%arg0: i32) -> (i32, i32) {
    %c0_i32 = arith.constant 0 : i32
    %c0_i32_0 = arith.constant 0 : i32
    %c0_i32_1 = arith.constant 0 : i32
    return %c0_i32, %c0_i32_0 : i32, i32
  }
  func.func @transform_7(%arg0: i32) -> (i32, i32) {
    %c0_i32 = arith.constant 0 : i32
    %c0_i32_0 = arith.constant 0 : i32
    %c0_i32_1 = arith.constant 0 : i32
    return %c0_i32, %c0_i32_0 : i32, i32
  }
  func.func @transform_8(%arg0: i32) -> (i32, i32) {
    %c0_i32 = arith.constant 0 : i32
    %c0_i32_0 = arith.constant 0 : i32
    %c0_i32_1 = arith.constant 0 : i32
    return %c0_i32, %c0_i32_0 : i32, i32
  }
  func.func @transform_9(%arg0: i32) -> (i32, i32, i32) {
    %c0_i32 = arith.constant 0 : i32
    %c0_i32_0 = arith.constant 0 : i32
    %c0_i32_1 = arith.constant 0 : i32
    %c0_i32_2 = arith.constant 0 : i32
    return %c0_i32, %c0_i32_0, %c0_i32_1 : i32, i32, i32
  }
  func.func @transform_10(%arg0: i32) -> (i32, i32, i32) {
    %c0_i32 = arith.constant 0 : i32
    %c0_i32_0 = arith.constant 0 : i32
    %c0_i32_1 = arith.constant 0 : i32
    %c0_i32_2 = arith.constant 0 : i32
    return %c0_i32, %c0_i32_0, %c0_i32_1 : i32, i32, i32
  }
  func.func @transform_11(%arg0: i32) -> (i32, i32, i32) {
    %c0_i32 = arith.constant 0 : i32
    %c0_i32_0 = arith.constant 0 : i32
    %c0_i32_1 = arith.constant 0 : i32
    %c0_i32_2 = arith.constant 0 : i32
    return %c0_i32, %c0_i32_0, %c0_i32_1 : i32, i32, i32
  }
  func.func @transform_12(%arg0: i32) -> (i32, i32, i32) {
    %c0_i32 = arith.constant 0 : i32
    %c0_i32_0 = arith.constant 0 : i32
    %c0_i32_1 = arith.constant 0 : i32
    %c0_i32_2 = arith.constant 0 : i32
    return %c0_i32, %c0_i32_0, %c0_i32_1 : i32, i32, i32
  }
  func.func @transform_13(%arg0: i32) -> (i32, i32, i32) {
    %c0_i32 = arith.constant 0 : i32
    %c0_i32_0 = arith.constant 0 : i32
    %c0_i32_1 = arith.constant 0 : i32
    %c0_i32_2 = arith.constant 0 : i32
    return %c0_i32, %c0_i32_0, %c0_i32_1 : i32, i32, i32
  }
  func.func @transform_14(%arg0: i32) -> (i32, i32, i32) {
    %c0_i32 = arith.constant 0 : i32
    %c0_i32_0 = arith.constant 0 : i32
    %c0_i32_1 = arith.constant 0 : i32
    %c0_i32_2 = arith.constant 0 : i32
    return %c0_i32, %c0_i32_0, %c0_i32_1 : i32, i32, i32
  }
  func.func @transform_15(%arg0: i32) -> (i32, i32, i32, i32) {
    %c0_i32 = arith.constant 0 : i32
    %c0_i32_0 = arith.constant 0 : i32
    %c0_i32_1 = arith.constant 0 : i32
    %c0_i32_2 = arith.constant 0 : i32
    %c0_i32_3 = arith.constant 0 : i32
    return %c0_i32, %c0_i32_0, %c0_i32_1, %c0_i32_2 : i32, i32, i32, i32
  }
  func.func @transform_16(%arg0: i32) -> (i32, i32, i32) {
    %c0_i32 = arith.constant 0 : i32
    %c0_i32_0 = arith.constant 0 : i32
    %c0_i32_1 = arith.constant 0 : i32
    %c0_i32_2 = arith.constant 0 : i32
    return %c0_i32, %c0_i32_0, %c0_i32_1 : i32, i32, i32
  }
  func.func @transform_17(%arg0: i32) -> (i32, i32, i32) {
    %c0_i32 = arith.constant 0 : i32
    %c0_i32_0 = arith.constant 0 : i32
    %c0_i32_1 = arith.constant 0 : i32
    %c0_i32_2 = arith.constant 0 : i32
    return %c0_i32, %c0_i32_0, %c0_i32_1 : i32, i32, i32
  }
  func.func @transform_18(%arg0: i32) -> (i32, i32, i32) {
    %c0_i32 = arith.constant 0 : i32
    %c0_i32_0 = arith.constant 0 : i32
    %c0_i32_1 = arith.constant 0 : i32
    %c0_i32_2 = arith.constant 0 : i32
    return %c0_i32, %c0_i32_0, %c0_i32_1 : i32, i32, i32
  }
  func.func @transform_19(%arg0: i32) -> (i32, i32, i32) {
    %c0_i32 = arith.constant 0 : i32
    %c0_i32_0 = arith.constant 0 : i32
    %c0_i32_1 = arith.constant 0 : i32
    %c0_i32_2 = arith.constant 0 : i32
    return %c0_i32, %c0_i32_0, %c0_i32_1 : i32, i32, i32
  }
  func.func @transform_20(%arg0: i32) -> (i32, i32, i32) {
    %c0_i32 = arith.constant 0 : i32
    %c0_i32_0 = arith.constant 0 : i32
    %c0_i32_1 = arith.constant 0 : i32
    %c0_i32_2 = arith.constant 0 : i32
    return %c0_i32, %c0_i32_0, %c0_i32_1 : i32, i32, i32
  }
  func.func @transform_21(%arg0: i32) -> (i32, i32, i32) {
    %c0_i32 = arith.constant 0 : i32
    %c0_i32_0 = arith.constant 0 : i32
    %c0_i32_1 = arith.constant 0 : i32
    %c0_i32_2 = arith.constant 0 : i32
    return %c0_i32, %c0_i32_0, %c0_i32_1 : i32, i32, i32
  }
  func.func @transform_22(%arg0: i32) -> (i32, i32, i32) {
    %c0_i32 = arith.constant 0 : i32
    %c0_i32_0 = arith.constant 0 : i32
    %c0_i32_1 = arith.constant 0 : i32
    %c0_i32_2 = arith.constant 0 : i32
    return %c0_i32, %c0_i32_0, %c0_i32_1 : i32, i32, i32
  }
  func.func @transform_23(%arg0: i32) -> (i32, i32) {
    %c0_i32 = arith.constant 0 : i32
    %c0_i32_0 = arith.constant 0 : i32
    %c0_i32_1 = arith.constant 0 : i32
    return %c0_i32, %c0_i32_0 : i32, i32
  }
  func.func @transform_24(%arg0: i32) -> (i32, i32) {
    %c0_i32 = arith.constant 0 : i32
    %c0_i32_0 = arith.constant 0 : i32
    %c0_i32_1 = arith.constant 0 : i32
    return %c0_i32, %c0_i32_0 : i32, i32
  }
  func.func @transform_25(%arg0: i32) -> (i32, i32) {
    %c0_i32 = arith.constant 0 : i32
    %c0_i32_0 = arith.constant 0 : i32
    %c0_i32_1 = arith.constant 0 : i32
    return %c0_i32, %c0_i32_0 : i32, i32
  }
  func.func @transform_26(%arg0: i32) -> (i32, i32) {
    %c0_i32 = arith.constant 0 : i32
    %c0_i32_0 = arith.constant 0 : i32
    %c0_i32_1 = arith.constant 0 : i32
    return %c0_i32, %c0_i32_0 : i32, i32
  }
  func.func @transform_27(%arg0: i32) -> (i32, i32) {
    %c0_i32 = arith.constant 0 : i32
    %c0_i32_0 = arith.constant 0 : i32
    %c0_i32_1 = arith.constant 0 : i32
    return %c0_i32, %c0_i32_0 : i32, i32
  }
  func.func @transform_28(%arg0: i32) -> (i32, i32) {
    %c0_i32 = arith.constant 0 : i32
    %c0_i32_0 = arith.constant 0 : i32
    %c0_i32_1 = arith.constant 0 : i32
    return %c0_i32, %c0_i32_0 : i32, i32
  }
  func.func @transform_29(%arg0: i32) -> (i32, i32) {
    %c0_i32 = arith.constant 0 : i32
    %c0_i32_0 = arith.constant 0 : i32
    %c0_i32_1 = arith.constant 0 : i32
    return %c0_i32, %c0_i32_0 : i32, i32
  }
  func.func @transform_30(%arg0: i32) -> (i32, i32, i32) {
    %c0_i32 = arith.constant 0 : i32
    %c0_i32_0 = arith.constant 0 : i32
    %c0_i32_1 = arith.constant 0 : i32
    return %arg0, %c0_i32, %c0_i32_0 : i32, i32, i32
  }
}

</mosaic_0001>

<bundles_post_ra>
// kernel: tpu_custom_call.1
= control target key start
LH: loop header
LB: loop body
LE: loop exit
PB: predicated region body
PF: predicated region fallthrough
CT: control target
= control target key end

     0   :  { %s11104_s6 = smov 1   ;;  %s11105_s10 = smov 2   ;;  %s14052_s0 = inlined_call_operand.smem [shape: u32[31], index: -1, kind: input, shape index: {}] }
   0x1   :  { %s11169_s5 = sld [smem:[%s14052_s0]]   ;;  %s11106_s14 = smov 3  }
   0x2   :  { %s11174_s9 = sld [smem:[%s14052_s0 + %s11104_s6]]   ;;  %s11107_s18 = smov 4  }
   0x3   :  { %s11179_s13 = sld [smem:[%s14052_s0 + %s11105_s10]]   ;;  %s11108_s22 = smov 5  }
   0x4   :  { %s11184_s17 = sld [smem:[%s14052_s0 + %s11106_s14]]   ;;  %s11109_s26 = smov 6  }
   0x5   :  { %s11189_s21 = sld [smem:[%s14052_s0 + %s11107_s18]]   ;;  %s11110_s30 = smov 7  }
   0x6   :  { %s11194_s25 = sld [smem:[%s14052_s0 + %s11108_s22]]   ;;  %s11111_s4 = smov 8  }
   0x7   :  { %14081 = sst [smem:[#allocation31_spill]] %s11169_s5  ;;  %s11112_s10 = smov 9  }
   0x8   :  { %s11199_s29 = sld [smem:[%s14052_s0 + %s11109_s26]]   ;;  %s11113_s15 = smov 10  }
   0x9   :  { %14082 = sst [smem:[#allocation32_spill]] %s11179_s13  ;;  %s11114_s20 = smov 11  }
   0xa   :  { %14083 = sst [smem:[#allocation33_spill]] %s11184_s17  ;;  %s11115_s26 = smov 12  }
   0xb   :  { %s11204_s3 = sld [smem:[%s14052_s0 + %s11110_s30]]   ;;  %s11116_s1 = smov 13  }
   0xc   :  { %s11209_s8 = sld [smem:[%s14052_s0 + %s11111_s4]]   ;;  %s11117_s7 = smov 14  }
   0xd   :  { %s11214_s14 = sld [smem:[%s14052_s0 + %s11112_s10]]   ;;  %s11119_s22 = smov 16  }
   0xe   :  { %14084 = sst [smem:[#allocation34_spill]] %s11199_s29  ;;  %s11120_s28 = smov 17  }
   0xf   :  { %s11219_s19 = sld [smem:[%s14052_s0 + %s11113_s15]]   ;;  %s11118_s15 = smov 15  }
  0x10   :  { %s11224_s24 = sld [smem:[%s14052_s0 + %s11114_s20]]  }
  0x11   :  { %14085 = sst [smem:[#allocation35_spill]] %s11204_s3 }
  0x12   :  { %s11229_s30 = sld [smem:[%s14052_s0 + %s11115_s26]]  }
  0x13   :  { %s11234_s6 = sld [smem:[%s14052_s0 + %s11116_s1]]  }
  0x14   :  { %s11239_s12 = sld [smem:[%s14052_s0 + %s11117_s7]]   ;;  %s11121_s7 = smov 18  }
  0x15   :  { %14086 = sst [smem:[#allocation36_spill]] %s11219_s19 }
  0x16   :  { %14087 = sst [smem:[#allocation37_spill]] %s11224_s24 }
  0x17   :  { %s11244_s20 = sld [smem:[%s14052_s0 + %s11118_s15]]   ;;  %s11122_s15 = smov 19  }
  0x18   :  { %14088 = sst [smem:[#allocation38_spill]] %s11229_s30 }
  0x19   :  { %14089 = sst [smem:[#allocation39_spill]] %s11234_s6 }
  0x1a   :  { %14090 = sst [smem:[#allocation40_spill]] %s11239_s12 }
  0x1b   :  { %s11249_s27 = sld [smem:[%s14052_s0 + %s11119_s22]]   ;;  %s11123_s22 = smov 20  }
  0x1c   :  { %s11254_s4 = sld [smem:[%s14052_s0 + %s11120_s28]]   ;;  %s11124_s28 = smov 21  }
  0x1d   :  { %s11259_s17 = sld [smem:[%s14052_s0 + %s11121_s7]]   ;;  %s11125_s7 = smov 22  }
  0x1e   :  { %s11264_s13 = sld [smem:[%s14052_s0 + %s11122_s15]]   ;;  %s11126_s15 = smov 23  }
  0x1f   :  { %s11284_s12 = sld [smem:[%s14052_s0 + %s11126_s15]]   ;;  %s11130_s15 = smov 27  }
  0x20   :  { %s11304_s30 = sld [smem:[%s14052_s0 + %s11130_s15]]  }
  0x21   :  { %14091 = sst [smem:[#allocation41_spill]] %s11249_s27 }
  0x22   :  { %14092 = sst [smem:[#allocation42_spill]] %s11254_s4 }
  0x23   :  { %14093 = sst [smem:[#allocation43_spill]] %s11259_s17 }
  0x24   :  { %s11269_s27 = sld [smem:[%s14052_s0 + %s11123_s22]]   ;;  %s11127_s22 = smov 24  }
  0x25   :  { %s11274_s4 = sld [smem:[%s14052_s0 + %s11124_s28]]   ;;  %s11128_s28 = smov 25  }
  0x26   :  { %s11279_s17 = sld [smem:[%s14052_s0 + %s11125_s7]]   ;;  %s11129_s7 = smov 26  }
  0x27   :  { %s11294_s19 = sld [smem:[%s14052_s0 + %s11128_s28]]   ;;  %s11132_s28 = smov 29  }
  0x28   :  { %s11314_s3 = sld [smem:[%s14052_s0 + %s11132_s28]]  }
  0x2a   :  { %14094 = sst [smem:[#allocation44_spill]] %s11269_s27 }
  0x2b   :  { %14095 = sst [smem:[#allocation45_spill]] %s11274_s4 }
  0x2c   :  { %14096 = sst [smem:[#allocation46_spill]] %s11279_s17 }
  0x2d   :  { %s11289_s27 = sld [smem:[%s14052_s0 + %s11127_s22]]   ;;  %s11131_s22 = smov 28  }
  0x2e   :  { %s11299_s17 = sld [smem:[%s14052_s0 + %s11129_s7]]   ;;  %s11133_s7 = smov 30  }
  0x2f   :  { %14099 = sst [smem:[#allocation49_spill]] %s11314_s3 }
  0x33   :  { %14097 = sst [smem:[#allocation47_spill]] %s11289_s27 }
  0x34   :  { %14098 = sst [smem:[#allocation48_spill]] %s11299_s17 }
  0x35   :  { %s11309_s27 = sld [smem:[%s14052_s0 + %s11131_s22]]  }
  0x36   :  { %s11319_s17 = sld [smem:[%s14052_s0 + %s11133_s7]]  }
  0x3c   :  { %14100 = sst [smem:[#allocation50_spill]] %s11319_s17 }
  0x3d   :  { %66 = vsyncpa [#allocation3], 0 }
  0x3e   :  { %67 = vsyncpa [#allocation6], 0 }
  0x3f   :  { %68 = vsyncpa [#allocation9], 0 }
  0x40   :  { %69 = vsyncpa [#allocation12], 0 }
  0x41   :  { %70 = vsyncpa [#allocation15], 0 }
  0x42   :  { %71 = vsyncpa [#allocation18], 0 }
  0x43   :  { %72 = vsyncpa [#allocation21], 0 }
  0x44   :  { %73 = vsyncpa [#allocation4], 0 }
  0x45   :  { %75 = vsyncpa [#allocation4 + $0x1], 0  ;;  %s11321_s15 = smov 0   ;;  %s11323_s16 = smov 0  }
  0x46   :  { %s11325_s18 = smov 0   ;;  %s11327_s22 = smov 0  }
  0x47 LB: > { %s14101_s6 = sld [smem:[#allocation39_spill]]  ;;  %s11342_s0 = sadd.s32 4294967295, %s11102_s22   ;;  %s11090_s15 = sphi %s11321_s15, %s14157_s15   ;;  %s11102_s22 = sphi %s11327_s22, %s14154_s22   ;;  %s11098_s18 = sphi %s11325_s18, %s14156_s18   ;;  %s11094_s16 = sphi %s11323_s16, %s14158_s16  }
  0x48   : > { %s14102_s3 = sld [smem:[#allocation49_spill]]  ;;  %s9203_s23 = sadd.s32 4294967294, %s11102_s22  }
  0x49   : > { %s14103_s4 = sld [smem:[#allocation45_spill]]  ;;  %s11346_s26 = sadd.s32 1, %s11102_s22  }
  0x4a   : > { %s14104_s29 = sld [smem:[#allocation34_spill]]  ;;  %s738_s28 = sadd.s32 1, %s11098_s18 }
  0x4b   : > { %s14105_s24 = sld [smem:[#allocation37_spill]]  ;;  %s735_s1 = ssub.s32 %s11102_s22, %s11346_s26 }
  0x4c   : > { %14106 = sst [smem:[#allocation51_spill]] %s11090_s15  ;;  %p748_p0 = scmp.ne.s32.totalorder %s11098_s18, %s11094_s16 }
  0x4d   : > { %14107 = sst [smem:[#allocation52_spill]] %s11098_s18  ;;  %p736_p1 = scmp.eq.s32.totalorder %s735_s1, 0 }
  0x4e   : > { %14108 = sst [smem:[#allocation53_spill]] %s11102_s22  ;;  %p749_p2 = scmp.eq.s32.totalorder %s11342_s0, 1 }
  0x4f   : > { %14109 = sst [smem:[#allocation54_spill]] %s11346_s26  ;;  %p754_p3 = scmp.ne.s32.totalorder %s11094_s16, %s11090_s15 }
  0x50   : > { %p755_p4 = scmp.eq.s32.totalorder %s9203_s23, 1  ;;  %p11359_p5 = por %p749_p2, %p748_p0 }
  0x51   : > { %s11357_s2 = scalar_select %p736_p1, %s11098_s18, %s738_s28  }
  0x52   : > { %s14111_s7 = scalar_select %p11359_p5, 1, 0 }
  0x53   : > { %14110 = sst [smem:[#allocation55_spill]] %s11357_s2  ;;  %p11363_p6 = por %p755_p4, %p754_p3 }
  0x54   : > { %14112 = sst [smem:[#allocation56_spill]] %s14111_s7  ;;  %p9204_p7 = scmp.ge.s32.totalorder %s11102_s22, 1 }
  0x55   : > { %s14113_s10 = scalar_select %p11363_p6, 1, 0 }
  0x56   : > { %p762_p8 = scmp.lt.s32.totalorder %s11102_s22, 3  ;;  %p10314_p9 = scmp.eq.s32.totalorder %s11342_s0, 0 }
  0x57   : > { %14114 = sst [smem:[#allocation57_spill]] %s14113_s10  ;;  %s789_s1 = sshll.u32 %s14104_s29, 4  ;;  %s790_s1 = int_to_ptr.hbm [resolvable:$true] %s789_s1 }
  0x58   : > { %p11370_p10 = pnand %p9204_p7, %p762_p8  ;;  %s11134_s23 = smov [#allocation5]  }
  0x59   : > { %s791_s28 = sshll.u32 %s11134_s23, 4  ;;  %s821_s2 = sshll.u32 %s14105_s24, 4  ;;  %s792_s28 = int_to_ptr.vmem [resolvable:$true] %s791_s28  ;;  %s11384_s2 = int_to_ptr.hbm [resolvable:$true] %s821_s2 }
  0x5a   : > { %p10273_p11 = pneg %p11370_p10  ;;  %s11135_s26 = smov [#allocation8]  }
  0x5b   : > { %s11386_s10 = sshll.u32 %s11135_s26, 4  ;;  %s10652_s15 = sshra.s32 %s790_s1, 4  ;;  %s10653_s15 = int_to_ptr.hbm [resolvable:$true] %s10652_s15  ;;  %s824_s10 = int_to_ptr.vmem [resolvable:$true] %s11386_s10 }
  0x5c   : > { %p11380_p12 = pnand %p10314_p9, %p10273_p11  ;;  %s10654_s22 = scalar_lea.hbm %s10653_s15, 2 }
  0x5d   : > { %p10655_p13 = scmp.ne.s32.totalorder %s10653_s15, %s10654_s22  ;;  %s10659_s7 = scalar_lea.hbm %s14104_s29, 2 }
  0x5e   : > { %p11390_p0 = pneg %p11380_p12  ;;  %p10660_p3 = scmp.lt.s32.totalorder %s10653_s15, %s14104_s29 }
  0x5f   : > { %p10661_p4 = scmp.lt.s32.totalorder %s10659_s7, %s10654_s22 }
  0x60   : > { %p10657_p1 = pnand %p11390_p0, %p10655_p13 }
  0x61   : > { %p10662_p7 = por %p10661_p4, %p10660_p3 }
  0x62   : > { %p10658_p2 = pneg %p10657_p1 }
  0x64   : > { %p10663_p8 = pnand %p10662_p7, %p10658_p2 }
  0x66   : > { %10666 = shalt.err (!%p10663_p8)
}
  0x67   : > { %10279 = dma.hbm_to_vmem [thread:$0]  (!%p11380_p12), %s790_s1, 32, %s792_s28, [#allocation6]  }
  0x68   : > { %s10682_s26 = sshra.s32 %s11384_s2, 4  ;;  %s10689_s15 = scalar_lea.hbm %s14105_s24, 128  ;;  %s10683_s26 = int_to_ptr.hbm [resolvable:$true] %s10682_s26 }
  0x69   : > { %s10684_s17 = scalar_lea.hbm %s10683_s26, 128  ;;  %p10690_p3 = scmp.lt.s32.totalorder %s10683_s26, %s14105_s24 }
  0x6a   : > { %p10685_p11 = scmp.ne.s32.totalorder %s10683_s26, %s10684_s17  ;;  %p10691_p2 = scmp.lt.s32.totalorder %s10689_s15, %s10684_s17 }
  0x6c   : > { %p10687_p13 = pnand %p10685_p11, %p11390_p0  ;;  %p10692_p4 = por %p10691_p2, %p10690_p3 }
  0x6e   : > { %p10688_p1 = pneg %p10687_p13 }
  0x70   : > { %p10693_p7 = pnand %p10692_p4, %p10688_p1 }
  0x72   : > { %10696 = shalt.err (!%p10693_p7)
}
  0x73   : > { %s14073_s22 = smov 64   ;;  %s11137_s7 = smov 4  }
  0x74   : > { %10285 = dma.hbm_to_vmem [thread:$0]  (!%p11380_p12), %s11384_s2, 2048, %s824_s10, [#allocation9], %s14073_s22, %s14073_s22, %s11137_s7  }
  0x75   : > { %s855_s1 = sshll.u32 %s11244_s20, 4  ;;  %s11138_s17 = smov [#allocation11]   ;;  %s856_s1 = int_to_ptr.hbm [resolvable:$true] %s855_s1 }
  0x76   : > { %s857_s28 = sshll.u32 %s11138_s17, 4  ;;  %s895_s26 = sshll.u32 %s14103_s4, 4  ;;  %s858_s28 = int_to_ptr.vmem [resolvable:$true] %s857_s28  ;;  %s896_s26 = int_to_ptr.hbm [resolvable:$true] %s895_s26 }
  0x77   : > { %s10712_s15 = sshra.s32 %s856_s1, 4  ;;  %s10719_s29 = scalar_lea.hbm %s11244_s20, 128  ;;  %s10713_s15 = int_to_ptr.hbm [resolvable:$true] %s10712_s15 }
  0x78   : > { %s10714_s24 = scalar_lea.hbm %s10713_s15, 128  ;;  %p10720_p1 = scmp.lt.s32.totalorder %s10713_s15, %s11244_s20 }
  0x79   : > { %p10715_p8 = scmp.ne.s32.totalorder %s10713_s15, %s10714_s24  ;;  %p10721_p3 = scmp.lt.s32.totalorder %s10719_s29, %s10714_s24 }
  0x7b   : > { %p10717_p11 = pnand %p10715_p8, %p11390_p0  ;;  %p10722_p2 = por %p10721_p3, %p10720_p1 }
  0x7d   : > { %p10718_p13 = pneg %p10717_p11 }
  0x7f   : > { %p10723_p4 = pnand %p10722_p2, %p10718_p13 }
  0x81   : > { %10726 = shalt.err (!%p10723_p4)
}
  0x82   : > { %10291 = dma.hbm_to_vmem [thread:$0]  (!%p11380_p12), %s856_s1, 2048, %s858_s28, [#allocation12], %s14073_s22, %s14073_s22, %s11137_s7  }
  0x83   : > { %s11139_s2 = smov [#allocation14]   ;;  %s929_s17 = sshll.u32 %s11294_s19, 4  ;;  %s11424_s17 = int_to_ptr.hbm [resolvable:$true] %s929_s17 }
  0x84   : > { %s897_s10 = sshll.u32 %s11139_s2, 4  ;;  %s10742_s29 = sshra.s32 %s896_s26, 4  ;;  %s898_s10 = int_to_ptr.vmem [resolvable:$true] %s897_s10  ;;  %s10743_s29 = int_to_ptr.hbm [resolvable:$true] %s10742_s29 }
  0x85   : > { %s10744_s24 = scalar_lea.hbm %s10743_s29, 256  ;;  %s10749_s15 = scalar_lea.hbm %s14103_s4, 256 }
  0x86   : > { %p10745_p7 = scmp.ne.s32.totalorder %s10743_s29, %s10744_s24  ;;  %p10750_p13 = scmp.lt.s32.totalorder %s10743_s29, %s14103_s4 }
  0x87   : > { %p10751_p1 = scmp.lt.s32.totalorder %s10749_s15, %s10744_s24 }
  0x88   : > { %p10747_p8 = pnand %p10745_p7, %p11390_p0 }
  0x89   : > { %p10752_p3 = por %p10751_p1, %p10750_p13 }
  0x8a   : > { %p10748_p11 = pneg %p10747_p8 }
  0x8c   : > { %p10753_p2 = pnand %p10752_p3, %p10748_p11 }
  0x8e   : > { %10756 = shalt.err (!%p10753_p2)
}
  0x8f   : > { %10297 = dma.hbm_to_vmem [thread:$0]  (!%p11380_p12), %s896_s26, 4096, %s898_s10, [#allocation15], %s14073_s22, %s14073_s22, %s11137_s7  }
  0x90   : > { %s777_s1 = sshll.u32 %s11194_s25, 4  ;;  %s11140_s28 = smov [#allocation17]   ;;  %s11436_s1 = int_to_ptr.hbm [resolvable:$true] %s777_s1 }
  0x91   : > { %s931_s2 = sshll.u32 %s11140_s28, 4  ;;  %s10772_s29 = sshra.s32 %s11424_s17, 4  ;;  %s932_s2 = int_to_ptr.vmem [resolvable:$true] %s931_s2  ;;  %s10773_s29 = int_to_ptr.hbm [resolvable:$true] %s10772_s29 }
  0x92   : > { %s10774_s24 = scalar_lea.hbm %s10773_s29, 64  ;;  %s10779_s15 = scalar_lea.hbm %s11294_s19, 64 }
  0x93   : > { %p10775_p4 = scmp.ne.s32.totalorder %s10773_s29, %s10774_s24  ;;  %p10780_p11 = scmp.lt.s32.totalorder %s10773_s29, %s11294_s19 }
  0x94   : > { %p10781_p13 = scmp.lt.s32.totalorder %s10779_s15, %s10774_s24 }
  0x95   : > { %p10777_p7 = pnand %p10775_p4, %p11390_p0 }
  0x96   : > { %p10782_p1 = por %p10781_p13, %p10780_p11 }
  0x97   : > { %p10778_p8 = pneg %p10777_p7 }
  0x99   : > { %p10783_p3 = pnand %p10782_p1, %p10778_p8 }
  0x9b   : > { %10786 = shalt.err (!%p10783_p3)
}
  0x9c   : > { %10303 = dma.hbm_to_vmem [thread:$0]  (!%p11380_p12), %s11424_s17, 1024, %s932_s2, [#allocation18], %s14073_s22, %s14073_s22, %s11137_s7  }
  0x9d   : > { %s11141_s26 = smov [#allocation2]   ;;  %s804_s28 = sshll.u32 %s11209_s8, 4  ;;  %s11450_s28 = int_to_ptr.hbm [resolvable:$true] %s804_s28 }
  0x9e   : > { %s779_s10 = sshll.u32 %s11141_s26, 4  ;;  %s10802_s29 = sshra.s32 %s11436_s1, 4  ;;  %s780_s10 = int_to_ptr.vmem [resolvable:$true] %s779_s10  ;;  %s10803_s29 = int_to_ptr.hbm [resolvable:$true] %s10802_s29 }
  0x9f   : > { %s10804_s24 = scalar_lea.hbm %s10803_s29, 4  ;;  %s10809_s15 = scalar_lea.hbm %s11194_s25, 4 }
  0xa0   : > { %p10805_p2 = scmp.ne.s32.totalorder %s10803_s29, %s10804_s24  ;;  %p10810_p8 = scmp.lt.s32.totalorder %s10803_s29, %s11194_s25 }
  0xa1   : > { %p10811_p11 = scmp.lt.s32.totalorder %s10809_s15, %s10804_s24 }
  0xa2   : > { %p10807_p4 = pnand %p10805_p2, %p11390_p0 }
  0xa3   : > { %p10812_p13 = por %p10811_p11, %p10810_p8 }
  0xa4   : > { %p10808_p7 = pneg %p10807_p4 }
  0xa6   : > { %p10813_p1 = pnand %p10812_p13, %p10808_p7 }
  0xa8   : > { %10816 = shalt.err (!%p10813_p1)
}
  0xa9   : > { %10276 = dma.hbm_to_vmem [thread:$0]  (!%p11380_p12), %s11436_s1, 64, %s780_s10, [#allocation3]  }
  0xaa   : > { %s838_s17 = sshll.u32 %s14101_s6, 4  ;;  %s11142_s2 = smov [#allocation7]   ;;  %s11461_s17 = int_to_ptr.hbm [resolvable:$true] %s838_s17 }
  0xab   : > { %s806_s26 = sshll.u32 %s11142_s2, 4  ;;  %s10832_s29 = sshra.s32 %s11450_s28, 4  ;;  %s807_s26 = int_to_ptr.vmem [resolvable:$true] %s806_s26  ;;  %s10833_s29 = int_to_ptr.hbm [resolvable:$true] %s10832_s29 }
  0xac   : > { %s10834_s24 = scalar_lea.hbm %s10833_s29, 1  ;;  %s10839_s15 = scalar_lea.hbm %s11209_s8, 1 }
  0xad   : > { %p10835_p3 = scmp.ne.s32.totalorder %s10833_s29, %s10834_s24  ;;  %p10840_p7 = scmp.lt.s32.totalorder %s10833_s29, %s11209_s8 }
  0xae   : > { %p10841_p8 = scmp.lt.s32.totalorder %s10839_s15, %s10834_s24 }
  0xaf   : > { %p10837_p2 = pnand %p10835_p3, %p11390_p0 }
  0xb0   : > { %p10842_p11 = por %p10841_p8, %p10840_p7 }
  0xb1   : > { %p10838_p4 = pneg %p10837_p2 }
  0xb3   : > { %p10843_p13 = pnand %p10842_p11, %p10838_p4 }
  0xb5   : > { %10846 = shalt.err (!%p10843_p13)
}
  0xb6   : > { %10282 = dma.hbm_to_vmem [thread:$0]  (!%p11380_p12), %s11450_s28, 16, %s807_s26, [#allocation6]  }
  0xb7   : > { %s11143_s1 = smov [#allocation10]   ;;  %s878_s2 = sshll.u32 %s11264_s13, 4  ;;  %s11472_s2 = int_to_ptr.hbm [resolvable:$true] %s878_s2 }
  0xb8   : > { %s840_s10 = sshll.u32 %s11143_s1, 4  ;;  %s10862_s29 = sshra.s32 %s11461_s17, 4  ;;  %s841_s10 = int_to_ptr.vmem [resolvable:$true] %s840_s10  ;;  %s10863_s29 = int_to_ptr.hbm [resolvable:$true] %s10862_s29 }
  0xb9   : > { %s10864_s24 = scalar_lea.hbm %s10863_s29, 128  ;;  %s10869_s15 = scalar_lea.hbm %s14101_s6, 128 }
  0xba   : > { %p10865_p1 = scmp.ne.s32.totalorder %s10863_s29, %s10864_s24  ;;  %p10870_p4 = scmp.lt.s32.totalorder %s10863_s29, %s14101_s6 }
  0xbb   : > { %p10871_p7 = scmp.lt.s32.totalorder %s10869_s15, %s10864_s24 }
  0xbc   : > { %p10867_p3 = pnand %p10865_p1, %p11390_p0 }
  0xbd   : > { %p10872_p8 = por %p10871_p7, %p10870_p4 }
  0xbe   : > { %p10868_p2 = pneg %p10867_p3 }
  0xc0   : > { %p10873_p11 = pnand %p10872_p8, %p10868_p2 }
  0xc2   : > { %10876 = shalt.err (!%p10873_p11)
}
  0xc3   : > { %10288 = dma.hbm_to_vmem [thread:$0]  (!%p11380_p12), %s11461_s17, 2048, %s841_s10, [#allocation9], %s14073_s22, %s14073_s22, %s11137_s7  }
  0xc4   : > { %s11144_s28 = smov [#allocation13]   ;;  %s912_s1 = sshll.u32 %s11284_s12, 4  ;;  %s913_s1 = int_to_ptr.hbm [resolvable:$true] %s912_s1 }
  0xc5   : > { %s880_s26 = sshll.u32 %s11144_s28, 4  ;;  %s10892_s29 = sshra.s32 %s11472_s2, 4  ;;  %s881_s26 = int_to_ptr.vmem [resolvable:$true] %s880_s26  ;;  %s10893_s29 = int_to_ptr.hbm [resolvable:$true] %s10892_s29 }
  0xc6   : > { %s10894_s24 = scalar_lea.hbm %s10893_s29, 256  ;;  %s10899_s15 = scalar_lea.hbm %s11264_s13, 256 }
  0xc7   : > { %p10895_p13 = scmp.ne.s32.totalorder %s10893_s29, %s10894_s24  ;;  %p10900_p2 = scmp.lt.s32.totalorder %s10893_s29, %s11264_s13 }
  0xc8   : > { %p10901_p4 = scmp.lt.s32.totalorder %s10899_s15, %s10894_s24 }
  0xc9   : > { %p10897_p1 = pnand %p10895_p13, %p11390_p0 }
  0xca   : > { %p10902_p7 = por %p10901_p4, %p10900_p2 }
  0xcb   : > { %p10898_p3 = pneg %p10897_p1 }
  0xcd   : > { %p10903_p8 = pnand %p10902_p7, %p10898_p3 }
  0xcf   : > { %10906 = shalt.err (!%p10903_p8)
}
  0xd0   : > { %s11145_s4 = smov 128   ;;  %s11146_s17 = smov 8  }
  0xd1   : > { %10294 = dma.hbm_to_vmem [thread:$0]  (!%p11380_p12), %s11472_s2, 4096, %s881_s26, [#allocation12], %s11145_s4, %s11145_s4, %s11146_s17  }
  0xd2   : > { %s11147_s10 = smov [#allocation16]   ;;  %s946_s22 = sshll.u32 %s11304_s30, 4  ;;  %s11495_s22 = int_to_ptr.hbm [resolvable:$true] %s946_s22 }
  0xd3   : > { %s914_s28 = sshll.u32 %s11147_s10, 4  ;;  %s10922_s29 = sshra.s32 %s913_s1, 4  ;;  %s915_s28 = int_to_ptr.vmem [resolvable:$true] %s914_s28  ;;  %s10923_s29 = int_to_ptr.hbm [resolvable:$true] %s10922_s29 }
  0xd4   : > { %s10924_s24 = scalar_lea.hbm %s10923_s29, 64  ;;  %s10929_s15 = scalar_lea.hbm %s11284_s12, 64 }
  0xd5   : > { %p10925_p11 = scmp.ne.s32.totalorder %s10923_s29, %s10924_s24  ;;  %p10930_p3 = scmp.lt.s32.totalorder %s10923_s29, %s11284_s12 }
  0xd6   : > { %p10931_p2 = scmp.lt.s32.totalorder %s10929_s15, %s10924_s24 }
  0xd7   : > { %p10927_p13 = pnand %p10925_p11, %p11390_p0 }
  0xd8   : > { %p10932_p4 = por %p10931_p2, %p10930_p3 }
  0xd9   : > { %p10928_p1 = pneg %p10927_p13 }
  0xdb   : > { %p10933_p7 = pnand %p10932_p4, %p10928_p1 }
  0xdd   : > { %10936 = shalt.err (!%p10933_p7)
}
  0xde   : > { %s14118_s4 = smov 64   ;;  %s963_s2 = sshll.u32 %s14102_s3, 4  ;;  %s11507_s2 = int_to_ptr.hbm [resolvable:$true] %s963_s2 }
  0xdf   : > { %10300 = dma.hbm_to_vmem [thread:$0]  (!%p11380_p12), %s913_s1, 1024, %s915_s28, [#allocation15], %s14118_s4, %s14118_s4, %s11137_s7  }
  0xe0   : > { %s11148_s26 = smov [#allocation19]   ;;  %s10952_s10 = sshra.s32 %s11495_s22, 4  ;;  %s10953_s10 = int_to_ptr.hbm [resolvable:$true] %s10952_s10 }
  0xe1   : > { %s948_s17 = sshll.u32 %s11148_s26, 4  ;;  %s10954_s29 = scalar_lea.hbm %s10953_s10, 64  ;;  %s949_s17 = int_to_ptr.vmem [resolvable:$true] %s948_s17 }
  0xe2   : > { %p10955_p8 = scmp.ne.s32.totalorder %s10953_s10, %s10954_s29  ;;  %s10959_s24 = scalar_lea.hbm %s11304_s30, 64 }
  0xe3   : > { %p10960_p1 = scmp.lt.s32.totalorder %s10953_s10, %s11304_s30  ;;  %p10961_p3 = scmp.lt.s32.totalorder %s10959_s24, %s10954_s29 }
  0xe4   : > { %p10957_p11 = pnand %p10955_p8, %p11390_p0 }
  0xe5   : > { %p10962_p2 = por %p10961_p3, %p10960_p1 }
  0xe6   : > { %p10958_p13 = pneg %p10957_p11 }
  0xe8   : > { %p10963_p4 = pnand %p10962_p2, %p10958_p13 }
  0xea   : > { %10966 = shalt.err (!%p10963_p4)
}
  0xeb   : > { %10306 = dma.hbm_to_vmem [thread:$0]  (!%p11380_p12), %s11495_s22, 1024, %s949_s17, [#allocation18], %s14118_s4, %s14118_s4, %s11137_s7  }
  0xec   : > { %s11149_s1 = smov [#allocation20]   ;;  %s10982_s15 = sshra.s32 %s11507_s2, 4  ;;  %s10983_s15 = int_to_ptr.hbm [resolvable:$true] %s10982_s15 }
  0xed   : > { %s965_s28 = sshll.u32 %s11149_s1, 4  ;;  %s10984_s26 = scalar_lea.hbm %s10983_s15, 64  ;;  %s966_s28 = int_to_ptr.vmem [resolvable:$true] %s965_s28 }
  0xee   : > { %p10985_p7 = scmp.ne.s32.totalorder %s10983_s15, %s10984_s26  ;;  %s10989_s10 = scalar_lea.hbm %s14102_s3, 64 }
  0xef   : > { %p10990_p13 = scmp.lt.s32.totalorder %s10983_s15, %s14102_s3  ;;  %p10991_p1 = scmp.lt.s32.totalorder %s10989_s10, %s10984_s26 }
  0xf0   : > { %p10987_p8 = pnand %p10985_p7, %p11390_p0 }
  0xf1   : > { %p10992_p3 = por %p10991_p1, %p10990_p13 }
  0xf2   : > { %p10988_p11 = pneg %p10987_p8 }
  0xf4   : > { %p10993_p2 = pnand %p10992_p3, %p10988_p11 }
  0xf6   : > { %10996 = shalt.err (!%p10993_p2)
}
  0xf7   : > { %10309 = dma.hbm_to_vmem [thread:$0]  (!%p11380_p12), %s11507_s2, 1024, %s966_s28, [#allocation21], %s14118_s4, %s14118_s4, %s11137_s7  }
  0xf8   : > { %1018 = sbr.rel (%p11370_p10) target bundleno = 5393 (0x1511), region = 140 }
  0xfd   : > { %11057 = dma.done.wait (%p10314_p9), [#allocation3], 64  }
  0xfe   : > { %11059 = vsyncadd (%p10314_p9), [#allocation3], 4294967232 }
  0xff   : > { %11061 = dma.done.wait (%p10314_p9), [#allocation6], 48  }
 0x100   : > { %11063 = vsyncadd (%p10314_p9), [#allocation6], 4294967248 }
 0x101   : > { %11065 = dma.done.wait (%p10314_p9), [#allocation9], 4096  }
 0x102   : > { %11067 = vsyncadd (%p10314_p9), [#allocation9], 4294963200 }
 0x103   : > { %11069 = dma.done.wait (%p10314_p9), [#allocation12], 6144  }
 0x104   : > { %11071 = vsyncadd (%p10314_p9), [#allocation12], 4294961152 }
 0x105   : > { %11073 = dma.done.wait (%p10314_p9), [#allocation15], 5120  }
 0x106   : > { %11075 = vsyncadd (%p10314_p9), [#allocation15], 4294962176 }
 0x107   : > { %11077 = dma.done.wait (%p10314_p9), [#allocation18], 2048  }
 0x108   : > { %11079 = vsyncadd (%p10314_p9), [#allocation18], 4294965248 }
 0x109   : > { %11081 = dma.done.wait (%p10314_p9), [#allocation21], 1024  }
 0x10a   : > { %11083 = vsyncadd (%p10314_p9), [#allocation21], 4294966272  ;;  %s14119_s5 = sld [smem:[#allocation31_spill]]  ;;  %s9232_s18 = sshll.u32 %s11342_s0, 1  ;;  %v11150_v0 = vmov 0   ;;  %v11614_v53 = vld [vmem:[%s11189_s21] sm:$0xff] }
 0x10b   : > { %10429 = vset.pattern.permute.xlu1 %v11150_v0  ;;  %10428 = vset.pattern.permute.xlu0 %v11150_v0  ;;  %p1169_p10 = scmp.lt.s32.totalorder %s9232_s18, 3  ;;  %v11590_v21 = vld [vmem:[#allocation2 + $0x1] ss:$0 sm:$0xff]  ;;  %v11592_v22 = vld [vmem:[#allocation2] ss:$0 sm:$0xff]  ;;  %s14120_s7 = sld [smem:[#allocation35_spill]] }
 0x10c   : > { %10430 = vset.pattern.permute.xlu2 %v11150_v0  ;;  %v11594_v26 = vld [vmem:[#allocation2 + $0x2] ss:$0 sm:$0xff]  ;;  %v11598_v29 = vld [vmem:[#allocation2 + $0x3] ss:$0 sm:$0xff]  ;;  %v11604_v39 = vld [vmem:[#allocation5] ss:$0 sm:$0xff] }
 0x10d   : > { %s14160_s18 = smov (!%p1169_p10, %s9232_s18), 3  ;;  %v11609_v46 = vld [vmem:[#allocation5 + $0x1] ss:$0 sm:$0xff]  ;;  %s14121_s4 = sld [smem:[#allocation38_spill]] }
 0x10e   : > { %s10044_s11 = sshll.u32 %s14160_s18, 4  ;;  %v11618_v57 = vld [vmem:[%s11189_s21 + $0x8] sm:$0xff]  ;;  %s14122_s2 = sld [smem:[#allocation36_spill]] }
 0x10f   : > { %s11578_s22 = scalar_lea.vmem %s11174_s9, %s10044_s11  ;;  %s11152_s17 = smov 64  }
 0x110   : > { %s11569_s23 = scalar_lea.vmem %s14119_s5, %s10044_s11  ;;  %v1199_v9 = vld [vmem:[%s11578_s22] sm:$0xff]  ;;  %v1200_v13 = vld [vmem:[%s11578_s22 + $0x8] sm:$0xff]  ;;  %s11153_s29 = smov 96  }
 0x111   : > { %v1195_v1 = vld [vmem:[%s11569_s23] sm:$0xff]  ;;  %v1196_v2 = vld [vmem:[%s11569_s23 + $0x8] sm:$0xff]  ;;  %vm1339_vm8 = vcmp.eq.s32.totalorder %v1199_v9, 0  ;;  %vm1373_vm9 = vcmp.eq.s32.totalorder %v1199_v9, 1  ;;  %vm1340_vm10 = vcmp.eq.s32.totalorder %v1200_v13, 0  ;;  %vm1374_vm11 = vcmp.eq.s32.totalorder %v1200_v13, 1 }
 0x112   : > { %vm1237_vm0 = vcmp.eq.s32.totalorder %v1195_v1, 1  ;;  %vm1203_vm1 = vcmp.eq.s32.totalorder %v1195_v1, 0  ;;  %vm1271_vm2 = vcmp.eq.s32.totalorder %v1195_v1, 2  ;;  %vm1238_vm3 = vcmp.eq.s32.totalorder %v1196_v2, 1  ;;  %v1197_v61 = vld [vmem:[%s11569_s23 + $0x10] sm:$0xff]  ;;  %v1198_v63 = vld [vmem:[%s11569_s23 + $0x18] sm:$0xff] }
 0x113   : > { %v1242_v3 = vsel %vm1237_vm0, 1, %v11150_v0  ;;  %v1208_v4 = vsel %vm1203_vm1, 1, %v11150_v0  ;;  %v1276_v5 = vsel %vm1271_vm2, 1, %v11150_v0  ;;  %vm1204_vm4 = vcmp.eq.s32.totalorder %v1196_v2, 0  ;;  %s11154_s24 = smov 32   ;;  %s14123_s1 = sld [smem:[#allocation40_spill]] }
 0x114   : > { %1247 = vperm.xlu1 %10429, %v1242_v3   ;;  %1213 = vperm.xlu0 %10428, %v1208_v4   ;;  %vm1272_vm5 = vcmp.eq.s32.totalorder %v1196_v2, 2  ;;  %v1243_v6 = vsel %vm1238_vm3, 1, %v11150_v0  ;;  %v1209_v7 = vsel %vm1204_vm4, 1, %v11150_v0  ;;  %vm1306_vm6 = vcmp.eq.s32.totalorder %v1196_v2, 3  ;;  %s14124_s28 = sld [smem:[#allocation32_spill]] }
 0x115   : > { %1281 = vperm.xlu2 %10430, %v1276_v5   ;;  %v1277_v8 = vsel %vm1272_vm5, 1, %v11150_v0  ;;  %vm1305_vm7 = vcmp.eq.s32.totalorder %v1195_v1, 3  ;;  %v1311_v10 = vsel %vm1306_vm6, 1, %v11150_v0  ;;  %v1344_v12 = vsel %vm1339_vm8, 1, %v11150_v0  ;;  %v1201_v5 = vld [vmem:[%s11578_s22 + $0x10] sm:$0xff]  ;;  %s14129_s26 = sld [smem:[#allocation41_spill]] }
 0x116   : > { %v1310_v11 = vsel %vm1305_vm7, 1, %v11150_v0  ;;  %v1378_v14 = vsel %vm1373_vm9, 1, %v11150_v0  ;;  %v1345_v15 = vsel %vm1340_vm10, 1, %v11150_v0  ;;  %v1379_v16 = vsel %vm1374_vm11, 1, %v11150_v0  ;;  %s14130_s10 = sld [smem:[#allocation42_spill]] }
 0x117   : > { %vm1205_vm8 = vcmp.eq.s32.totalorder %v1197_v61, 0  ;;  %vm1206_vm9 = vcmp.eq.s32.totalorder %v1198_v63, 0  ;;  %vm1240_vm10 = vcmp.eq.s32.totalorder %v1198_v63, 1  ;;  %vm1273_vm11 = vcmp.eq.s32.totalorder %v1197_v61, 2  ;;  %s14131_s11 = sld [smem:[#allocation43_spill]] }
 0x118   : > { %v1210_v62 = vsel %vm1205_vm8, 1, %v11150_v0  ;;  %v1211_v1 = vsel %vm1206_vm9, 1, %v11150_v0  ;;  %v1245_v2 = vsel %vm1240_vm10, 1, %v11150_v0  ;;  %v1278_v3 = vsel %vm1273_vm11, 1, %v11150_v0  ;;  %s14132_s23 = sld [smem:[#allocation44_spill]] }
 0x11a   : > { %s11970_s15 = scalar_lea.vmem %s14124_s28, %s14160_s18  ;;  %s14147_s28 = sld [smem:[#allocation48_spill]] }
 0x11c   : > { %1250 = vperm.xlu1 %10429, %v1243_v6   ;;  %1216 = vperm.xlu0 %10428, %v1209_v7  }
 0x11d   : > { %1284 = vperm.xlu2 %10430, %v1277_v8   ;;  %v1202_v8 = vld [vmem:[%s11578_s22 + $0x18] sm:$0xff]  ;;  %s14133_s22 = sld [smem:[#allocation46_spill]] }
 0x124   : > { %1318 = vperm.xlu1 %10429, %v1311_v10   ;;  %1315 = vperm.xlu0 %10428, %v1310_v11   ;;  %v11151_v11 = vmov 128.0  }
 0x125   : > { %1349 = vperm.xlu2 %10430, %v1344_v12   ;;  %10456 = vrcp.f32 %v11151_v11 }
 0x12b   : > { %v10457_v12 = vpop.eup %10456 }
 0x12c   : > { %1383 = vperm.xlu1 %10429, %v1378_v14   ;;  %1352 = vperm.xlu0 %10428, %v1345_v15   ;;  %v1424_v13 = vmul.f32 128.0, %v10457_v12 }
 0x12d   : > { %1386 = vperm.xlu2 %10430, %v1379_v16  }
 0x12e   : > { %v1425_v14 = vsub.f32 1.0, %v1424_v13 }
 0x130   : > { %v1426_v15 = vmul.f32 %v10457_v12, %v1425_v14 }
 0x132   : > { %v1427_v16 = vadd.f32 %v10457_v12, %v1426_v15 }
 0x16f   : > { %v1282_v17 = vpop.permute.xlu2 %1281 }
 0x170   : > { %vm1292_vm14 = vcmp.eq.s32.totalorder %v1282_v17, 1 }
 0x171   : > { %v1297_v31 = vsel %vm1292_vm14, %v11594_v26, 0.0  ;;  %vm1341_vm14 = vcmp.eq.s32.totalorder %v1201_v5, 0 }
 0x172   : > { %v1346_v7 = vsel %vm1341_vm14, 1, %v11150_v0 }
 0x177   : > { %v1285_v20 = vpop.permute.xlu2 %1284 }
 0x178   : > { %vm1293_vm2 = vcmp.eq.s32.totalorder %v1285_v20, 1 }
 0x179   : > { %v1298_v42 = vsel %vm1293_vm2, %v11594_v26, 0.0  ;;  %vm1239_vm2 = vcmp.eq.s32.totalorder %v1197_v61, 1 }
 0x17f   : > { %v1350_v25 = vpop.permute.xlu2 %1349 }
 0x180   : > { %vm1360_vm4 = vcmp.eq.s32.totalorder %v1350_v25, 1 }
 0x181   : > { %v1365_v45 = vsel %vm1360_vm4, %v11604_v39, 0.0  ;;  %vm1342_vm4 = vcmp.eq.s32.totalorder %v1202_v8, 0 }
 0x186   : > { %v1248_v18 = vpop.permute.xlu1 %1247  ;;  %v1214_v19 = vpop.permute.xlu0 %1213 }
 0x187   : > { %vm1258_vm12 = vcmp.eq.s32.totalorder %v1248_v18, 1  ;;  %vm1224_vm13 = vcmp.eq.s32.totalorder %v1214_v19, 1  ;;  %v1387_v40 = vpop.permute.xlu2 %1386 }
 0x188   : > { %v1263_v27 = vsel %vm1258_vm12, %v11590_v21, 0.0  ;;  %v1229_v28 = vsel %vm1224_vm13, %v11592_v22, 0.0  ;;  %vm1395_vm5 = vcmp.eq.s32.totalorder %v1387_v40, 1  ;;  %vm1274_vm12 = vcmp.eq.s32.totalorder %v1198_v63, 2  ;;  %v10051_v40 = vld [vmem:[%s11214_s14 + $0x28] sm:$0xff] }
 0x189   : > { %v1267_v30 = vadd.f32 %v1263_v27, %v1229_v28  ;;  %v1400_v56 = vsel %vm1395_vm5, %v11609_v46, 0.0  ;;  %v1279_v4 = vsel %vm1274_vm12, 1, %v11150_v0  ;;  %vm1308_vm13 = vcmp.eq.s32.totalorder %v1198_v63, 3  ;;  %v10046_v63 = vld [vmem:[%s11214_s14] sm:$0xff] }
 0x18a   : > { %v1313_v6 = vsel %vm1308_vm13, 1, %v11150_v0 }
 0x18b   : > { %v1301_v38 = vadd.f32 %v1297_v31, %v1267_v30  ;;  %v1244_v30 = vsel %vm1239_vm2, 1, %v11150_v0 }
 0x18e   : > { %v1251_v23 = vpop.permute.xlu1 %1250  ;;  %v1217_v24 = vpop.permute.xlu0 %1216 }
 0x18f   : > { %vm1259_vm15 = vcmp.eq.s32.totalorder %v1251_v23, 1  ;;  %vm1225_vm0 = vcmp.eq.s32.totalorder %v1217_v24, 1 }
 0x190   : > { %v1264_v32 = vsel %vm1259_vm15, %v11590_v21, 0.0  ;;  %v1230_v33 = vsel %vm1225_vm0, %v11592_v22, 0.0  ;;  %vm1375_vm15 = vcmp.eq.s32.totalorder %v1201_v5, 1  ;;  %vm1376_vm0 = vcmp.eq.s32.totalorder %v1202_v8, 1 }
 0x191   : > { %v1268_v37 = vadd.f32 %v1264_v32, %v1230_v33  ;;  %v1380_v9 = vsel %vm1375_vm15, 1, %v11150_v0  ;;  %v1381_v10 = vsel %vm1376_vm0, 1, %v11150_v0  ;;  %v1347_v32 = vsel %vm1342_vm4, 1, %v11150_v0  ;;  %v10053_v33 = vld [vmem:[%s11214_s14 + $0x38] sm:$0xff] }
 0x192   : > { %1591 = vmatpush.bf16.msra.mxu0 %v10053_v33 }
 0x193   : > { %v1302_v44 = vadd.f32 %v1298_v42, %v1268_v37  ;;  %v10060_v37 = vld [vmem:[#allocation8 + $0x30] sm:$0xff]  ;;  %v10067_v42 = vld [vmem:[#allocation10 + $0x28] sm:$0xff] }
 0x196   : > { %v1319_v34 = vpop.permute.xlu1 %1318  ;;  %v1316_v35 = vpop.permute.xlu0 %1315 }
 0x197   : > { %vm1326_vm1 = vcmp.eq.s32.totalorder %v1316_v35, 1  ;;  %vm1327_vm3 = vcmp.eq.s32.totalorder %v1319_v34, 1  ;;  %v10061_v34 = vld [vmem:[#allocation8 + $0x38] sm:$0xff] }
 0x198   : > { %v1331_v36 = vsel %vm1326_vm1, %v11598_v29, 0.0  ;;  %v1332_v43 = vsel %vm1327_vm3, %v11598_v29, 0.0  ;;  %vm1428_vm1 = vweird.f32 %v10457_v12  ;;  %vm1307_vm3 = vcmp.eq.s32.totalorder %v1197_v61, 3  ;;  %v10069_v35 = vld [vmem:[#allocation10 + $0x38] sm:$0xff]  ;;  %1678 = vmatpush.bf16.msra.mxu1 %v10061_v34 }
 0x199   : > { %v1335_v41 = vadd.f32 %v1331_v36, %v1301_v38  ;;  %v1336_v49 = vadd.f32 %v1332_v43, %v1302_v44  ;;  %v11635_v17 = vsel %vm1428_vm1, %v10457_v12, %v1427_v16  ;;  %v1312_v31 = vsel %vm1307_vm3, 1, %v11150_v0  ;;  %1765 = vmatpush.bf16.msra.mxu2 %v10069_v35  ;;  %v10052_v36 = vld [vmem:[%s11214_s14 + $0x30] sm:$0xff]  ;;  %v10068_v38 = vld [vmem:[#allocation10 + $0x30] sm:$0xff] }
 0x19a   : > { %1592 = vmatpush.bf16.msra.mxu0 %v10052_v36  ;;  %v10050_v43 = vld [vmem:[%s11214_s14 + $0x20] sm:$0xff]  ;;  %v10058_v44 = vld [vmem:[#allocation8 + $0x20] sm:$0xff] }
 0x19b   : > { %v1369_v50 = vadd.f32 %v1365_v45, %v1335_v41  ;;  %v10059_v41 = vld [vmem:[#allocation8 + $0x28] sm:$0xff]  ;;  %v10066_v45 = vld [vmem:[#allocation10 + $0x20] sm:$0xff] }
 0x19c   : > { %1679 = vmatpush.bf16.msra.mxu1 %v10060_v37 }
 0x19d   : > { %1766 = vmatpush.bf16.msra.mxu2 %v10068_v38 }
 0x19e   : > { %v1384_v47 = vpop.permute.xlu1 %1383  ;;  %v1353_v48 = vpop.permute.xlu0 %1352  ;;  %1593 = vmatpush.bf16.msra.mxu0 %v10051_v40 }
 0x19f   : > { %vm1394_vm6 = vcmp.eq.s32.totalorder %v1384_v47, 1  ;;  %vm1361_vm7 = vcmp.eq.s32.totalorder %v1353_v48, 1  ;;  %v10049_v47 = vld [vmem:[%s11214_s14 + $0x18] sm:$0xff]  ;;  %v10057_v48 = vld [vmem:[#allocation8 + $0x18] sm:$0xff] }
 0x1a0   : > { %v1399_v51 = vsel %vm1394_vm6, %v11609_v46, 0.0  ;;  %v1366_v52 = vsel %vm1361_vm7, %v11604_v39, 0.0  ;;  %1680 = vmatpush.bf16.msra.mxu1 %v10059_v41 }
 0x1a1   : > { %v1370_v54 = vadd.f32 %v1366_v52, %v1336_v49  ;;  %v1403_v55 = vadd.f32 %v1399_v51, %v1369_v50  ;;  %1767 = vmatpush.bf16.msra.mxu2 %v10067_v42  ;;  %v10065_v49 = vld [vmem:[#allocation10 + $0x18] sm:$0xff]  ;;  %v10048_v52 = vld [vmem:[%s11214_s14 + $0x10] sm:$0xff]  ;;  %v11674_v42 = vld [vmem:[%s14120_s7] ss:$0 sm:$0xff]  ;;  %s14134_s7 = smov %s14133_s22 }
 0x1a2   : > { %1594 = vmatpush.bf16.msra.mxu0 %v10050_v43 }
 0x1a3   : > { %v1409_v58 = vadd.f32 %v11614_v53, %v1403_v55  ;;  %v1404_v59 = vadd.f32 %v1400_v56, %v1370_v54  ;;  %v10056_v54 = vld [vmem:[#allocation8 + $0x10] sm:$0xff]  ;;  %v10047_v56 = vld [vmem:[%s11214_s14 + $0x8] sm:$0xff] }
 0x1a4   : > { %1681 = vmatpush.bf16.msra.mxu1 %v10058_v44  ;;  %v10064_v55 = vld [vmem:[#allocation10 + $0x10] sm:$0xff] }
 0x1a5   : > { %1415 = vadd.xlane.f32.xlu0 %v1409_v58  ;;  %v1410_v60 = vadd.f32 %v11618_v57, %v1404_v59  ;;  %1768 = vmatpush.bf16.msra.mxu2 %v10066_v45  ;;  %v10063_v59 = vld [vmem:[#allocation10 + $0x8] sm:$0xff] }
 0x1a6   : > { %1595 = vmatpush.bf16.msra.mxu0 %v10049_v47 }
 0x1a7   : > { %1417 = vadd.xlane.f32.xlu1 %v1410_v60 }
 0x1a8   : > { %1682 = vmatpush.bf16.msra.mxu1 %v10057_v48 }
 0x1a9   : > { %1769 = vmatpush.bf16.msra.mxu2 %v10065_v49 }
 0x1aa   : > { %1596 = vmatpush.bf16.msra.mxu0 %v10048_v52 }
 0x1ac   : > { %1683 = vmatpush.bf16.msra.mxu1 %v10056_v54  ;;  %v11680_v54 = vld [vmem:[#allocation7] ss:$0 sm:$0xff] }
 0x1ad   : > { %1770 = vmatpush.bf16.msra.mxu2 %v10064_v55 }
 0x1ae   : > { %1597 = vmatpush.bf16.msra.mxu0 %v10047_v56 }
 0x1b1   : > { %1771 = vmatpush.bf16.msra.mxu2 %v10063_v59 }
 0x1b2   : > { %1598 = vmatpush.bf16.msra.mxu0 %v10046_v63 }
 0x1b9   : > { %1219 = vperm.xlu0 %10428, %v1210_v62  }
 0x1c0   : > { %1222 = vperm.xlu1 %10429, %v1211_v1   ;;  %v10054_v1 = vld [vmem:[#allocation8] sm:$0xff] }
 0x1c1   : > { %1256 = vperm.xlu0 %10428, %v1245_v2   ;;  %v10062_v2 = vld [vmem:[#allocation10] sm:$0xff] }
 0x1c2   : > { %1772 = vmatpush.bf16.msra.mxu2 %v10062_v2 }
 0x1c8   : > { %1287 = vperm.xlu1 %10429, %v1278_v3  }
 0x1c9   : > { %1290 = vperm.xlu0 %10428, %v1279_v4  }
 0x1d0   : > { %1324 = vperm.xlu1 %10429, %v1313_v6  }
 0x1d1   : > { %1355 = vperm.xlu0 %10428, %v1346_v7  }
 0x1d8   : > { %1389 = vperm.xlu1 %10429, %v1380_v9  }
 0x1d9   : > { %1392 = vperm.xlu0 %10428, %v1381_v10  }
 0x218   : > { %v1416_v18 = vpop.xlane.xlu0 %1415 }
 0x219   : > { %v1430_v19 = vmul.f32 %v11635_v17, %v1416_v18 }
 0x21a   : > { %v1418_v20 = vpop.xlane.xlu1 %1417 }
 0x21b   : > { %v11638_v23 = vsub.f32 %v1409_v58, %v1430_v19  ;;  %v1431_v24 = vmul.f32 %v11635_v17, %v1418_v20  ;;  %v10055_v58 = vld [vmem:[#allocation8 + $0x8] sm:$0xff] }
 0x21c   : > { %1684 = vmatpush.bf16.msra.mxu1 %v10055_v58 }
 0x21d   : > { %v1438_v25 = vmul.f32 %v11638_v23, %v11638_v23  ;;  %v11643_v27 = vsub.f32 %v1410_v60, %v1431_v24 }
 0x21f   : > { %1442 = vadd.xlane.f32.xlu2 %v1438_v25  ;;  %v1439_v28 = vmul.f32 %v11643_v27, %v11643_v27 }
 0x220   : > { %1685 = vmatpush.bf16.msra.mxu1 %v10054_v1  ;;  %v11703_v1 = vld [vmem:[%s14122_s2] ss:$0 sm:$0xff] }
 0x227   : > { %1444 = vadd.xlane.f32.xlu2 %v1439_v28 }
 0x22b   : > { %v1220_v50 = vpop.permute.xlu0 %1219 }
 0x22c   : > { %vm1226_vm5 = vcmp.eq.s32.totalorder %v1220_v50, 1 }
 0x22d   : > { %v1231_v19 = vsel %vm1226_vm5, %v11592_v22, 0.0 }
 0x232   : > { %v11655_v51 = vpop.permute.xlu1 %1222 }
 0x233   : > { %v11660_v62 = vpop.permute.xlu0 %1256  ;;  %vm1227_vm1 = vcmp.eq.s32.totalorder %v11655_v51, 1 }
 0x234   : > { %vm1261_vm2 = vcmp.eq.s32.totalorder %v11660_v62, 1 }
 0x23a   : > { %v1288_v4 = vpop.permute.xlu1 %1287 }
 0x23b   : > { %v11664_v9 = vpop.permute.xlu0 %1290  ;;  %vm1294_vm8 = vcmp.eq.s32.totalorder %v1288_v4, 1 }
 0x23c   : > { %vm1295_vm3 = vcmp.eq.s32.totalorder %v11664_v9, 1 }
 0x23f   : > { %1253 = vperm.xlu2 %10430, %v1244_v30  }
 0x242   : > { %v11666_v11 = vpop.permute.xlu1 %1324 }
 0x243   : > { %v1356_v28 = vpop.permute.xlu0 %1355  ;;  %vm1329_vm4 = vcmp.eq.s32.totalorder %v11666_v11, 1 }
 0x244   : > { %vm1362_vm11 = vcmp.eq.s32.totalorder %v1356_v28, 1  ;;  %v1334_v51 = vsel %vm1329_vm4, %v11598_v29, 0.0 }
 0x245   : > { %v1367_v43 = vsel %vm1362_vm11, %v11604_v39, 0.0 }
 0x247   : > { %1321 = vperm.xlu2 %10430, %v1312_v31   ;;  %v1299_v31 = vsel %vm1294_vm8, %v11594_v26, 0.0  ;;  %vm2533_vm8 = vcmask 261120  }
 0x24b   : > { %v1393_v9 = vpop.permute.xlu0 %1392 }
 0x24f   : > { %1358 = vperm.xlu2 %10430, %v1347_v32   ;;  %v1390_v32 = vpop.permute.xlu1 %1389 }
 0x250   : > { %vm1396_vm14 = vcmp.eq.s32.totalorder %v1390_v32, 1 }
 0x251   : > { %v1401_v47 = vsel %vm1396_vm14, %v11609_v46, 0.0 }
 0x292   : > { %v1443_v60 = vpop.xlane.xlu2 %1442 }
 0x293   : > { %v1450_v61 = vmul.f32 %v1443_v60, %v11635_v17 }
 0x295   : > { %v1454_v3 = vadd.f32 1e-05, %v1450_v61 }
 0x297   : > { %10458 = vrsqrt.f32 %v1454_v3  ;;  %vm1464_vm9 = vweird.f32 %v1454_v3 }
 0x29a   : > { %v1445_v5 = vpop.xlane.xlu2 %1444 }
 0x29b   : > { %v1451_v6 = vmul.f32 %v1445_v5, %v11635_v17 }
 0x29d   : > { %v10459_v7 = vpop.eup %10458  ;;  %v1455_v8 = vadd.f32 1e-05, %v1451_v6 }
 0x29e   : > { %v1459_v10 = vmul.f32 %v10459_v7, %v1454_v3  ;;  %vm1465_vm7 = vweird.f32 %v10459_v7 }
 0x29f   : > { %10460 = vrsqrt.f32 %v1455_v8  ;;  %vm1466_vm10 = vmor %vm1464_vm9, %vm1465_vm7  ;;  %vm1474_vm15 = vweird.f32 %v1455_v8  ;;  %vm1849_vm7 = vcmask 1047556  }
 0x2a0   : > { %v1460_v12 = vmul.f32 %v10459_v7, %v1459_v10 }
 0x2a2   : > { %v1461_v13 = vmul.f32 0.5, %v1460_v12  ;;  %v1254_v14 = vpop.permute.xlu2 %1253 }
 0x2a3   : > { %vm1260_vm6 = vcmp.eq.s32.totalorder %v1254_v14, 1  ;;  %v1266_v14 = vsel %vm1261_vm2, %v11590_v21, 0.0 }
 0x2a4   : > { %v1462_v15 = vsub.f32 1.5, %v1461_v13  ;;  %v1265_v16 = vsel %vm1260_vm6, %v11590_v21, 0.0  ;;  %v1232_v13 = vsel %vm1227_vm1, %v11592_v22, 0.0  ;;  %vm1397_vm6 = vcmp.eq.s32.totalorder %v1393_v9, 1 }
 0x2a5   : > { %v10461_v18 = vpop.eup %10460  ;;  %v1269_v25 = vadd.f32 %v1265_v16, %v1231_v19  ;;  %v1270_v19 = vadd.f32 %v1266_v14, %v1232_v13  ;;  %vm2643_vm1 = vcmask 130048  }
 0x2a6   : > { %v1463_v20 = vmul.f32 %v10459_v7, %v1462_v15  ;;  %v1469_v24 = vmul.f32 %v10461_v18, %v1455_v8  ;;  %vm1475_vm13 = vweird.f32 %v10461_v18 }
 0x2a7   : > { %v1303_v36 = vadd.f32 %v1299_v31, %v1269_v25  ;;  %vm1476_vm0 = vmor %vm1474_vm15, %vm1475_vm13 }
 0x2a8   : > { %v1470_v30 = vmul.f32 %v10461_v18, %v1469_v24  ;;  %v1467_v33 = vsel %vm1466_vm10, %v10459_v7, %v1463_v20 }
 0x2a9   : > { %v1498_v41 = vmul.f32 %v1467_v33, %v11638_v23 }
 0x2aa   : > { %v1471_v34 = vmul.f32 0.5, %v1470_v30  ;;  %v1322_v35 = vpop.permute.xlu2 %1321 }
 0x2ab   : > { %vm1328_vm12 = vcmp.eq.s32.totalorder %v1322_v35, 1  ;;  %v1505_v52 = vmul.f32 %v11674_v42, %v1498_v41 }
 0x2ac   : > { %v1472_v37 = vsub.f32 1.5, %v1471_v34  ;;  %v1333_v38 = vsel %vm1328_vm12, %v11598_v29, 0.0 }
 0x2ad   : > { %v1337_v40 = vadd.f32 %v1333_v38, %v1303_v36  ;;  %v11685_v56 = vadd.f32 %v11680_v54, %v1505_v52 }
 0x2ae   : > { %v1473_v44 = vmul.f32 %v10461_v18, %v1472_v37  ;;  %v11155_v37 = vmov 1983009808  }
 0x2af   : > { %v1371_v45 = vadd.f32 %v1367_v43, %v1337_v40  ;;  %v1840_v38 = vunpack.c.l.s4 %v11155_v37 }
 0x2b0   : > { %v1477_v48 = vsel %vm1476_vm0, %v10461_v18, %v1473_v44  ;;  %v1300_v18 = vsel %vm1295_vm3, %v11594_v26, 0.0  ;;  %v1402_v26 = vsel %vm1397_vm6, %v11609_v46, 0.0 }
 0x2b1   : > { %v1405_v49 = vadd.f32 %v1401_v47, %v1371_v45  ;;  %v1499_v50 = vmul.f32 %v1477_v48, %v11643_v27  ;;  %v11693_v27 = vld [vmem:[%s14121_s4] ss:$0 sm:$0xff]  ;;  %v1304_v62 = vadd.f32 %v1300_v18, %v1270_v19  ;;  %v11766_v41 = vunpack.c.0.s8 %v1840_v38 }
 0x2b2   : > { %v1359_v15 = vpop.permute.xlu2 %1358 }
 0x2b3   : > { %v1411_v23 = vadd.f32 %v11614_v53, %v1405_v49  ;;  %v1506_v55 = vmul.f32 %v11674_v42, %v1499_v50  ;;  %vm1363_vm5 = vcmp.eq.s32.totalorder %v1359_v15, 1  ;;  %v1338_v20 = vadd.f32 %v1334_v51, %v1304_v62 }
 0x2b4   : > { %v1368_v22 = vsel %vm1363_vm5, %v11604_v39, 0.0 }
 0x2b5   : > { %1419 = vadd.xlane.f32.xlu0 %v1411_v23  ;;  %v11688_v58 = vadd.f32 %v11680_v54, %v1506_v55  ;;  %v1372_v21 = vadd.f32 %v1368_v22, %v1338_v20  ;;  %v11156_v55 = vmov 1934713408  }
 0x2b7   : > { %v1521_v59 = vpack.c.bf16 %v11688_v58, %v11685_v56  ;;  %v1406_v11 = vadd.f32 %v1402_v26, %v1372_v21 }
 0x2b9   : > { %1599 = vmatmul.bf16.vlgmr.msra.gmra.mxu0 %v1521_v59  ;;  %1686 = vmatmul.bf16.vlgmr.msra.gmra.mxu1 %v1521_v59  ;;  %v11735_v25 = vadd.f32 %v11618_v57, %v1406_v11  ;;  %v11750_v57 = vld [vmem:[%s14123_s1] ss:$0 sm:$0xff] }
 0x2ba   : > { %1773 = vmatmul.bf16.vlgmr.msra.gmra.mxu2 %v1521_v59  ;;  %v1854_v59 = vunpack.c.l.s4 %v11156_v55 }
 0x328   : > { %v1420_v24 = vpop.xlane.xlu0 %1419 }
 0x329   : > { %v1432_v29 = vmul.f32 %v11635_v17, %v1420_v24 }
 0x32b   : > { %v11741_v39 = vsub.f32 %v1411_v23, %v1432_v29 }
 0x32d   : > { %v1440_v46 = vmul.f32 %v11741_v39, %v11741_v39 }
 0x336   : > { %v1600_v60 = vpop.f32.mrf.mxu0  ;;  %v1687_v53 = vpop.f32.mrf.mxu1 }
 0x337   : > { %v1688_v61 = vadd.f32 %v11693_v27, %v1687_v53  ;;  %v1601_v4 = vadd.f32 %v11703_v1, %v1600_v60 }
 0x339   : > { %v11696_v63 = vpack.c.bf16 %v1688_v61, %v1688_v61  ;;  %v1784_v7 = vmul.f32 0.17677669, %v1601_v4 }
 0x33b   : > { %2049 = vrot.lane.b32.xlu1 %v11696_v63, %s11152_s17  ;;  %2045 = vrot.lane.b32.xlu2 %v11696_v63, %s11153_s29  ;;  %v11713_v8 = vpack.c.bf16 %v1784_v7, %v1784_v7  ;;  %v2060_v43 = vshrl.u32 %v11696_v63, 16 }
 0x33d   : > { %v1774_v28 = vpop.f32.mrf.mxu2 }
 0x33e   : > { %v1602_v2 = vpop.f32.mrf.mxu0  ;;  %v1689_v10 = vpop.f32.mrf.mxu1  ;;  %v1775_v31 = vadd.f32 %v11750_v57, %v1774_v28 }
 0x33f   : > { %v1603_v3 = vadd.f32 %v11703_v1, %v1602_v2  ;;  %v1690_v12 = vadd.f32 %v11693_v27, %v1689_v10 }
 0x340   : > { %v11758_v33 = vpack.c.bf16 %v1775_v31, %v1775_v31 }
 0x341   : > { %v1785_v5 = vmul.f32 0.17677669, %v1603_v3  ;;  %v11723_v16 = vpack.c.bf16 %v1690_v12, %v1690_v12  ;;  %v11774_v3 = vunpack.c.0.s8 %v1854_v59 }
 0x343   : > { %v11707_v6 = vpack.c.bf16 %v1785_v5, %v1785_v5  ;;  %2053 = vrot.lane.b32.xlu1 %v11696_v63, %s11154_s24  ;;  %v2072_v31 = vshrl.u32 %v11723_v16, 16 }
 0x345   : > { %1804 = vrot.lane.b32.xlu0 %v11707_v6, %s11153_s29  ;;  %v1776_v30 = vpop.f32.mrf.mxu2 }
 0x346   : > { %v1777_v32 = vadd.f32 %v11750_v57, %v1776_v30 }
 0x348   : > { %v11760_v34 = vpack.c.bf16 %v1777_v32, %v1777_v32 }
 0x34b   : > { %1802 = vrot.lane.b32.xlu1 %v11713_v8, %s11153_s29 }
 0x353   : > { %2047 = vrot.lane.b32.xlu1 %v11723_v16, %s11153_s29 }
 0x35b   : > { %2051 = vrot.lane.b32.xlu1 %v11723_v16, %s11152_s17 }
 0x363   : > { %2055 = vrot.lane.b32.xlu1 %v11723_v16, %s11154_s24 }
 0x364   : > { %1421 = vadd.xlane.f32.xlu2 %v11735_v25 }
 0x36b   : > { %1810 = vrot.lane.b32.xlu1 %v11713_v8, %s11154_s24 }
 0x36f   : > { %1446 = vadd.xlane.f32.xlu0 %v1440_v46 }
 0x373   : > { %1808 = vrot.lane.b32.xlu1 %v11707_v6, %s11152_s17 }
 0x37b   : > { %1812 = vrot.lane.b32.xlu1 %v11707_v6, %s11154_s24 }
 0x37c   : > { %1806 = vrot.lane.b32.xlu2 %v11713_v8, %s11152_s17 }
 0x383   : > { %2289 = vrot.lane.b32.xlu1 %v11760_v34, %s11153_s29  ;;  %2291 = vrot.lane.b32.xlu0 %v11758_v33, %s11152_s17 }
 0x395   : > { %v2046_v36 = vpop.permute.xlu2 %2045 }
 0x396   : > { %v2061_v40 = vshrl.u32 %v2046_v36, 16  ;;  %v2059_v44 = vpack.i.b16 %v2046_v36, %v11696_v63 }
 0x398   : > { %v2062_v47 = vpack.i.b16 %v2061_v40, %v2060_v43  ;;  %v2085_v52 = vperm.slane %v2059_v44, %v11766_v41 }
 0x39a   : > { %v2111_v60 = vperm.slane %v2062_v47, %v11766_v41  ;;  %v2093_v61 = vrot.slane %v2085_v52, 4  ;;  %v1817_v47 = vshrl.u32 %v11713_v8, 16 }
 0x39c   : > { %v2119_v4 = vrot.slane %v2111_v60, 4 }
 0x3ad   : > { %v2050_v35 = vpop.permute.xlu1 %2049 }
 0x3ae   : > { %v2066_v48 = vshrl.u32 %v2050_v35, 16 }
 0x3b5   : > { %v2054_v45 = vpop.permute.xlu1 %2053 }
 0x3b6   : > { %v2065_v49 = vpack.i.b16 %v2054_v45, %v2050_v35  ;;  %v2067_v50 = vshrl.u32 %v2054_v45, 16  ;;  %v1829_v45 = vshrl.u32 %v11707_v6, 16 }
 0x3b7   : > { %v11791_v38 = vpop.permute.xlu0 %1804 }
 0x3b8   : > { %v2068_v23 = vpack.i.b16 %v2067_v50, %v2066_v48  ;;  %v2090_v53 = vperm.slane %v2065_v49, %v11766_v41  ;;  %v1828_v49 = vpack.i.b16 %v11791_v38, %v11707_v6 }
 0x3ba   : > { %v2116_v2 = vperm.slane %v2068_v23, %v11766_v41  ;;  %v2091_v5 = vrot.slane %v2090_v53, 4  ;;  %v2094_v7 = vsel %vm1849_vm7, %v2090_v53, %v2093_v61  ;;  %v1830_v61 = vshrl.u32 %v11791_v38, 16 }
 0x3bb   : > { %v2102_v13 = vperm.slane %v2094_v7, %v11774_v3 }
 0x3bc   : > { %v2117_v10 = vrot.slane %v2116_v2, 4  ;;  %v2120_v12 = vsel %vm1849_vm7, %v2116_v2, %v2119_v4  ;;  %v2092_v14 = vsel %vm1849_vm7, %v2091_v5, %v2085_v52 }
 0x3bd   : > { %v1803_v63 = vpop.permute.xlu1 %1802  ;;  %v2128_v15 = vperm.slane %v2120_v12, %v11774_v3  ;;  %v2098_v19 = vperm.slane %v2092_v14, %v11774_v3  ;;  %v2105_v51 = vrot.slane %v2102_v13, 4 }
 0x3be   : > { %v2118_v18 = vsel %vm1849_vm7, %v2117_v10, %v2111_v60  ;;  %v1818_v43 = vshrl.u32 %v1803_v63, 16 }
 0x3bf   : > { %v2124_v9 = vperm.slane %v2118_v18, %v11774_v3  ;;  %v2131_v22 = vrot.slane %v2128_v15, 4  ;;  %v2103_v20 = vrot.slane %v2098_v19, 4  ;;  %v2106_v21 = vsel %vm1849_vm7, 0, %v2105_v51 }
 0x3c0   : > { %v2190_v24 = vrot.slane %v2106_v21, 4  ;;  %v2185_v53 = vsel %vm1849_vm7, %v2105_v51, %v2098_v19  ;;  %v1819_v2 = vpack.i.b16 %v1818_v43, %v1817_v47 }
 0x3c1   : > { %v2129_v26 = vrot.slane %v2124_v9, 4  ;;  %v2132_v11 = vsel %vm1849_vm7, 0, %v2131_v22  ;;  %v2104_v29 = vsel %vm1849_vm7, 0, %v2103_v20  ;;  %v2204_v7 = vsel %vm1849_vm7, %v2131_v22, %v2124_v9 }
 0x3c2   : > { %v2209_v30 = vrot.slane %v2132_v11, 4  ;;  %v2191_v36 = vsel %vm1849_vm7, %v2190_v24, %v2104_v29  ;;  %v2189_v14 = vperm.slane %v2185_v53, %v11766_v41  ;;  %v1831_v9 = vpack.i.b16 %v1830_v61, %v1829_v45 }
 0x3c3   : > { %v2130_v32 = vsel %vm1849_vm7, 0, %v2129_v26  ;;  %v2195_v44 = vperm.slane %v2191_v36, %v11766_v41  ;;  %v2208_v21 = vperm.slane %v2204_v7, %v11766_v41 }
 0x3c4   : > { %v2210_v40 = vsel %vm1849_vm7, %v2209_v30, %v2130_v32  ;;  %v1869_v32 = vperm.slane %v1819_v2, %v11766_v41 }
 0x3c5   : > { %v2048_v62 = vpop.permute.xlu1 %2047  ;;  %v2214_v23 = vperm.slane %v2210_v40, %v11766_v41  ;;  %v2196_v5 = vrot.slane %v2195_v44, 4 }
 0x3c6   : > { %v2073_v46 = vshrl.u32 %v2048_v62, 16  ;;  %v2071_v35 = vpack.i.b16 %v2048_v62, %v11723_v16  ;;  %v1816_v16 = vpack.i.b16 %v1803_v63, %v11713_v8 }
 0x3c7   : > { %v2215_v15 = vrot.slane %v2214_v23, 4  ;;  %v2197_v20 = vsel %vm1849_vm7, %v2196_v5, %v2189_v14 }
 0x3c8   : > { %v2074_v37 = vpack.i.b16 %v2073_v46, %v2072_v31  ;;  %v2137_v48 = vperm.slane %v2071_v35, %v11766_v41  ;;  %v1842_v12 = vperm.slane %v1816_v16, %v11766_v41  ;;  %v11827_v36 = vperm.slane %v2197_v20, %v11774_v3 }
 0x3ca   : > { %v2163_v50 = vperm.slane %v2074_v37, %v11766_v41  ;;  %v2145_v6 = vrot.slane %v2137_v48, 4  ;;  %v1851_v46 = vrot.slane %v1842_v12, 4  ;;  %v2216_v37 = vsel %vm1849_vm7, %v2215_v15, %v2208_v21 }
 0x3cc   : > { %v2171_v13 = vrot.slane %v2163_v50, 4 }
 0x3cd   : > { %v2052_v28 = vpop.permute.xlu1 %2051 }
 0x3ce   : > { %v2078_v55 = vshrl.u32 %v2052_v28, 16 }
 0x3d5   : > { %v2056_v52 = vpop.permute.xlu1 %2055 }
 0x3d6   : > { %v2077_v59 = vpack.i.b16 %v2056_v52, %v2052_v28  ;;  %v2079_v60 = vshrl.u32 %v2056_v52, 16 }
 0x3d7   : > { %v1422_v4 = vpop.xlane.xlu2 %1421 }
 0x3d8   : > { %v2080_v10 = vpack.i.b16 %v2079_v60, %v2078_v55  ;;  %v2142_v8 = vperm.slane %v2077_v59, %v11766_v41  ;;  %v1433_v63 = vmul.f32 %v11635_v17, %v1422_v4  ;;  %v2220_v59 = vperm.slane %v2216_v37, %v11774_v3 }
 0x3d9   : > { %v11838_v4 = vperm.slane %v1828_v49, %v11766_v41 }
 0x3da   : > { %v2143_v18 = vrot.slane %v2142_v8, 4  ;;  %v2146_v19 = vsel %vm1849_vm7, %v2142_v8, %v2145_v6  ;;  %v2168_v51 = vperm.slane %v2080_v10, %v11766_v41  ;;  %v11813_v62 = vsub.f32 %v11735_v25, %v1433_v63 }
 0x3db   : > { %v2154_v22 = vperm.slane %v2146_v19, %v11774_v3  ;;  %v1877_v19 = vrot.slane %v1869_v32, 4  ;;  %v2221_v20 = vrot.slane %v2220_v59, 4 }
 0x3dc   : > { %v2144_v26 = vsel %vm1849_vm7, %v2143_v18, %v2137_v48  ;;  %v2169_v11 = vrot.slane %v2168_v51, 4  ;;  %v2172_v24 = vsel %vm1849_vm7, %v2168_v51, %v2171_v13  ;;  %v1441_v29 = vmul.f32 %v11813_v62, %v11813_v62 }
 0x3dd   : > { %v2150_v28 = vperm.slane %v2144_v26, %v11774_v3  ;;  %v2157_v25 = vrot.slane %v2154_v22, 4  ;;  %v2180_v30 = vperm.slane %v2172_v24, %v11774_v3  ;;  %v1811_v31 = vpop.permute.xlu1 %1810  ;;  %v11846_v13 = vperm.slane %v1831_v9, %v11766_v41 }
 0x3de   : > { %v2170_v35 = vsel %vm1849_vm7, %v2169_v11, %v2163_v50  ;;  %1448 = vadd.xlane.f32.xlu2 %v1441_v29  ;;  %v1824_v48 = vshrl.u32 %v1811_v31, 16  ;;  %v2202_v22 = vrot.slane %v11827_v36, 4  ;;  %v1903_v24 = vrot.slane %v11838_v4, 4 }
 0x3df   : > { %v2155_v38 = vrot.slane %v2150_v28, 4  ;;  %v2158_v40 = vsel %vm1849_vm7, 0, %v2157_v25  ;;  %v2176_v43 = vperm.slane %v2170_v35, %v11774_v3  ;;  %v2183_v44 = vrot.slane %v2180_v30, 4  ;;  %v1807_v45 = vpop.permute.xlu2 %1806 }
 0x3e0   : > { %v2228_v47 = vrot.slane %v2158_v40, 4  ;;  %v1822_v16 = vpack.i.b16 %v1811_v31, %v1807_v45  ;;  %v1823_v52 = vshrl.u32 %v1807_v45, 16  ;;  %v2223_v63 = vsel %vm1849_vm7, %v2157_v25, %v2150_v28 }
 0x3e1   : > { %v2156_v23 = vsel %vm1849_vm7, 0, %v2155_v38  ;;  %v2181_v50 = vrot.slane %v2176_v43, 4  ;;  %v2184_v55 = vsel %vm1849_vm7, 0, %v2183_v44  ;;  %v2227_v11 = vperm.slane %v2223_v63, %v11766_v41 }
 0x3e2   : > { %v2247_v60 = vrot.slane %v2184_v55, 4  ;;  %v1825_v53 = vpack.i.b16 %v1824_v48, %v1823_v52  ;;  %v1847_v61 = vperm.slane %v1822_v16, %v11766_v41  ;;  %v2229_v2 = vsel %vm1849_vm7, %v2228_v47, %v2156_v23 }
 0x3e3   : > { %v2182_v5 = vsel %vm1849_vm7, 0, %v2181_v50  ;;  %v2233_v7 = vperm.slane %v2229_v2, %v11766_v41  ;;  %v2242_v9 = vsel %vm1849_vm7, %v2183_v44, %v2176_v43  ;;  %v2265_v30 = vshrl.u32 %v2220_v59, 16 }
 0x3e4   : > { %v1848_v6 = vrot.slane %v1847_v61, 4  ;;  %v1852_v10 = vsel %vm1849_vm7, %v1847_v61, %v1851_v46  ;;  %v1874_v8 = vperm.slane %v1825_v53, %v11766_v41  ;;  %v2248_v49 = vsel %vm1849_vm7, %v2247_v60, %v2182_v5 }
 0x3e5   : > { %v1860_v14 = vperm.slane %v1852_v10, %v11774_v3  ;;  %v1809_v15 = vpop.permute.xlu1 %1808  ;;  %v2234_v18 = vrot.slane %v2233_v7, 4  ;;  %v2252_v46 = vperm.slane %v2248_v49, %v11766_v41  ;;  %v2246_v37 = vperm.slane %v2242_v9, %v11766_v41 }
 0x3e6   : > { %v1850_v51 = vsel %vm1849_vm7, %v1848_v6, %v1842_v12  ;;  %v1875_v29 = vrot.slane %v1874_v8, 4  ;;  %v1878_v28 = vsel %vm1849_vm7, %v1874_v8, %v1877_v19  ;;  %v2263_v12 = vpack.i.b16 %v2220_v59, %v11827_v36 }
 0x3e7   : > { %v1856_v21 = vperm.slane %v1850_v51, %v11774_v3  ;;  %v1863_v26 = vrot.slane %v1860_v14, 4  ;;  %v2235_v25 = vsel %vm1849_vm7, %v2234_v18, %v2227_v11  ;;  %v2253_v38 = vrot.slane %v2252_v46, 4 }
 0x3e8   : > { %v1929_v40 = vrot.slane %v11846_v13, 4  ;;  %v2264_v43 = vshrl.u32 %v11827_v36, 16  ;;  %v11865_v44 = vsel %vm1849_vm7, 0, %v2202_v22  ;;  %v11868_v45 = vsel %vm1849_vm7, 0, %v2221_v20 }
 0x3e9   : > { %v1861_v31 = vrot.slane %v1856_v21, 4  ;;  %v1864_v35 = vsel %vm1849_vm7, 0, %v1863_v26  ;;  %v1876_v47 = vsel %vm1849_vm7, %v1875_v29, %v1869_v32  ;;  %v1886_v48 = vperm.slane %v1878_v28, %v11774_v3 }
 0x3ea   : > { %v11873_v16 = vperm.slane %v2235_v25, %v11774_v3  ;;  %v2254_v52 = vsel %vm1849_vm7, %v2253_v38, %v2246_v37  ;;  %v1948_v23 = vrot.slane %v1864_v35, 4  ;;  %v2530_v36 = vunpack.c.l.b16 %v2263_v12 }
 0x3eb   : > { %v2258_v55 = vperm.slane %v2254_v52, %v11774_v3  ;;  %v2266_v59 = vpack.i.b16 %v2265_v30, %v2264_v43  ;;  %v1862_v60 = vsel %vm1849_vm7, 0, %v1861_v31  ;;  %v2269_v61 = vpack.i.b16 %v11868_v45, %v11865_v44 }
 0x3ec   : > { %v2271_v32 = vshrl.u32 %v11868_v45, 16  ;;  %v1882_v2 = vperm.slane %v1876_v47, %v11774_v3  ;;  %v1835_v5 = vshrl.u32 %v1809_v15, 16  ;;  %v1889_v10 = vrot.slane %v1886_v48, 4 }
 0x3ed   : > { %v1813_v50 = vpop.permute.xlu1 %1812  ;;  %v2275_v6 = vpack.i.b16 %v2258_v55, %v11873_v16  ;;  %v2276_v63 = vshrl.u32 %v11873_v16, 16  ;;  %v2277_v14 = vshrl.u32 %v2258_v55, 16  ;;  %v1949_v18 = vsel %vm1849_vm7, %v1948_v23, %v1862_v60 }
 0x3ee   : > { %v1834_v53 = vpack.i.b16 %v1813_v50, %v1809_v15  ;;  %v1836_v7 = vshrl.u32 %v1813_v50, 16  ;;  %v2557_v51 = vunpack.c.l.b16 %v2266_v59  ;;  %v1943_v15 = vsel %vm1849_vm7, %v1863_v26, %v1856_v21 }
 0x3ef   : > { %v2531_v19 = vunpack.c.l.b16 %v2275_v6  ;;  %v2278_v11 = vpack.i.b16 %v2277_v14, %v2276_v63  ;;  %v1887_v28 = vrot.slane %v1882_v2, 4  ;;  %v1890_v25 = vsel %vm1849_vm7, 0, %v1889_v10 }
 0x3f0   : > { %v1900_v8 = vperm.slane %v1834_v53, %v11766_v41  ;;  %v1837_v49 = vpack.i.b16 %v1836_v7, %v1835_v5  ;;  %v1953_v12 = vperm.slane %v1949_v18, %v11766_v41  ;;  %v2259_v43 = vrot.slane %v2258_v55, 4 }
 0x3f1   : > { %v2532_v46 = vpack.c.b16 %v2531_v19, %v2530_v36  ;;  %v2558_v38 = vunpack.c.l.b16 %v2278_v11  ;;  %v1967_v47 = vrot.slane %v1890_v25, 4  ;;  %v1888_v23 = vsel %vm1849_vm7, 0, %v1887_v28 }
 0x3f2   : > { %v1901_v22 = vrot.slane %v1900_v8, 4  ;;  %v1904_v20 = vsel %vm1849_vm7, %v1900_v8, %v1903_v24  ;;  %v1926_v29 = vperm.slane %v1837_v49, %v11766_v41  ;;  %v2240_v36 = vrot.slane %v11873_v16, 4 }
 0x3f3   : > { %v1912_v9 = vperm.slane %v1904_v20, %v11774_v3  ;;  %v2538_v26 = vsel %vm2533_vm8, %v2532_v46, 0  ;;  %v1947_v55 = vperm.slane %v1943_v15, %v11766_v41  ;;  %v1954_v59 = vrot.slane %v1953_v12, 4 }
 0x3f4   : > { %v1902_v30 = vsel %vm1849_vm7, %v1901_v22, %v11838_v4  ;;  %v1927_v35 = vrot.slane %v1926_v29, 4  ;;  %v1930_v37 = vsel %vm1849_vm7, %v1926_v29, %v1929_v40  ;;  %2547 = vmatpush.bf16.xpose.msrb.mxu0 %v2538_v26  ;;  %v2559_v6 = vpack.c.b16 %v2558_v38, %v2557_v51 }
 0x3f5   : > { %v1908_v31 = vperm.slane %v1902_v30, %v11774_v3  ;;  %v1915_v24 = vrot.slane %v1912_v9, 4  ;;  %v1938_v21 = vperm.slane %v1930_v37, %v11774_v3  ;;  %v1968_v8 = vsel %vm1849_vm7, %v1967_v47, %v1888_v23 }
 0x3f6   : > { %2287 = vrot.lane.b32.xlu2 %v11758_v33, %s11153_s29  ;;  %v1928_v4 = vsel %vm1849_vm7, %v1927_v35, %v11846_v13  ;;  %v2260_v13 = vsel %vm1849_vm7, 0, %v2259_v43  ;;  %v2564_v19 = vsel %vm2533_vm8, %v2559_v6, 0  ;;  %v2241_v22 = vsel %vm1849_vm7, 0, %v2240_v36 }
 0x3f7   : > { %v1913_v48 = vrot.slane %v1908_v31, 4  ;;  %v1916_v52 = vsel %vm1849_vm7, 0, %v1915_v24  ;;  %v1934_v40 = vperm.slane %v1928_v4, %v11774_v3  ;;  %v1941_v50 = vrot.slane %v1938_v21, 4  ;;  %2573 = vmatpush.bf16.xpose.msra.mxu3 %v2564_v19 }
 0x3f8   : > { %v1986_v53 = vrot.slane %v1916_v52, 4  ;;  %v1981_v63 = vsel %vm1849_vm7, %v1915_v24, %v1908_v31  ;;  %v1962_v20 = vsel %vm1849_vm7, %v1889_v10, %v1882_v2  ;;  %v2281_v15 = vpack.i.b16 %v2260_v13, %v2241_v22 }
 0x3f9   : > { %v1914_v60 = vsel %vm1849_vm7, 0, %v1913_v48  ;;  %v1939_v5 = vrot.slane %v1934_v40, 4  ;;  %v1942_v7 = vsel %vm1849_vm7, 0, %v1941_v50  ;;  %v2000_v51 = vsel %vm1849_vm7, %v1941_v50, %v1934_v40 }
 0x3fa   : > { %v1987_v14 = vsel %vm1849_vm7, %v1986_v53, %v1914_v60  ;;  %v2005_v18 = vrot.slane %v1942_v7, 4  ;;  %v1985_v9 = vperm.slane %v1981_v63, %v11766_v41  ;;  %v2283_v46 = vshrl.u32 %v2260_v13, 16 }
 0x3fb   : > { %v1940_v16 = vsel %vm1849_vm7, 0, %v1939_v5  ;;  %v1991_v49 = vperm.slane %v1987_v14, %v11766_v41  ;;  %v1955_v28 = vsel %vm1849_vm7, %v1954_v59, %v1947_v55  ;;  %v2583_v25 = vunpack.c.l.b16 %v2269_v61 }
 0x3fc   : > { %v2006_v11 = vsel %vm1849_vm7, %v2005_v18, %v1940_v16  ;;  %v2584_v12 = vunpack.c.l.b16 %v2281_v15  ;;  %v1972_v30 = vperm.slane %v1968_v8, %v11766_v41  ;;  %v1966_v10 = vperm.slane %v1962_v20, %v11766_v41 }
 0x3fd   : > { %v1992_v29 = vrot.slane %v1991_v49, 4  ;;  %v2010_v2 = vperm.slane %v2006_v11, %v11766_v41  ;;  %v2004_v31 = vperm.slane %v2000_v51, %v11766_v41  ;;  %v2282_v24 = vshrl.u32 %v2241_v22, 16 }
 0x3fe   : > { %v2585_v37 = vpack.c.b16 %v2584_v12, %v2583_v25  ;;  %v1959_v21 = vperm.slane %v1955_v28, %v11774_v3  ;;  %v1973_v26 = vrot.slane %v1972_v30, 4  ;;  %v2270_v43 = vshrl.u32 %v11865_v44, 16 }
 0x3ff   : > { %v1993_v35 = vsel %vm1849_vm7, %v1992_v29, %v1985_v9  ;;  %v2011_v38 = vrot.slane %v2010_v2, 4  ;;  %v2284_v47 = vpack.i.b16 %v2283_v46, %v2282_v24 }
 0x400   : > { %v1997_v61 = vperm.slane %v1993_v35, %v11774_v3  ;;  %v2590_v48 = vsel %vm2533_vm8, %v2585_v37, 0  ;;  %v1974_v52 = vsel %vm1849_vm7, %v1973_v26, %v1966_v10  ;;  %v2272_v50 = vpack.i.b16 %v2271_v32, %v2270_v43  ;;  %v1447_v43 = vpop.xlane.xlu0 %1446 }
 0x401   : > { %v2012_v4 = vsel %vm1849_vm7, %v2011_v38, %v2004_v31  ;;  %2599 = vmatpush.bf16.xpose.msrb.mxu3 %v2590_v48  ;;  %v1978_v23 = vperm.slane %v1974_v52, %v11774_v3  ;;  %v2022_v36 = vshrl.u32 %v1959_v21, 16  ;;  %v2610_v60 = vunpack.c.l.b16 %v2284_v47 }
 0x402   : > { %v2016_v40 = vperm.slane %v2012_v4, %v11774_v3  ;;  %v2034_v44 = vshrl.u32 %v1997_v61, 16  ;;  %v2609_v6 = vunpack.c.l.b16 %v2272_v50  ;;  %v1998_v20 = vrot.slane %v1997_v61, 4 }
 0x403   : > { %v2023_v55 = vshrl.u32 %v1978_v23, 16  ;;  %v2021_v53 = vpack.i.b16 %v1978_v23, %v1959_v21  ;;  %v1979_v22 = vrot.slane %v1978_v23, 4  ;;  %v1960_v51 = vrot.slane %v1959_v21, 4 }
 0x404   : > { %v2035_v59 = vshrl.u32 %v2016_v40, 16  ;;  %v2033_v13 = vpack.i.b16 %v2016_v40, %v1997_v61  ;;  %v2611_v14 = vpack.c.b16 %v2610_v60, %v2609_v6  ;;  %v2017_v45 = vrot.slane %v2016_v40, 4 }
 0x405   : > { %v2024_v5 = vpack.i.b16 %v2023_v55, %v2022_v36  ;;  %v11940_v18 = vunpack.c.l.b16 %v2021_v53  ;;  %v1980_v15 = vsel %vm1849_vm7, 0, %v1979_v22  ;;  %v1999_v9 = vsel %vm1849_vm7, 0, %v1998_v20 }
 0x406   : > { %v2036_v7 = vpack.i.b16 %v2035_v59, %v2034_v44  ;;  %v11942_v16 = vunpack.c.l.b16 %v2033_v13  ;;  %v2616_v19 = vsel %vm2533_vm8, %v2611_v14, 0  ;;  %v2018_v11 = vsel %vm1849_vm7, 0, %v2017_v45 }
 0x407   : > { %v2554_v8 = vunpack.c.l.b16 %v2024_v5  ;;  %v2039_v29 = vpack.i.b16 %v2018_v11, %v1999_v9  ;;  %v1961_v46 = vsel %vm1849_vm7, 0, %v1960_v51  ;;  %v2041_v2 = vshrl.u32 %v2018_v11, 16 }
 0x408   : > { %v2555_v63 = vunpack.c.l.b16 %v2036_v7  ;;  %v2529_v32 = vpack.c.b16 %v11942_v16, %v11940_v18  ;;  %v2027_v28 = vpack.i.b16 %v1980_v15, %v1961_v46  ;;  %v2029_v10 = vshrl.u32 %v1980_v15, 16 }
 0x409   : > { %v2581_v25 = vunpack.c.l.b16 %v2039_v29  ;;  %v2040_v31 = vshrl.u32 %v1999_v9, 16  ;;  %v2028_v24 = vshrl.u32 %v1961_v46, 16  ;;  %v1452_v61 = vmul.f32 %v1447_v43, %v11635_v17 }
 0x40a   : > { %v2556_v49 = vpack.c.b16 %v2555_v63, %v2554_v8  ;;  %v2580_v12 = vunpack.c.l.b16 %v2027_v28 }
 0x40b   : > { %v2042_v35 = vpack.i.b16 %v2041_v2, %v2040_v31  ;;  %v2030_v37 = vpack.i.b16 %v2029_v10, %v2028_v24  ;;  %v1456_v47 = vadd.f32 1e-05, %v1452_v61 }
 0x40c   : > { %9339 = vmatmul.msk.bf16.vlgmr.msra.gmra.mxu3 %vm2533_vm8, %v2556_v49  ;;  %v2582_v30 = vpack.c.b16 %v2581_v25, %v2580_v12 }
 0x40d   : > { %2625 = vmatpush.bf16.xpose.msra.mxu3 %v2616_v19  ;;  %v2607_v21 = vunpack.c.l.b16 %v2042_v35  ;;  %v2606_v26 = vunpack.c.l.b16 %v2030_v37  ;;  %10462 = vrsqrt.f32 %v1456_v47  ;;  %vm1484_vm10 = vweird.f32 %v1456_v47 }
 0x40f   : > { %v2608_v38 = vpack.c.b16 %v2607_v21, %v2606_v26 }
 0x413   : > { %v10463_v48 = vpop.eup %10462 }
 0x414   : > { %v1479_v52 = vmul.f32 %v10463_v48, %v1456_v47  ;;  %vm1485_vm9 = vweird.f32 %v10463_v48 }
 0x415   : > { %vm1486_vm11 = vmor %vm1484_vm10, %vm1485_vm9 }
 0x416   : > { %v1480_v4 = vmul.f32 %v10463_v48, %v1479_v52  ;;  %v12021_v52 = vpop.permute.xlu1 %2289 }
 0x418   : > { %v1481_v36 = vmul.f32 0.5, %v1480_v4 }
 0x41a   : > { %v1482_v55 = vsub.f32 1.5, %v1481_v36 }
 0x41c   : > { %9340 = vmatmul.msk.bf16.vlgmr.msrb.gmra.mxu3 %vm2533_vm8, %v2582_v30  ;;  %v1483_v59 = vmul.f32 %v10463_v48, %v1482_v55 }
 0x41e   : > { %v1487_v5 = vsel %vm1486_vm11, %v10463_v48, %v1483_v59 }
 0x41f   : > { %v1500_v13 = vmul.f32 %v1487_v5, %v11741_v39 }
 0x421   : > { %v1507_v49 = vmul.f32 %v11674_v42, %v1500_v13 }
 0x423   : > { %v11961_v19 = vadd.f32 %v11680_v54, %v1507_v49  ;;  %v2292_v49 = vpop.permute.xlu0 %2291 }
 0x42c   : > { %9341 = vmatmul.msk.bf16.vlgmr.msra.gmra.mxu3 %vm2533_vm8, %v2608_v38 }
 0x451   : > { %v1449_v23 = vpop.xlane.xlu2 %1448 }
 0x452   : > { %v1453_v40 = vmul.f32 %v1449_v23, %v11635_v17 }
 0x454   : > { %v1457_v50 = vadd.f32 1e-05, %v1453_v40 }
 0x456   : > { %10464 = vrsqrt.f32 %v1457_v50  ;;  %vm1494_vm13 = vweird.f32 %v1457_v50 }
 0x45c   : > { %v10465_v44 = vpop.eup %10464 }
 0x45d   : > { %v1489_v60 = vmul.f32 %v10465_v44, %v1457_v50  ;;  %vm1495_vm12 = vweird.f32 %v10465_v44 }
 0x45e   : > { %vm1496_vm14 = vmor %vm1494_vm13, %vm1495_vm12 }
 0x45f   : > { %v1490_v53 = vmul.f32 %v10465_v44, %v1489_v60 }
 0x461   : > { %v1491_v7 = vmul.f32 0.5, %v1490_v53 }
 0x463   : > { %v1492_v6 = vsub.f32 1.5, %v1491_v7 }
 0x465   : > { %v1493_v8 = vmul.f32 %v10465_v44, %v1492_v6 }
 0x467   : > { %v1497_v63 = vsel %vm1496_vm14, %v10465_v44, %v1493_v8 }
 0x468   : > { %v1501_v14 = vmul.f32 %v1497_v63, %v11813_v62 }
 0x46a   : > { %v1508_v45 = vmul.f32 %v11674_v42, %v1501_v14  ;;  %v1516_v42 = vld [vmem:[%s11970_s15] sm:$0x1] }
 0x46b   : > { %vm1517_vm15 = vcmp.gt.f32.partialorder %v1516_v42, 0.5  ;;  %v2288_v42 = vpop.permute.xlu2 %2287 }
 0x46c   : > { %v11964_v22 = vadd.f32 %v11680_v54, %v1508_v45  ;;  %v2632_v39 = vsel %vm1517_vm15, 1, %v11150_v0 }
 0x46d   : > { %v2633_v54 = vperm.slane %v2632_v39, 0 }
 0x46e   : > { %v1522_v20 = vpack.c.bf16 %v11964_v22, %v11961_v19 }
 0x46f   : > { %vm11978_vm0 = vcmp.eq.s32.totalorder %v2633_v54, 1 }
 0x470   : > { %1604 = vmatmul.bf16.gmra.mxu0 %v1522_v20  ;;  %1691 = vmatmul.bf16.gmra.mxu1 %v1522_v20 }
 0x471   : > { %1778 = vmatmul.bf16.gmra.mxu2 %v1522_v20 }
 0x480   : > { %9338 = vmatmul.msk.bf16.vlgmr.msrb.gmra.mxu0 %vm2533_vm8, %v2529_v32 }
 0x48f   : > { %v2575_v51 = vpop.f32.mrf.mxu3 }
 0x490   : > { %v2637_v11 = vsel %vm11978_vm0, -1e+09, %v2575_v51 }
 0x491   : > { %v2650_v15 = vsel %vm2643_vm1, %v2637_v11, -inf }
 0x492   : > { %2651 = vmax.xlane.f32.xlu1 %v2650_v15 }
 0x497   : > { %v2577_v18 = vpop.f32.mrf.mxu3 }
 0x498   : > { %v12001_v35 = vsel %vm11978_vm0, -1e+09, %v2577_v18 }
 0x499   : > { %v2653_v26 = vsel %vm2643_vm1, %v12001_v35, -inf }
 0x49f   : > { %v2601_v16 = vpop.f32.mrf.mxu3 }
 0x4a0   : > { %v2639_v32 = vsel %vm11978_vm0, -1e+09, %v2601_v16 }
 0x4a1   : > { %v2656_v9 = vsel %vm2643_vm1, %v2639_v32, -inf }
 0x4a2   : > { %2657 = vmax.xlane.f32.xlu1 %v2656_v9 }
 0x4a7   : > { %v2603_v29 = vpop.f32.mrf.mxu3 }
 0x4a8   : > { %v2640_v61 = vsel %vm11978_vm0, -1e+09, %v2603_v29 }
 0x4a9   : > { %v2659_v47 = vsel %vm2643_vm1, %v2640_v61, -inf }
 0x4af   : > { %v2627_v46 = vpop.f32.mrf.mxu3 }
 0x4b0   : > { %v2641_v43 = vsel %vm11978_vm0, -1e+09, %v2627_v46 }
 0x4b1   : > { %v2662_v48 = vsel %vm2643_vm1, %v2641_v43, -inf }
 0x4b7   : > { %v2629_v28 = vpop.f32.mrf.mxu3 }
 0x4b8   : > { %v2642_v25 = vsel %vm11978_vm0, -1e+09, %v2629_v28 }
 0x4b9   : > { %v2665_v12 = vsel %vm2643_vm1, %v2642_v25, -inf }
 0x4ba   : > { %2666 = vmax.xlane.f32.xlu1 %v2665_v12  ;;  %v2302_v12 = vshrl.u32 %v11758_v33, 16 }
 0x4d3   : > { %2297 = vrot.lane.b32.xlu1 %v11760_v34, %s11154_s24 }
 0x4ed   : > { %v1605_v30 = vpop.f32.mrf.mxu0  ;;  %v12035_v63 = vpop.f32.mrf.mxu1 }
 0x4ee   : > { %v1606_v54 = vadd.f32 %v11703_v1, %v1605_v30  ;;  %v2301_v30 = vpack.i.b16 %v2288_v42, %v11758_v33 }
 0x4f0   : > { %v1786_v15 = vmul.f32 0.17677669, %v1606_v54 }
 0x4f2   : > { %v12047_v16 = vpack.c.bf16 %v1786_v15, %v1786_v15 }
 0x4f4   : > { %v12045_v18 = vpop.f32.mrf.mxu2 }
 0x4f5   : > { %v1607_v2 = vpop.f32.mrf.mxu0  ;;  %v1694_v14 = vpop.f32.mrf.mxu1 }
 0x4f6   : > { %v1695_v45 = vadd.f32 %v11693_v27, %v1694_v14  ;;  %v1608_v27 = vadd.f32 %v11703_v1, %v1607_v2 }
 0x4f8   : > { %v12038_v20 = vpack.c.bf16 %v1695_v45, %v1695_v45  ;;  %v1787_v46 = vmul.f32 0.17677669, %v1608_v27 }
 0x4fa   : > { %v12056_v2 = vpack.c.bf16 %v1787_v46, %v1787_v46 }
 0x4fd   : > { %v2549_v10 = vpop.f32.mrf.mxu0 }
 0x4fe   : > { %v11995_v31 = vsel %vm11978_vm0, -1e+09, %v2549_v10 }
 0x4ff   : > { %v2644_v24 = vsel %vm2643_vm1, %v11995_v31, -inf }
 0x500   : > { %2645 = vmax.xlane.f32.xlu0 %v2644_v24 }
 0x505   : > { %v2551_v37 = vpop.f32.mrf.mxu0  ;;  %v2652_v4 = vpop.xlane.xlu1 %2651 }
 0x506   : > { %v12005_v21 = vsel %vm11978_vm0, -1e+09, %v2551_v37  ;;  %v2670_v60 = vsub.f32 %v2637_v11, %v2652_v4  ;;  %v2308_v4 = vshrl.u32 %v2292_v49, 16 }
 0x507   : > { %v2647_v38 = vsel %vm2643_vm1, %v12005_v21, -inf }
 0x508   : > { %2654 = vmax.xlane.f32.xlu0 %v2653_v26  ;;  %2648 = vmax.xlane.f32.xlu2 %v2647_v38  ;;  %v2680_v5 = vmul.f32 1.442695, %v2670_v60  ;;  %v1781_v38 = vpop.f32.mrf.mxu2 }
 0x510   : > { %2660 = vmax.xlane.f32.xlu0 %v2659_v47  ;;  %2663 = vmax.xlane.f32.xlu2 %v2662_v48  ;;  %v2327_v47 = vperm.slane %v2301_v30, %v11766_v41 }
 0x515   : > { %v2658_v23 = vpop.xlane.xlu1 %2657 }
 0x516   : > { %v2672_v40 = vsub.f32 %v2639_v32, %v2658_v23  ;;  %v2303_v32 = vshrl.u32 %v2288_v42, 16  ;;  %v2313_v42 = vpack.i.b16 %v12021_v52, %v11760_v34 }
 0x518   : > { %v2684_v50 = vmul.f32 1.442695, %v2672_v40  ;;  %v2304_v26 = vpack.i.b16 %v2303_v32, %v2302_v12  ;;  %v2314_v40 = vshrl.u32 %v11760_v34, 16 }
 0x51a   : > { %10466 = vpow2.f32 %v2684_v50  ;;  %v2315_v50 = vshrl.u32 %v12021_v52, 16 }
 0x520   : > { %v12023_v59 = vpop.eup %10466 }
 0x521   : > { %v2704_v53 = vsel %vm2643_vm1, %v12023_v59, 0.0 }
 0x524   : > { %2293 = vrot.lane.b32.xlu0 %v11760_v34, %s11152_s17 }
 0x528   : > { %2295 = vrot.lane.b32.xlu2 %v11758_v33, %s11154_s24  ;;  %v2353_v33 = vperm.slane %v2304_v26, %v11766_v41 }
 0x52d   : > { %v2667_v36 = vpop.xlane.xlu1 %2666 }
 0x52e   : > { %v2675_v55 = vsub.f32 %v2642_v25, %v2667_v36  ;;  %v2335_v36 = vrot.slane %v2327_v47, 4 }
 0x530   : > { %v2690_v44 = vmul.f32 1.442695, %v2675_v55 }
 0x532   : > { %10468 = vpow2.f32 %v2690_v44 }
 0x533   : > { %10470 = vpow2.f32 %v2680_v5 }
 0x538   : > { %v12027_v7 = vpop.eup %10468 }
 0x539   : > { %v2713_v6 = vsel %vm2643_vm1, %v12027_v7, 0.0  ;;  %v12031_v13 = vpop.eup %10470 }
 0x53a   : > { %v2698_v8 = vsel %vm2643_vm1, %v12031_v13, 0.0 }
 0x54e   : > { %2705 = vadd.xlane.f32.xlu0 %v2704_v53 }
 0x556   : > { %2714 = vadd.xlane.f32.xlu0 %v2713_v6 }
 0x55e   : > { %2699 = vadd.xlane.f32.xlu0 %v2698_v8 }
 0x572   : > { %3256 = vrot.lane.b32.xlu0 %v12038_v20, %s11153_s29 }
 0x573   : > { %v2646_v39 = vpop.xlane.xlu0 %2645 }
 0x574   : > { %v2668_v1 = vsub.f32 %v11995_v31, %v2646_v39  ;;  %v2316_v39 = vpack.i.b16 %v2315_v50, %v2314_v40 }
 0x57a   : > { %3260 = vrot.lane.b32.xlu0 %v12038_v20, %s11152_s17 }
 0x57b   : > { %v2649_v51 = vpop.xlane.xlu2 %2648  ;;  %v2655_v11 = vpop.xlane.xlu0 %2654 }
 0x57c   : > { %v2669_v10 = vsub.f32 %v12005_v21, %v2649_v51  ;;  %v1782_v21 = vadd.f32 %v11750_v57, %v1781_v38  ;;  %v2671_v44 = vsub.f32 %v12001_v35, %v2655_v11  ;;  %v2361_v57 = vrot.slane %v2353_v33, 4 }
 0x57e   : > { %v12071_v6 = vpack.c.bf16 %v1782_v21, %v1782_v21  ;;  %v2682_v51 = vmul.f32 1.442695, %v2671_v44 }
 0x582   : > { %3012 = vrot.lane.b32.xlu0 %v12047_v16, %s11153_s29 }
 0x583   : > { %v2664_v9 = vpop.xlane.xlu2 %2663  ;;  %v2661_v29 = vpop.xlane.xlu0 %2660 }
 0x584   : > { %v2674_v28 = vsub.f32 %v2641_v43, %v2664_v9  ;;  %v2673_v25 = vsub.f32 %v2640_v61, %v2661_v29  ;;  %v2678_v43 = vmul.f32 1.442695, %v2669_v10  ;;  %v2676_v61 = vmul.f32 1.442695, %v2668_v1 }
 0x585   : > { %v2379_v10 = vperm.slane %v2313_v42, %v11766_v41 }
 0x586   : > { %v2688_v24 = vmul.f32 1.442695, %v2674_v28  ;;  %v2686_v37 = vmul.f32 1.442695, %v2673_v25 }
 0x587   : > { %v2387_v50 = vrot.slane %v2379_v10, 4 }
 0x588   : > { %10472 = vpow2.f32 %v2688_v24  ;;  %v2405_v24 = vperm.slane %v2316_v39, %v11766_v41 }
 0x589   : > { %10474 = vpow2.f32 %v2686_v37  ;;  %v2298_v37 = vpop.permute.xlu1 %2297 }
 0x58a   : > { %3018 = vrot.lane.b32.xlu0 %v12056_v2, %s11152_s17  ;;  %10476 = vpow2.f32 %v2678_v43 }
 0x58b   : > { %v2296_v48 = vpop.permute.xlu2 %2295  ;;  %10478 = vpow2.f32 %v2676_v61 }
 0x58c   : > { %v2307_v23 = vpack.i.b16 %v2296_v48, %v2292_v49  ;;  %v2309_v31 = vshrl.u32 %v2296_v48, 16  ;;  %10480 = vpow2.f32 %v2682_v51 }
 0x58e   : > { %v12065_v55 = vpop.eup %10472  ;;  %v2310_v60 = vpack.i.b16 %v2309_v31, %v2308_v4  ;;  %v2332_v53 = vperm.slane %v2307_v23, %v11766_v41  ;;  %v2321_v23 = vshrl.u32 %v2298_v37, 16 }
 0x58f   : > { %v12069_v5 = vpop.eup %10474  ;;  %v2710_v8 = vsel %vm2643_vm1, %v12065_v55, 0.0 }
 0x590   : > { %v2333_v14 = vrot.slane %v2332_v53, 4  ;;  %v2336_v49 = vsel %vm1849_vm7, %v2332_v53, %v2335_v36  ;;  %v2358_v45 = vperm.slane %v2310_v60, %v11766_v41  ;;  %2711 = vadd.xlane.f32.xlu1 %v2710_v8  ;;  %v2707_v35 = vsel %vm2643_vm1, %v12069_v5, 0.0  ;;  %v12088_v46 = vpop.eup %10476 }
 0x591   : > { %v2344_v54 = vperm.slane %v2336_v49, %v11774_v3  ;;  %2708 = vadd.xlane.f32.xlu2 %v2707_v35  ;;  %v12091_v52 = vpop.eup %10478  ;;  %v2413_v49 = vrot.slane %v2405_v24, 4 }
 0x592   : > { %v2334_v11 = vsel %vm1849_vm7, %v2333_v14, %v2327_v47  ;;  %v2359_v15 = vrot.slane %v2358_v45, 4  ;;  %v2362_v27 = vsel %vm1849_vm7, %v2358_v45, %v2361_v57  ;;  %3498 = vrot.lane.b32.xlu0 %v12071_v6, %s11153_s29  ;;  %v2692_v4 = vsel %vm2643_vm1, %v12091_v52, 0.0  ;;  %v12110_v14 = vpop.eup %10480 }
 0x593   : > { %v2340_v32 = vperm.slane %v2334_v11, %v11774_v3  ;;  %v2347_v9 = vrot.slane %v2344_v54, 4  ;;  %v2370_v29 = vperm.slane %v2362_v27, %v11774_v3 }
 0x594   : > { %v2360_v34 = vsel %vm1849_vm7, %v2359_v15, %v2353_v33  ;;  %v2695_v33 = vsel %vm2643_vm1, %v12088_v46, 0.0 }
 0x595   : > { %v2345_v28 = vrot.slane %v2340_v32, 4  ;;  %v2348_v25 = vsel %vm1849_vm7, 0, %v2347_v9  ;;  %v2366_v12 = vperm.slane %v2360_v34, %v11774_v3  ;;  %v2373_v30 = vrot.slane %v2370_v29, 4 }
 0x596   : > { %v2432_v26 = vrot.slane %v2348_v25, 4  ;;  %v2294_v1 = vpop.permute.xlu0 %2293  ;;  %v2427_v42 = vsel %vm1849_vm7, %v2347_v9, %v2340_v32  ;;  %v2701_v9 = vsel %vm2643_vm1, %v12110_v14, 0.0 }
 0x597   : > { %v2346_v38 = vsel %vm1849_vm7, 0, %v2345_v28  ;;  %v2371_v47 = vrot.slane %v2366_v12, 4  ;;  %v2374_v43 = vsel %vm1849_vm7, 0, %v2373_v30  ;;  %v2319_v48 = vpack.i.b16 %v2298_v37, %v2294_v1 }
 0x598   : > { %v2433_v21 = vsel %vm1849_vm7, %v2432_v26, %v2346_v38  ;;  %v2451_v61 = vrot.slane %v2374_v43, 4  ;;  %2696 = vadd.xlane.f32.xlu1 %v2695_v33  ;;  %v2320_v40 = vshrl.u32 %v2294_v1, 16  ;;  %v2446_v53 = vsel %vm1849_vm7, %v2373_v30, %v2366_v12 }
 0x599   : > { %v2372_v31 = vsel %vm1849_vm7, 0, %v2371_v47  ;;  %2693 = vadd.xlane.f32.xlu2 %v2692_v4  ;;  %v2437_v36 = vperm.slane %v2433_v21, %v11766_v41  ;;  %v2384_v60 = vperm.slane %v2319_v48, %v11766_v41  ;;  %v2450_v15 = vperm.slane %v2446_v53, %v11766_v41 }
 0x59a   : > { %v2452_v44 = vsel %vm1849_vm7, %v2451_v61, %v2372_v31  ;;  %v2322_v8 = vpack.i.b16 %v2321_v23, %v2320_v40  ;;  %v2431_v12 = vperm.slane %v2427_v42, %v11766_v41 }
 0x59b   : > { %v2456_v57 = vperm.slane %v2452_v44, %v11766_v41  ;;  %v2385_v45 = vrot.slane %v2384_v60, 4  ;;  %v2388_v35 = vsel %vm1849_vm7, %v2384_v60, %v2387_v50  ;;  %v2438_v11 = vrot.slane %v2437_v36, 4 }
 0x59c   : > { %v2396_v39 = vperm.slane %v2388_v35, %v11774_v3  ;;  %v2410_v54 = vperm.slane %v2322_v8, %v11766_v41 }
 0x59d   : > { %v2457_v51 = vrot.slane %v2456_v57, 4  ;;  %v2386_v27 = vsel %vm1849_vm7, %v2385_v45, %v2379_v10  ;;  %v2439_v43 = vsel %vm1849_vm7, %v2438_v11, %v2431_v12 }
 0x59e   : > { %v2392_v29 = vperm.slane %v2386_v27, %v11774_v3  ;;  %v2399_v34 = vrot.slane %v2396_v39, 4  ;;  %v2411_v28 = vrot.slane %v2410_v54, 4  ;;  %v2414_v25 = vsel %vm1849_vm7, %v2410_v54, %v2413_v49  ;;  %v10648_v49 = vld [vmem:[%s14121_s4] ss:$0 sm:$0xff] }
 0x59f   : > { %v2422_v32 = vperm.slane %v2414_v25, %v11774_v3  ;;  %v2458_v30 = vsel %vm1849_vm7, %v2457_v51, %v2450_v15  ;;  %v2443_v40 = vperm.slane %v2439_v43, %v11774_v3  ;;  %v1693_v45 = vadd.f32 %v10648_v49, %v12035_v63 }
 0x5a0   : > { %v2397_v37 = vrot.slane %v2392_v29, 4  ;;  %v2400_v26 = vsel %vm1849_vm7, 0, %v2399_v34  ;;  %v2412_v10 = vsel %vm1849_vm7, %v2411_v28, %v2405_v24  ;;  %v2465_v21 = vsel %vm1849_vm7, %v2399_v34, %v2392_v29 }
 0x5a1   : > { %2702 = vadd.xlane.f32.xlu2 %v2701_v9  ;;  %v2418_v1 = vperm.slane %v2412_v10, %v11774_v3  ;;  %v2425_v38 = vrot.slane %v2422_v32, 4  ;;  %v2470_v47 = vrot.slane %v2400_v26, 4  ;;  %v2462_v61 = vperm.slane %v2458_v30, %v11774_v3 }
 0x5a2   : > { %v2398_v33 = vsel %vm1849_vm7, 0, %v2397_v37  ;;  %v2469_v36 = vperm.slane %v2465_v21, %v11766_v41  ;;  %v2444_v42 = vrot.slane %v2443_v40, 4  ;;  %v2506_v29 = vshrl.u32 %v2443_v40, 16 }
 0x5a3   : > { %v2423_v48 = vrot.slane %v2418_v1, 4  ;;  %v2426_v4 = vsel %vm1849_vm7, 0, %v2425_v38  ;;  %v2471_v23 = vsel %vm1849_vm7, %v2470_v47, %v2398_v33  ;;  %v2484_v60 = vsel %vm1849_vm7, %v2425_v38, %v2418_v1 }
 0x5a4   : > { %v2475_v24 = vperm.slane %v2471_v23, %v11766_v41  ;;  %v2489_v31 = vrot.slane %v2426_v4, 4  ;;  %v2463_v57 = vrot.slane %v2462_v61, 4  ;;  %v2488_v39 = vperm.slane %v2484_v60, %v11766_v41 }
 0x5a5   : > { %v2424_v50 = vsel %vm1849_vm7, 0, %v2423_v48  ;;  %v2507_v11 = vshrl.u32 %v2462_v61, 16  ;;  %v2505_v25 = vpack.i.b16 %v2462_v61, %v2443_v40  ;;  %v2445_v63 = vsel %vm1849_vm7, 0, %v2444_v42 }
 0x5a6   : > { %v2476_v44 = vrot.slane %v2475_v24, 4  ;;  %v2490_v53 = vsel %vm1849_vm7, %v2489_v31, %v2424_v50  ;;  %v2464_v15 = vsel %vm1849_vm7, 0, %v2463_v57  ;;  %v12150_v12 = vpack.c.bf16 %v1693_v45, %v1693_v45 }
 0x5a7   : > { %v2494_v8 = vperm.slane %v2490_v53, %v11766_v41  ;;  %v2508_v32 = vpack.i.b16 %v2507_v11, %v2506_v29  ;;  %v2513_v30 = vshrl.u32 %v2464_v15, 16  ;;  %v2511_v38 = vpack.i.b16 %v2464_v15, %v2445_v63 }
 0x5a8   : > { %v2477_v35 = vsel %vm1849_vm7, %v2476_v44, %v2469_v36  ;;  %v2512_v47 = vshrl.u32 %v2445_v63, 16  ;;  %v2745_v43 = vunpack.c.l.b16 %v2505_v25 }
 0x5a9   : > { %v2481_v54 = vperm.slane %v2477_v35, %v11774_v3  ;;  %v2495_v51 = vrot.slane %v2494_v8, 4  ;;  %v2771_v40 = vunpack.c.l.b16 %v2508_v32  ;;  %v2797_v44 = vunpack.c.l.b16 %v2511_v38  ;;  %v10649_v35 = vld [vmem:[%s14123_s1] ss:$0 sm:$0xff] }
 0x5aa   : > { %v2514_v48 = vpack.i.b16 %v2513_v30, %v2512_v47  ;;  %v1780_v42 = vadd.f32 %v10649_v35, %v12045_v18 }
 0x5ab   : > { %v2496_v27 = vsel %vm1849_vm7, %v2495_v51, %v2488_v39  ;;  %v2482_v34 = vrot.slane %v2481_v54, 4  ;;  %v2518_v9 = vshrl.u32 %v2481_v54, 16 }
 0x5ac   : > { %v2500_v28 = vperm.slane %v2496_v27, %v11774_v3  ;;  %v2823_v8 = vunpack.c.l.b16 %v2514_v48  ;;  %v12170_v39 = vpack.c.bf16 %v1780_v42, %v1780_v42 }
 0x5ad   : > { %v2483_v10 = vsel %vm1849_vm7, 0, %v2482_v34 }
 0x5ae   : > { %v2517_v37 = vpack.i.b16 %v2500_v28, %v2481_v54  ;;  %v2519_v26 = vshrl.u32 %v2500_v28, 16  ;;  %v2501_v1 = vrot.slane %v2500_v28, 4  ;;  %v2524_v23 = vshrl.u32 %v2483_v10, 16 }
 0x5b0   : > { %v2746_v33 = vunpack.c.l.b16 %v2517_v37  ;;  %v2520_v21 = vpack.i.b16 %v2519_v26, %v2518_v9  ;;  %v2502_v61 = vsel %vm1849_vm7, 0, %v2501_v1 }
 0x5b1   : > { %3254 = vrot.lane.b32.xlu1 %v12150_v12, %s11153_s29  ;;  %v2523_v4 = vpack.i.b16 %v2502_v61, %v2483_v10  ;;  %v2525_v24 = vshrl.u32 %v2502_v61, 16 }
 0x5b2   : > { %v2747_v31 = vpack.c.b16 %v2746_v33, %v2745_v43  ;;  %v2772_v50 = vunpack.c.l.b16 %v2520_v21 }
 0x5b3   : > { %v2526_v36 = vpack.i.b16 %v2525_v24, %v2524_v23  ;;  %v2798_v60 = vunpack.c.l.b16 %v2523_v4 }
 0x5b4   : > { %2759 = vmatpush.bf16.msra.mxu0 %v2747_v31  ;;  %v2773_v53 = vpack.c.b16 %v2772_v50, %v2771_v40 }
 0x5b5   : > { %v2799_v57 = vpack.c.b16 %v2798_v60, %v2797_v44  ;;  %v2824_v49 = vunpack.c.l.b16 %v2526_v36 }
 0x5b6   : > { %2785 = vmatpush.bf16.msrb.mxu1 %v2773_v53 }
 0x5b7   : > { %2811 = vmatpush.bf16.msrb.mxu2 %v2799_v57  ;;  %v2825_v45 = vpack.c.b16 %v2824_v49, %v2823_v8 }
 0x5b9   : > { %3258 = vrot.lane.b32.xlu2 %v12150_v12, %s11152_s17  ;;  %3262 = vrot.lane.b32.xlu1 %v12150_v12, %s11154_s24 }
 0x5ba   : > { %2837 = vmatpush.bf16.msrb.mxu3 %v2825_v45 }
 0x5c1   : > { %3264 = vrot.lane.b32.xlu2 %v12038_v20, %s11154_s24  ;;  %3014 = vrot.lane.b32.xlu1 %v12056_v2, %s11153_s29  ;;  %v2706_v54 = vpop.xlane.xlu0 %2705 }
 0x5c9   : > { %3016 = vrot.lane.b32.xlu2 %v12047_v16, %s11152_s17  ;;  %3020 = vrot.lane.b32.xlu1 %v12047_v16, %s11154_s24  ;;  %v2715_v51 = vpop.xlane.xlu0 %2714 }
 0x5ca   : > { %10482 = vrcp.f32 %v2715_v51 }
 0x5cb   : > { %10484 = vrcp.f32 %v2706_v54 }
 0x5d0   : > { %v10483_v15 = vpop.eup %10482 }
 0x5d1   : > { %3022 = vrot.lane.b32.xlu2 %v12056_v2, %s11154_s24  ;;  %3500 = vrot.lane.b32.xlu1 %v12170_v39, %s11152_s17  ;;  %v10485_v18 = vpop.eup %10484  ;;  %v2731_v29 = vmul.f32 %v10483_v15, %v12027_v7  ;;  %v2700_v37 = vpop.xlane.xlu0 %2699 }
 0x5d2   : > { %v2728_v34 = vmul.f32 %v10485_v18, %v12023_v59 }
 0x5d3   : > { %v2739_v63 = vpack.c.bf16 %v2731_v29, %v2731_v29 }
 0x5d4   : > { %v2736_v30 = vpack.c.bf16 %v2728_v34, %v2728_v34 }
 0x5d5   : > { %v2821_v47 = vunpack.c.l.b16 %v2739_v63 }
 0x5d6   : > { %v2794_v43 = vunpack.c.l.b16 %v2736_v30 }
 0x5d9   : > { %3496 = vrot.lane.b32.xlu2 %v12170_v39, %s11153_s29 }
 0x603   : > { %v2712_v11 = vpop.xlane.xlu1 %2711 }
 0x604   : > { %10486 = vrcp.f32 %v2712_v11  ;;  %v2709_v27 = vpop.xlane.xlu2 %2708 }
 0x605   : > { %10488 = vrcp.f32 %v2709_v27 }
 0x60a   : > { %v10487_v28 = vpop.eup %10486 }
 0x60b   : > { %v10489_v25 = vpop.eup %10488  ;;  %v2730_v32 = vmul.f32 %v10487_v28, %v12065_v55  ;;  %v2697_v9 = vpop.xlane.xlu1 %2696  ;;  %v3281_v28 = vshrl.u32 %v12038_v20, 16 }
 0x60c   : > { %v2729_v26 = vmul.f32 %v10489_v25, %v12069_v5  ;;  %10490 = vrcp.f32 %v2697_v9  ;;  %v2694_v10 = vpop.xlane.xlu2 %2693 }
 0x60d   : > { %v2738_v1 = vpack.c.bf16 %v2730_v32, %v2730_v32  ;;  %10492 = vrcp.f32 %v2694_v10  ;;  %v3269_v32 = vshrl.u32 %v12150_v12, 16 }
 0x60e   : > { %v2737_v38 = vpack.c.bf16 %v2729_v26, %v2729_v26  ;;  %10494 = vrcp.f32 %v2700_v37 }
 0x60f   : > { %v2820_v7 = vunpack.c.l.b16 %v2738_v1 }
 0x610   : > { %v2795_v59 = vunpack.c.l.b16 %v2737_v38 }
 0x611   : > { %v2822_v33 = vpack.c.b16 %v2821_v47, %v2820_v7 }
 0x612   : > { %v10491_v21 = vpop.eup %10490  ;;  %v2796_v61 = vpack.c.b16 %v2795_v59, %v2794_v43 }
 0x613   : > { %v10493_v48 = vpop.eup %10492  ;;  %v2725_v55 = vmul.f32 %v10491_v21, %v12088_v46  ;;  %9345 = vmatmul.msk.bf16.vlgmr.msrb.gmra.mxu3 %vm2643_vm1, %v2822_v33 }
 0x614   : > { %v2724_v5 = vmul.f32 %v10493_v48, %v12091_v52  ;;  %v2703_v4 = vpop.xlane.xlu2 %2702  ;;  %9344 = vmatmul.msk.bf16.vlgmr.msrb.gmra.mxu2 %vm2643_vm1, %v2796_v61  ;;  %v10495_v23 = vpop.eup %10494 }
 0x615   : > { %v2733_v24 = vpack.c.bf16 %v2725_v55, %v2725_v55  ;;  %10496 = vrcp.f32 %v2703_v4  ;;  %v2726_v50 = vmul.f32 %v10495_v23, %v12031_v13  ;;  %v3257_v52 = vpop.permute.xlu0 %3256  ;;  %v10073_v4 = vld [vmem:[#allocation11 + $0x18] sm:$0xff]  ;;  %v10075_v23 = vld [vmem:[#allocation11 + $0x28] sm:$0xff] }
 0x616   : > { %v2732_v31 = vpack.c.bf16 %v2724_v5, %v2724_v5  ;;  %v3280_v13 = vpack.i.b16 %v3257_v52, %v12038_v20  ;;  %v3282_v15 = vshrl.u32 %v3257_v52, 16  ;;  %v10071_v5 = vld [vmem:[#allocation11 + $0x8] sm:$0xff]  ;;  %2928 = vmatpush.bf16.msra.mxu1 %v10073_v4  ;;  %2962 = vmatpush.bf16.msra.mxu2 %v10075_v23 }
 0x617   : > { %v2743_v40 = vunpack.c.l.b16 %v2733_v24  ;;  %v2734_v53 = vpack.c.bf16 %v2726_v50, %v2726_v50  ;;  %v10077_v50 = vld [vmem:[#allocation11 + $0x38] sm:$0xff]  ;;  %2894 = vmatpush.bf16.msrb.mxu0 %v10071_v5 }
 0x618   : > { %v2742_v36 = vunpack.c.l.b16 %v2732_v31  ;;  %v3346_v27 = vperm.slane %v3280_v13, %v11766_v41  ;;  %v3283_v37 = vpack.i.b16 %v3282_v15, %v3281_v28  ;;  %2996 = vmatpush.bf16.msra.mxu3 %v10077_v50 }
 0x619   : > { %v2768_v49 = vunpack.c.l.b16 %v2734_v53 }
 0x61a   : > { %v2744_v44 = vpack.c.b16 %v2743_v40, %v2742_v36  ;;  %v3354_v26 = vrot.slane %v3346_v27, 4  ;;  %v3372_v33 = vperm.slane %v3283_v37, %v11766_v41 }
 0x61b   : > { %v10497_v60 = vpop.eup %10496 }
 0x61c   : > { %v2727_v46 = vmul.f32 %v10497_v60, %v12110_v14  ;;  %v3259_v57 = vpop.permute.xlu2 %3258  ;;  %9342 = vmatmul.msk.bf16.vlgmr.msra.gmra.mxu0 %vm2643_vm1, %v2744_v44  ;;  %v3380_v36 = vrot.slane %v3372_v33, 4  ;;  %v10070_v44 = vld [vmem:[#allocation11] sm:$0xff] }
 0x61d   : > { %v3261_v51 = vpop.permute.xlu0 %3260  ;;  %v3275_v10 = vshrl.u32 %v3259_v57, 16  ;;  %2895 = vmatpush.bf16.msrb.mxu0 %v10070_v44 }
 0x61e   : > { %v2735_v8 = vpack.c.bf16 %v2727_v46, %v2727_v46  ;;  %v3287_v63 = vshrl.u32 %v3261_v51, 16 }
 0x620   : > { %v2769_v45 = vunpack.c.l.b16 %v2735_v8 }
 0x622   : > { %v2770_v35 = vpack.c.b16 %v2769_v45, %v2768_v49 }
 0x623   : > { %v3255_v42 = vpop.permute.xlu1 %3254 }
 0x624   : > { %9343 = vmatmul.msk.bf16.vlgmr.msrb.gmra.mxu1 %vm2643_vm1, %v2770_v35  ;;  %v3265_v54 = vpop.permute.xlu2 %3264  ;;  %v3268_v18 = vpack.i.b16 %v3255_v42, %v12150_v12  ;;  %v3270_v29 = vshrl.u32 %v3255_v42, 16 }
 0x625   : > { %v3286_v11 = vpack.i.b16 %v3265_v54, %v3261_v51  ;;  %v3288_v34 = vshrl.u32 %v3265_v54, 16 }
 0x626   : > { %v3271_v1 = vpack.i.b16 %v3270_v29, %v3269_v32  ;;  %v3294_v38 = vperm.slane %v3268_v18, %v11766_v41  ;;  %v10074_v18 = vld [vmem:[#allocation11 + $0x20] sm:$0xff] }
 0x627   : > { %v3351_v25 = vperm.slane %v3286_v11, %v11766_v41  ;;  %v3289_v47 = vpack.i.b16 %v3288_v34, %v3287_v63  ;;  %2963 = vmatpush.bf16.msra.mxu2 %v10074_v18 }
 0x628   : > { %v3302_v21 = vrot.slane %v3294_v38, 4  ;;  %v3320_v12 = vperm.slane %v3271_v1, %v11766_v41 }
 0x629   : > { %v3352_v7 = vrot.slane %v3351_v25, 4  ;;  %v3355_v43 = vsel %vm1849_vm7, %v3351_v25, %v3354_v26  ;;  %v3377_v61 = vperm.slane %v3289_v47, %v11766_v41  ;;  %v10076_v26 = vld [vmem:[#allocation11 + $0x30] sm:$0xff] }
 0x62a   : > { %v3363_v55 = vperm.slane %v3355_v43, %v11774_v3  ;;  %v3328_v60 = vrot.slane %v3320_v12, 4  ;;  %2997 = vmatpush.bf16.msra.mxu3 %v10076_v26 }
 0x62b   : > { %v3263_v14 = vpop.permute.xlu1 %3262  ;;  %v3353_v48 = vsel %vm1849_vm7, %v3352_v7, %v3346_v27  ;;  %v3378_v46 = vrot.slane %v3377_v61, 4  ;;  %v3381_v52 = vsel %vm1849_vm7, %v3377_v61, %v3380_v36 }
 0x62c   : > { %v3274_v9 = vpack.i.b16 %v3263_v14, %v3259_v57  ;;  %v3276_v30 = vshrl.u32 %v3263_v14, 16  ;;  %v3359_v53 = vperm.slane %v3353_v48, %v11774_v3  ;;  %v3366_v57 = vrot.slane %v3363_v55, 4  ;;  %v10072_v14 = vld [vmem:[#allocation11 + $0x10] sm:$0xff] }
 0x62d   : > { %v3379_v54 = vsel %vm1849_vm7, %v3378_v46, %v3372_v33  ;;  %v3389_v13 = vperm.slane %v3381_v52, %v11774_v3  ;;  %2929 = vmatpush.bf16.msra.mxu1 %v10072_v14 }
 0x62e   : > { %v3277_v59 = vpack.i.b16 %v3276_v30, %v3275_v10  ;;  %v3299_v20 = vperm.slane %v3274_v9, %v11766_v41  ;;  %v3364_v42 = vrot.slane %v3359_v53, 4  ;;  %v3367_v51 = vsel %vm1849_vm7, 0, %v3366_v57 }
 0x62f   : > { %v3385_v28 = vperm.slane %v3379_v54, %v11774_v3  ;;  %v3392_v25 = vrot.slane %v3389_v13, 4  ;;  %v3437_v63 = vrot.slane %v3367_v51, 4  ;;  %v3432_v55 = vsel %vm1849_vm7, %v3366_v57, %v3359_v53 }
 0x630   : > { %v3300_v24 = vrot.slane %v3299_v20, 4  ;;  %v3303_v31 = vsel %vm1849_vm7, %v3299_v20, %v3302_v21  ;;  %v3325_v40 = vperm.slane %v3277_v59, %v11766_v41  ;;  %v3365_v34 = vsel %vm1849_vm7, 0, %v3364_v42 }
 0x631   : > { %v3311_v8 = vperm.slane %v3303_v31, %v11774_v3  ;;  %v3390_v10 = vrot.slane %v3385_v28, 4  ;;  %v3438_v1 = vsel %vm1849_vm7, %v3437_v63, %v3365_v34  ;;  %v3393_v47 = vsel %vm1849_vm7, 0, %v3392_v25 }
 0x632   : > { %v3301_v49 = vsel %vm1849_vm7, %v3300_v24, %v3294_v38  ;;  %v3326_v45 = vrot.slane %v3325_v40, 4  ;;  %v3329_v35 = vsel %vm1849_vm7, %v3325_v40, %v3328_v60  ;;  %v3442_v20 = vperm.slane %v3438_v1, %v11766_v41 }
 0x633   : > { %v3307_v11 = vperm.slane %v3301_v49, %v11774_v3  ;;  %v3314_v15 = vrot.slane %v3311_v8, 4  ;;  %v3337_v27 = vperm.slane %v3329_v35, %v11774_v3  ;;  %v3456_v33 = vrot.slane %v3393_v47, 4 }
 0x634   : > { %v3327_v29 = vsel %vm1849_vm7, %v3326_v45, %v3320_v12  ;;  %v3391_v61 = vsel %vm1849_vm7, 0, %v3390_v10  ;;  %v3443_v23 = vrot.slane %v3442_v20, 4  ;;  %v3436_v40 = vperm.slane %v3432_v55, %v11766_v41 }
 0x635   : > { %v3312_v32 = vrot.slane %v3307_v11, 4  ;;  %v3315_v9 = vsel %vm1849_vm7, 0, %v3314_v15  ;;  %v3333_v30 = vperm.slane %v3327_v29, %v11774_v3  ;;  %v3340_v37 = vrot.slane %v3337_v27, 4 }
 0x636   : > { %v3399_v38 = vrot.slane %v3315_v9, 4  ;;  %v3394_v5 = vsel %vm1849_vm7, %v3314_v15, %v3307_v11  ;;  %v3457_v24 = vsel %vm1849_vm7, %v3456_v33, %v3391_v61  ;;  %v3451_v50 = vsel %vm1849_vm7, %v3392_v25, %v3385_v28 }
 0x637   : > { %v3313_v7 = vsel %vm1849_vm7, 0, %v3312_v32  ;;  %v3338_v43 = vrot.slane %v3333_v30, 4  ;;  %v3341_v59 = vsel %vm1849_vm7, 0, %v3340_v37  ;;  %v3398_v36 = vperm.slane %v3394_v5, %v11766_v41 }
 0x638   : > { %v3400_v21 = vsel %vm1849_vm7, %v3399_v38, %v3313_v7  ;;  %v3418_v12 = vrot.slane %v3341_v59, 4  ;;  %v3413_v44 = vsel %vm1849_vm7, %v3340_v37, %v3333_v30  ;;  %v3444_v46 = vsel %vm1849_vm7, %v3443_v23, %v3436_v40 }
 0x639   : > { %v3339_v48 = vsel %vm1849_vm7, 0, %v3338_v43  ;;  %v3404_v4 = vperm.slane %v3400_v21, %v11766_v41  ;;  %v3461_v57 = vperm.slane %v3457_v24, %v11766_v41  ;;  %v3455_v52 = vperm.slane %v3451_v50, %v11766_v41 }
 0x63a   : > { %v3419_v31 = vsel %vm1849_vm7, %v3418_v12, %v3339_v48  ;;  %v3448_v8 = vperm.slane %v3444_v46, %v11774_v3  ;;  %v3417_v49 = vperm.slane %v3413_v44, %v11766_v41 }
 0x63b   : > { %v3405_v60 = vrot.slane %v3404_v4, 4  ;;  %v3423_v53 = vperm.slane %v3419_v31, %v11766_v41  ;;  %v3462_v42 = vrot.slane %v3461_v57, 4  ;;  %v3015_v57 = vpop.permute.xlu1 %3014 }
 0x63c   : > { %v3449_v13 = vrot.slane %v3448_v8, 4  ;;  %v3485_v29 = vshrl.u32 %v3448_v8, 16 }
 0x63d   : > { %v3406_v45 = vsel %vm1849_vm7, %v3405_v60, %v3398_v36  ;;  %v3424_v35 = vrot.slane %v3423_v53, 4  ;;  %v3463_v11 = vsel %vm1849_vm7, %v3462_v42, %v3455_v52  ;;  %v3040_v42 = vshrl.u32 %v3015_v57, 16 }
 0x63e   : > { %v3410_v54 = vperm.slane %v3406_v45, %v11774_v3  ;;  %v3467_v27 = vperm.slane %v3463_v11, %v11774_v3  ;;  %v3450_v34 = vsel %vm1849_vm7, 0, %v3449_v13  ;;  %v3039_v13 = vshrl.u32 %v12056_v2, 16 }
 0x63f   : > { %v3425_v51 = vsel %vm1849_vm7, %v3424_v35, %v3417_v49  ;;  %v3491_v43 = vshrl.u32 %v3450_v34, 16  ;;  %v3013_v49 = vpop.permute.xlu0 %3012 }
 0x640   : > { %v3429_v15 = vperm.slane %v3425_v51, %v11774_v3  ;;  %v3411_v14 = vrot.slane %v3410_v54, 4  ;;  %v3473_v18 = vshrl.u32 %v3410_v54, 16  ;;  %v3484_v25 = vpack.i.b16 %v3467_v27, %v3448_v8  ;;  %v3017_v8 = vpop.permute.xlu2 %3016 }
 0x641   : > { %v3486_v32 = vshrl.u32 %v3467_v27, 16  ;;  %v3468_v37 = vrot.slane %v3467_v27, 4  ;;  %v3028_v35 = vshrl.u32 %v3013_v49, 16  ;;  %v3033_v27 = vshrl.u32 %v3017_v8, 16 }
 0x642   : > { %v3472_v28 = vpack.i.b16 %v3429_v15, %v3410_v54  ;;  %v3474_v63 = vshrl.u32 %v3429_v15, 16  ;;  %v3412_v9 = vsel %vm1849_vm7, 0, %v3411_v14  ;;  %v3430_v30 = vrot.slane %v3429_v15, 4 }
 0x643   : > { %v3740_v10 = vunpack.c.l.b16 %v3484_v25  ;;  %v3487_v38 = vpack.i.b16 %v3486_v32, %v3485_v29  ;;  %v3469_v7 = vsel %vm1849_vm7, 0, %v3468_v37  ;;  %v3479_v61 = vshrl.u32 %v3412_v9, 16  ;;  %v3021_v45 = vpop.permute.xlu1 %3020 }
 0x644   : > { %v3739_v26 = vunpack.c.l.b16 %v3472_v28  ;;  %v3475_v1 = vpack.i.b16 %v3474_v63, %v3473_v18  ;;  %v3431_v47 = vsel %vm1849_vm7, 0, %v3430_v30  ;;  %v3490_v12 = vpack.i.b16 %v3469_v7, %v3450_v34 }
 0x645   : > { %v3766_v33 = vunpack.c.l.b16 %v3487_v38  ;;  %v3478_v21 = vpack.i.b16 %v3431_v47, %v3412_v9  ;;  %v3480_v48 = vshrl.u32 %v3431_v47, 16  ;;  %v3492_v55 = vshrl.u32 %v3469_v7, 16 }
 0x646   : > { %v3741_v59 = vpack.c.b16 %v3740_v10, %v3739_v26  ;;  %v3765_v20 = vunpack.c.l.b16 %v3475_v1  ;;  %v3792_v24 = vunpack.c.l.b16 %v3490_v12  ;;  %v3027_v54 = vshrl.u32 %v12047_v16, 16 }
 0x647   : > { %v3791_v23 = vunpack.c.l.b16 %v3478_v21  ;;  %v3481_v31 = vpack.i.b16 %v3480_v48, %v3479_v61  ;;  %v3493_v40 = vpack.i.b16 %v3492_v55, %v3491_v43  ;;  %v3034_v51 = vshrl.u32 %v3021_v45, 16  ;;  %v3019_v29 = vpop.permute.xlu0 %3018 }
 0x648   : > { %v3746_v5 = vsel %vm2533_vm8, %v3741_v59, 0  ;;  %v3767_v4 = vpack.c.b16 %v3766_v33, %v3765_v20  ;;  %v3023_v11 = vpop.permute.xlu2 %3022  ;;  %v3029_v15 = vpack.i.b16 %v3028_v35, %v3027_v54  ;;  %v3041_v14 = vpack.i.b16 %v3040_v42, %v3039_v13 }
 0x649   : > { %3755 = vmatpush.bf16.xpose.msra.mxu0 %v3746_v5  ;;  %v3793_v36 = vpack.c.b16 %v3792_v24, %v3791_v23  ;;  %v3817_v44 = vunpack.c.l.b16 %v3481_v31  ;;  %v3818_v60 = vunpack.c.l.b16 %v3493_v40  ;;  %v3026_v18 = vpack.i.b16 %v3013_v49, %v12047_v16 }
 0x64a   : > { %v3772_v50 = vsel %vm2533_vm8, %v3767_v4, 0  ;;  %v3038_v34 = vpack.i.b16 %v3015_v57, %v12056_v2  ;;  %v3046_v28 = vshrl.u32 %v3023_v11, 16  ;;  %v3035_v25 = vpack.i.b16 %v3034_v51, %v3033_v27 }
 0x64b   : > { %3781 = vmatpush.bf16.xpose.msrb.mxu1 %v3772_v50  ;;  %v3798_v53 = vsel %vm2533_vm8, %v3793_v36, 0  ;;  %v3819_v46 = vpack.c.b16 %v3818_v60, %v3817_v44  ;;  %v3032_v63 = vpack.i.b16 %v3021_v45, %v3017_v8  ;;  %v3078_v32 = vperm.slane %v3029_v15, %v11766_v41 }
 0x64c   : > { %3807 = vmatpush.bf16.xpose.msrb.mxu2 %v3798_v53  ;;  %v3045_v9 = vshrl.u32 %v3019_v29, 16  ;;  %v3130_v30 = vperm.slane %v3041_v14, %v11766_v41  ;;  %v3052_v37 = vperm.slane %v3026_v18, %v11766_v41  ;;  %v3104_v26 = vperm.slane %v3038_v34, %v11766_v41 }
 0x64d   : > { %v3824_v52 = vsel %vm2533_vm8, %v3819_v46, 0  ;;  %v3083_v1 = vperm.slane %v3035_v25, %v11766_v41  ;;  %v3044_v38 = vpack.i.b16 %v3023_v11, %v3019_v29  ;;  %v3057_v16 = vperm.slane %v3032_v63, %v11766_v41 }
 0x64e   : > { %3833 = vmatpush.bf16.xpose.msrb.mxu3 %v3824_v52  ;;  %v3047_v10 = vpack.i.b16 %v3046_v28, %v3045_v9  ;;  %v3086_v47 = vrot.slane %v3078_v32, 4  ;;  %v3138_v2 = vrot.slane %v3130_v30, 4  ;;  %v3060_v7 = vrot.slane %v3052_v37, 4 }
 0x64f   : > { %v3112_v43 = vrot.slane %v3104_v26, 4  ;;  %v3084_v20 = vrot.slane %v3083_v1, 4  ;;  %v3109_v21 = vperm.slane %v3044_v38, %v11766_v41  ;;  %v3058_v12 = vrot.slane %v3057_v16, 4 }
 0x650   : > { %v3135_v59 = vperm.slane %v3047_v10, %v11766_v41  ;;  %v3087_v33 = vsel %vm1849_vm7, %v3083_v1, %v3086_v47  ;;  %v3061_v61 = vsel %vm1849_vm7, %v3057_v16, %v3060_v7 }
 0x651   : > { %v3113_v55 = vsel %vm1849_vm7, %v3109_v21, %v3112_v43  ;;  %v3095_v5 = vperm.slane %v3087_v33, %v11774_v3  ;;  %v3069_v23 = vperm.slane %v3061_v61, %v11774_v3  ;;  %v3085_v24 = vsel %vm1849_vm7, %v3084_v20, %v3078_v32 }
 0x652   : > { %v3139_v48 = vsel %vm1849_vm7, %v3135_v59, %v3138_v2  ;;  %v3136_v4 = vrot.slane %v3135_v59, 4  ;;  %v3110_v31 = vrot.slane %v3109_v21, 4  ;;  %v3059_v50 = vsel %vm1849_vm7, %v3058_v12, %v3052_v37 }
 0x653   : > { %v3147_v40 = vperm.slane %v3139_v48, %v11774_v3  ;;  %v3121_v36 = vperm.slane %v3113_v55, %v11774_v3  ;;  %v3091_v44 = vperm.slane %v3085_v24, %v11774_v3  ;;  %v3098_v60 = vrot.slane %v3095_v5, 4 }
 0x654   : > { %v3137_v53 = vsel %vm1849_vm7, %v3136_v4, %v3130_v30  ;;  %v3065_v46 = vperm.slane %v3059_v50, %v11774_v3  ;;  %v3072_v57 = vrot.slane %v3069_v23, 4  ;;  %v3111_v52 = vsel %vm1849_vm7, %v3110_v31, %v3104_v26 }
 0x655   : > { %v3150_v8 = vrot.slane %v3147_v40, 4  ;;  %v3124_v49 = vrot.slane %v3121_v36, 4  ;;  %v3143_v45 = vperm.slane %v3137_v53, %v11774_v3  ;;  %v3096_v35 = vrot.slane %v3091_v44, 4 }
 0x656   : > { %v3099_v42 = vsel %vm1849_vm7, 0, %v3098_v60  ;;  %v3117_v54 = vperm.slane %v3111_v52, %v11774_v3  ;;  %v3070_v13 = vrot.slane %v3065_v46, 4  ;;  %v3073_v51 = vsel %vm1849_vm7, 0, %v3072_v57 }
 0x657   : > { %v3151_v11 = vsel %vm1849_vm7, 0, %v3150_v8  ;;  %v3125_v15 = vsel %vm1849_vm7, 0, %v3124_v49  ;;  %v3176_v27 = vrot.slane %v3099_v42, 4  ;;  %v3148_v14 = vrot.slane %v3143_v45, 4 }
 0x658   : > { %v3097_v18 = vsel %vm1849_vm7, 0, %v3096_v35  ;;  %v3157_v29 = vrot.slane %v3073_v51, 4  ;;  %v3122_v34 = vrot.slane %v3117_v54, 4  ;;  %v3214_v28 = vrot.slane %v3151_v11, 4 }
 0x659   : > { %v3071_v25 = vsel %vm1849_vm7, 0, %v3070_v13  ;;  %v3195_v63 = vrot.slane %v3125_v15, 4  ;;  %v3177_v32 = vsel %vm1849_vm7, %v3176_v27, %v3097_v18  ;;  %v3149_v9 = vsel %vm1849_vm7, 0, %v3148_v14 }
 0x65a   : > { %v3158_v30 = vsel %vm1849_vm7, %v3157_v29, %v3071_v25  ;;  %v3123_v37 = vsel %vm1849_vm7, 0, %v3122_v34  ;;  %v3215_v26 = vsel %vm1849_vm7, %v3214_v28, %v3149_v9  ;;  %v3181_v1 = vperm.slane %v3177_v32, %v11766_v41 }
 0x65b   : > { %v3196_v10 = vsel %vm1849_vm7, %v3195_v63, %v3123_v37  ;;  %v3162_v38 = vperm.slane %v3158_v30, %v11766_v41  ;;  %v3219_v16 = vperm.slane %v3215_v26, %v11766_v41  ;;  %v3171_v2 = vsel %vm1849_vm7, %v3098_v60, %v3091_v44 }
 0x65c   : > { %v3200_v47 = vperm.slane %v3196_v10, %v11766_v41  ;;  %v3152_v7 = vsel %vm1849_vm7, %v3072_v57, %v3065_v46  ;;  %v3182_v43 = vrot.slane %v3181_v1, 4  ;;  %v3209_v59 = vsel %vm1849_vm7, %v3150_v8, %v3143_v45 }
 0x65d   : > { %v3163_v20 = vrot.slane %v3162_v38, 4  ;;  %v3190_v21 = vsel %vm1849_vm7, %v3124_v49, %v3117_v54  ;;  %v3220_v12 = vrot.slane %v3219_v16, 4  ;;  %v3175_v61 = vperm.slane %v3171_v2, %v11766_v41 }
 0x65e   : > { %v3201_v55 = vrot.slane %v3200_v47, 4  ;;  %v3156_v5 = vperm.slane %v3152_v7, %v11766_v41  ;;  %v3213_v4 = vperm.slane %v3209_v59, %v11766_v41  ;;  %v3194_v31 = vperm.slane %v3190_v21, %v11766_v41 }
 0x65f   : > { %v3183_v23 = vsel %vm1849_vm7, %v3182_v43, %v3175_v61 }
 0x660   : > { %v3164_v40 = vsel %vm1849_vm7, %v3163_v20, %v3156_v5  ;;  %v3221_v50 = vsel %vm1849_vm7, %v3220_v12, %v3213_v4  ;;  %v3202_v36 = vsel %vm1849_vm7, %v3201_v55, %v3194_v31  ;;  %v12315_v44 = vperm.slane %v3183_v23, %v11774_v3 }
 0x661   : > { %v12318_v60 = vperm.slane %v3164_v40, %v11774_v3  ;;  %v12321_v52 = vperm.slane %v3221_v50, %v11774_v3  ;;  %v12324_v8 = vperm.slane %v3202_v36, %v11774_v3 }
 0x662   : > { %v3188_v54 = vrot.slane %v12315_v44, 4  ;;  %v3232_v36 = vshrl.u32 %v12315_v44, 16 }
 0x663   : > { %v3169_v27 = vrot.slane %v12318_v60, 4  ;;  %v3226_v34 = vrot.slane %v12321_v52, 4  ;;  %v3207_v25 = vrot.slane %v12324_v8, 4  ;;  %v3230_v5 = vpack.i.b16 %v12315_v44, %v12318_v60 }
 0x664   : > { %v3189_v30 = vsel %vm1849_vm7, 0, %v3188_v54  ;;  %v3243_v54 = vshrl.u32 %v12324_v8, 16 }
 0x665   : > { %v3170_v26 = vsel %vm1849_vm7, 0, %v3169_v27  ;;  %v3227_v10 = vsel %vm1849_vm7, 0, %v3226_v34  ;;  %v3238_v1 = vshrl.u32 %v3189_v30, 16  ;;  %v3208_v16 = vsel %vm1849_vm7, 0, %v3207_v25 }
 0x666   : > { %v3237_v2 = vshrl.u32 %v3170_v26, 16  ;;  %v3250_v7 = vshrl.u32 %v3227_v10, 16  ;;  %v3249_v20 = vshrl.u32 %v3208_v16, 16  ;;  %v3236_v12 = vpack.i.b16 %v3189_v30, %v3170_v26 }
 0x667   : > { %v3248_v55 = vpack.i.b16 %v3227_v10, %v3208_v16  ;;  %v3736_v50 = vunpack.c.l.b16 %v3230_v5 }
 0x668   : > { %v3239_v59 = vpack.i.b16 %v3238_v1, %v3237_v2  ;;  %v3251_v61 = vpack.i.b16 %v3250_v7, %v3249_v20  ;;  %v3788_v23 = vunpack.c.l.b16 %v3236_v12 }
 0x669   : > { %v3789_v40 = vunpack.c.l.b16 %v3248_v55 }
 0x66a   : > { %v3814_v4 = vunpack.c.l.b16 %v3239_v59  ;;  %v3815_v31 = vunpack.c.l.b16 %v3251_v61 }
 0x696   : > { %v2839_v33 = vpop.f32.mrf.mxu3 }
 0x697   : > { %v2813_v48 = vpop.f32.mrf.mxu2  ;;  %v2850_v53 = vpack.c.bf16 %v2839_v33, %v2839_v33 }
 0x698   : > { %v2848_v46 = vpack.c.bf16 %v2813_v48, %v2813_v48 }
 0x699   : > { %v2761_v24 = vpop.f32.mrf.mxu0  ;;  %v2972_v13 = vunpack.c.l.b16 %v2850_v53  ;;  %v3816_v53 = vpack.c.b16 %v3815_v31, %v3814_v4 }
 0x69a   : > { %v2844_v35 = vpack.c.bf16 %v2761_v24, %v2761_v24  ;;  %v2938_v14 = vunpack.c.l.b16 %v2848_v46  ;;  %v3242_v24 = vpack.i.b16 %v12321_v52, %v12324_v8  ;;  %v3790_v46 = vpack.c.b16 %v3789_v40, %v3788_v23  ;;  %v12405_v40 = vpop.permute.xlu1 %3500 }
 0x69c   : > { %v2870_v63 = vunpack.c.l.b16 %v2844_v35 }
 0x69e   : > { %v2841_v57 = vpop.f32.mrf.mxu3 }
 0x69f   : > { %v2815_v49 = vpop.f32.mrf.mxu2  ;;  %v2851_v45 = vpack.c.bf16 %v2841_v57, %v2841_v57  ;;  %v3737_v57 = vunpack.c.l.b16 %v3242_v24 }
 0x6a0   : > { %v2849_v42 = vpack.c.bf16 %v2815_v49, %v2815_v49  ;;  %v3231_v49 = vshrl.u32 %v12318_v60, 16  ;;  %v9241_v60 = vld [vmem:[%s11970_s15 + $0x1] sm:$0x1]  ;;  %s14148_s15 = sld [smem:[#allocation50_spill]] }
 0x6a1   : > { %v2973_v51 = vunpack.c.l.b16 %v2851_v45  ;;  %v2763_v11 = vpop.f32.mrf.mxu0  ;;  %v2787_v15 = vpop.f32.mrf.mxu1  ;;  %v3244_v45 = vshrl.u32 %v12321_v52, 16  ;;  %v3738_v35 = vpack.c.b16 %v3737_v57, %v3736_v50  ;;  %vm1520_vm2 = vcmp.gt.f32.partialorder %v9241_v60, 0.5 }
 0x6a2   : > { %v2939_v18 = vunpack.c.l.b16 %v2849_v42  ;;  %v2845_v29 = vpack.c.bf16 %v2763_v11, %v2763_v11  ;;  %v2846_v38 = vpack.c.bf16 %v2787_v15, %v2787_v15  ;;  %v3233_v42 = vpack.i.b16 %v3232_v36, %v3231_v49  ;;  %v12407_v50 = vpop.permute.xlu0 %3498  ;;  %v3497_v36 = vpop.permute.xlu2 %3496 }
 0x6a3   : > { %v2974_v28 = vpack.c.b16 %v2973_v51, %v2972_v13  ;;  %v3245_v13 = vpack.i.b16 %v3244_v45, %v3243_v54  ;;  %v3840_v27 = vsel %vm1520_vm2, 1, %v11150_v0 }
 0x6a4   : > { %v2940_v32 = vpack.c.b16 %v2939_v18, %v2938_v14  ;;  %v2871_v9 = vunpack.c.l.b16 %v2845_v29  ;;  %v2904_v33 = vunpack.c.l.b16 %v2846_v38  ;;  %v3762_v44 = vunpack.c.l.b16 %v3233_v42 }
 0x6a5   : > { %9381 = vmatmul.msk.bf16.vlgmr.msra.gmra.mxu3 %vm2533_vm8, %v2974_v28  ;;  %v3763_v51 = vunpack.c.l.b16 %v3245_v13  ;;  %v3841_v8 = vperm.slane %v3840_v27, 0 }
 0x6a6   : > { %v2872_v37 = vpack.c.b16 %v2871_v9, %v2870_v63  ;;  %9372 = vmatmul.msk.bf16.vlgmr.msra.gmra.mxu2 %vm2533_vm8, %v2940_v32 }
 0x6a7   : > { %v3764_v11 = vpack.c.b16 %v3763_v51, %v3762_v44  ;;  %vm12356_vm3 = vcmp.eq.s32.totalorder %v3841_v8, 1 }
 0x6a8   : > { %9354 = vmatmul.msk.bf16.vlgmr.msrb.gmra.mxu0 %vm2533_vm8, %v2872_v37 }
 0x6a9   : > { %v2789_v47 = vpop.f32.mrf.mxu1 }
 0x6aa   : > { %v2847_v43 = vpack.c.bf16 %v2789_v47, %v2789_v47 }
 0x6ac   : > { %v2905_v21 = vunpack.c.l.b16 %v2847_v43 }
 0x6ae   : > { %v2906_v48 = vpack.c.b16 %v2905_v21, %v2904_v33 }
 0x6b0   : > { %9363 = vmatmul.msk.bf16.vlgmr.msra.gmra.mxu1 %vm2533_vm8, %v2906_v48 }
 0x6b5   : > { %9385 = vmatmul.msk.bf16.vlgmr.msrb.gmra.mxu3 %vm2533_vm8, %v3816_v53 }
 0x6b6   : > { %9384 = vmatmul.msk.bf16.vlgmr.msrb.gmra.mxu2 %vm2533_vm8, %v3790_v46 }
 0x6b8   : > { %9382 = vmatmul.msk.bf16.vlgmr.msra.gmra.mxu0 %vm2533_vm8, %v3738_v35 }
 0x6c0   : > { %9383 = vmatmul.msk.bf16.vlgmr.msrb.gmra.mxu1 %vm2533_vm8, %v3764_v11 }
 0x725   : > { %v2897_v15 = vpop.f32.mrf.mxu0 }
 0x728   : > { %v2999_v14 = vpop.f32.mrf.mxu3 }
 0x729   : > { %v2965_v52 = vpop.f32.mrf.mxu2 }
 0x72d   : > { %v12352_v18 = vpop.f32.mrf.mxu0  ;;  %v2931_v29 = vpop.f32.mrf.mxu1 }
 0x72e   : > { %v3004_v34 = vadd.f32 %v2931_v29, %v2897_v15 }
 0x730   : > { %v3006_v28 = vadd.f32 %v3004_v34, %v2965_v52  ;;  %v12364_v37 = vpop.f32.mrf.mxu3 }
 0x731   : > { %v12360_v32 = vpop.f32.mrf.mxu2 }
 0x732   : > { %v12354_v25 = vadd.f32 %v3006_v28, %v2999_v14 }
 0x735   : > { %v12362_v9 = vpop.f32.mrf.mxu1  ;;  %v3757_v30 = vpop.f32.mrf.mxu0 }
 0x736   : > { %v12368_v0 = vsel %vm12356_vm3, -1e+09, %v3757_v30 }
 0x737   : > { %v3851_v26 = vsel %vm2643_vm1, %v12368_v0, -inf }
 0x738   : > { %3852 = vmax.xlane.f32.xlu1 %v3851_v26  ;;  %v3835_v43 = vpop.f32.mrf.mxu3 }
 0x739   : > { %v3809_v47 = vpop.f32.mrf.mxu2  ;;  %v3849_v59 = vsel %vm12356_vm3, -1e+09, %v3835_v43  ;;  %v3512_v43 = vshrl.u32 %v3497_v36, 16 }
 0x73a   : > { %v3847_v20 = vsel %vm12356_vm3, -1e+09, %v3809_v47  ;;  %v3869_v61 = vsel %vm2643_vm1, %v3849_v59, -inf  ;;  %v3005_v47 = vadd.f32 %v12362_v9, %v12352_v18  ;;  %v3511_v9 = vshrl.u32 %v12170_v39, 16 }
 0x73b   : > { %v3863_v48 = vsel %vm2643_vm1, %v3847_v20, -inf }
 0x73d   : > { %v3759_v10 = vpop.f32.mrf.mxu0  ;;  %v3783_v1 = vpop.f32.mrf.mxu1 }
 0x73e   : > { %v12374_v38 = vsel %vm12356_vm3, -1e+09, %v3783_v1  ;;  %v3844_v16 = vsel %vm12356_vm3, -1e+09, %v3759_v10 }
 0x73f   : > { %v3857_v2 = vsel %vm2643_vm1, %v12374_v38, -inf  ;;  %v3854_v7 = vsel %vm2643_vm1, %v3844_v16, -inf }
 0x740   : > { %3858 = vmax.xlane.f32.xlu0 %v3857_v2  ;;  %3855 = vmax.xlane.f32.xlu2 %v3854_v7  ;;  %v3837_v5 = vpop.f32.mrf.mxu3 }
 0x741   : > { %v3811_v55 = vpop.f32.mrf.mxu2  ;;  %v3850_v23 = vsel %vm12356_vm3, -1e+09, %v3837_v5 }
 0x742   : > { %v3848_v4 = vsel %vm12356_vm3, -1e+09, %v3811_v55  ;;  %v3872_v31 = vsel %vm2643_vm1, %v3850_v23, -inf  ;;  %v3513_v55 = vpack.i.b16 %v3512_v43, %v3511_v9 }
 0x743   : > { %v3866_v24 = vsel %vm2643_vm1, %v3848_v4, -inf }
 0x745   : > { %v3785_v33 = vpop.f32.mrf.mxu1 }
 0x746   : > { %v12387_v21 = vsel %vm12356_vm3, -1e+09, %v3785_v33 }
 0x747   : > { %v3860_v12 = vsel %vm2643_vm1, %v12387_v21, -inf }
 0x748   : > { %3861 = vmax.xlane.f32.xlu1 %v3860_v12  ;;  %3870 = vmax.xlane.f32.xlu2 %v3869_v61  ;;  %v3510_v12 = vpack.i.b16 %v3497_v36, %v12170_v39 }
 0x749   : > { %3864 = vmax.xlane.f32.xlu0 %v3863_v48  ;;  %v3522_v48 = vpack.i.b16 %v12407_v50, %v12071_v6 }
 0x74b   : > { %v3588_v36 = vperm.slane %v3522_v48, %v11766_v41 }
 0x750   : > { %3867 = vmax.xlane.f32.xlu1 %v3866_v24 }
 0x751   : > { %3873 = vmax.xlane.f32.xlu0 %v3872_v31 }
 0x760   : > { %3502 = vrot.lane.b32.xlu2 %v12071_v6, %s11152_s17 }
 0x765   : > { %3504 = vrot.lane.b32.xlu0 %v12170_v39, %s11154_s24  ;;  %v3536_v39 = vperm.slane %v3510_v12, %v11766_v41 }
 0x769   : > { %3506 = vrot.lane.b32.xlu1 %v12071_v6, %s11154_s24 }
 0x7ab   : > { %v3853_v53 = vpop.xlane.xlu1 %3852 }
 0x7ac   : > { %v3875_v14 = vsub.f32 %v12368_v0, %v3853_v53  ;;  %v3562_v53 = vperm.slane %v3513_v55, %v11766_v41 }
 0x7ae   : > { %v3883_v0 = vmul.f32 1.442695, %v3875_v14 }
 0x7b3   : > { %v3856_v46 = vpop.xlane.xlu2 %3855  ;;  %v3859_v57 = vpop.xlane.xlu0 %3858 }
 0x7b4   : > { %v3876_v44 = vsub.f32 %v3844_v16, %v3856_v46  ;;  %v3877_v30 = vsub.f32 %v12374_v38, %v3859_v57 }
 0x7b6   : > { %v3885_v11 = vmul.f32 1.442695, %v3876_v44  ;;  %v3887_v1 = vmul.f32 1.442695, %v3877_v30  ;;  %v3570_v44 = vrot.slane %v3562_v53, 4 }
 0x7bb   : > { %v3862_v49 = vpop.xlane.xlu1 %3861  ;;  %v3871_v45 = vpop.xlane.xlu2 %3870 }
 0x7bc   : > { %v3881_v35 = vsub.f32 %v3849_v59, %v3871_v45  ;;  %v3865_v42 = vpop.xlane.xlu0 %3864  ;;  %v3878_v38 = vsub.f32 %v12387_v21, %v3862_v49  ;;  %v3007_v21 = vadd.f32 %v3005_v47, %v12360_v32  ;;  %v3523_v32 = vshrl.u32 %v12071_v6, 16 }
 0x7bd   : > { %v3879_v54 = vsub.f32 %v3847_v20, %v3865_v42  ;;  %v12431_v20 = vld [vmem:[%s14129_s26] ss:$0 sm:$0xff]  ;;  %v3544_v42 = vrot.slane %v3536_v39, 4 }
 0x7be   : > { %v3895_v13 = vmul.f32 1.442695, %v3881_v35  ;;  %v3889_v61 = vmul.f32 1.442695, %v3878_v38  ;;  %v4221_v5 = vadd.f32 %v12431_v20, %v12354_v25  ;;  %v3009_v24 = vadd.f32 %v3007_v21, %v12364_v37 }
 0x7bf   : > { %v3891_v51 = vmul.f32 1.442695, %v3879_v54  ;;  %v3517_v37 = vshrl.u32 %v12405_v40, 16 }
 0x7c0   : > { %10498 = vpow2.f32 %v3895_v13  ;;  %v12455_v25 = vadd.f32 %v4221_v5, %v11685_v56  ;;  %v4222_v35 = vadd.f32 %v12431_v20, %v3009_v24  ;;  %v3596_v13 = vrot.slane %v3588_v36, 4 }
 0x7c1   : > { %10500 = vpow2.f32 %v3891_v51 }
 0x7c2   : > { %10502 = vpow2.f32 %v3885_v11  ;;  %v12473_v30 = vadd.f32 %v4222_v35, %v11688_v58 }
 0x7c3   : > { %v3868_v15 = vpop.xlane.xlu1 %3867  ;;  %v3503_v51 = vpop.permute.xlu2 %3502 }
 0x7c4   : > { %v3880_v60 = vsub.f32 %v3848_v4, %v3868_v15  ;;  %v3874_v52 = vpop.xlane.xlu0 %3873 }
 0x7c5   : > { %v3882_v27 = vsub.f32 %v3850_v23, %v3874_v52  ;;  %v3524_v23 = vshrl.u32 %v12407_v50, 16 }
 0x7c6   : > { %v3893_v29 = vmul.f32 1.442695, %v3880_v60  ;;  %v12410_v34 = vpop.eup %10498 }
 0x7c7   : > { %v3897_v8 = vmul.f32 1.442695, %v3882_v27  ;;  %v12412_v28 = vpop.eup %10500  ;;  %v3917_v26 = vsel %vm2643_vm1, %v12410_v34, 0.0  ;;  %v3525_v6 = vpack.i.b16 %v3524_v23, %v3523_v32 }
 0x7c8   : > { %10504 = vpow2.f32 %v3893_v29  ;;  %3918 = vadd.xlane.f32.xlu1 %v3917_v26  ;;  %v3911_v10 = vsel %vm2643_vm1, %v12412_v28, 0.0  ;;  %v12419_v16 = vpop.eup %10502 }
 0x7c9   : > { %10506 = vpow2.f32 %v3897_v8  ;;  %3912 = vadd.xlane.f32.xlu2 %v3911_v10  ;;  %v3902_v33 = vsel %vm2643_vm1, %v12419_v16, 0.0  ;;  %v3614_v14 = vperm.slane %v3525_v6, %v11766_v41 }
 0x7ca   : > { %10508 = vpow2.f32 %v3883_v0 }
 0x7cb   : > { %10510 = vpow2.f32 %v3887_v1 }
 0x7cc   : > { %10512 = vpow2.f32 %v3889_v61 }
 0x7ce   : > { %v12423_v2 = vpop.eup %10504 }
 0x7cf   : > { %v12426_v7 = vpop.eup %10506  ;;  %v3914_v59 = vsel %vm2643_vm1, %v12423_v2, 0.0 }
 0x7d0   : > { %3915 = vadd.xlane.f32.xlu0 %v3914_v59  ;;  %v3920_v18 = vsel %vm2643_vm1, %v12426_v7, 0.0  ;;  %3903 = vadd.xlane.f32.xlu1 %v3902_v33  ;;  %v12444_v4 = vpop.eup %10508  ;;  %v3529_v33 = vshrl.u32 %v3503_v51, 16 }
 0x7d1   : > { %3921 = vadd.xlane.f32.xlu2 %v3920_v18  ;;  %v12448_v31 = vpop.eup %10510  ;;  %v3899_v50 = vsel %vm2643_vm1, %v12444_v4, 0.0 }
 0x7d2   : > { %v3905_v45 = vsel %vm2643_vm1, %v12448_v31, 0.0 }
 0x7d7   : > { %v3505_v46 = vpop.permute.xlu0 %3504 }
 0x7d8   : > { %v3516_v57 = vpack.i.b16 %v3505_v46, %v12405_v40  ;;  %v3518_v49 = vshrl.u32 %v3505_v46, 16  ;;  %3900 = vadd.xlane.f32.xlu0 %v3899_v50  ;;  %4231 = vadd.xlane.f32.xlu1 %v12455_v25  ;;  %v12466_v40 = vpop.eup %10512  ;;  %v3622_v46 = vrot.slane %v3614_v14, 4 }
 0x7d9   : > { %3906 = vadd.xlane.f32.xlu2 %v3905_v45  ;;  %v3908_v59 = vsel %vm2643_vm1, %v12466_v40, 0.0 }
 0x7da   : > { %v3519_v56 = vpack.i.b16 %v3518_v49, %v3517_v37  ;;  %v3541_v54 = vperm.slane %v3516_v57, %v11766_v41 }
 0x7db   : > { %v3507_v11 = vpop.permute.xlu1 %3506 }
 0x7dc   : > { %v3542_v15 = vrot.slane %v3541_v54, 4  ;;  %v3545_v60 = vsel %vm1849_vm7, %v3541_v54, %v3544_v42  ;;  %v3567_v52 = vperm.slane %v3519_v56, %v11766_v41  ;;  %v3528_v27 = vpack.i.b16 %v3507_v11, %v3503_v51 }
 0x7dd   : > { %v3553_v29 = vperm.slane %v3545_v60, %v11774_v3  ;;  %v3530_v8 = vshrl.u32 %v3507_v11, 16 }
 0x7de   : > { %v3543_v26 = vsel %vm1849_vm7, %v3542_v15, %v3536_v39  ;;  %v3568_v10 = vrot.slane %v3567_v52, 4  ;;  %v3571_v0 = vsel %vm1849_vm7, %v3567_v52, %v3570_v44  ;;  %v3593_v1 = vperm.slane %v3528_v27, %v11766_v41 }
 0x7df   : > { %v3549_v47 = vperm.slane %v3543_v26, %v11774_v3  ;;  %v3556_v38 = vrot.slane %v3553_v29, 4  ;;  %v3579_v43 = vperm.slane %v3571_v0, %v11774_v3  ;;  %v3531_v5 = vpack.i.b16 %v3530_v8, %v3529_v33 }
 0x7e0   : > { %v3569_v18 = vsel %vm1849_vm7, %v3568_v10, %v3562_v53  ;;  %v3594_v58 = vrot.slane %v3593_v1, 4  ;;  %v3597_v9 = vsel %vm1849_vm7, %v3593_v1, %v3596_v13  ;;  %3909 = vadd.xlane.f32.xlu0 %v3908_v59 }
 0x7e1   : > { %v3554_v21 = vrot.slane %v3549_v47, 4  ;;  %v3557_v12 = vsel %vm1849_vm7, 0, %v3556_v38  ;;  %v3575_v61 = vperm.slane %v3569_v18, %v11774_v3  ;;  %v3582_v48 = vrot.slane %v3579_v43, 4  ;;  %4233 = vadd.xlane.f32.xlu2 %v12473_v30 }
 0x7e2   : > { %v3641_v55 = vrot.slane %v3557_v12, 4  ;;  %v3595_v23 = vsel %vm1849_vm7, %v3594_v58, %v3588_v36  ;;  %v3605_v24 = vperm.slane %v3597_v9, %v11774_v3  ;;  %v3636_v6 = vsel %vm1849_vm7, %v3556_v38, %v3549_v47 }
 0x7e3   : > { %v3555_v32 = vsel %vm1849_vm7, 0, %v3554_v21  ;;  %v3580_v39 = vrot.slane %v3575_v61, 4  ;;  %v3583_v53 = vsel %vm1849_vm7, 0, %v3582_v48  ;;  %v3601_v57 = vperm.slane %v3595_v23, %v11774_v3 }
 0x7e4   : > { %v3642_v50 = vsel %vm1849_vm7, %v3641_v55, %v3555_v32  ;;  %v3660_v37 = vrot.slane %v3583_v53, 4  ;;  %v3608_v45 = vrot.slane %v3605_v24, 4  ;;  %v3655_v35 = vsel %vm1849_vm7, %v3582_v48, %v3575_v61 }
 0x7e5   : > { %v3581_v49 = vsel %vm1849_vm7, 0, %v3580_v39  ;;  %v3646_v36 = vperm.slane %v3642_v50, %v11766_v41  ;;  %v3606_v56 = vrot.slane %v3601_v57, 4  ;;  %v3619_v54 = vperm.slane %v3531_v5, %v11766_v41 }
 0x7e6   : > { %v3661_v42 = vsel %vm1849_vm7, %v3660_v37, %v3581_v49  ;;  %v3609_v51 = vsel %vm1849_vm7, 0, %v3608_v45  ;;  %v3640_v11 = vperm.slane %v3636_v6, %v11766_v41  ;;  %v3659_v27 = vperm.slane %v3655_v35, %v11766_v41 }
 0x7e7   : > { %v3647_v13 = vrot.slane %v3646_v36, 4  ;;  %v3665_v44 = vperm.slane %v3661_v42, %v11766_v41  ;;  %v3607_v15 = vsel %vm1849_vm7, 0, %v3606_v56  ;;  %v3620_v60 = vrot.slane %v3619_v54, 4 }
 0x7e8   : > { %v3623_v52 = vsel %vm1849_vm7, %v3619_v54, %v3622_v46  ;;  %v3679_v8 = vrot.slane %v3609_v51, 4  ;;  %v3674_v0 = vsel %vm1849_vm7, %v3608_v45, %v3601_v57 }
 0x7e9   : > { %v3631_v29 = vperm.slane %v3623_v52, %v11774_v3  ;;  %v3666_v26 = vrot.slane %v3665_v44, 4  ;;  %v3621_v10 = vsel %vm1849_vm7, %v3620_v60, %v3614_v14  ;;  %v3648_v1 = vsel %vm1849_vm7, %v3647_v13, %v3640_v11 }
 0x7ea   : > { %v3627_v47 = vperm.slane %v3621_v10, %v11774_v3  ;;  %v3680_v43 = vsel %vm1849_vm7, %v3679_v8, %v3607_v15  ;;  %v3678_v14 = vperm.slane %v3674_v0, %v11766_v41  ;;  %v3652_v61 = vperm.slane %v3648_v1, %v11774_v3 }
 0x7eb   : > { %v3634_v38 = vrot.slane %v3631_v29, 4  ;;  %v3667_v59 = vsel %vm1849_vm7, %v3666_v26, %v3659_v27  ;;  %v3684_v33 = vperm.slane %v3680_v43, %v11766_v41 }
 0x7ec   : > { %v3671_v18 = vperm.slane %v3667_v59, %v11774_v3  ;;  %v3632_v58 = vrot.slane %v3627_v47, 4  ;;  %v3653_v53 = vrot.slane %v3652_v61, 4  ;;  %v3715_v36 = vshrl.u32 %v3652_v61, 16 }
 0x7ed   : > { %v3635_v9 = vsel %vm1849_vm7, 0, %v3634_v38  ;;  %v3685_v21 = vrot.slane %v3684_v33, 4  ;;  %v3693_v55 = vsel %vm1849_vm7, %v3634_v38, %v3627_v47 }
 0x7ee   : > { %v3698_v12 = vrot.slane %v3635_v9, 4  ;;  %v3633_v48 = vsel %vm1849_vm7, 0, %v3632_v58  ;;  %v3672_v24 = vrot.slane %v3671_v18, 4  ;;  %v3697_v46 = vperm.slane %v3693_v55, %v11766_v41 }
 0x7ef   : > { %v3686_v23 = vsel %vm1849_vm7, %v3685_v21, %v3678_v14  ;;  %v3716_v37 = vshrl.u32 %v3671_v18, 16  ;;  %v3714_v35 = vpack.i.b16 %v3671_v18, %v3652_v61  ;;  %v3654_v42 = vsel %vm1849_vm7, 0, %v3653_v53 }
 0x7f0   : > { %v3699_v5 = vsel %vm1849_vm7, %v3698_v12, %v3633_v48  ;;  %v3690_v39 = vperm.slane %v3686_v23, %v11774_v3  ;;  %v3673_v57 = vsel %vm1849_vm7, 0, %v3672_v24  ;;  %v3721_v52 = vshrl.u32 %v3654_v42, 16 }
 0x7f1   : > { %v3703_v32 = vperm.slane %v3699_v5, %v11766_v41  ;;  %v3717_v56 = vpack.i.b16 %v3716_v37, %v3715_v36  ;;  %v3722_v13 = vshrl.u32 %v3673_v57, 16  ;;  %v3720_v60 = vpack.i.b16 %v3673_v57, %v3654_v42 }
 0x7f2   : > { %v3691_v49 = vrot.slane %v3690_v39, 4  ;;  %v3727_v54 = vshrl.u32 %v3690_v39, 16  ;;  %v3952_v27 = vunpack.c.l.b16 %v3714_v35 }
 0x7f3   : > { %v3704_v50 = vrot.slane %v3703_v32, 4  ;;  %v3723_v0 = vpack.i.b16 %v3722_v13, %v3721_v52  ;;  %v3978_v43 = vunpack.c.l.b16 %v3717_v56  ;;  %v4004_v33 = vunpack.c.l.b16 %v3720_v60 }
 0x7f4   : > { %v3692_v11 = vsel %vm1849_vm7, 0, %v3691_v49 }
 0x7f5   : > { %v3705_v6 = vsel %vm1849_vm7, %v3704_v50, %v3697_v46  ;;  %v3733_v1 = vshrl.u32 %v3692_v11, 16  ;;  %v4030_v21 = vunpack.c.l.b16 %v3723_v0 }
 0x7f6   : > { %v3709_v45 = vperm.slane %v3705_v6, %v11774_v3 }
 0x7f8   : > { %v3726_v44 = vpack.i.b16 %v3709_v45, %v3690_v39  ;;  %v3728_v51 = vshrl.u32 %v3709_v45, 16  ;;  %v3710_v15 = vrot.slane %v3709_v45, 4 }
 0x7fa   : > { %v3953_v29 = vunpack.c.l.b16 %v3726_v44  ;;  %v3729_v8 = vpack.i.b16 %v3728_v51, %v3727_v54  ;;  %v3711_v26 = vsel %vm1849_vm7, 0, %v3710_v15 }
 0x7fb   : > { %v3732_v10 = vpack.i.b16 %v3711_v26, %v3692_v11  ;;  %v3734_v47 = vshrl.u32 %v3711_v26, 16 }
 0x7fc   : > { %v3954_v38 = vpack.c.b16 %v3953_v29, %v3952_v27  ;;  %v3979_v59 = vunpack.c.l.b16 %v3729_v8 }
 0x7fd   : > { %v4005_v18 = vunpack.c.l.b16 %v3732_v10  ;;  %v3735_v58 = vpack.i.b16 %v3734_v47, %v3733_v1 }
 0x7fe   : > { %3966 = vmatpush.bf16.msrb.mxu0 %v3954_v38  ;;  %v3980_v9 = vpack.c.b16 %v3979_v59, %v3978_v43 }
 0x7ff   : > { %v4006_v14 = vpack.c.b16 %v4005_v18, %v4004_v33  ;;  %v4031_v12 = vunpack.c.l.b16 %v3735_v58 }
 0x800   : > { %3992 = vmatpush.bf16.msra.mxu1 %v3980_v9 }
 0x801   : > { %4018 = vmatpush.bf16.msra.mxu2 %v4006_v14  ;;  %v4032_v61 = vpack.c.b16 %v4031_v12, %v4030_v21 }
 0x803   : > { %4044 = vmatpush.bf16.msra.mxu3 %v4032_v61  ;;  %v9484_v61 = vld [vmem:[#allocation13 + $0x70] sm:$0xf] }
 0x83b   : > { %v3919_v48 = vpop.xlane.xlu1 %3918 }
 0x83c   : > { %v3913_v55 = vpop.xlane.xlu2 %3912 }
 0x83d   : > { %10514 = vrcp.f32 %v3913_v55  ;;  %v10078_v55 = vld [vmem:[#allocation11] sm:$0xff] }
 0x83e   : > { %10516 = vrcp.f32 %v3919_v48 }
 0x843   : > { %v3916_v5 = vpop.xlane.xlu0 %3915  ;;  %v10515_v23 = vpop.eup %10514 }
 0x844   : > { %v3904_v24 = vpop.xlane.xlu1 %3903  ;;  %10518 = vrcp.f32 %v3916_v5  ;;  %v3922_v32 = vpop.xlane.xlu2 %3921  ;;  %v3935_v53 = vmul.f32 %v10515_v23, %v12412_v28  ;;  %v10101_v5 = vld [vmem:[#allocation13 + $0x74] sm:$0xf0] }
 0x845   : > { %10520 = vrcp.f32 %v3904_v24  ;;  %v10517_v39 = vpop.eup %10516  ;;  %v10081_v23 = vld [vmem:[#allocation11 + $0x18] sm:$0xff]  ;;  %v9476_v24 = vld [vmem:[#allocation13 + $0x60] sm:$0xf] }
 0x846   : > { %10522 = vrcp.f32 %v3922_v32  ;;  %v3937_v46 = vmul.f32 %v10517_v39, %v12410_v34  ;;  %v3943_v37 = vpack.c.bf16 %v3935_v53, %v3935_v53  ;;  %v10085_v32 = vld [vmem:[#allocation11 + $0x38] sm:$0xff]  ;;  %v9485_v53 = vor.u32 %v10101_v5, %v9484_v61  ;;  %4135 = vmatpush.bf16.msrb.mxu1 %v10081_v23  ;;  %v9436_v23 = vld [vmem:[#allocation13 + $0x10] sm:$0xf] }
 0x847   : > { %4203 = vmatpush.bf16.msrb.mxu3 %v10085_v32 }
 0x848   : > { %v3945_v35 = vpack.c.bf16 %v3937_v46, %v3937_v46  ;;  %v4001_v28 = vunpack.c.l.b16 %v3943_v37  ;;  %v10099_v46 = vld [vmem:[#allocation13 + $0x64] sm:$0xf0]  ;;  %v10100_v37 = vld [vmem:[#allocation13 + $0x74] sm:$0xf] }
 0x84a   : > { %v10519_v50 = vpop.eup %10518 }
 0x84b   : > { %v10521_v57 = vpop.eup %10520  ;;  %v3936_v49 = vmul.f32 %v10519_v50, %v12423_v2  ;;  %v3901_v6 = vpop.xlane.xlu0 %3900  ;;  %v4027_v2 = vunpack.c.l.b16 %v3945_v35  ;;  %v10080_v50 = vld [vmem:[#allocation11 + $0x10] sm:$0xff]  ;;  %v9478_v35 = vld [vmem:[#allocation13 + $0x68] sm:$0xf0] }
 0x84c   : > { %v10523_v36 = vpop.eup %10522  ;;  %v4232_v45 = vpop.xlane.xlu1 %4231  ;;  %10524 = vrcp.f32 %v3901_v6  ;;  %v3932_v34 = vmul.f32 %v10521_v57, %v12419_v16  ;;  %v9486_v57 = vld [vmem:[#allocation13 + $0x78] sm:$0xf0]  ;;  %4136 = vmatpush.bf16.msrb.mxu1 %v10080_v50 }
 0x84d   : > { %v3938_v42 = vmul.f32 %v10523_v36, %v12426_v7  ;;  %v3944_v56 = vpack.c.bf16 %v3936_v49, %v3936_v49  ;;  %v4239_v54 = vmul.f32 %v4232_v45, %v11635_v17  ;;  %v3907_v13 = vpop.xlane.xlu2 %3906  ;;  %v10082_v49 = vld [vmem:[#allocation11 + $0x20] sm:$0xff]  ;;  %v9489_v6 = vor.u32 %v10100_v37, %v9486_v57  ;;  %v10084_v36 = vld [vmem:[#allocation11 + $0x30] sm:$0xff] }
 0x84e   : > { %10526 = vrcp.f32 %v3907_v13  ;;  %v3940_v27 = vpack.c.bf16 %v3932_v34, %v3932_v34  ;;  %v10098_v45 = vld [vmem:[#allocation13 + $0x64] sm:$0xf]  ;;  %4204 = vmatpush.bf16.msrb.mxu3 %v10084_v36  ;;  %v10096_v34 = vld [vmem:[#allocation13 + $0x54] sm:$0xf] }
 0x84f   : > { %v3946_v44 = vpack.c.bf16 %v3938_v42, %v3938_v42  ;;  %v4002_v51 = vunpack.c.l.b16 %v3944_v56  ;;  %v12537_v11 = vsub.f32 %v12455_v25, %v4239_v54  ;;  %v9477_v42 = vor.u32 %v10099_v46, %v9476_v24  ;;  %v9468_v56 = vld [vmem:[#allocation13 + $0x50] sm:$0xf]  ;;  %v10097_v54 = vld [vmem:[#allocation13 + $0x54] sm:$0xf0]  ;;  %v10088_v57 = vld [vmem:[#allocation13 + $0x14] sm:$0xf] }
 0x850   : > { %v3950_v1 = vunpack.c.l.b16 %v3940_v27  ;;  %v9481_v13 = vor.u32 %v10098_v45, %v9478_v35  ;;  %v10089_v24 = vld [vmem:[#allocation13 + $0x14] sm:$0xf0] }
 0x851   : > { %v4028_v15 = vunpack.c.l.b16 %v3946_v44  ;;  %v4003_v60 = vpack.c.b16 %v4002_v51, %v4001_v28  ;;  %v4247_v52 = vmul.f32 %v12537_v11, %v12537_v11  ;;  %v9470_v44 = vld [vmem:[#allocation13 + $0x58] sm:$0xf0] }
 0x852   : > { %v10525_v7 = vpop.eup %10524  ;;  %v9473_v27 = vor.u32 %v10096_v34, %v9470_v44 }
 0x853   : > { %v4029_v29 = vpack.c.b16 %v4028_v15, %v4027_v2  ;;  %v3931_v8 = vmul.f32 %v10525_v7, %v12444_v4  ;;  %4251 = vadd.xlane.f32.xlu0 %v4247_v52  ;;  %9388 = vmatmul.msk.bf16.vlgmr.msra.gmra.mxu2 %vm2643_vm1, %v4003_v60  ;;  %v3910_v16 = vpop.xlane.xlu0 %3909  ;;  %v9469_v15 = vor.u32 %v10097_v54, %v9468_v56  ;;  %v9460_v52 = vld [vmem:[#allocation13 + $0x40] sm:$0xf]  ;;  %v10095_v7 = vld [vmem:[#allocation13 + $0x44] sm:$0xf0] }
 0x854   : > { %v10527_v26 = vpop.eup %10526  ;;  %10528 = vrcp.f32 %v3910_v16 }
 0x855   : > { %v3939_v10 = vpack.c.bf16 %v3931_v8, %v3931_v8  ;;  %v4234_v25 = vpop.xlane.xlu2 %4233  ;;  %9389 = vmatmul.msk.bf16.vlgmr.msra.gmra.mxu3 %vm2643_vm1, %v4029_v29  ;;  %v3933_v47 = vmul.f32 %v10527_v26, %v12448_v31  ;;  %v10094_v29 = vld [vmem:[#allocation13 + $0x44] sm:$0xf]  ;;  %v9462_v8 = vld [vmem:[#allocation13 + $0x48] sm:$0xf0]  ;;  %v9461_v26 = vor.u32 %v10095_v7, %v9460_v52  ;;  %v10087_v52 = vld [vmem:[#allocation13 + $0x4] sm:$0xf0] }
 0x856   : > { %v4240_v0 = vmul.f32 %v4234_v25, %v11635_v17  ;;  %v9452_v25 = vld [vmem:[#allocation13 + $0x30] sm:$0xf] }
 0x857   : > { %v3949_v38 = vunpack.c.l.b16 %v3939_v10  ;;  %v3941_v18 = vpack.c.bf16 %v3933_v47, %v3933_v47  ;;  %v10092_v47 = vld [vmem:[#allocation13 + $0x34] sm:$0xf] }
 0x858   : > { %v12547_v43 = vsub.f32 %v12473_v30, %v4240_v0  ;;  %v10079_v30 = vld [vmem:[#allocation11 + $0x8] sm:$0xff]  ;;  %v10093_v0 = vld [vmem:[#allocation13 + $0x34] sm:$0xf0] }
 0x859   : > { %v3951_v4 = vpack.c.b16 %v3950_v1, %v3949_v38  ;;  %v3975_v14 = vunpack.c.l.b16 %v3941_v18  ;;  %4101 = vmatpush.bf16.msra.mxu0 %v10079_v30  ;;  %v9465_v1 = vor.u32 %v10094_v29, %v9462_v8  ;;  %v9454_v38 = vld [vmem:[#allocation13 + $0x38] sm:$0xf0]  ;;  %v9453_v18 = vor.u32 %v10093_v0, %v9452_v25  ;;  %v9446_v30 = vld [vmem:[#allocation13 + $0x28] sm:$0xf0] }
 0x85a   : > { %v10529_v59 = vpop.eup %10528  ;;  %v4248_v33 = vmul.f32 %v12547_v43, %v12547_v43 }
 0x85b   : > { %v3934_v58 = vmul.f32 %v10529_v59, %v12466_v40  ;;  %9386 = vmatmul.msk.bf16.vlgmr.msrb.gmra.mxu0 %vm2643_vm1, %v3951_v4  ;;  %v10083_v40 = vld [vmem:[#allocation11 + $0x28] sm:$0xff] }
 0x85c   : > { %4253 = vadd.xlane.f32.xlu1 %v4248_v33  ;;  %4169 = vmatpush.bf16.msrb.mxu2 %v10083_v40 }
 0x85d   : > { %v3942_v9 = vpack.c.bf16 %v3934_v58, %v3934_v58  ;;  %4102 = vmatpush.bf16.msra.mxu0 %v10078_v55 }
 0x85f   : > { %v3976_v21 = vunpack.c.l.b16 %v3942_v9  ;;  %v9444_v9 = vld [vmem:[#allocation13 + $0x20] sm:$0xf] }
 0x860   : > { %4170 = vmatpush.bf16.msrb.mxu2 %v10082_v49  ;;  %v9438_v49 = vld [vmem:[#allocation13 + $0x18] sm:$0xf0] }
 0x861   : > { %v3977_v12 = vpack.c.b16 %v3976_v21, %v3975_v14  ;;  %4429 = vmatpush.bf16.msrb.mxu0 %v9485_v53  ;;  %v10091_v14 = vld [vmem:[#allocation13 + $0x24] sm:$0xf0]  ;;  %v9457_v21 = vor.u32 %v10092_v47, %v9454_v38  ;;  %v9441_v7 = vor.u32 %v10088_v57, %v9438_v49 }
 0x862   : > { %v9445_v5 = vor.u32 %v10091_v14, %v9444_v9 }
 0x863   : > { %9387 = vmatmul.msk.bf16.vlgmr.msra.gmra.mxu1 %vm2643_vm1, %v3977_v12 }
 0x864   : > { %4448 = vmatpush.bf16.msra.mxu1 %v9489_v6 }
 0x865   : > { %4430 = vmatpush.bf16.msrb.mxu0 %v9477_v42  ;;  %v9437_v42 = vor.u32 %v10089_v24, %v9436_v23 }
 0x868   : > { %4449 = vmatpush.bf16.msra.mxu1 %v9481_v13 }
 0x869   : > { %4431 = vmatpush.bf16.msrb.mxu0 %v9469_v15  ;;  %v9428_v15 = vld [vmem:[#allocation13] sm:$0xf] }
 0x86a   : > { %v9429_v47 = vor.u32 %v10087_v52, %v9428_v15 }
 0x86c   : > { %4450 = vmatpush.bf16.msra.mxu1 %v9473_v27 }
 0x86d   : > { %4432 = vmatpush.bf16.msrb.mxu0 %v9461_v26  ;;  %v10086_v26 = vld [vmem:[#allocation13 + $0x4] sm:$0xf] }
 0x870   : > { %4451 = vmatpush.bf16.msra.mxu1 %v9465_v1 }
 0x871   : > { %4433 = vmatpush.bf16.msrb.mxu0 %v9453_v18 }
 0x874   : > { %4452 = vmatpush.bf16.msra.mxu1 %v9457_v21 }
 0x875   : > { %4434 = vmatpush.bf16.msrb.mxu0 %v9445_v5 }
 0x879   : > { %4435 = vmatpush.bf16.msrb.mxu0 %v9437_v42 }
 0x87d   : > { %4436 = vmatpush.bf16.msrb.mxu0 %v9429_v47 }
 0x8c6   : > { %v4252_v31 = vpop.xlane.xlu0 %4251 }
 0x8c7   : > { %v4259_v48 = vmul.f32 %v4252_v31, %v11635_v17  ;;  %v10090_v31 = vld [vmem:[#allocation13 + $0x24] sm:$0xf] }
 0x8c8   : > { %v9449_v46 = vor.u32 %v10090_v31, %v9446_v30 }
 0x8c9   : > { %v12555_v39 = vadd.f32 1e-05, %v4259_v48 }
 0x8ca   : > { %4453 = vmatpush.bf16.msra.mxu1 %v9449_v46 }
 0x8cb   : > { %10530 = vrsqrt.f32 %v12555_v39  ;;  %vm4273_vm10 = vweird.f32 %v12555_v39 }
 0x8ce   : > { %4454 = vmatpush.bf16.msra.mxu1 %v9441_v7 }
 0x8cf   : > { %v4254_v28 = vpop.xlane.xlu1 %4253 }
 0x8d0   : > { %v4260_v51 = vmul.f32 %v4254_v28, %v11635_v17 }
 0x8d1   : > { %v12559_v2 = vpop.eup %10530 }
 0x8d2   : > { %v12561_v60 = vadd.f32 1e-05, %v4260_v51  ;;  %v4268_v16 = vmul.f32 %v12559_v2, %v12555_v39  ;;  %vm4274_vm5 = vweird.f32 %v12559_v2 }
 0x8d3   : > { %vm4275_vm11 = vmor %vm4273_vm10, %vm4274_vm5 }
 0x8d4   : > { %10532 = vrsqrt.f32 %v12561_v60  ;;  %v4269_v4 = vmul.f32 %v12559_v2, %v4268_v16  ;;  %vm4283_vm6 = vweird.f32 %v12561_v60 }
 0x8d6   : > { %v4020_v10 = vpop.f32.mrf.mxu2  ;;  %v4270_v61 = vmul.f32 0.5, %v4269_v4 }
 0x8d7   : > { %v4055_v48 = vpack.c.bf16 %v4020_v10, %v4020_v10  ;;  %v9430_v10 = vld [vmem:[#allocation13 + $0x8] sm:$0xf0] }
 0x8d8   : > { %v4046_v59 = vpop.f32.mrf.mxu3  ;;  %v3968_v33 = vpop.f32.mrf.mxu0  ;;  %v4271_v6 = vsub.f32 1.5, %v4270_v61  ;;  %v9433_v4 = vor.u32 %v10086_v26, %v9430_v10  ;;  %v12593_v61 = vld [vmem:[%s14131_s11] ss:$0 sm:$0xff] }
 0x8d9   : > { %v4057_v40 = vpack.c.bf16 %v4046_v59, %v4046_v59  ;;  %v4051_v32 = vpack.c.bf16 %v3968_v33, %v3968_v33  ;;  %v4145_v36 = vunpack.c.l.b16 %v4055_v48 }
 0x8da   : > { %v12567_v58 = vpop.eup %10532  ;;  %v4272_v25 = vmul.f32 %v12559_v2, %v4271_v6  ;;  %4455 = vmatpush.bf16.msra.mxu1 %v9433_v4 }
 0x8db   : > { %v4278_v12 = vmul.f32 %v12567_v58, %v12561_v60  ;;  %vm4284_vm4 = vweird.f32 %v12567_v58  ;;  %v4179_v44 = vunpack.c.l.b16 %v4057_v40  ;;  %v4077_v51 = vunpack.c.l.b16 %v4051_v32 }
 0x8dc   : > { %vm4285_vm9 = vmor %vm4283_vm6, %vm4284_vm4  ;;  %v4276_v60 = vsel %vm4275_vm11, %v12559_v2, %v4272_v25 }
 0x8dd   : > { %v4279_v55 = vmul.f32 %v12567_v58, %v4278_v12  ;;  %v4307_v39 = vmul.f32 %v4276_v60, %v12537_v11  ;;  %v11157_v11 = vmov 1.4142135  }
 0x8de   : > { %v4022_v53 = vpop.f32.mrf.mxu2  ;;  %10534 = vrcp.f32 %v11157_v11 }
 0x8df   : > { %v4280_v50 = vmul.f32 0.5, %v4279_v55  ;;  %v4056_v37 = vpack.c.bf16 %v4022_v53, %v4022_v53 }
 0x8e0   : > { %v4048_v45 = vpop.f32.mrf.mxu3  ;;  %v3970_v35 = vpop.f32.mrf.mxu0 }
 0x8e1   : > { %v4281_v56 = vsub.f32 1.5, %v4280_v50  ;;  %v4146_v54 = vunpack.c.l.b16 %v4056_v37  ;;  %v4058_v13 = vpack.c.bf16 %v4048_v45, %v4048_v45  ;;  %v4052_v28 = vpack.c.bf16 %v3970_v35, %v3970_v35  ;;  %v3994_v34 = vpop.f32.mrf.mxu1  ;;  %v4343_v37 = vld [vmem:[%s14132_s23] sm:$0x3] }
 0x8e2   : > { %v4053_v59 = vpack.c.bf16 %v3994_v34, %v3994_v34 }
 0x8e3   : > { %v4282_v27 = vmul.f32 %v12567_v58, %v4281_v56  ;;  %v4147_v29 = vpack.c.b16 %v4146_v54, %v4145_v36  ;;  %v4180_v8 = vunpack.c.l.b16 %v4058_v13  ;;  %v4078_v16 = vunpack.c.l.b16 %v4052_v28 }
 0x8e4   : > { %v4111_v14 = vunpack.c.l.b16 %v4053_v59  ;;  %v10535_v55 = vpop.eup %10534  ;;  %v12599_v36 = vperm.slane %v4343_v37, 0 }
 0x8e5   : > { %v4181_v0 = vpack.c.b16 %v4180_v8, %v4179_v44  ;;  %v4079_v1 = vpack.c.b16 %v4078_v16, %v4077_v51  ;;  %9416 = vmatmul.msk.bf16.vlgmr.msrb.gmra.mxu2 %vm2533_vm8, %v4147_v29  ;;  %v4286_v38 = vsel %vm4285_vm9, %v12567_v58, %v4282_v27  ;;  %v12588_v58 = vld [vmem:[%s14130_s10] ss:$0 sm:$0xff]  ;;  %v4476_v23 = vmul.f32 1.4142135, %v10535_v55 }
 0x8e6   : > { %v4308_v33 = vmul.f32 %v4286_v38, %v12547_v43  ;;  %v4314_v30 = vmul.f32 %v12588_v58, %v4307_v39  ;;  %vm4480_vm12 = vweird.f32 %v10535_v55  ;;  %v12617_v27 = vperm.slane %v4343_v37, 1 }
 0x8e7   : > { %9425 = vmatmul.msk.bf16.vlgmr.msrb.gmra.mxu3 %vm2533_vm8, %v4181_v0  ;;  %9398 = vmatmul.msk.bf16.vlgmr.msra.gmra.mxu0 %vm2533_vm8, %v4079_v1  ;;  %v4477_v24 = vsub.f32 1.0, %v4476_v23 }
 0x8e8   : > { %v4315_v12 = vmul.f32 %v12588_v58, %v4308_v33  ;;  %v4321_v2 = vadd.f32 %v12593_v61, %v4314_v30 }
 0x8e9   : > { %v3996_v18 = vpop.f32.mrf.mxu1  ;;  %v4478_v32 = vmul.f32 %v10535_v55, %v4477_v24 }
 0x8ea   : > { %v4054_v9 = vpack.c.bf16 %v3996_v18, %v3996_v18  ;;  %v4322_v43 = vadd.f32 %v12593_v61, %v4315_v12 }
 0x8eb   : > { %v4479_v6 = vadd.f32 %v10535_v55, %v4478_v32 }
 0x8ec   : > { %v4112_v21 = vunpack.c.l.b16 %v4054_v9  ;;  %v4325_v48 = vpack.c.bf16 %v4322_v43, %v4321_v2 }
 0x8ed   : > { %v12601_v42 = vsel %vm4480_vm12, %v10535_v55, %v4479_v6 }
 0x8ee   : > { %v4113_v31 = vpack.c.b16 %v4112_v21, %v4111_v14 }
 0x8f0   : > { %9407 = vmatmul.msk.bf16.vlgmr.msrb.gmra.mxu1 %vm2533_vm8, %v4113_v31 }
 0x8f7   : > { %4437 = vmatmul.bf16.vlgmr.msrb.gmra.mxu0 %v4325_v48 }
 0x900   : > { %4456 = vmatmul.bf16.vlgmr.msra.gmra.mxu1 %v4325_v48 }
 0x964   : > { %v4104_v5 = vpop.f32.mrf.mxu0 }
 0x968   : > { %v4172_v53 = vpop.f32.mrf.mxu2 }
 0x96a   : > { %v4206_v57 = vpop.f32.mrf.mxu3 }
 0x96c   : > { %v4106_v40 = vpop.f32.mrf.mxu0 }
 0x96d   : > { %v4138_v46 = vpop.f32.mrf.mxu1 }
 0x96e   : > { %v4211_v50 = vadd.f32 %v4138_v46, %v4104_v5 }
 0x970   : > { %v4213_v49 = vadd.f32 %v4211_v50, %v4172_v53  ;;  %v4174_v44 = vpop.f32.mrf.mxu2 }
 0x972   : > { %v4215_v45 = vadd.f32 %v4213_v49, %v4206_v57  ;;  %v4208_v52 = vpop.f32.mrf.mxu3 }
 0x974   : > { %v4438_v35 = vpop.f32.mrf.mxu0  ;;  %v4223_v56 = vadd.f32 %v12431_v20, %v4215_v45 }
 0x975   : > { %v4140_v54 = vpop.f32.mrf.mxu1  ;;  %v12605_v13 = vadd.f32 %v4438_v35, %v12599_v36 }
 0x976   : > { %v4212_v28 = vadd.f32 %v4140_v54, %v4106_v40  ;;  %v12608_v34 = vadd.f32 %v4223_v56, %v11961_v19 }
 0x977   : > { %v12612_v51 = vmul.f32 %v12601_v42, %v12605_v13 }
 0x978   : > { %v4214_v15 = vadd.f32 %v4212_v28, %v4174_v44  ;;  %4235 = vadd.xlane.f32.xlu2 %v12608_v34 }
 0x979   : > { %v4490_v7 = vmul.f32 %v12612_v51, %v12612_v51 }
 0x97a   : > { %v4216_v29 = vadd.f32 %v4214_v15, %v4208_v52 }
 0x97b   : > { %v12619_v8 = vmin.f32 %v4490_v7, 16.0 }
 0x97c   : > { %v4440_v16 = vpop.f32.mrf.mxu0  ;;  %v4224_v19 = vadd.f32 %v12431_v20, %v4216_v29 }
 0x97d   : > { %v4492_v26 = vmul.f32 2.1237322e-06, %v12619_v8  ;;  %v4503_v10 = vmul.f32 3.8918573e-05, %v12619_v8  ;;  %v12625_v25 = vadd.f32 %v4440_v16, %v12599_v36  ;;  %v4457_v0 = vpop.f32.mrf.mxu1 }
 0x97e   : > { %v12628_v1 = vadd.f32 %v4457_v0, %v12617_v27  ;;  %v12631_v47 = vadd.f32 %v4224_v19, %v11964_v22 }
 0x97f   : > { %v4493_v38 = vadd.f32 0.00028619796, %v4492_v26  ;;  %v4504_v4 = vadd.f32 0.001143296, %v4503_v10  ;;  %v12635_v60 = vmul.f32 %v12601_v42, %v12625_v25  ;;  %v10109_v26 = vld [vmem:[#allocation14 + $0x38] sm:$0xff] }
 0x980   : > { %v12639_v20 = vmul.f32 %v12601_v42, %v12628_v1  ;;  %4237 = vadd.xlane.f32.xlu0 %v12631_v47  ;;  %4962 = vmatpush.bf16.msra.mxu2 %v10109_v26 }
 0x981   : > { %v4505_v59 = vmul.f32 %v4504_v4, %v12619_v8  ;;  %v4570_v33 = vmul.f32 %v12635_v60, %v12635_v60  ;;  %v4494_v22 = vmul.f32 %v4493_v38, %v12619_v8 }
 0x982   : > { %v4530_v18 = vmul.f32 %v12639_v20, %v12639_v20 }
 0x983   : > { %v4506_v9 = vadd.f32 0.014752088, %v4505_v59  ;;  %v12648_v39 = vmin.f32 %v4570_v33, 16.0  ;;  %v4495_v43 = vadd.f32 0.0036580483, %v4494_v22 }
 0x984   : > { %v12650_v14 = vmin.f32 %v4530_v18, 16.0 }
 0x985   : > { %v4507_v21 = vmul.f32 %v4506_v9, %v12619_v8  ;;  %v4572_v12 = vmul.f32 2.1237322e-06, %v12648_v39  ;;  %v4583_v31 = vmul.f32 3.8918573e-05, %v12648_v39  ;;  %v4459_v30 = vpop.f32.mrf.mxu1  ;;  %v4496_v53 = vmul.f32 %v4495_v43, %v12619_v8  ;;  %v10108_v9 = vld [vmem:[#allocation14 + $0x30] sm:$0xff] }
 0x986   : > { %v4543_v2 = vmul.f32 3.8918573e-05, %v12650_v14  ;;  %v12657_v48 = vadd.f32 %v4459_v30, %v12617_v27  ;;  %v4532_v57 = vmul.f32 2.1237322e-06, %v12650_v14  ;;  %4963 = vmatpush.bf16.msra.mxu2 %v10108_v9 }
 0x987   : > { %v4508_v11 = vadd.f32 0.112945676, %v4507_v21  ;;  %v4573_v55 = vadd.f32 0.00028619796, %v4572_v12  ;;  %v4584_v5 = vadd.f32 0.001143296, %v4583_v31 }
 0x988   : > { %v4544_v23 = vadd.f32 0.001143296, %v4543_v2  ;;  %v12661_v24 = vmul.f32 %v12601_v42, %v12657_v48  ;;  %v4497_v54 = vadd.f32 0.05243302, %v4496_v53  ;;  %v4533_v52 = vadd.f32 0.00028619796, %v4532_v57 }
 0x989   : > { %v4509_v40 = vmul.f32 %v4508_v11, %v12619_v8  ;;  %v4574_v32 = vmul.f32 %v4573_v55, %v12648_v39  ;;  %v4585_v46 = vmul.f32 %v4584_v5, %v12648_v39  ;;  %v10117_v53 = vld [vmem:[#allocation14 + $0x78] sm:$0xff] }
 0x98a   : > { %v4545_v50 = vmul.f32 %v4544_v23, %v12650_v14  ;;  %v4610_v49 = vmul.f32 %v12661_v24, %v12661_v24  ;;  %v4498_v10 = vmul.f32 %v4497_v54, %v12619_v8  ;;  %v4534_v38 = vmul.f32 %v4533_v52, %v12650_v14  ;;  %4981 = vmatpush.bf16.msra.mxu3 %v10117_v53  ;;  %v10106_v54 = vld [vmem:[#allocation14 + $0x20] sm:$0xff] }
 0x98b   : > { %v4510_v37 = vadd.f32 0.4994258, %v4509_v40  ;;  %v4575_v6 = vadd.f32 0.0036580483, %v4574_v32  ;;  %v4586_v45 = vadd.f32 0.014752088, %v4585_v46 }
 0x98c   : > { %v4546_v35 = vadd.f32 0.014752088, %v4545_v50  ;;  %v12676_v7 = vmin.f32 %v4610_v49, 16.0  ;;  %v4499_v2 = vadd.f32 0.18741608, %v4498_v10  ;;  %v10107_v32 = vld [vmem:[#allocation14 + $0x28] sm:$0xff] }
 0x98d   : > { %v4511_v56 = vmul.f32 %v4510_v37, %v12619_v8  ;;  %v4587_v28 = vmul.f32 %v4586_v45, %v12648_v39  ;;  %v4576_v29 = vmul.f32 %v4575_v6, %v12648_v39  ;;  %v4535_v11 = vadd.f32 0.0036580483, %v4534_v38  ;;  %4964 = vmatpush.bf16.msra.mxu2 %v10107_v32 }
 0x98e   : > { %v4547_v44 = vmul.f32 %v4546_v35, %v12650_v14  ;;  %v4612_v59 = vmul.f32 2.1237322e-06, %v12676_v7  ;;  %v4623_v33 = vmul.f32 3.8918573e-05, %v12676_v7  ;;  %v4500_v49 = vmul.f32 %v4499_v2, %v12619_v8  ;;  %v10114_v2 = vld [vmem:[#allocation14 + $0x60] sm:$0xff] }
 0x98f   : > { %v12674_v15 = vadd.f32 1.0, %v4511_v56  ;;  %v4588_v16 = vadd.f32 0.112945676, %v4587_v28  ;;  %v4577_v22 = vadd.f32 0.05243302, %v4576_v29  ;;  %v4536_v6 = vmul.f32 %v4535_v11, %v12650_v14  ;;  %v10116_v28 = vld [vmem:[#allocation14 + $0x70] sm:$0xff] }
 0x990   : > { %v4548_v19 = vadd.f32 0.112945676, %v4547_v44  ;;  %v4613_v31 = vadd.f32 0.00028619796, %v4612_v59  ;;  %v4624_v30 = vadd.f32 0.001143296, %v4623_v33  ;;  %4982 = vmatpush.bf16.msra.mxu3 %v10116_v28 }
 0x991   : > { %10536 = vrcp.f32 %v12674_v15  ;;  %v4589_v0 = vmul.f32 %v4588_v16, %v12648_v39  ;;  %v4578_v23 = vmul.f32 %v4577_v22, %v12648_v39  ;;  %v4524_v35 = vand.u32 2147483648, %v12674_v15  ;;  %4965 = vmatpush.bf16.msra.mxu2 %v10106_v54  ;;  %v10105_v59 = vld [vmem:[#allocation14 + $0x18] sm:$0xff]  ;;  %v10115_v33 = vld [vmem:[#allocation14 + $0x68] sm:$0xff] }
 0x992   : > { %v4549_v4 = vmul.f32 %v4548_v19, %v12650_v14  ;;  %v4625_v50 = vmul.f32 %v4624_v30, %v12676_v7  ;;  %v4614_v57 = vmul.f32 %v4613_v31, %v12676_v7  ;;  %v4522_v44 = vand.u32 2147483647, %v12674_v15 }
 0x993   : > { %v4590_v18 = vadd.f32 0.4994258, %v4589_v0  ;;  %v4579_v56 = vadd.f32 0.18741608, %v4578_v23  ;;  %vm4518_vm14 = vweird.f32 %v12674_v15  ;;  %v4501_v8 = vadd.f32 1.1283791, %v4500_v49 }
 0x994   : > { %v4550_v21 = vadd.f32 0.4994258, %v4549_v4  ;;  %v4626_v52 = vadd.f32 0.014752088, %v4625_v50  ;;  %v4615_v16 = vadd.f32 0.0036580483, %v4614_v57  ;;  %4983 = vmatpush.bf16.msra.mxu3 %v10115_v33 }
 0x995   : > { %v4591_v12 = vmul.f32 %v4590_v18, %v12648_v39  ;;  %v4537_v19 = vadd.f32 0.05243302, %v4536_v6  ;;  %v4525_v38 = vor.u32 1.1754944e-38, %v4524_v35  ;;  %v4580_v4 = vmul.f32 %v4579_v56, %v12648_v39  ;;  %4966 = vmatpush.bf16.msra.mxu2 %v10105_v59  ;;  %v10103_v6 = vld [vmem:[#allocation14 + $0x8] sm:$0xff] }
 0x996   : > { %v4551_v55 = vmul.f32 %v4550_v21, %v12650_v14  ;;  %v4627_v26 = vmul.f32 %v4626_v52, %v12676_v7  ;;  %vm4523_vm2 = vcmp.eq.f32.partialorder %v4522_v44, 8.507059e+37  ;;  %v4616_v21 = vmul.f32 %v4615_v16, %v12676_v7 }
 0x997   : > { %v10537_v43 = vpop.eup %10536  ;;  %v12690_v40 = vadd.f32 1.0, %v4591_v12  ;;  %v4502_v31 = vmul.f32 %v4501_v8, %v12612_v51  ;;  %v4538_v39 = vmul.f32 %v4537_v19, %v12650_v14  ;;  %v4581_v11 = vadd.f32 1.1283791, %v4580_v4  ;;  %v10113_v51 = vld [vmem:[#allocation14 + $0x58] sm:$0xff] }
 0x998   : > { %v4514_v5 = vmul.f32 %v10537_v43, %v12674_v15  ;;  %v12692_v46 = vadd.f32 1.0, %v4551_v55  ;;  %vm4519_vm13 = vweird.f32 %v10537_v43  ;;  %v4628_v12 = vadd.f32 0.112945676, %v4627_v26  ;;  %4984 = vmatpush.bf16.msra.mxu3 %v10114_v2  ;;  %v10102_v26 = vld [vmem:[#allocation14] sm:$0xff] }
 0x999   : > { %10538 = vrcp.f32 %v12690_v40  ;;  %vm4520_vm15 = vmor %vm4518_vm14, %vm4519_vm13  ;;  %v4602_v55 = vand.u32 2147483647, %v12690_v40  ;;  %vm4598_vm5 = vweird.f32 %v12690_v40  ;;  %v4539_v56 = vadd.f32 0.18741608, %v4538_v39  ;;  %v10110_v2 = vld [vmem:[#allocation14 + $0x40] sm:$0xff] }
 0x99a   : > { %v4515_v37 = vsub.f32 1.0, %v4514_v5  ;;  %10540 = vrcp.f32 %v12692_v46  ;;  %v4604_v5 = vand.u32 2147483648, %v12690_v40  ;;  %v4629_v23 = vmul.f32 %v4628_v12, %v12676_v7 }
 0x99b   : > { %vm4603_vm9 = vcmp.eq.f32.partialorder %v4602_v55, 8.507059e+37  ;;  %v4564_v59 = vand.u32 2147483648, %v12692_v46  ;;  %vm4558_vm11 = vweird.f32 %v12692_v46 }
 0x99c   : > { %v4516_v45 = vmul.f32 %v10537_v43, %v4515_v37  ;;  %v4617_v37 = vadd.f32 0.05243302, %v4616_v21  ;;  %v4630_v57 = vadd.f32 0.4994258, %v4629_v23  ;;  %v4605_v35 = vor.u32 1.1754944e-38, %v4604_v5  ;;  %4985 = vmatpush.bf16.msra.mxu3 %v10113_v51 }
 0x99d   : > { %v4565_v39 = vor.u32 1.1754944e-38, %v4564_v59  ;;  %v10123_v59 = vld [vmem:[%s11214_s14 + $0x68] sm:$0xff] }
 0x99e   : > { %v4517_v29 = vadd.f32 %v10537_v43, %v4516_v45  ;;  %v4582_v45 = vmul.f32 %v4581_v11, %v12635_v60  ;;  %v4631_v54 = vmul.f32 %v4630_v57, %v12676_v7  ;;  %v4618_v16 = vmul.f32 %v4617_v37, %v12676_v7 }
 0x99f   : > { %v10539_v10 = vpop.eup %10538  ;;  %v4540_v60 = vmul.f32 %v4539_v56, %v12650_v14  ;;  %v4562_v14 = vand.u32 2147483647, %v12692_v46  ;;  %v4468_v56 = vmul.f32 0.5, %v12628_v1 }
 0x9a0   : > { %v4521_v0 = vsel %vm4520_vm15, %v10537_v43, %v4517_v29  ;;  %v12705_v22 = vpop.eup %10540  ;;  %v4594_v15 = vmul.f32 %v10539_v10, %v12690_v40  ;;  %v10104_v43 = vld [vmem:[#allocation14 + $0x10] sm:$0xff]  ;;  %vm4599_vm4 = vweird.f32 %v10539_v10  ;;  %v4632_v8 = vadd.f32 1.0, %v4631_v54 }
 0x9a1   : > { %v4526_v18 = vsel %vm4523_vm2, %v4525_v38, %v4521_v0  ;;  %v4554_v9 = vmul.f32 %v12705_v22, %v12692_v46  ;;  %4967 = vmatpush.bf16.msra.mxu2 %v10104_v43  ;;  %vm4600_vm6 = vmor %vm4598_vm5, %vm4599_vm4  ;;  %v10112_v40 = vld [vmem:[#allocation14 + $0x50] sm:$0xff]  ;;  %vm4559_vm10 = vweird.f32 %v12705_v22  ;;  %v4619_v33 = vadd.f32 0.18741608, %v4618_v16 }
 0x9a2   : > { %v4595_v30 = vsub.f32 1.0, %v4594_v15  ;;  %v4527_v32 = vmul.f32 %v4526_v18, %v4502_v31  ;;  %10542 = vrcp.f32 %v4632_v8  ;;  %4986 = vmatpush.bf16.msra.mxu3 %v10112_v40  ;;  %v10111_v15 = vld [vmem:[#allocation14 + $0x48] sm:$0xff]  ;;  %v4469_v18 = vmul.f32 0.5, %v12625_v25  ;;  %vm4560_vm12 = vmor %vm4558_vm11, %vm4559_vm10 }
 0x9a3   : > { %v4555_v50 = vsub.f32 1.0, %v4554_v9  ;;  %v4541_v31 = vadd.f32 1.1283791, %v4540_v60  ;;  %v4620_v43 = vmul.f32 %v4619_v33, %v12676_v7  ;;  %vm4563_vm13 = vcmp.eq.f32.partialorder %v4562_v14, 8.507059e+37  ;;  %v10125_v60 = vld [vmem:[%s11214_s14 + $0x78] sm:$0xff] }
 0x9a4   : > { %v4596_v53 = vmul.f32 %v10539_v10, %v4595_v30  ;;  %v9490_v28 = vclamps-f32 %v4527_v32, 1.0  ;;  %v4644_v32 = vand.u32 2147483648, %v4632_v8  ;;  %vm4638_vm15 = vweird.f32 %v4632_v8  ;;  %5072 = vmatpush.bf16.msra.mxu0 %v10125_v60 }
 0x9a5   : > { %v4556_v52 = vmul.f32 %v12705_v22, %v4555_v50  ;;  %4968 = vmatpush.bf16.msra.mxu2 %v10103_v6  ;;  %v4542_v5 = vmul.f32 %v4541_v31, %v12639_v20  ;;  %v4621_v23 = vadd.f32 1.1283791, %v4620_v43  ;;  %v4470_v54 = vmul.f32 0.5, %v12657_v48  ;;  %v10120_v43 = vld [vmem:[%s11214_s14 + $0x50] sm:$0xff] }
 0x9a6   : > { %v4597_v49 = vadd.f32 %v10539_v10, %v4596_v53  ;;  %v4810_v0 = vadd.f32 1.0, %v9490_v28  ;;  %4987 = vmatpush.bf16.msra.mxu3 %v10111_v15  ;;  %v4645_v7 = vor.u32 1.1754944e-38, %v4644_v32  ;;  %v10122_v15 = vld [vmem:[%s11214_s14 + $0x60] sm:$0xff] }
 0x9a7   : > { %v4557_v4 = vadd.f32 %v12705_v22, %v4556_v52  ;;  %v4622_v51 = vmul.f32 %v4621_v23, %v12661_v24 }
 0x9a8   : > { %v4601_v44 = vsel %vm4600_vm6, %v10539_v10, %v4597_v49  ;;  %v4467_v10 = vmul.f32 0.5, %v12605_v13  ;;  %v10543_v13 = vpop.eup %10542 }
 0x9a9   : > { %v4606_v29 = vsel %vm4603_vm9, %v4605_v35, %v4601_v44  ;;  %4969 = vmatpush.bf16.msra.mxu2 %v10102_v26  ;;  %v4561_v30 = vsel %vm4560_vm12, %v12705_v22, %v4557_v4  ;;  %v4634_v25 = vmul.f32 %v10543_v13, %v4632_v8  ;;  %vm4639_vm14 = vweird.f32 %v10543_v13 }
 0x9aa   : > { %v4607_v19 = vmul.f32 %v4606_v29, %v4582_v45  ;;  %v4818_v21 = vmul.f32 %v4810_v0, %v4467_v10  ;;  %v4566_v55 = vsel %vm4563_vm13, %v4565_v39, %v4561_v30  ;;  %4988 = vmatpush.bf16.msra.mxu3 %v10110_v2  ;;  %v4642_v22 = vand.u32 2147483647, %v4632_v8  ;;  %vm4640_vm2 = vmor %vm4638_vm15, %vm4639_vm14  ;;  %v10133_v0 = vld [vmem:[#allocation8 + $0x78] sm:$0xff]  ;;  %v10128_v2 = vld [vmem:[#allocation8 + $0x50] sm:$0xff] }
 0x9ab   : > { %v4635_v46 = vsub.f32 1.0, %v4634_v25  ;;  %v4567_v53 = vmul.f32 %v4566_v55, %v4542_v5  ;;  %5161 = vmatpush.bf16.msrb.mxu1 %v10133_v0  ;;  %v10119_v55 = vld [vmem:[%s11214_s14 + $0x48] sm:$0xff]  ;;  %v10127_v5 = vld [vmem:[#allocation8 + $0x48] sm:$0xff] }
 0x9ac   : > { %v9492_v38 = vclamps-f32 %v4607_v19, 1.0  ;;  %vm4643_vm4 = vcmp.eq.f32.partialorder %v4642_v22, 8.507059e+37  ;;  %v10126_v22 = vld [vmem:[#allocation8 + $0x40] sm:$0xff] }
 0x9ad   : > { %v4636_v50 = vmul.f32 %v10543_v13, %v4635_v46  ;;  %v9491_v57 = vclamps-f32 %v4567_v53, 1.0 }
 0x9ae   : > { %v4812_v9 = vadd.f32 1.0, %v9492_v38  ;;  %v10132_v38 = vld [vmem:[#allocation8 + $0x70] sm:$0xff] }
 0x9af   : > { %v4637_v37 = vadd.f32 %v10543_v13, %v4636_v50  ;;  %v4811_v45 = vadd.f32 1.0, %v9491_v57  ;;  %5162 = vmatpush.bf16.msrb.mxu1 %v10132_v38  ;;  %v10118_v50 = vld [vmem:[%s11214_s14 + $0x40] sm:$0xff] }
 0x9b0   : > { %v4820_v12 = vmul.f32 %v4812_v9, %v4469_v18  ;;  %v10130_v18 = vld [vmem:[#allocation8 + $0x60] sm:$0xff] }
 0x9b1   : > { %v4641_v49 = vsel %vm4640_vm2, %v10543_v13, %v4637_v37  ;;  %v4819_v44 = vmul.f32 %v4811_v45, %v4468_v56 }
 0x9b2   : > { %v4826_v11 = vpack.c.bf16 %v4820_v12, %v4818_v21  ;;  %v4646_v6 = vsel %vm4643_vm4, %v4645_v7, %v4641_v49  ;;  %v10121_v21 = vld [vmem:[%s11214_s14 + $0x58] sm:$0xff]  ;;  %v10129_v12 = vld [vmem:[#allocation8 + $0x58] sm:$0xff] }
 0x9b3   : > { %v4647_v20 = vmul.f32 %v4646_v6, %v4622_v51 }
 0x9b4   : > { %4970 = vmatmul.bf16.vlgmr.msra.gmra.mxu2 %v4826_v11 }
 0x9b5   : > { %v9493_v35 = vclamps-f32 %v4647_v20, 1.0 }
 0x9b7   : > { %v4813_v28 = vadd.f32 1.0, %v9493_v35 }
 0x9b9   : > { %v4821_v52 = vmul.f32 %v4813_v28, %v4470_v54 }
 0x9bb   : > { %v4827_v29 = vpack.c.bf16 %v4821_v52, %v4819_v44 }
 0x9bd   : > { %4989 = vmatmul.bf16.vlgmr.msra.gmra.mxu3 %v4827_v29 }
 0x9eb   : > { %v4236_v16 = vpop.xlane.xlu2 %4235 }
 0x9ec   : > { %v4241_v24 = vmul.f32 %v4236_v16, %v11635_v17  ;;  %v12764_v16 = vld [vmem:[%s14133_s22] ss:$0 sm:$0xff]  ;;  %s1165_s22 = sand.u32 1, %s11094_s16  }
 0x9ee   : > { %v12737_v8 = vsub.f32 %v12608_v34, %v4241_v24  ;;  %v10124_v34 = vld [vmem:[%s11214_s14 + $0x70] sm:$0xff] }
 0x9ef   : > { %5073 = vmatpush.bf16.msra.mxu0 %v10124_v34 }
 0x9f0   : > { %v4249_v40 = vmul.f32 %v12737_v8, %v12737_v8 }
 0x9f2   : > { %4255 = vadd.xlane.f32.xlu1 %v4249_v40 }
 0x9f3   : > { %v4238_v1 = vpop.xlane.xlu0 %4237  ;;  %5074 = vmatpush.bf16.msra.mxu0 %v10123_v59 }
 0x9f4   : > { %v4242_v48 = vmul.f32 %v4238_v1, %v11635_v17 }
 0x9f6   : > { %v12743_v19 = vsub.f32 %v12631_v47, %v4242_v48  ;;  %v10131_v47 = vld [vmem:[#allocation8 + $0x68] sm:$0xff] }
 0x9f7   : > { %5163 = vmatpush.bf16.msrb.mxu1 %v10131_v47  ;;  %5075 = vmatpush.bf16.msra.mxu0 %v10122_v15 }
 0x9f8   : > { %v4250_v26 = vmul.f32 %v12743_v19, %v12743_v19 }
 0x9fa   : > { %4257 = vadd.xlane.f32.xlu2 %v4250_v26 }
 0x9fb   : > { %5164 = vmatpush.bf16.msrb.mxu1 %v10130_v18  ;;  %5076 = vmatpush.bf16.msra.mxu0 %v10121_v21 }
 0x9ff   : > { %5165 = vmatpush.bf16.msrb.mxu1 %v10129_v12  ;;  %5077 = vmatpush.bf16.msra.mxu0 %v10120_v43 }
 0xa03   : > { %5166 = vmatpush.bf16.msrb.mxu1 %v10128_v2  ;;  %5078 = vmatpush.bf16.msra.mxu0 %v10119_v55  ;;  %v12825_v55 = vld [vmem:[%s14122_s2 + $0x1] ss:$0 sm:$0xff] }
 0xa07   : > { %5167 = vmatpush.bf16.msrb.mxu1 %v10127_v5  ;;  %5079 = vmatpush.bf16.msra.mxu0 %v10118_v50 }
 0xa0b   : > { %5168 = vmatpush.bf16.msrb.mxu1 %v10126_v22  ;;  %v10140_v22 = vld [vmem:[#allocation10 + $0x70] sm:$0xff] }
 0xa37   : > { %v4971_v56 = vpop.f32.mrf.mxu2 }
 0xa38   : > { %v4972_v40 = vadd.f32 %v12764_v16, %v4971_v56 }
 0xa3f   : > { %v4973_v29 = vpop.f32.mrf.mxu2 }
 0xa40   : > { %v4990_v44 = vpop.f32.mrf.mxu3 }
 0xa48   : > { %v4992_v24 = vpop.f32.mrf.mxu3 }
 0xa65   : > { %v4256_v4 = vpop.xlane.xlu1 %4255 }
 0xa66   : > { %v4261_v10 = vmul.f32 %v4256_v4, %v11635_v17 }
 0xa68   : > { %v4265_v33 = vadd.f32 1e-05, %v4261_v10 }
 0xa6a   : > { %10544 = vrsqrt.f32 %v4265_v33  ;;  %vm4293_vm6 = vweird.f32 %v4265_v33 }
 0xa6d   : > { %v4258_v9 = vpop.xlane.xlu2 %4257 }
 0xa6e   : > { %v4262_v14 = vmul.f32 %v4258_v9, %v11635_v17 }
 0xa70   : > { %v10545_v31 = vpop.eup %10544  ;;  %v4266_v30 = vadd.f32 1e-05, %v4262_v14 }
 0xa71   : > { %v4288_v13 = vmul.f32 %v10545_v31, %v4265_v33  ;;  %vm4294_vm5 = vweird.f32 %v10545_v31 }
 0xa72   : > { %10546 = vrsqrt.f32 %v4266_v30  ;;  %vm4295_vm9 = vmor %vm4293_vm6, %vm4294_vm5  ;;  %vm4303_vm11 = vweird.f32 %v4266_v30 }
 0xa73   : > { %v4289_v39 = vmul.f32 %v10545_v31, %v4288_v13 }
 0xa75   : > { %v4290_v25 = vmul.f32 0.5, %v4289_v39 }
 0xa77   : > { %v4291_v11 = vsub.f32 1.5, %v4290_v25 }
 0xa78   : > { %v10547_v46 = vpop.eup %10546 }
 0xa79   : > { %v4292_v23 = vmul.f32 %v10545_v31, %v4291_v11  ;;  %v4298_v32 = vmul.f32 %v10547_v46, %v4266_v30  ;;  %vm4304_vm10 = vweird.f32 %v10547_v46  ;;  %v10141_v11 = vld [vmem:[#allocation10 + $0x78] sm:$0xff] }
 0xa7a   : > { %vm4305_vm12 = vmor %vm4303_vm11, %vm4304_vm10  ;;  %5250 = vmatpush.bf16.msrb.mxu2 %v10141_v11 }
 0xa7b   : > { %v4299_v53 = vmul.f32 %v10547_v46, %v4298_v32  ;;  %v4296_v7 = vsel %vm4295_vm9, %v10545_v31, %v4292_v23 }
 0xa7c   : > { %v4309_v51 = vmul.f32 %v4296_v7, %v12737_v8  ;;  %v4974_v8 = vadd.f32 %v12764_v16, %v4973_v29  ;;  %v10139_v29 = vld [vmem:[#allocation10 + $0x68] sm:$0xff] }
 0xa7d   : > { %v4300_v37 = vmul.f32 0.5, %v4299_v53 }
 0xa7e   : > { %v4316_v45 = vmul.f32 %v12588_v58, %v4309_v51  ;;  %v12768_v1 = vadd.f32 %v4992_v24, %v4974_v8  ;;  %5251 = vmatpush.bf16.msrb.mxu2 %v10140_v22 }
 0xa7f   : > { %v4301_v57 = vsub.f32 1.5, %v4300_v37 }
 0xa80   : > { %v4323_v54 = vadd.f32 %v12593_v61, %v4316_v45 }
 0xa81   : > { %v4302_v49 = vmul.f32 %v10547_v46, %v4301_v57 }
 0xa82   : > { %5252 = vmatpush.bf16.msrb.mxu2 %v10139_v29 }
 0xa83   : > { %v4306_v6 = vsel %vm4305_vm12, %v10547_v46, %v4302_v49 }
 0xa84   : > { %v4310_v20 = vmul.f32 %v4306_v6, %v12743_v19 }
 0xa86   : > { %v4317_v35 = vmul.f32 %v12588_v58, %v4310_v20  ;;  %v12770_v58 = vadd.f32 %v4990_v44, %v4972_v40 }
 0xa88   : > { %v4324_v28 = vadd.f32 %v12593_v61, %v4317_v35  ;;  %v12774_v48 = vpack.c.bf16 %v12768_v1, %v12770_v58 }
 0xa8a   : > { %v4326_v52 = vpack.c.bf16 %v4324_v28, %v4323_v54 }
 0xa8c   : > { %4442 = vmatmul.bf16.gmra.mxu0 %v4326_v52  ;;  %4461 = vmatmul.bf16.gmra.mxu1 %v4326_v52 }
 0xa9c   : > { %5080 = vmatmul.bf16.vlgmr.msra.gmra.mxu0 %v12774_v48  ;;  %5169 = vmatmul.bf16.vlgmr.msrb.gmra.mxu1 %v12774_v48 }
 0xb09   : > { %v4443_v61 = vpop.f32.mrf.mxu0  ;;  %v4462_v19 = vpop.f32.mrf.mxu1 }
 0xb0a   : > { %v12779_v26 = vadd.f32 %v4443_v61, %v12599_v36  ;;  %v12782_v60 = vadd.f32 %v4462_v19, %v12617_v27 }
 0xb0c   : > { %v12786_v0 = vmul.f32 %v12601_v42, %v12779_v26  ;;  %v12790_v34 = vmul.f32 %v12601_v42, %v12782_v60 }
 0xb0e   : > { %v4650_v38 = vmul.f32 %v12786_v0, %v12786_v0  ;;  %v4690_v4 = vmul.f32 %v12790_v34, %v12790_v34 }
 0xb10   : > { %v12796_v10 = vmin.f32 %v4650_v38, 16.0  ;;  %v12798_v59 = vmin.f32 %v4690_v4, 16.0 }
 0xb11   : > { %v4445_v47 = vpop.f32.mrf.mxu0  ;;  %v4464_v33 = vpop.f32.mrf.mxu1 }
 0xb12   : > { %v4652_v15 = vmul.f32 2.1237322e-06, %v12796_v10  ;;  %v12802_v18 = vadd.f32 %v4445_v47, %v12599_v36  ;;  %v12805_v9 = vadd.f32 %v4464_v33, %v12617_v27  ;;  %v4663_v14 = vmul.f32 3.8918573e-05, %v12796_v10  ;;  %v10447_v27 = vld [vmem:[%s14121_s4 + $0x1] ss:$0 sm:$0xff] }
 0xb13   : > { %v4703_v21 = vmul.f32 3.8918573e-05, %v12798_v59  ;;  %v4692_v53 = vmul.f32 2.1237322e-06, %v12798_v59 }
 0xb14   : > { %v12811_v12 = vmul.f32 %v12601_v42, %v12802_v18  ;;  %v4664_v31 = vadd.f32 0.001143296, %v4663_v14  ;;  %v4653_v13 = vadd.f32 0.00028619796, %v4652_v15  ;;  %v12817_v36 = vmul.f32 %v12601_v42, %v12805_v9  ;;  %v10138_v15 = vld [vmem:[#allocation10 + $0x60] sm:$0xff] }
 0xb15   : > { %v4704_v30 = vadd.f32 0.001143296, %v4703_v21  ;;  %v4693_v54 = vadd.f32 0.00028619796, %v4692_v53  ;;  %5253 = vmatpush.bf16.msrb.mxu2 %v10138_v15 }
 0xb16   : > { %v4730_v39 = vmul.f32 %v12811_v12, %v12811_v12  ;;  %v4665_v43 = vmul.f32 %v4664_v31, %v12796_v10  ;;  %v4654_v32 = vmul.f32 %v4653_v13, %v12796_v10  ;;  %v4770_v37 = vmul.f32 %v12817_v36, %v12817_v36 }
 0xb17   : > { %v4705_v2 = vmul.f32 %v4704_v30, %v12798_v59  ;;  %v4694_v47 = vmul.f32 %v4693_v54, %v12798_v59 }
 0xb18   : > { %v12822_v25 = vmin.f32 %v4730_v39, 16.0  ;;  %v4666_v46 = vadd.f32 0.014752088, %v4665_v43  ;;  %v4655_v56 = vadd.f32 0.0036580483, %v4654_v32  ;;  %v12838_v52 = vmin.f32 %v4770_v37, 16.0 }
 0xb19   : > { %v5170_v5 = vpop.f32.mrf.mxu1  ;;  %v4706_v23 = vadd.f32 0.014752088, %v4705_v2  ;;  %v5081_v7 = vpop.f32.mrf.mxu0  ;;  %v4695_v11 = vadd.f32 0.0036580483, %v4694_v47 }
 0xb1a   : > { %v4732_v50 = vmul.f32 2.1237322e-06, %v12822_v25  ;;  %v5171_v57 = vadd.f32 %v10447_v27, %v5170_v5  ;;  %v4667_v51 = vmul.f32 %v4666_v46, %v12796_v10  ;;  %v4743_v49 = vmul.f32 3.8918573e-05, %v12822_v25 }
 0xb1b   : > { %v4707_v35 = vmul.f32 %v4706_v23, %v12798_v59  ;;  %v5082_v28 = vadd.f32 %v12825_v55, %v5081_v7  ;;  %v4656_v4 = vmul.f32 %v4655_v56, %v12796_v10  ;;  %v4772_v14 = vmul.f32 2.1237322e-06, %v12838_v52 }
 0xb1c   : > { %v4733_v6 = vadd.f32 0.00028619796, %v4732_v50  ;;  %v12834_v20 = vpack.c.bf16 %v5171_v57, %v5171_v57  ;;  %v4668_v45 = vadd.f32 0.112945676, %v4667_v51  ;;  %v4744_v44 = vadd.f32 0.001143296, %v4743_v49 }
 0xb1d   : > { %v4708_v38 = vadd.f32 0.112945676, %v4707_v35  ;;  %v5269_v33 = vmul.f32 0.17677669, %v5082_v28  ;;  %v4783_v23 = vmul.f32 3.8918573e-05, %v12838_v52  ;;  %v4696_v37 = vmul.f32 %v4695_v11, %v12798_v59 }
 0xb1e   : > { %5533 = vrot.lane.b32.xlu2 %v12834_v20, %s11152_s17  ;;  %5529 = vrot.lane.b32.xlu0 %v12834_v20, %s11153_s29  ;;  %v4669_v24 = vmul.f32 %v4668_v45, %v12796_v10  ;;  %v4734_v8 = vmul.f32 %v4733_v6, %v12822_v25  ;;  %v4745_v40 = vmul.f32 %v4744_v44, %v12822_v25  ;;  %v4657_v32 = vadd.f32 0.05243302, %v4656_v4 }
 0xb1f   : > { %v4709_v2 = vmul.f32 %v4708_v38, %v12798_v59  ;;  %v12856_v5 = vpack.c.bf16 %v5269_v33, %v5269_v33  ;;  %v4784_v57 = vadd.f32 0.001143296, %v4783_v23 }
 0xb20   : > { %v4670_v19 = vadd.f32 0.4994258, %v4669_v24  ;;  %v4746_v30 = vadd.f32 0.014752088, %v4745_v40  ;;  %v4735_v13 = vadd.f32 0.0036580483, %v4734_v8  ;;  %v4658_v51 = vmul.f32 %v4657_v32, %v12796_v10 }
 0xb21   : > { %v5172_v61 = vpop.f32.mrf.mxu1  ;;  %v4710_v22 = vadd.f32 0.4994258, %v4709_v2  ;;  %v5083_v7 = vpop.f32.mrf.mxu0  ;;  %v4785_v56 = vmul.f32 %v4784_v57, %v12838_v52  ;;  %v4697_v24 = vadd.f32 0.05243302, %v4696_v37  ;;  %v4471_v57 = vmul.f32 0.5, %v12779_v26 }
 0xb22   : > { %v5173_v21 = vadd.f32 %v10447_v27, %v5172_v61  ;;  %v4671_v31 = vmul.f32 %v4670_v19, %v12796_v10  ;;  %v4747_v46 = vmul.f32 %v4746_v30, %v12822_v25  ;;  %v4773_v27 = vadd.f32 0.00028619796, %v4772_v14 }
 0xb23   : > { %v4736_v53 = vmul.f32 %v4735_v13, %v12822_v25  ;;  %v4711_v45 = vmul.f32 %v4710_v22, %v12798_v59  ;;  %v5084_v28 = vadd.f32 %v12825_v55, %v5083_v7  ;;  %v4786_v40 = vadd.f32 0.014752088, %v4785_v56 }
 0xb24   : > { %v12851_v39 = vpack.c.bf16 %v5173_v21, %v5173_v21  ;;  %v12853_v43 = vadd.f32 1.0, %v4671_v31  ;;  %v4748_v50 = vadd.f32 0.112945676, %v4747_v46  ;;  %v4774_v49 = vmul.f32 %v4773_v27, %v12838_v52 }
 0xb25   : > { %v4737_v35 = vadd.f32 0.05243302, %v4736_v53  ;;  %v12875_v29 = vadd.f32 1.0, %v4711_v45  ;;  %v4659_v61 = vadd.f32 0.18741608, %v4658_v51  ;;  %v4787_v47 = vmul.f32 %v4786_v40, %v12838_v52  ;;  %v10137_v45 = vld [vmem:[#allocation10 + $0x58] sm:$0xff] }
 0xb26   : > { %5531 = vrot.lane.b32.xlu1 %v12851_v39, %s11153_s29  ;;  %5537 = vrot.lane.b32.xlu0 %v12834_v20, %s11154_s24  ;;  %10548 = vrcp.f32 %v12853_v43  ;;  %v4749_v6 = vmul.f32 %v4748_v50, %v12822_v25  ;;  %v4775_v19 = vadd.f32 0.0036580483, %v4774_v49  ;;  %v5270_v33 = vmul.f32 0.17677669, %v5084_v28 }
 0xb27   : > { %5291 = vrot.lane.b32.xlu2 %v12856_v5, %s11152_s17  ;;  %10550 = vrcp.f32 %v12875_v29  ;;  %v4738_v55 = vmul.f32 %v4737_v35, %v12822_v25  ;;  %v4788_v21 = vadd.f32 0.112945676, %v4787_v47  ;;  %v4660_v31 = vmul.f32 %v4659_v61, %v12796_v10  ;;  %5254 = vmatpush.bf16.msrb.mxu2 %v10137_v45 }
 0xb28   : > { %v4750_v44 = vadd.f32 0.4994258, %v4749_v6  ;;  %v4698_v30 = vmul.f32 %v4697_v24, %v12798_v59  ;;  %v4776_v13 = vmul.f32 %v4775_v19, %v12838_v52  ;;  %v12897_v32 = vpack.c.bf16 %v5270_v33, %v5270_v33  ;;  %v10136_v24 = vld [vmem:[#allocation10 + $0x50] sm:$0xff] }
 0xb29   : > { %v4739_v2 = vadd.f32 0.18741608, %v4738_v55  ;;  %v4789_v46 = vmul.f32 %v4788_v21, %v12838_v52  ;;  %v4684_v27 = vand.u32 2147483648, %v12853_v43  ;;  %vm4678_vm14 = vweird.f32 %v12853_v43  ;;  %v10135_v21 = vld [vmem:[#allocation10 + $0x48] sm:$0xff] }
 0xb2a   : > { %v4751_v38 = vmul.f32 %v4750_v44, %v12822_v25  ;;  %v4682_v10 = vand.u32 2147483647, %v12853_v43  ;;  %v4661_v22 = vadd.f32 1.1283791, %v4660_v31  ;;  %v4699_v37 = vadd.f32 0.18741608, %v4698_v30 }
 0xb2b   : > { %v4790_v50 = vadd.f32 0.4994258, %v4789_v46  ;;  %v4777_v7 = vadd.f32 0.05243302, %v4776_v13  ;;  %v4740_v51 = vmul.f32 %v4739_v2, %v12822_v25  ;;  %v4685_v56 = vor.u32 1.1754944e-38, %v4684_v27  ;;  %5255 = vmatpush.bf16.msrb.mxu2 %v10136_v24 }
 0xb2c   : > { %v10549_v54 = vpop.eup %10548  ;;  %v12888_v15 = vadd.f32 1.0, %v4751_v38  ;;  %vm4683_vm2 = vcmp.eq.f32.partialorder %v4682_v10, 8.507059e+37  ;;  %v4700_v61 = vmul.f32 %v4699_v37, %v12798_v59  ;;  %vm4718_vm6 = vweird.f32 %v12875_v29 }
 0xb2d   : > { %v4674_v8 = vmul.f32 %v10549_v54, %v12853_v43  ;;  %vm4679_vm13 = vweird.f32 %v10549_v54  ;;  %v12895_v23 = vpop.eup %10550  ;;  %v4791_v6 = vmul.f32 %v4790_v50, %v12838_v52  ;;  %v4778_v25 = vmul.f32 %v4777_v7, %v12838_v52 }
 0xb2e   : > { %5535 = vrot.lane.b32.xlu0 %v12851_v39, %s11152_s17  ;;  %5287 = vrot.lane.b32.xlu1 %v12856_v5, %s11153_s29  ;;  %10552 = vrcp.f32 %v12888_v15  ;;  %v4714_v53 = vmul.f32 %v12895_v23, %v12875_v29  ;;  %vm12908_vm15 = vmor %vm4678_vm14, %vm4679_vm13  ;;  %v4741_v19 = vadd.f32 1.1283791, %v4740_v51  ;;  %v4762_v55 = vand.u32 2147483647, %v12888_v15 }
 0xb2f   : > { %5539 = vrot.lane.b32.xlu2 %v12851_v39, %s11154_s24  ;;  %v4675_v4 = vsub.f32 1.0, %v4674_v8  ;;  %v12921_v40 = vadd.f32 1.0, %v4791_v6  ;;  %vm4719_vm4 = vweird.f32 %v12895_v23  ;;  %v4724_v59 = vand.u32 2147483648, %v12875_v29  ;;  %5256 = vmatpush.bf16.msrb.mxu2 %v10135_v21 }
 0xb30   : > { %v4715_v49 = vsub.f32 1.0, %v4714_v53  ;;  %vm4758_vm9 = vweird.f32 %v12888_v15  ;;  %vm12935_vm10 = vmor %vm4718_vm6, %vm4719_vm4  ;;  %v4722_v13 = vand.u32 2147483647, %v12875_v29  ;;  %v4701_v2 = vadd.f32 1.1283791, %v4700_v61 }
 0xb31   : > { %v4676_v14 = vmul.f32 %v10549_v54, %v4675_v4  ;;  %v4764_v4 = vand.u32 2147483648, %v12888_v15  ;;  %10554 = vrcp.f32 %v12921_v40  ;;  %vm4763_vm12 = vcmp.eq.f32.partialorder %v4762_v55, 8.507059e+37 }
 0xb32   : > { %v4716_v44 = vmul.f32 %v12895_v23, %v4715_v49  ;;  %v4725_v7 = vor.u32 1.1754944e-38, %v4724_v59  ;;  %vm4723_vm13 = vcmp.eq.f32.partialorder %v4722_v13, 8.507059e+37 }
 0xb33   : > { %v4677_v11 = vadd.f32 %v10549_v54, %v4676_v14  ;;  %v4765_v46 = vor.u32 1.1754944e-38, %v4764_v4 }
 0xb34   : > { %v10553_v35 = vpop.eup %10552  ;;  %v4717_v14 = vadd.f32 %v12895_v23, %v4716_v44 }
 0xb35   : > { %v4681_v43 = vsel %vm12908_vm15, %v10549_v54, %v4677_v11  ;;  %v4754_v28 = vmul.f32 %v10553_v35, %v12888_v15  ;;  %v4662_v54 = vmul.f32 %v4661_v22, %v12786_v0  ;;  %vm4759_vm5 = vweird.f32 %v10553_v35  ;;  %v10134_v15 = vld [vmem:[#allocation10 + $0x40] sm:$0xff] }
 0xb36   : > { %5289 = vrot.lane.b32.xlu0 %v12897_v32, %s11153_s29  ;;  %5293 = vrot.lane.b32.xlu1 %v12897_v32, %s11152_s17  ;;  %v4686_v8 = vsel %vm4683_vm2, %v4685_v56, %v4681_v43  ;;  %v4779_v0 = vadd.f32 0.18741608, %v4778_v25  ;;  %v4742_v11 = vmul.f32 %v4741_v19, %v12811_v12  ;;  %vm4760_vm11 = vmor %vm4758_vm9, %vm4759_vm5  ;;  %v4721_v53 = vsel %vm12935_vm10, %v12895_v23, %v4717_v14 }
 0xb37   : > { %5297 = vrot.lane.b32.xlu2 %v12897_v32, %s11154_s24  ;;  %v4755_v38 = vsub.f32 1.0, %v4754_v28  ;;  %v4687_v47 = vmul.f32 %v4686_v8, %v4662_v54  ;;  %v10555_v50 = vpop.eup %10554  ;;  %v4726_v51 = vsel %vm4723_vm13, %v4725_v7, %v4721_v53  ;;  %v4702_v43 = vmul.f32 %v4701_v2, %v12790_v34  ;;  %5257 = vmatpush.bf16.msrb.mxu2 %v10134_v15 }
 0xb38   : > { %v4780_v22 = vmul.f32 %v4779_v0, %v12838_v52  ;;  %v4794_v12 = vmul.f32 %v10555_v50, %v12921_v40  ;;  %v4473_v23 = vmul.f32 0.5, %v12802_v18  ;;  %v4802_v52 = vand.u32 2147483647, %v12921_v40 }
 0xb39   : > { %v4756_v33 = vmul.f32 %v10553_v35, %v4755_v38  ;;  %v9494_v27 = vclamps-f32 %v4687_v47, 1.0  ;;  %v4804_v56 = vand.u32 2147483648, %v12921_v40  ;;  %v4727_v44 = vmul.f32 %v4726_v51, %v4702_v43 }
 0xb3a   : > { %v4795_v45 = vsub.f32 1.0, %v4794_v12  ;;  %vm4799_vm14 = vweird.f32 %v10555_v50  ;;  %vm4798_vm15 = vweird.f32 %v12921_v40  ;;  %vm4803_vm4 = vcmp.eq.f32.partialorder %v4802_v52, 8.507059e+37 }
 0xb3b   : > { %v4757_v31 = vadd.f32 %v10553_v35, %v4756_v33  ;;  %v4814_v6 = vadd.f32 1.0, %v9494_v27  ;;  %vm4800_vm2 = vmor %vm4798_vm15, %vm4799_vm14  ;;  %v4805_v54 = vor.u32 1.1754944e-38, %v4804_v56  ;;  %v9495_v18 = vclamps-f32 %v4727_v44, 1.0 }
 0xb3c   : > { %v4796_v24 = vmul.f32 %v10555_v50, %v4795_v45  ;;  %v4472_v33 = vmul.f32 0.5, %v12782_v60  ;;  %v4474_v14 = vmul.f32 0.5, %v12805_v9  ;;  %v5556_v53 = vshrl.u32 %v12851_v39, 16 }
 0xb3d   : > { %v4761_v10 = vsel %vm4760_vm11, %v10553_v35, %v4757_v31  ;;  %v4781_v35 = vadd.f32 1.1283791, %v4780_v22  ;;  %v4822_v25 = vmul.f32 %v4814_v6, %v4471_v57  ;;  %v4815_v47 = vadd.f32 1.0, %v9495_v18 }
 0xb3e   : > { %5295 = vrot.lane.b32.xlu0 %v12856_v5, %s11154_s24  ;;  %v4766_v37 = vsel %vm4763_vm12, %v4765_v46, %v4761_v10  ;;  %v4797_v8 = vadd.f32 %v10555_v50, %v4796_v24  ;;  %v5544_v46 = vshrl.u32 %v12834_v20, 16 }
 0xb3f   : > { %v4767_v29 = vmul.f32 %v4766_v37, %v4742_v11  ;;  %v4782_v34 = vmul.f32 %v4781_v35, %v12817_v36  ;;  %v4823_v0 = vmul.f32 %v4815_v47, %v4472_v33 }
 0xb40   : > { %v4801_v19 = vsel %vm4800_vm2, %v10555_v50, %v4797_v8 }
 0xb41   : > { %v9496_v49 = vclamps-f32 %v4767_v29, 1.0  ;;  %v4806_v38 = vsel %vm4803_vm4, %v4805_v54, %v4801_v19 }
 0xb42   : > { %v4807_v55 = vmul.f32 %v4806_v38, %v4782_v34 }
 0xb43   : > { %v4816_v28 = vadd.f32 1.0, %v9496_v49  ;;  %v5302_v49 = vshrl.u32 %v12856_v5, 16 }
 0xb44   : > { %v9497_v4 = vclamps-f32 %v4807_v55, 1.0 }
 0xb45   : > { %v4824_v26 = vmul.f32 %v4816_v28, %v4473_v23  ;;  %v5314_v23 = vshrl.u32 %v12897_v32, 16 }
 0xb46   : > { %v4817_v21 = vadd.f32 1.0, %v9497_v4 }
 0xb47   : > { %v4828_v61 = vpack.c.bf16 %v4824_v26, %v4822_v25 }
 0xb48   : > { %v4825_v40 = vmul.f32 %v4817_v21, %v4474_v14 }
 0xb49   : > { %4975 = vmatmul.bf16.gmra.mxu2 %v4828_v61 }
 0xb4a   : > { %v4829_v59 = vpack.c.bf16 %v4825_v40, %v4823_v0 }
 0xb4c   : > { %4994 = vmatmul.bf16.gmra.mxu3 %v4829_v59 }
 0xb59   : > { %5258 = vmatmul.bf16.vlgmr.msrb.gmra.mxu2 %v12774_v48 }
 0xb78   : > { %v5534_v36 = vpop.permute.xlu2 %5533 }
 0xb79   : > { %v5550_v27 = vshrl.u32 %v5534_v36, 16 }
 0xb81   : > { %v12956_v31 = vpop.permute.xlu2 %5291 }
 0xb82   : > { %v5308_v35 = vshrl.u32 %v12956_v31, 16 }
 0xb89   : > { %v5540_v13 = vpop.permute.xlu2 %5539 }
 0xb8a   : > { %v5563_v44 = vshrl.u32 %v5540_v13, 16 }
 0xb90   : > { %v5530_v30 = vpop.permute.xlu0 %5529 }
 0xb91   : > { %v5543_v2 = vpack.i.b16 %v5530_v30, %v12834_v20  ;;  %v5545_v11 = vshrl.u32 %v5530_v30, 16  ;;  %v12966_v43 = vpop.permute.xlu2 %5297 }
 0xb92   : > { %v5321_v24 = vshrl.u32 %v12966_v43, 16 }
 0xb93   : > { %v5546_v60 = vpack.i.b16 %v5545_v11, %v5544_v46  ;;  %v5569_v9 = vperm.slane %v5543_v2, %v11766_v41 }
 0xb95   : > { %v5577_v7 = vrot.slane %v5569_v9, 4  ;;  %v5595_v29 = vperm.slane %v5546_v60, %v11766_v41 }
 0xb97   : > { %v5603_v52 = vrot.slane %v5595_v29, 4 }
 0xb98   : > { %v5532_v10 = vpop.permute.xlu1 %5531  ;;  %v5538_v15 = vpop.permute.xlu0 %5537 }
 0xb99   : > { %v5555_v48 = vpack.i.b16 %v5532_v10, %v12851_v39  ;;  %v5557_v50 = vshrl.u32 %v5532_v10, 16  ;;  %v5549_v22 = vpack.i.b16 %v5538_v15, %v5534_v36  ;;  %v5551_v37 = vshrl.u32 %v5538_v15, 16 }
 0xb9b   : > { %v5558_v12 = vpack.i.b16 %v5557_v50, %v5556_v53  ;;  %v5621_v57 = vperm.slane %v5555_v48, %v11766_v41  ;;  %v5552_v20 = vpack.i.b16 %v5551_v37, %v5550_v27  ;;  %v5574_v51 = vperm.slane %v5549_v22, %v11766_v41 }
 0xb9d   : > { %v5647_v6 = vperm.slane %v5558_v12, %v11766_v41  ;;  %v5575_v45 = vrot.slane %v5574_v51, 4  ;;  %v5578_v39 = vsel %vm1849_vm7, %v5574_v51, %v5577_v7  ;;  %v5600_v28 = vperm.slane %v5552_v20, %v11766_v41 }
 0xb9e   : > { %v5586_v56 = vperm.slane %v5578_v39, %v11774_v3  ;;  %v5629_v25 = vrot.slane %v5621_v57, 4 }
 0xb9f   : > { %v5576_v26 = vsel %vm1849_vm7, %v5575_v45, %v5569_v9  ;;  %v5601_v54 = vrot.slane %v5600_v28, 4  ;;  %v5604_v61 = vsel %vm1849_vm7, %v5600_v28, %v5603_v52  ;;  %v5655_v38 = vrot.slane %v5647_v6, 4 }
 0xba0   : > { %v5582_v8 = vperm.slane %v5576_v26, %v11774_v3  ;;  %v5589_v34 = vrot.slane %v5586_v56, 4  ;;  %v5536_v18 = vpop.permute.xlu0 %5535  ;;  %v5288_v19 = vpop.permute.xlu1 %5287  ;;  %v5612_v55 = vperm.slane %v5604_v61, %v11774_v3 }
 0xba1   : > { %v5561_v4 = vpack.i.b16 %v5540_v13, %v5536_v18  ;;  %v5562_v47 = vshrl.u32 %v5536_v18, 16  ;;  %v5602_v21 = vsel %vm1849_vm7, %v5601_v54, %v5595_v29  ;;  %v5301_v0 = vpack.i.b16 %v5288_v19, %v12856_v5 }
 0xba2   : > { %v5587_v33 = vrot.slane %v5582_v8, 4  ;;  %v5590_v14 = vsel %vm1849_vm7, 0, %v5589_v34  ;;  %v5608_v40 = vperm.slane %v5602_v21, %v11774_v3  ;;  %v5615_v59 = vrot.slane %v5612_v55, 4 }
 0xba3   : > { %v12985_v36 = vsel %vm1849_vm7, %v5589_v34, %v5582_v8  ;;  %v5674_v30 = vrot.slane %v5590_v14, 4  ;;  %v5564_v11 = vpack.i.b16 %v5563_v44, %v5562_v47  ;;  %v5626_v13 = vperm.slane %v5561_v4, %v11766_v41 }
 0xba4   : > { %v5588_v2 = vsel %vm1849_vm7, 0, %v5587_v33  ;;  %v5303_v46 = vshrl.u32 %v5288_v19, 16  ;;  %v5613_v60 = vrot.slane %v5608_v40, 4  ;;  %v5616_v9 = vsel %vm1849_vm7, 0, %v5615_v59 }
 0xba5   : > { %v5675_v27 = vsel %vm1849_vm7, %v5674_v30, %v5588_v2  ;;  %v12992_v5 = vsel %vm1849_vm7, %v5615_v59, %v5608_v40  ;;  %v5673_v10 = vperm.slane %v12985_v36, %v11766_v41  ;;  %v5693_v15 = vrot.slane %v5616_v9, 4 }
 0xba6   : > { %v5679_v53 = vperm.slane %v5675_v27, %v11766_v41  ;;  %v5627_v48 = vrot.slane %v5626_v13, 4  ;;  %v5614_v50 = vsel %vm1849_vm7, 0, %v5613_v60  ;;  %v5630_v22 = vsel %vm1849_vm7, %v5626_v13, %v5629_v25 }
 0xba7   : > { %v5652_v37 = vperm.slane %v5564_v11, %v11766_v41  ;;  %v5304_v7 = vpack.i.b16 %v5303_v46, %v5302_v49  ;;  %v5692_v29 = vperm.slane %v12992_v5, %v11766_v41  ;;  %v5638_v20 = vperm.slane %v5630_v22, %v11774_v3 }
 0xba8   : > { %v5628_v12 = vsel %vm1849_vm7, %v5627_v48, %v5621_v57  ;;  %v13005_v51 = vperm.slane %v5301_v0, %v11766_v41  ;;  %v5290_v45 = vpop.permute.xlu0 %5289  ;;  %v13013_v49 = vsel %vm1849_vm7, %v5693_v15, %v5614_v50 }
 0xba9   : > { %v5634_v39 = vperm.slane %v5628_v12, %v11774_v3  ;;  %v5653_v52 = vrot.slane %v5652_v37, 4  ;;  %v5656_v56 = vsel %vm1849_vm7, %v5652_v37, %v5655_v38  ;;  %v13010_v28 = vperm.slane %v5304_v7, %v11766_v41 }
 0xbaa   : > { %v5641_v44 = vrot.slane %v5638_v20, 4  ;;  %v5664_v57 = vperm.slane %v5656_v56, %v11774_v3  ;;  %v5313_v25 = vpack.i.b16 %v5290_v45, %v12897_v32  ;;  %v5335_v34 = vrot.slane %v13005_v51, 4 }
 0xbab   : > { %v5639_v26 = vrot.slane %v5634_v39, 4  ;;  %v5654_v8 = vsel %vm1849_vm7, %v5653_v52, %v5647_v6  ;;  %v5315_v54 = vshrl.u32 %v5290_v45, 16  ;;  %v5361_v47 = vrot.slane %v13010_v28, 4  ;;  %v5294_v6 = vpop.permute.xlu1 %5293 }
 0xbac   : > { %v5642_v61 = vsel %vm1849_vm7, 0, %v5641_v44  ;;  %v5660_v18 = vperm.slane %v5654_v8, %v11774_v3  ;;  %v5667_v19 = vrot.slane %v5664_v57, 4  ;;  %v13022_v38 = vsel %vm1849_vm7, %v5641_v44, %v5634_v39 }
 0xbad   : > { %v5640_v55 = vsel %vm1849_vm7, 0, %v5639_v26  ;;  %v5712_v4 = vrot.slane %v5642_v61, 4  ;;  %v5316_v33 = vpack.i.b16 %v5315_v54, %v5314_v23  ;;  %v5379_v40 = vperm.slane %v5313_v25, %v11766_v41 }
 0xbae   : > { %v5665_v14 = vrot.slane %v5660_v18, 4  ;;  %v5668_v21 = vsel %vm1849_vm7, 0, %v5667_v19  ;;  %v13030_v0 = vsel %vm1849_vm7, %v5667_v19, %v5660_v18  ;;  %v5711_v59 = vperm.slane %v13022_v38, %v11766_v41 }
 0xbaf   : > { %v5713_v30 = vsel %vm1849_vm7, %v5712_v4, %v5640_v55  ;;  %v5731_v2 = vrot.slane %v5668_v21, 4  ;;  %v5405_v11 = vperm.slane %v5316_v33, %v11766_v41  ;;  %v5387_v13 = vrot.slane %v5379_v40, 4 }
 0xbb0   : > { %v5666_v32 = vsel %vm1849_vm7, 0, %v5665_v14  ;;  %v5717_v23 = vperm.slane %v5713_v30, %v11766_v41  ;;  %v5319_v46 = vpack.i.b16 %v12966_v43, %v5294_v6  ;;  %v5296_v60 = vpop.permute.xlu0 %5295  ;;  %v5730_v9 = vperm.slane %v13030_v0, %v11766_v41 }
 0xbb1   : > { %v13043_v27 = vsel %vm1849_vm7, %v5731_v2, %v5666_v32  ;;  %v5320_v15 = vshrl.u32 %v5294_v6, 16  ;;  %v5307_v48 = vpack.i.b16 %v5296_v60, %v12956_v31  ;;  %v5413_v50 = vrot.slane %v5405_v11, 4 }
 0xbb2   : > { %v5384_v22 = vperm.slane %v5319_v46, %v11766_v41  ;;  %v5309_v37 = vshrl.u32 %v5296_v60, 16  ;;  %v5680_v7 = vrot.slane %v5679_v53, 4  ;;  %v5698_v45 = vperm.slane %v13013_v49, %v11766_v41 }
 0xbb3   : > { %v5322_v12 = vpack.i.b16 %v5321_v24, %v5320_v15  ;;  %v5332_v20 = vperm.slane %v5307_v48, %v11766_v41  ;;  %v5718_v39 = vrot.slane %v5717_v23, 4  ;;  %v5736_v57 = vperm.slane %v13043_v27, %v11766_v41 }
 0xbb4   : > { %v5385_v52 = vrot.slane %v5384_v22, 4  ;;  %v5388_v56 = vsel %vm1849_vm7, %v5384_v22, %v5387_v13  ;;  %v5310_v44 = vpack.i.b16 %v5309_v37, %v5308_v35  ;;  %v5681_v31 = vsel %vm1849_vm7, %v5680_v7, %v5673_v10 }
 0xbb5   : > { %v5396_v53 = vperm.slane %v5388_v56, %v11774_v3  ;;  %v5410_v43 = vperm.slane %v5322_v12, %v11766_v41  ;;  %v5333_v24 = vrot.slane %v5332_v20, 4  ;;  %v5336_v25 = vsel %vm1849_vm7, %v5332_v20, %v5335_v34 }
 0xbb6   : > { %v5386_v26 = vsel %vm1849_vm7, %v5385_v52, %v5379_v40  ;;  %v5344_v49 = vperm.slane %v5336_v25, %v11774_v3  ;;  %v5358_v8 = vperm.slane %v5310_v44, %v11766_v41  ;;  %v5685_v30 = vperm.slane %v5681_v31, %v11774_v3 }
 0xbb7   : > { %v5392_v35 = vperm.slane %v5386_v26, %v11774_v3  ;;  %v5399_v54 = vrot.slane %v5396_v53, 4  ;;  %v5411_v61 = vrot.slane %v5410_v43, 4  ;;  %v5414_v18 = vsel %vm1849_vm7, %v5410_v43, %v5413_v50 }
 0xbb8   : > { %v5422_v19 = vperm.slane %v5414_v18, %v11774_v3  ;;  %v5334_v34 = vsel %vm1849_vm7, %v5333_v24, %v13005_v51  ;;  %v5347_v55 = vrot.slane %v5344_v49, 4  ;;  %v5359_v4 = vrot.slane %v5358_v8, 4 }
 0xbb9   : > { %v5397_v33 = vrot.slane %v5392_v35, 4  ;;  %v5400_v6 = vsel %vm1849_vm7, 0, %v5399_v54  ;;  %v5412_v36 = vsel %vm1849_vm7, %v5411_v61, %v5405_v11  ;;  %v5465_v10 = vsel %vm1849_vm7, %v5399_v54, %v5392_v35 }
 0xbba   : > { %v5418_v14 = vperm.slane %v5412_v36, %v11774_v3  ;;  %v5425_v21 = vrot.slane %v5422_v19, 4  ;;  %v5470_v40 = vrot.slane %v5400_v6, 4  ;;  %v5469_v32 = vperm.slane %v5465_v10, %v11766_v41 }
 0xbbb   : > { %v5398_v2 = vsel %vm1849_vm7, 0, %v5397_v33  ;;  %v5340_v51 = vperm.slane %v5334_v34, %v11774_v3  ;;  %v5360_v23 = vsel %vm1849_vm7, %v5359_v4, %v13010_v28  ;;  %v5348_v60 = vsel %vm1849_vm7, 0, %v5347_v55 }
 0xbbc   : > { %v5423_v13 = vrot.slane %v5418_v14, 4  ;;  %v5426_v11 = vsel %vm1849_vm7, 0, %v5425_v21  ;;  %v5471_v46 = vsel %vm1849_vm7, %v5470_v40, %v5398_v2  ;;  %v13087_v48 = vsel %vm1849_vm7, %v5425_v21, %v5418_v14 }
 0xbbd   : > { %v5475_v15 = vperm.slane %v5471_v46, %v11766_v41  ;;  %v5489_v50 = vrot.slane %v5426_v11, 4  ;;  %v5345_v22 = vrot.slane %v5340_v51, 4  ;;  %v5362_v7 = vsel %vm1849_vm7, %v5358_v8, %v5361_v47 }
 0xbbe   : > { %v5424_v37 = vsel %vm1849_vm7, 0, %v5423_v13  ;;  %v5366_v12 = vperm.slane %v5360_v23, %v11774_v3  ;;  %v5427_v20 = vsel %vm1849_vm7, %v5347_v55, %v5340_v51  ;;  %v5370_v53 = vperm.slane %v5362_v7, %v11774_v3 }
 0xbbf   : > { %v5476_v52 = vrot.slane %v5475_v15, 4  ;;  %v5490_v56 = vsel %vm1849_vm7, %v5489_v50, %v5424_v37  ;;  %v5346_v44 = vsel %vm1849_vm7, 0, %v5345_v22  ;;  %v5488_v43 = vperm.slane %v13087_v48, %v11766_v41 }
 0xbc0   : > { %v5494_v24 = vperm.slane %v5490_v56, %v11766_v41  ;;  %v5371_v25 = vrot.slane %v5366_v12, 4  ;;  %v5432_v28 = vrot.slane %v5348_v60, 4  ;;  %v5373_v26 = vrot.slane %v5370_v53, 4 }
 0xbc1   : > { %v5431_v47 = vperm.slane %v5427_v20, %v11766_v41  ;;  %v5699_v49 = vrot.slane %v5698_v45, 4  ;;  %v5719_v8 = vsel %vm1849_vm7, %v5718_v39, %v5711_v59  ;;  %v13107_v31 = vsel %vm1849_vm7, %v5476_v52, %v5469_v32 }
 0xbc2   : > { %v5372_v35 = vsel %vm1849_vm7, 0, %v5371_v25  ;;  %v5433_v54 = vsel %vm1849_vm7, %v5432_v28, %v5346_v44  ;;  %v5723_v61 = vperm.slane %v5719_v8, %v11774_v3  ;;  %v5374_v18 = vsel %vm1849_vm7, 0, %v5373_v26 }
 0xbc3   : > { %v5437_v19 = vperm.slane %v5433_v54, %v11766_v41  ;;  %v5446_v45 = vsel %vm1849_vm7, %v5373_v26, %v5366_v12  ;;  %v5700_v38 = vsel %vm1849_vm7, %v5699_v49, %v5692_v29  ;;  %v5495_v59 = vrot.slane %v5494_v24, 4 }
 0xbc4   : > { %v5451_v39 = vrot.slane %v5374_v18, 4  ;;  %v5704_v34 = vperm.slane %v5700_v38, %v11774_v3  ;;  %v5737_v55 = vrot.slane %v5736_v57, 4  ;;  %v5450_v33 = vperm.slane %v5446_v45, %v11766_v41 }
 0xbc5   : > { %v5438_v4 = vrot.slane %v5437_v19, 4  ;;  %v5748_v6 = vshrl.u32 %v5685_v30, 16  ;;  %v5686_v36 = vrot.slane %v5685_v30, 4  ;;  %v5760_v27 = vshrl.u32 %v5723_v61, 16 }
 0xbc6   : > { %v5452_v10 = vsel %vm1849_vm7, %v5451_v39, %v5372_v35  ;;  %v5738_v5 = vsel %vm1849_vm7, %v5737_v55, %v5730_v9  ;;  %v5747_v29 = vpack.i.b16 %v5704_v34, %v5685_v30  ;;  %v5749_v14 = vshrl.u32 %v5704_v34, 16 }
 0xbc7   : > { %v5456_v21 = vperm.slane %v5452_v10, %v11766_v41  ;;  %v5742_v40 = vperm.slane %v5738_v5, %v11774_v3  ;;  %v5687_v57 = vsel %vm1849_vm7, 0, %v5686_v36  ;;  %v5439_v2 = vsel %vm1849_vm7, %v5438_v4, %v5431_v47 }
 0xbc8   : > { %v6014_v32 = vunpack.c.l.b16 %v5747_v29  ;;  %v5705_v51 = vrot.slane %v5704_v34, 4  ;;  %v5724_v23 = vrot.slane %v5723_v61, 4  ;;  %v5750_v11 = vpack.i.b16 %v5749_v14, %v5748_v6 }
 0xbc9   : > { %v5759_v13 = vpack.i.b16 %v5742_v40, %v5723_v61  ;;  %v5761_v46 = vshrl.u32 %v5742_v40, 16  ;;  %v5743_v0 = vrot.slane %v5742_v40, 4  ;;  %v5457_v60 = vrot.slane %v5456_v21, 4  ;;  %v13152_v21 = vld [vmem:[%s14123_s1 + $0x1] ss:$0 sm:$0xff] }
 0xbca   : > { %v5706_v9 = vsel %vm1849_vm7, 0, %v5705_v51  ;;  %v5725_v30 = vsel %vm1849_vm7, 0, %v5724_v23  ;;  %v5754_v15 = vshrl.u32 %v5687_v57, 16  ;;  %v6040_v53 = vunpack.c.l.b16 %v5750_v11 }
 0xbcb   : > { %v6015_v50 = vunpack.c.l.b16 %v5759_v13  ;;  %v5762_v22 = vpack.i.b16 %v5761_v46, %v5760_v27  ;;  %v5744_v37 = vsel %vm1849_vm7, 0, %v5743_v0  ;;  %v5753_v7 = vpack.i.b16 %v5706_v9, %v5687_v57 }
 0xbcc   : > { %v5765_v12 = vpack.i.b16 %v5744_v37, %v5725_v30  ;;  %v5755_v20 = vshrl.u32 %v5706_v9, 16  ;;  %v5766_v52 = vshrl.u32 %v5725_v30, 16  ;;  %v5767_v56 = vshrl.u32 %v5744_v37, 16  ;;  %v4976_v38 = vpop.f32.mrf.mxu2 }
 0xbcd   : > { %v6016_v44 = vpack.c.b16 %v6015_v50, %v6014_v32  ;;  %v6041_v24 = vunpack.c.l.b16 %v5762_v22  ;;  %v6066_v25 = vunpack.c.l.b16 %v5753_v7  ;;  %v5458_v49 = vsel %vm1849_vm7, %v5457_v60, %v5450_v33 }
 0xbce   : > { %v6067_v28 = vunpack.c.l.b16 %v5765_v12  ;;  %v5756_v26 = vpack.i.b16 %v5755_v20, %v5754_v15  ;;  %v5768_v47 = vpack.i.b16 %v5767_v56, %v5766_v52  ;;  %v5443_v54 = vperm.slane %v5439_v2, %v11774_v3 }
 0xbcf   : > { %v6021_v8 = vsel %vm2533_vm8, %v6016_v44, 0  ;;  %v6042_v35 = vpack.c.b16 %v6041_v24, %v6040_v53  ;;  %v5462_v61 = vperm.slane %v5458_v49, %v11774_v3  ;;  %v5496_v39 = vsel %vm1849_vm7, %v5495_v59, %v5488_v43 }
 0xbd0   : > { %6030 = vmatpush.bf16.xpose.msrb.mxu3 %v6021_v8  ;;  %v6068_v18 = vpack.c.b16 %v6067_v28, %v6066_v25  ;;  %v6092_v19 = vunpack.c.l.b16 %v5756_v26  ;;  %v6093_v45 = vunpack.c.l.b16 %v5768_v47  ;;  %v5481_v55 = vperm.slane %v13107_v31, %v11774_v3  ;;  %v4995_v31 = vpop.f32.mrf.mxu3 }
 0xbd1   : > { %v6047_v34 = vsel %vm2533_vm8, %v6042_v35, 0  ;;  %v5500_v4 = vperm.slane %v5496_v39, %v11774_v3  ;;  %v5505_v33 = vpack.i.b16 %v5462_v61, %v5443_v54  ;;  %v5507_v14 = vshrl.u32 %v5462_v61, 16 }
 0xbd2   : > { %v6073_v6 = vsel %vm2533_vm8, %v6068_v18, 0  ;;  %v6094_v36 = vpack.c.b16 %v6093_v45, %v6092_v19  ;;  %v5506_v40 = vshrl.u32 %v5443_v54, 16  ;;  %v4977_v57 = vadd.f32 %v12764_v16, %v4976_v38 }
 0xbd3   : > { %6082 = vmatpush.bf16.xpose.msrb.mxu0 %v6073_v6  ;;  %v5517_v10 = vpack.i.b16 %v5500_v4, %v5481_v55  ;;  %v6011_v5 = vunpack.c.l.b16 %v5505_v33  ;;  %v5519_v27 = vshrl.u32 %v5500_v4, 16  ;;  %v5518_v51 = vshrl.u32 %v5481_v55, 16 }
 0xbd4   : > { %v6099_v48 = vsel %vm2533_vm8, %v6094_v36, 0  ;;  %v4978_v29 = vpop.f32.mrf.mxu2  ;;  %v5508_v32 = vpack.i.b16 %v5507_v14, %v5506_v40  ;;  %v5463_v0 = vrot.slane %v5462_v61, 4  ;;  %v13157_v60 = vadd.f32 %v4995_v31, %v4977_v57 }
 0xbd5   : > { %6108 = vmatpush.bf16.xpose.msra.mxu1 %v6099_v48  ;;  %v6012_v43 = vunpack.c.l.b16 %v5517_v10  ;;  %v4979_v2 = vadd.f32 %v12764_v16, %v4978_v29  ;;  %v5520_v11 = vpack.i.b16 %v5519_v27, %v5518_v51  ;;  %v5444_v50 = vrot.slane %v5443_v54, 4 }
 0xbd6   : > { %v6037_v15 = vunpack.c.l.b16 %v5508_v32  ;;  %v5501_v22 = vrot.slane %v5500_v4, 4  ;;  %v5464_v7 = vsel %vm1849_vm7, 0, %v5463_v0  ;;  %v5482_v12 = vrot.slane %v5481_v55, 4 }
 0xbd7   : > { %v6013_v59 = vpack.c.b16 %v6012_v43, %v6011_v5  ;;  %v6038_v37 = vunpack.c.l.b16 %v5520_v11  ;;  %v5445_v56 = vsel %vm1849_vm7, 0, %v5444_v50  ;;  %v5513_v24 = vshrl.u32 %v5464_v7, 16 }
 0xbd8   : > { %6056 = vmatpush.bf16.xpose.msra.mxu3 %v6047_v34  ;;  %v4997_v46 = vpop.f32.mrf.mxu3  ;;  %v5502_v44 = vsel %vm1849_vm7, 0, %v5501_v22  ;;  %v5483_v25 = vsel %vm1849_vm7, 0, %v5482_v12  ;;  %v5512_v26 = vshrl.u32 %v5445_v56, 16  ;;  %v5511_v49 = vpack.i.b16 %v5464_v7, %v5445_v56 }
 0xbd9   : > { %9677 = vmatmul.msk.bf16.vlgmr.msrb.gmra.mxu3 %vm2533_vm8, %v6013_v59  ;;  %v13159_v9 = vadd.f32 %v4997_v46, %v4979_v2  ;;  %v6039_v20 = vpack.c.b16 %v6038_v37, %v6037_v15  ;;  %v5525_v47 = vshrl.u32 %v5502_v44, 16  ;;  %v5524_v35 = vshrl.u32 %v5483_v25, 16 }
 0xbda   : > { %v5514_v8 = vpack.i.b16 %v5513_v24, %v5512_v26  ;;  %v5523_v54 = vpack.i.b16 %v5502_v44, %v5483_v25  ;;  %v6063_v18 = vunpack.c.l.b16 %v5511_v49 }
 0xbdb   : > { %v5001_v16 = vpack.c.bf16 %v13159_v9, %v13157_v60  ;;  %v5526_v61 = vpack.i.b16 %v5525_v47, %v5524_v35 }
 0xbdc   : > { %v5259_v23 = vpop.f32.mrf.mxu2  ;;  %v6089_v19 = vunpack.c.l.b16 %v5514_v8  ;;  %v6064_v45 = vunpack.c.l.b16 %v5523_v54 }
 0xbdd   : > { %v5260_v13 = vadd.f32 %v13152_v21, %v5259_v23  ;;  %5085 = vmatmul.bf16.gmra.mxu0 %v5001_v16  ;;  %5174 = vmatmul.bf16.gmra.mxu1 %v5001_v16  ;;  %v6090_v38 = vunpack.c.l.b16 %v5526_v61 }
 0xbde   : > { %5263 = vmatmul.bf16.gmra.mxu2 %v5001_v16  ;;  %v6065_v39 = vpack.c.b16 %v6064_v45, %v6063_v18 }
 0xbdf   : > { %v13161_v30 = vpack.c.bf16 %v5260_v13, %v5260_v13  ;;  %v6091_v34 = vpack.c.b16 %v6090_v38, %v6089_v19 }
 0xbe1   : > { %5775 = vrot.lane.b32.xlu0 %v13161_v30, %s11152_s17  ;;  %5771 = vrot.lane.b32.xlu2 %v13161_v30, %s11153_s29 }
 0xbe4   : > { %v5261_v52 = vpop.f32.mrf.mxu2 }
 0xbe5   : > { %v5262_v53 = vadd.f32 %v13152_v21, %v5261_v52 }
 0xbe7   : > { %v13175_v28 = vpack.c.bf16 %v5262_v53, %v5262_v53 }
 0xbe9   : > { %9678 = vmatmul.msk.bf16.vlgmr.msra.gmra.mxu3 %vm2533_vm8, %v6039_v20  ;;  %5773 = vrot.lane.b32.xlu1 %v13175_v28, %s11153_s29 }
 0xbed   : > { %9679 = vmatmul.msk.bf16.vlgmr.msrb.gmra.mxu0 %vm2533_vm8, %v6065_v39  ;;  %9680 = vmatmul.msk.bf16.vlgmr.msra.gmra.mxu1 %vm2533_vm8, %v6091_v34 }
 0xc3b   : > { %v5772_v52 = vpop.permute.xlu2 %5771 }
 0xc53   : > { %v13221_v7 = vpop.permute.xlu0 %5775 }
 0xc5a   : > { %v13184_v6 = vpop.f32.mrf.mxu0  ;;  %v13186_v36 = vpop.f32.mrf.mxu1 }
 0xc5b   : > { %v13219_v62 = vpop.permute.xlu1 %5773 }
 0xc5c   : > { %v6032_v55 = vpop.f32.mrf.mxu3 }
 0xc5d   : > { %v6115_v4 = vsel %vm11978_vm0, -1e+09, %v6032_v55 }
 0xc5e   : > { %v6123_v33 = vsel %vm2643_vm1, %v6115_v4, -inf }
 0xc5f   : > { %6124 = vmax.xlane.f32.xlu1 %v6123_v33 }
 0xc62   : > { %v13191_v43 = vpop.f32.mrf.mxu0  ;;  %v13193_v59 = vpop.f32.mrf.mxu1 }
 0xc64   : > { %v6034_v10 = vpop.f32.mrf.mxu3 }
 0xc65   : > { %v6116_v5 = vsel %vm11978_vm0, -1e+09, %v6034_v10 }
 0xc66   : > { %v6126_v48 = vsel %vm2643_vm1, %v6116_v5, -inf }
 0xc67   : > { %6127 = vmax.xlane.f32.xlu0 %v6126_v48 }
 0xc6a   : > { %v6084_v40 = vpop.f32.mrf.mxu0  ;;  %v6110_v27 = vpop.f32.mrf.mxu1 }
 0xc6b   : > { %v6119_v2 = vsel %vm11978_vm0, -1e+09, %v6084_v40  ;;  %v6121_v13 = vsel %vm11978_vm0, -1e+09, %v6110_v27 }
 0xc6c   : > { %v6058_v29 = vpop.f32.mrf.mxu3  ;;  %v6135_v51 = vsel %vm2643_vm1, %v6119_v2, -inf  ;;  %v6141_v16 = vsel %vm2643_vm1, %v6121_v13, -inf }
 0xc6d   : > { %v6117_v31 = vsel %vm11978_vm0, -1e+09, %v6058_v29 }
 0xc6e   : > { %v6129_v14 = vsel %vm2643_vm1, %v6117_v31, -inf }
 0xc6f   : > { %6130 = vmax.xlane.f32.xlu2 %v6129_v14  ;;  %6136 = vmax.xlane.f32.xlu0 %v6135_v51  ;;  %v5787_v51 = vshrl.u32 %v5772_v52, 16 }
 0xc72   : > { %v6086_v11 = vpop.f32.mrf.mxu0  ;;  %v6112_v46 = vpop.f32.mrf.mxu1 }
 0xc73   : > { %v6120_v0 = vsel %vm11978_vm0, -1e+09, %v6086_v11  ;;  %v6122_v15 = vsel %vm11978_vm0, -1e+09, %v6112_v46  ;;  %v5786_v46 = vshrl.u32 %v13161_v30, 16 }
 0xc74   : > { %v6060_v57 = vpop.f32.mrf.mxu3  ;;  %v6144_v50 = vsel %vm2643_vm1, %v6122_v15, -inf  ;;  %v6138_v22 = vsel %vm2643_vm1, %v6120_v0, -inf }
 0xc75   : > { %v6118_v32 = vsel %vm11978_vm0, -1e+09, %v6060_v57 }
 0xc76   : > { %v6132_v23 = vsel %vm2643_vm1, %v6118_v32, -inf }
 0xc77   : > { %6133 = vmax.xlane.f32.xlu1 %v6132_v23  ;;  %6145 = vmax.xlane.f32.xlu0 %v6144_v50 }
 0xc78   : > { %6139 = vmax.xlane.f32.xlu2 %v6138_v22  ;;  %v5788_v22 = vpack.i.b16 %v5787_v51, %v5786_v46 }
 0xc7f   : > { %6142 = vmax.xlane.f32.xlu1 %v6141_v16  ;;  %v5799_v16 = vshrl.u32 %v13219_v62, 16 }
 0xc8b   : > { %5779 = vrot.lane.b32.xlu0 %v13161_v30, %s11154_s24 }
 0xc90   : > { %5777 = vrot.lane.b32.xlu2 %v13175_v28, %s11152_s17 }
 0xc98   : > { %5781 = vrot.lane.b32.xlu1 %v13175_v28, %s11154_s24 }
 0xcd2   : > { %v6125_v37 = vpop.xlane.xlu1 %6124 }
 0xcd3   : > { %v6147_v12 = vsub.f32 %v6115_v4, %v6125_v37  ;;  %v5797_v37 = vpack.i.b16 %v13219_v62, %v13175_v28 }
 0xcd5   : > { %v6155_v20 = vmul.f32 1.442695, %v6147_v12 }
 0xcd7   : > { %10556 = vpow2.f32 %v6155_v20  ;;  %v5798_v20 = vshrl.u32 %v13175_v28, 16 }
 0xcda   : > { %v6128_v56 = vpop.xlane.xlu0 %6127 }
 0xcdb   : > { %v6148_v44 = vsub.f32 %v6116_v5, %v6128_v56  ;;  %v5837_v56 = vperm.slane %v5788_v22, %v11766_v41 }
 0xcdd   : > { %v13223_v53 = vpop.eup %10556  ;;  %v6157_v24 = vmul.f32 1.442695, %v6148_v44 }
 0xcde   : > { %v6171_v25 = vsel %vm2643_vm1, %v13223_v53, 0.0 }
 0xcdf   : > { %6172 = vadd.xlane.f32.xlu2 %v6171_v25  ;;  %10558 = vpow2.f32 %v6157_v24 }
 0xce2   : > { %v6131_v26 = vpop.xlane.xlu2 %6130  ;;  %v6137_v54 = vpop.xlane.xlu0 %6136 }
 0xce3   : > { %v6149_v47 = vsub.f32 %v6117_v31, %v6131_v26  ;;  %v6151_v18 = vsub.f32 %v6119_v2, %v6137_v54  ;;  %v5863_v26 = vperm.slane %v5797_v37, %v11766_v41 }
 0xce5   : > { %v13227_v49 = vpop.eup %10558  ;;  %v6159_v8 = vmul.f32 1.442695, %v6149_v47  ;;  %v6163_v45 = vmul.f32 1.442695, %v6151_v18 }
 0xce6   : > { %v6174_v35 = vsel %vm2643_vm1, %v13227_v49, 0.0 }
 0xce7   : > { %10560 = vpow2.f32 %v6159_v8  ;;  %6175 = vadd.xlane.f32.xlu0 %v6174_v35  ;;  %v5845_v35 = vrot.slane %v5837_v56, 4 }
 0xce8   : > { %10562 = vpow2.f32 %v6163_v45 }
 0xcea   : > { %v6134_v61 = vpop.xlane.xlu1 %6133  ;;  %v6146_v55 = vpop.xlane.xlu0 %6145 }
 0xceb   : > { %v6150_v19 = vsub.f32 %v6118_v32, %v6134_v61  ;;  %v6140_v4 = vpop.xlane.xlu2 %6139  ;;  %v6154_v10 = vsub.f32 %v6122_v15, %v6146_v55  ;;  %v5785_v15 = vpack.i.b16 %v5772_v52, %v13161_v30  ;;  %v5792_v30 = vshrl.u32 %v13221_v7, 16 }
 0xcec   : > { %v6152_v5 = vsub.f32 %v6120_v0, %v6140_v4  ;;  %v5800_v52 = vpack.i.b16 %v5799_v16, %v5798_v20 }
 0xced   : > { %v13231_v38 = vpop.eup %10560  ;;  %v6161_v39 = vmul.f32 1.442695, %v6150_v19  ;;  %v6169_v31 = vmul.f32 1.442695, %v6154_v10  ;;  %v5811_v12 = vperm.slane %v5785_v15, %v11766_v41  ;;  %v10650_v19 = vld [vmem:[%s14121_s4 + $0x1] ss:$0 sm:$0xff] }
 0xcee   : > { %v6177_v34 = vsel %vm2643_vm1, %v13231_v38, 0.0  ;;  %v13235_v29 = vpop.eup %10562  ;;  %v6165_v14 = vmul.f32 1.442695, %v6152_v5  ;;  %v13268_v54 = vperm.slane %v5800_v52, %v11766_v41  ;;  %v5176_v45 = vadd.f32 %v10650_v19, %v13186_v36 }
 0xcef   : > { %10564 = vpow2.f32 %v6161_v39  ;;  %6178 = vadd.xlane.f32.xlu1 %v6177_v34  ;;  %v6183_v57 = vsel %vm2643_vm1, %v13235_v29, 0.0  ;;  %v5819_v47 = vrot.slane %v5811_v12, 4 }
 0xcf0   : > { %10566 = vpow2.f32 %v6169_v31  ;;  %6184 = vadd.xlane.f32.xlu0 %v6183_v57  ;;  %v5897_v57 = vrot.slane %v13268_v54, 4 }
 0xcf2   : > { %v6143_v33 = vpop.xlane.xlu1 %6142 }
 0xcf3   : > { %v6153_v48 = vsub.f32 %v6121_v13, %v6143_v33  ;;  %v5778_v39 = vpop.permute.xlu2 %5777 }
 0xcf4   : > { %v5804_v36 = vshrl.u32 %v5778_v39, 16 }
 0xcf5   : > { %v13237_v40 = vpop.eup %10564  ;;  %v6167_v27 = vmul.f32 1.442695, %v6153_v48 }
 0xcf6   : > { %v6180_v2 = vsel %vm2643_vm1, %v13237_v40, 0.0  ;;  %v13243_v32 = vpop.eup %10566 }
 0xcf7   : > { %10568 = vpow2.f32 %v6167_v27  ;;  %6181 = vadd.xlane.f32.xlu2 %v6180_v2  ;;  %v6192_v13 = vsel %vm2643_vm1, %v13243_v32, 0.0 }
 0xcf8   : > { %10570 = vpow2.f32 %v6165_v14  ;;  %6193 = vadd.xlane.f32.xlu0 %v6192_v13 }
 0xcfd   : > { %v13245_v23 = vpop.eup %10568  ;;  %v5780_v44 = vpop.permute.xlu0 %5779 }
 0xcfe   : > { %v13249_v11 = vpop.eup %10570  ;;  %v6189_v0 = vsel %vm2643_vm1, %v13245_v23, 0.0  ;;  %v5791_v24 = vpack.i.b16 %v5780_v44, %v13221_v7  ;;  %v5793_v25 = vshrl.u32 %v5780_v44, 16  ;;  %v5871_v7 = vrot.slane %v5863_v26, 4 }
 0xcff   : > { %6190 = vadd.xlane.f32.xlu2 %v6189_v0  ;;  %v6186_v50 = vsel %vm2643_vm1, %v13249_v11, 0.0 }
 0xd00   : > { %6187 = vadd.xlane.f32.xlu1 %v6186_v50  ;;  %v5794_v8 = vpack.i.b16 %v5793_v25, %v5792_v30  ;;  %v5816_v62 = vperm.slane %v5791_v24, %v11766_v41  ;;  %v13284_v50 = vpack.c.bf16 %v5176_v45, %v5176_v45  ;;  %v10651_v30 = vld [vmem:[%s14122_s2 + $0x1] ss:$0 sm:$0xff] }
 0xd01   : > { %v5089_v52 = vadd.f32 %v10651_v30, %v13191_v43 }
 0xd02   : > { %v5817_v28 = vrot.slane %v5816_v62, 4  ;;  %v5820_v61 = vsel %vm1849_vm7, %v5816_v62, %v5819_v47  ;;  %v5842_v18 = vperm.slane %v5794_v8, %v11766_v41 }
 0xd03   : > { %v5828_v34 = vperm.slane %v5820_v61, %v11774_v3 }
 0xd04   : > { %v5818_v4 = vsel %vm1849_vm7, %v5817_v28, %v5811_v12  ;;  %v5843_v33 = vrot.slane %v5842_v18, 4  ;;  %v5846_v10 = vsel %vm1849_vm7, %v5842_v18, %v5845_v35  ;;  %v5178_v12 = vadd.f32 %v10650_v19, %v13193_v59 }
 0xd05   : > { %v5824_v48 = vperm.slane %v5818_v4, %v11774_v3  ;;  %v5831_v31 = vrot.slane %v5828_v34, 4  ;;  %v5854_v14 = vperm.slane %v5846_v10, %v11774_v3 }
 0xd06   : > { %v5844_v2 = vsel %vm1849_vm7, %v5843_v33, %v5837_v56 }
 0xd07   : > { %v5829_v13 = vrot.slane %v5824_v48, 4  ;;  %v5832_v46 = vsel %vm1849_vm7, 0, %v5831_v31  ;;  %v5850_v0 = vperm.slane %v5844_v2, %v11774_v3  ;;  %v5857_v15 = vrot.slane %v5854_v14, 4 }
 0xd08   : > { %v5916_v22 = vrot.slane %v5832_v46, 4  ;;  %v5911_v62 = vsel %vm1849_vm7, %v5831_v31, %v5824_v48  ;;  %v5272_v46 = vmul.f32 0.17677669, %v5089_v52 }
 0xd09   : > { %v5830_v20 = vsel %vm1849_vm7, 0, %v5829_v13  ;;  %v5855_v44 = vrot.slane %v5850_v0, 4  ;;  %v5858_v56 = vsel %vm1849_vm7, 0, %v5857_v15  ;;  %v5930_v45 = vsel %vm1849_vm7, %v5857_v15, %v5850_v0 }
 0xd0a   : > { %v5782_v55 = vpop.permute.xlu1 %5781  ;;  %v5917_v24 = vsel %vm1849_vm7, %v5916_v22, %v5830_v20  ;;  %v5935_v25 = vrot.slane %v5858_v56, 4  ;;  %v5915_v33 = vperm.slane %v5911_v62, %v11766_v41  ;;  %v5934_v48 = vperm.slane %v5930_v45, %v11766_v41 }
 0xd0b   : > { %v5803_v5 = vpack.i.b16 %v5782_v55, %v5778_v39  ;;  %v5805_v27 = vshrl.u32 %v5782_v55, 16  ;;  %v5856_v8 = vsel %vm1849_vm7, 0, %v5855_v44  ;;  %v5921_v35 = vperm.slane %v5917_v24, %v11766_v41 }
 0xd0c   : > { %6738 = vrot.lane.b32.xlu0 %v13284_v50, %s11152_s17  ;;  %v5936_v28 = vsel %vm1849_vm7, %v5935_v25, %v5856_v8  ;;  %v5087_v13 = vadd.f32 %v10651_v30, %v13184_v6  ;;  %v13336_v62 = vpack.c.bf16 %v5272_v46, %v5272_v46 }
 0xd0d   : > { %v5868_v51 = vperm.slane %v5803_v5, %v11766_v41  ;;  %v5806_v16 = vpack.i.b16 %v5805_v27, %v5804_v36  ;;  %v5922_v19 = vrot.slane %v5921_v35, 4  ;;  %v5940_v39 = vperm.slane %v5936_v28, %v11766_v41 }
 0xd0e   : > { %v5271_v8 = vmul.f32 0.17677669, %v5087_v13 }
 0xd0f   : > { %v5869_v37 = vrot.slane %v5868_v51, 4  ;;  %v5872_v59 = vsel %vm1849_vm7, %v5868_v51, %v5871_v7  ;;  %v5894_v18 = vperm.slane %v5806_v16, %v11766_v41  ;;  %v5941_v5 = vrot.slane %v5940_v39, 4 }
 0xd10   : > { %v5880_v61 = vperm.slane %v5872_v59, %v11774_v3  ;;  %v5923_v51 = vsel %vm1849_vm7, %v5922_v19, %v5915_v33  ;;  %v13351_v33 = vpack.c.bf16 %v5271_v8, %v5271_v8 }
 0xd11   : > { %v5870_v47 = vsel %vm1849_vm7, %v5869_v37, %v5863_v26  ;;  %v13303_v26 = vpack.c.bf16 %v5178_v12, %v5178_v12  ;;  %v5895_v55 = vrot.slane %v5894_v18, 4  ;;  %v5898_v4 = vsel %vm1849_vm7, %v5894_v18, %v5897_v57 }
 0xd12   : > { %v5876_v43 = vperm.slane %v5870_v47, %v11774_v3  ;;  %v5883_v7 = vrot.slane %v5880_v61, 4  ;;  %v5906_v10 = vperm.slane %v5898_v4, %v11774_v3  ;;  %v5942_v0 = vsel %vm1849_vm7, %v5941_v5, %v5934_v48 }
 0xd13   : > { %v5896_v27 = vsel %vm1849_vm7, %v5895_v55, %v13268_v54  ;;  %v5927_v6 = vperm.slane %v5923_v51, %v11774_v3  ;;  %v5946_v20 = vperm.slane %v5942_v0, %v11774_v3 }
 0xd14   : > { %v5881_v34 = vrot.slane %v5876_v43, 4  ;;  %v5884_v14 = vsel %vm1849_vm7, 0, %v5883_v7  ;;  %v5902_v36 = vperm.slane %v5896_v27, %v11774_v3  ;;  %v5909_v57 = vrot.slane %v5906_v10, 4  ;;  %6742 = vrot.lane.b32.xlu0 %v13284_v50, %s11154_s24 }
 0xd15   : > { %v5954_v2 = vrot.slane %v5884_v14, 4  ;;  %v5949_v22 = vsel %vm1849_vm7, %v5883_v7, %v5876_v43  ;;  %v5947_v47 = vrot.slane %v5946_v20, 4  ;;  %v5928_v59 = vrot.slane %v5927_v6, 4 }
 0xd16   : > { %v5882_v31 = vsel %vm1849_vm7, 0, %v5881_v34  ;;  %v5907_v15 = vrot.slane %v5902_v36, 4  ;;  %v5910_v54 = vsel %vm1849_vm7, 0, %v5909_v57  ;;  %v5953_v56 = vperm.slane %v5949_v22, %v11766_v41 }
 0xd17   : > { %6736 = vrot.lane.b32.xlu2 %v13303_v26, %s11153_s29  ;;  %v5955_v16 = vsel %vm1849_vm7, %v5954_v2, %v5882_v31  ;;  %v5973_v12 = vrot.slane %v5910_v54, 4  ;;  %v5968_v52 = vsel %vm1849_vm7, %v5909_v57, %v5902_v36  ;;  %v5991_v18 = vshrl.u32 %v5946_v20, 16  ;;  %v5264_v57 = vpop.f32.mrf.mxu2 }
 0xd18   : > { %v5959_v37 = vperm.slane %v5955_v16, %v11766_v41  ;;  %v5908_v44 = vsel %vm1849_vm7, 0, %v5907_v15  ;;  %v5972_v28 = vperm.slane %v5968_v52, %v11766_v41  ;;  %v5948_v19 = vsel %vm1849_vm7, 0, %v5947_v47 }
 0xd19   : > { %6734 = vrot.lane.b32.xlu1 %v13284_v50, %s11153_s29  ;;  %v5974_v24 = vsel %vm1849_vm7, %v5973_v12, %v5908_v44  ;;  %v5990_v39 = vshrl.u32 %v5927_v6, 16  ;;  %v5989_v55 = vpack.i.b16 %v5946_v20, %v5927_v6  ;;  %v5929_v4 = vsel %vm1849_vm7, 0, %v5928_v59 }
 0xd1a   : > { %v5960_v30 = vrot.slane %v5959_v37, 4  ;;  %v5978_v25 = vperm.slane %v5974_v24, %v11766_v41  ;;  %v5997_v48 = vshrl.u32 %v5948_v19, 16  ;;  %v5995_v2 = vpack.i.b16 %v5948_v19, %v5929_v4 }
 0xd1b   : > { %v5992_v10 = vpack.i.b16 %v5991_v18, %v5990_v39  ;;  %v5996_v51 = vshrl.u32 %v5929_v4, 16  ;;  %v6224_v13 = vunpack.c.l.b16 %v5989_v55  ;;  %v5265_v24 = vadd.f32 %v13152_v21, %v5264_v57 }
 0xd1c   : > { %v5961_v35 = vsel %vm1849_vm7, %v5960_v30, %v5953_v56  ;;  %v5979_v61 = vrot.slane %v5978_v25, 4  ;;  %6494 = vrot.lane.b32.xlu0 %v13336_v62, %s11153_s29  ;;  %v6276_v44 = vunpack.c.l.b16 %v5995_v2 }
 0xd1d   : > { %v5965_v43 = vperm.slane %v5961_v35, %v11774_v3  ;;  %v5998_v22 = vpack.i.b16 %v5997_v48, %v5996_v51  ;;  %v6250_v6 = vunpack.c.l.b16 %v5992_v10  ;;  %v13364_v59 = vpack.c.bf16 %v5265_v24, %v5265_v24 }
 0xd1e   : > { %v5980_v45 = vsel %vm1849_vm7, %v5979_v61, %v5972_v28 }
 0xd1f   : > { %6744 = vrot.lane.b32.xlu2 %v13303_v26, %s11154_s24  ;;  %v5966_v34 = vrot.slane %v5965_v43, 4  ;;  %v5984_v7 = vperm.slane %v5980_v45, %v11774_v3  ;;  %v6002_v5 = vshrl.u32 %v5965_v43, 16  ;;  %v6302_v47 = vunpack.c.l.b16 %v5998_v22  ;;  %v5266_v28 = vpop.f32.mrf.mxu2 }
 0xd21   : > { %6740 = vrot.lane.b32.xlu1 %v13303_v26, %s11152_s17  ;;  %v6001_v31 = vpack.i.b16 %v5984_v7, %v5965_v43  ;;  %v6003_v14 = vshrl.u32 %v5984_v7, 16  ;;  %v5967_v27 = vsel %vm1849_vm7, 0, %v5966_v34  ;;  %v5985_v36 = vrot.slane %v5984_v7, 4 }
 0xd22   : > { %v6008_v16 = vshrl.u32 %v5967_v27, 16  ;;  %v5267_v43 = vadd.f32 %v13152_v21, %v5266_v28 }
 0xd23   : > { %v6225_v46 = vunpack.c.l.b16 %v6001_v31  ;;  %v6004_v0 = vpack.i.b16 %v6003_v14, %v6002_v5  ;;  %v5986_v15 = vsel %vm1849_vm7, 0, %v5985_v36 }
 0xd24   : > { %v6007_v54 = vpack.i.b16 %v5986_v15, %v5967_v27  ;;  %v6009_v37 = vshrl.u32 %v5986_v15, 16  ;;  %6500 = vrot.lane.b32.xlu0 %v13351_v33, %s11154_s24  ;;  %v13371_v61 = vpack.c.bf16 %v5267_v43, %v5267_v43 }
 0xd25   : > { %v6226_v12 = vpack.c.b16 %v6225_v46, %v6224_v13  ;;  %v6251_v20 = vunpack.c.l.b16 %v6004_v0 }
 0xd26   : > { %v6277_v56 = vunpack.c.l.b16 %v6007_v54  ;;  %v6010_v30 = vpack.i.b16 %v6009_v37, %v6008_v16 }
 0xd27   : > { %6496 = vrot.lane.b32.xlu2 %v13351_v33, %s11152_s17  ;;  %6238 = vmatpush.bf16.msra.mxu2 %v6226_v12  ;;  %v6252_v52 = vpack.c.b16 %v6251_v20, %v6250_v6 }
 0xd28   : > { %v6278_v25 = vpack.c.b16 %v6277_v56, %v6276_v44  ;;  %v6303_v8 = vunpack.c.l.b16 %v6010_v30 }
 0xd29   : > { %6492 = vrot.lane.b32.xlu1 %v13351_v33, %s11153_s29  ;;  %6264 = vmatpush.bf16.msrb.mxu3 %v6252_v52 }
 0xd2a   : > { %6290 = vmatpush.bf16.msra.mxu0 %v6278_v25  ;;  %v6304_v35 = vpack.c.b16 %v6303_v8, %v6302_v47 }
 0xd2c   : > { %6316 = vmatpush.bf16.msrb.mxu1 %v6304_v35  ;;  %6976 = vrot.lane.b32.xlu0 %v13364_v59, %s11153_s29 }
 0xd2f   : > { %6502 = vrot.lane.b32.xlu2 %v13336_v62, %s11154_s24 }
 0xd31   : > { %6498 = vrot.lane.b32.xlu1 %v13336_v62, %s11152_s17 }
 0xd39   : > { %6978 = vrot.lane.b32.xlu1 %v13371_v61, %s11153_s29  ;;  %s9240_s29 = sshll.u32 %s14160_s18, 2  ;;  %s14146_s18 = sld [smem:[#allocation47_spill]] }
 0xd52   : > { %v6173_v18 = vpop.xlane.xlu2 %6172 }
 0xd53   : > { %10572 = vrcp.f32 %v6173_v18 }
 0xd59   : > { %v10573_v45 = vpop.eup %10572 }
 0xd5a   : > { %v6176_v19 = vpop.xlane.xlu0 %6175  ;;  %v6203_v39 = vmul.f32 %v10573_v45, %v13223_v53 }
 0xd5b   : > { %10574 = vrcp.f32 %v6176_v19 }
 0xd5c   : > { %v6211_v7 = vpack.c.bf16 %v6203_v39, %v6203_v39 }
 0xd5e   : > { %v6221_v21 = vunpack.c.l.b16 %v6211_v7 }
 0xd61   : > { %v10575_v34 = vpop.eup %10574 }
 0xd62   : > { %v6204_v55 = vmul.f32 %v10575_v34, %v13227_v49  ;;  %v6179_v4 = vpop.xlane.xlu1 %6178 }
 0xd63   : > { %10576 = vrcp.f32 %v6179_v4  ;;  %v6185_v31 = vpop.xlane.xlu0 %6184 }
 0xd64   : > { %v6212_v10 = vpack.c.bf16 %v6204_v55, %v6204_v55  ;;  %v10143_v55 = vld [vmem:[#allocation11 + $0x48] sm:$0xff] }
 0xd65   : > { %6374 = vmatpush.bf16.msrb.mxu2 %v10143_v55  ;;  %v10144_v55 = vld [vmem:[#allocation11 + $0x50] sm:$0xff] }
 0xd66   : > { %v6222_v5 = vunpack.c.l.b16 %v6212_v10 }
 0xd68   : > { %v6223_v48 = vpack.c.b16 %v6222_v5, %v6221_v21 }
 0xd69   : > { %v10577_v27 = vpop.eup %10576 }
 0xd6a   : > { %9681 = vmatmul.msk.bf16.vlgmr.msra.gmra.mxu2 %vm2643_vm1, %v6223_v48  ;;  %v6182_v14 = vpop.xlane.xlu2 %6181  ;;  %v6205_v36 = vmul.f32 %v10577_v27, %v13231_v38  ;;  %v10147_v27 = vld [vmem:[#allocation11 + $0x68] sm:$0xff] }
 0xd6b   : > { %10578 = vrcp.f32 %v6182_v14  ;;  %v6194_v57 = vpop.xlane.xlu0 %6193  ;;  %6442 = vmatpush.bf16.msrb.mxu0 %v10147_v27  ;;  %v10148_v27 = vld [vmem:[#allocation11 + $0x70] sm:$0xff] }
 0xd6c   : > { %10580 = vrcp.f32 %v6185_v31  ;;  %v6213_v2 = vpack.c.bf16 %v6205_v36, %v6205_v36  ;;  %v10145_v31 = vld [vmem:[#allocation11 + $0x58] sm:$0xff] }
 0xd6d   : > { %10582 = vrcp.f32 %v6194_v57  ;;  %6408 = vmatpush.bf16.msra.mxu3 %v10145_v31  ;;  %v10142_v57 = vld [vmem:[#allocation11 + $0x40] sm:$0xff] }
 0xd6e   : > { %v6247_v15 = vunpack.c.l.b16 %v6213_v2  ;;  %v6761_v2 = vshrl.u32 %v13303_v26, 16  ;;  %6375 = vmatpush.bf16.msrb.mxu2 %v10142_v57 }
 0xd71   : > { %v10579_v53 = vpop.eup %10578  ;;  %6409 = vmatpush.bf16.msra.mxu3 %v10144_v55 }
 0xd72   : > { %v6206_v49 = vmul.f32 %v10579_v53, %v13237_v40  ;;  %v6191_v51 = vpop.xlane.xlu2 %6190  ;;  %v10581_v46 = vpop.eup %10580 }
 0xd73   : > { %v6188_v13 = vpop.xlane.xlu1 %6187  ;;  %10584 = vrcp.f32 %v6191_v51  ;;  %v6207_v22 = vmul.f32 %v10581_v46, %v13235_v29  ;;  %v10583_v16 = vpop.eup %10582  ;;  %v10149_v46 = vld [vmem:[#allocation11 + $0x78] sm:$0xff] }
 0xd74   : > { %v6214_v0 = vpack.c.bf16 %v6206_v49, %v6206_v49  ;;  %10586 = vrcp.f32 %v6188_v13  ;;  %v6210_v12 = vmul.f32 %v10583_v16, %v13243_v32  ;;  %6476 = vmatpush.bf16.msra.mxu1 %v10149_v46 }
 0xd75   : > { %v6215_v40 = vpack.c.bf16 %v6207_v22, %v6207_v22 }
 0xd76   : > { %v6248_v54 = vunpack.c.l.b16 %v6214_v0  ;;  %v6218_v44 = vpack.c.bf16 %v6210_v12, %v6210_v12 }
 0xd77   : > { %v6273_v47 = vunpack.c.l.b16 %v6215_v40 }
 0xd78   : > { %v6249_v37 = vpack.c.b16 %v6248_v54, %v6247_v15  ;;  %v6300_v52 = vunpack.c.l.b16 %v6218_v44  ;;  %6477 = vmatpush.bf16.msra.mxu1 %v10148_v27 }
 0xd79   : > { %v10585_v38 = vpop.eup %10584 }
 0xd7a   : > { %v10587_v6 = vpop.eup %10586  ;;  %v6209_v20 = vmul.f32 %v10585_v38, %v13245_v23  ;;  %9682 = vmatmul.msk.bf16.vlgmr.msrb.gmra.mxu3 %vm2643_vm1, %v6249_v37  ;;  %v6737_v28 = vpop.permute.xlu2 %6736 }
 0xd7b   : > { %v6208_v56 = vmul.f32 %v10587_v6, %v13249_v11  ;;  %v6749_v11 = vshrl.u32 %v13284_v50, 16  ;;  %v6760_v39 = vpack.i.b16 %v6737_v28, %v13303_v26  ;;  %v6762_v14 = vshrl.u32 %v6737_v28, 16 }
 0xd7c   : > { %v6217_v30 = vpack.c.bf16 %v6209_v20, %v6209_v20 }
 0xd7d   : > { %v6216_v24 = vpack.c.bf16 %v6208_v56, %v6208_v56  ;;  %v6826_v36 = vperm.slane %v6760_v39, %v11766_v41  ;;  %v6763_v15 = vpack.i.b16 %v6762_v14, %v6761_v2 }
 0xd7e   : > { %v6299_v25 = vunpack.c.l.b16 %v6217_v30  ;;  %v6739_v32 = vpop.permute.xlu0 %6738 }
 0xd7f   : > { %v6274_v29 = vunpack.c.l.b16 %v6216_v24  ;;  %v6755_v5 = vshrl.u32 %v6739_v32, 16  ;;  %v6834_v22 = vrot.slane %v6826_v36, 4  ;;  %v6852_v40 = vperm.slane %v6763_v15, %v11766_v41 }
 0xd80   : > { %v6301_v8 = vpack.c.b16 %v6300_v52, %v6299_v25 }
 0xd81   : > { %v6275_v35 = vpack.c.b16 %v6274_v29, %v6273_v47  ;;  %v6860_v29 = vrot.slane %v6852_v40, 4 }
 0xd82   : > { %9684 = vmatmul.msk.bf16.vlgmr.msrb.gmra.mxu1 %vm2643_vm1, %v6301_v8  ;;  %v6745_v4 = vpop.permute.xlu2 %6744 }
 0xd83   : > { %9683 = vmatmul.msk.bf16.vlgmr.msra.gmra.mxu0 %vm2643_vm1, %v6275_v35  ;;  %v6768_v54 = vshrl.u32 %v6745_v4, 16 }
 0xd86   : > { %v6743_v19 = vpop.permute.xlu0 %6742 }
 0xd87   : > { %v6754_v34 = vpack.i.b16 %v6743_v19, %v6739_v32  ;;  %v6756_v7 = vshrl.u32 %v6743_v19, 16 }
 0xd89   : > { %v6757_v53 = vpack.i.b16 %v6756_v7, %v6755_v5 }
 0xd8b   : > { %v6735_v23 = vpop.permute.xlu1 %6734  ;;  %v6805_v37 = vperm.slane %v6757_v53, %v11766_v41 }
 0xd8c   : > { %v6748_v43 = vpack.i.b16 %v6735_v23, %v13284_v50  ;;  %v6750_v18 = vshrl.u32 %v6735_v23, 16  ;;  %v6779_v50 = vperm.slane %v6754_v34, %v11766_v41 }
 0xd8d   : > { %v6806_v30 = vrot.slane %v6805_v37, 4 }
 0xd8e   : > { %v6751_v10 = vpack.i.b16 %v6750_v18, %v6749_v11  ;;  %v6774_v21 = vperm.slane %v6748_v43, %v11766_v41  ;;  %v6780_v16 = vrot.slane %v6779_v50, 4 }
 0xd90   : > { %v6782_v49 = vrot.slane %v6774_v21, 4  ;;  %v6800_v51 = vperm.slane %v6751_v10, %v11766_v41  ;;  %v6781_v44 = vsel %vm1849_vm7, %v6780_v16, %v6774_v21 }
 0xd91   : > { %v6787_v8 = vperm.slane %v6781_v44, %v11774_v3 }
 0xd92   : > { %v6808_v38 = vrot.slane %v6800_v51, 4  ;;  %v6783_v12 = vsel %vm1849_vm7, %v6779_v50, %v6782_v49  ;;  %v6807_v32 = vsel %vm1849_vm7, %v6806_v30, %v6800_v51 }
 0xd93   : > { %v6741_v45 = vpop.permute.xlu1 %6740  ;;  %v6791_v56 = vperm.slane %v6783_v12, %v11774_v3  ;;  %v6792_v11 = vrot.slane %v6787_v8, 4 }
 0xd94   : > { %v6766_v48 = vpack.i.b16 %v6745_v4, %v6741_v45  ;;  %v6767_v13 = vshrl.u32 %v6741_v45, 16  ;;  %v6809_v52 = vsel %vm1849_vm7, %v6805_v37, %v6808_v38  ;;  %v6813_v45 = vperm.slane %v6807_v32, %v11774_v3  ;;  %v10146_v4 = vld [vmem:[#allocation11 + $0x60] sm:$0xff] }
 0xd95   : > { %v6794_v35 = vrot.slane %v6791_v56, 4  ;;  %v6817_v23 = vperm.slane %v6809_v52, %v11774_v3  ;;  %6443 = vmatpush.bf16.msrb.mxu0 %v10146_v4 }
 0xd96   : > { %v6831_v0 = vperm.slane %v6766_v48, %v11766_v41  ;;  %v6769_v26 = vpack.i.b16 %v6768_v54, %v6767_v13  ;;  %v6793_v48 = vsel %vm1849_vm7, 0, %v6792_v11  ;;  %v6818_v31 = vrot.slane %v6813_v45, 4 }
 0xd97   : > { %v6795_v39 = vsel %vm1849_vm7, 0, %v6794_v35  ;;  %v6820_v34 = vrot.slane %v6817_v23, 4 }
 0xd98   : > { %v6832_v6 = vrot.slane %v6831_v0, 4  ;;  %v6835_v20 = vsel %vm1849_vm7, %v6831_v0, %v6834_v22  ;;  %v6857_v25 = vperm.slane %v6769_v26, %v11766_v41  ;;  %v6879_v14 = vrot.slane %v6795_v39, 4 }
 0xd99   : > { %v6843_v24 = vperm.slane %v6835_v20, %v11774_v3  ;;  %v6819_v13 = vsel %vm1849_vm7, 0, %v6818_v31  ;;  %v6874_v22 = vsel %vm1849_vm7, %v6794_v35, %v6787_v8 }
 0xd9a   : > { %v6833_v47 = vsel %vm1849_vm7, %v6832_v6, %v6826_v36  ;;  %v6858_v18 = vrot.slane %v6857_v25, 4  ;;  %v6861_v19 = vsel %vm1849_vm7, %v6857_v25, %v6860_v29  ;;  %v6821_v36 = vsel %vm1849_vm7, 0, %v6820_v34 }
 0xd9b   : > { %v6839_v28 = vperm.slane %v6833_v47, %v11774_v3  ;;  %v6846_v43 = vrot.slane %v6843_v24, 4  ;;  %v6869_v7 = vperm.slane %v6861_v19, %v11774_v3  ;;  %v6880_v49 = vsel %vm1849_vm7, %v6879_v14, %v6793_v48 }
 0xd9c   : > { %v6859_v5 = vsel %vm1849_vm7, %v6858_v18, %v6852_v40  ;;  %v6898_v51 = vrot.slane %v6821_v36, 4  ;;  %v6884_v54 = vperm.slane %v6880_v49, %v11766_v41  ;;  %v6893_v6 = vsel %vm1849_vm7, %v6820_v34, %v6813_v45 }
 0xd9d   : > { %v6844_v10 = vrot.slane %v6839_v28, 4  ;;  %v6847_v21 = vsel %vm1849_vm7, 0, %v6846_v43  ;;  %v6865_v53 = vperm.slane %v6859_v5, %v11774_v3  ;;  %v6872_v50 = vrot.slane %v6869_v7, 4 }
 0xd9e   : > { %v6917_v57 = vrot.slane %v6847_v21, 4  ;;  %v6899_v16 = vsel %vm1849_vm7, %v6898_v51, %v6819_v13  ;;  %v6912_v26 = vsel %vm1849_vm7, %v6846_v43, %v6839_v28  ;;  %v6878_v20 = vperm.slane %v6874_v22, %v11766_v41 }
 0xd9f   : > { %v6845_v2 = vsel %vm1849_vm7, 0, %v6844_v10  ;;  %v6870_v46 = vrot.slane %v6865_v53, 4  ;;  %v6873_v0 = vsel %vm1849_vm7, 0, %v6872_v50  ;;  %v6885_v40 = vrot.slane %v6884_v54, 4  ;;  %v6495_v54 = vpop.permute.xlu0 %6494 }
 0xda0   : > { %v6918_v15 = vsel %vm1849_vm7, %v6917_v57, %v6845_v2  ;;  %v6936_v38 = vrot.slane %v6873_v0, 4  ;;  %v6903_v44 = vperm.slane %v6899_v16, %v11766_v41  ;;  %v6916_v56 = vperm.slane %v6912_v26, %v11766_v41  ;;  %v6493_v57 = vpop.permute.xlu1 %6492 }
 0xda1   : > { %v6922_v37 = vperm.slane %v6918_v15, %v11766_v41  ;;  %v6871_v12 = vsel %vm1849_vm7, 0, %v6870_v46  ;;  %v6897_v24 = vperm.slane %v6893_v6, %v11766_v41  ;;  %v6886_v25 = vsel %vm1849_vm7, %v6885_v40, %v6878_v20  ;;  %v6497_v15 = vpop.permute.xlu2 %6496 }
 0xda2   : > { %v6937_v30 = vsel %vm1849_vm7, %v6936_v38, %v6871_v12  ;;  %v6904_v47 = vrot.slane %v6903_v44, 4  ;;  %v6931_v29 = vsel %vm1849_vm7, %v6872_v50, %v6865_v53  ;;  %v6890_v8 = vperm.slane %v6886_v25, %v11774_v3 }
 0xda3   : > { %v6923_v52 = vrot.slane %v6922_v37, 4  ;;  %v6941_v28 = vperm.slane %v6937_v30, %v11766_v41  ;;  %v6935_v18 = vperm.slane %v6931_v29, %v11766_v41 }
 0xda4   : > { %v6905_v32 = vsel %vm1849_vm7, %v6904_v47, %v6897_v24  ;;  %v6891_v11 = vrot.slane %v6890_v8, 4  ;;  %v6953_v55 = vshrl.u32 %v6890_v8, 16 }
 0xda5   : > { %v6924_v35 = vsel %vm1849_vm7, %v6923_v52, %v6916_v56  ;;  %v6909_v43 = vperm.slane %v6905_v32, %v11774_v3  ;;  %v6942_v19 = vrot.slane %v6941_v28, 4  ;;  %v6508_v28 = vshrl.u32 %v6493_v57, 16 }
 0xda6   : > { %v6928_v23 = vperm.slane %v6924_v35, %v11774_v3  ;;  %v6892_v21 = vsel %vm1849_vm7, 0, %v6891_v11  ;;  %v6507_v11 = vshrl.u32 %v13351_v33, 16 }
 0xda7   : > { %v6954_v45 = vshrl.u32 %v6909_v43, 16  ;;  %v6910_v39 = vrot.slane %v6909_v43, 4  ;;  %v6943_v7 = vsel %vm1849_vm7, %v6942_v19, %v6935_v18  ;;  %v6952_v10 = vpack.i.b16 %v6909_v43, %v6890_v8  ;;  %v6501_v18 = vpop.permute.xlu0 %6500 }
 0xda8   : > { %v6929_v34 = vrot.slane %v6928_v23, 4  ;;  %v6947_v4 = vperm.slane %v6943_v7, %v11774_v3  ;;  %v6965_v31 = vshrl.u32 %v6928_v23, 16  ;;  %v6959_v49 = vshrl.u32 %v6892_v21, 16  ;;  %v6499_v35 = vpop.permute.xlu1 %6498 }
 0xda9   : > { %v6911_v5 = vsel %vm1849_vm7, 0, %v6910_v39  ;;  %v6955_v48 = vpack.i.b16 %v6954_v45, %v6953_v55  ;;  %v7219_v51 = vunpack.c.l.b16 %v6952_v10  ;;  %v6503_v43 = vpop.permute.xlu2 %6502  ;;  %v6519_v19 = vshrl.u32 %v13336_v62, 16 }
 0xdaa   : > { %v6960_v14 = vshrl.u32 %v6911_v5, 16  ;;  %v6964_v27 = vpack.i.b16 %v6947_v4, %v6928_v23  ;;  %v6966_v36 = vshrl.u32 %v6947_v4, 16  ;;  %v6930_v53 = vsel %vm1849_vm7, 0, %v6929_v34 }
 0xdab   : > { %v6948_v50 = vrot.slane %v6947_v4, 4  ;;  %v6958_v2 = vpack.i.b16 %v6911_v5, %v6892_v21  ;;  %v6971_v37 = vshrl.u32 %v6930_v53, 16  ;;  %v7245_v26 = vunpack.c.l.b16 %v6955_v48 }
 0xdac   : > { %v7220_v13 = vunpack.c.l.b16 %v6964_v27  ;;  %v6967_v46 = vpack.i.b16 %v6966_v36, %v6965_v31  ;;  %v6961_v16 = vpack.i.b16 %v6960_v14, %v6959_v49  ;;  %v6520_v23 = vshrl.u32 %v6495_v54, 16 }
 0xdad   : > { %v6949_v0 = vsel %vm1849_vm7, 0, %v6948_v50  ;;  %v7271_v20 = vunpack.c.l.b16 %v6958_v2  ;;  %v6525_v45 = vshrl.u32 %v6499_v35, 16  ;;  %v6526_v39 = vshrl.u32 %v6503_v43, 16 }
 0xdae   : > { %v6970_v22 = vpack.i.b16 %v6949_v0, %v6930_v53  ;;  %v6972_v38 = vshrl.u32 %v6949_v0, 16  ;;  %v7221_v12 = vpack.c.b16 %v7220_v13, %v7219_v51  ;;  %v7246_v6 = vunpack.c.l.b16 %v6967_v46 }
 0xdaf   : > { %v7297_v24 = vunpack.c.l.b16 %v6961_v16  ;;  %v6521_v34 = vpack.i.b16 %v6520_v23, %v6519_v19  ;;  %v6509_v7 = vpack.i.b16 %v6508_v28, %v6507_v11  ;;  %v6514_v55 = vshrl.u32 %v6501_v18, 16 }
 0xdb0   : > { %v7272_v40 = vunpack.c.l.b16 %v6970_v22  ;;  %v6973_v44 = vpack.i.b16 %v6972_v38, %v6971_v37  ;;  %v7226_v56 = vsel %vm2533_vm8, %v7221_v12, 0  ;;  %v7247_v30 = vpack.c.b16 %v7246_v6, %v7245_v26  ;;  %v13563_v63 = vpop.permute.xlu1 %6978 }
 0xdb1   : > { %7235 = vmatpush.bf16.xpose.msra.mxu2 %v7226_v56  ;;  %v6518_v4 = vpack.i.b16 %v6495_v54, %v13336_v62  ;;  %v6513_v10 = vshrl.u32 %v6497_v15, 16  ;;  %v6506_v21 = vpack.i.b16 %v6493_v57, %v13351_v33  ;;  %v6527_v5 = vpack.i.b16 %v6526_v39, %v6525_v45 }
 0xdb2   : > { %v7273_v52 = vpack.c.b16 %v7272_v40, %v7271_v20  ;;  %v7298_v25 = vunpack.c.l.b16 %v6973_v44  ;;  %v7252_v47 = vsel %vm2533_vm8, %v7247_v30, 0  ;;  %v6610_v48 = vperm.slane %v6521_v34, %v11766_v41 }
 0xdb3   : > { %7261 = vmatpush.bf16.xpose.msrb.mxu3 %v7252_v47  ;;  %v6558_v31 = vperm.slane %v6509_v7, %v11766_v41  ;;  %v6515_v14 = vpack.i.b16 %v6514_v55, %v6513_v10  ;;  %v6524_v27 = vpack.i.b16 %v6503_v43, %v6499_v35  ;;  %v6584_v36 = vperm.slane %v6518_v4, %v11766_v41 }
 0xdb4   : > { %v7278_v29 = vsel %vm2533_vm8, %v7273_v52, 0  ;;  %v7299_v8 = vpack.c.b16 %v7298_v25, %v7297_v24  ;;  %v6532_v53 = vperm.slane %v6506_v21, %v11766_v41  ;;  %v6512_v50 = vpack.i.b16 %v6501_v18, %v6497_v15 }
 0xdb5   : > { %7287 = vmatpush.bf16.xpose.msra.mxu0 %v7278_v29  ;;  %v6615_v2 = vperm.slane %v6527_v5, %v11766_v41  ;;  %v6618_v49 = vrot.slane %v6610_v48, 4  ;;  %v6566_v51 = vrot.slane %v6558_v31, 4  ;;  %v6563_v62 = vperm.slane %v6515_v14, %v11766_v41 }
 0xdb6   : > { %v7304_v32 = vsel %vm2533_vm8, %v7299_v8, 0  ;;  %v6589_v33 = vperm.slane %v6524_v27, %v11766_v41  ;;  %v6592_v57 = vrot.slane %v6584_v36, 4  ;;  %v6540_v13 = vrot.slane %v6532_v53, 4 }
 0xdb7   : > { %7313 = vmatpush.bf16.xpose.msrb.mxu1 %v7304_v32  ;;  %v6537_v46 = vperm.slane %v6512_v50, %v11766_v41  ;;  %v6616_v0 = vrot.slane %v6615_v2, 4  ;;  %v6619_v54 = vsel %vm1849_vm7, %v6615_v2, %v6618_v49  ;;  %v6564_v22 = vrot.slane %v6563_v62, 4 }
 0xdb8   : > { %v6567_v16 = vsel %vm1849_vm7, %v6563_v62, %v6566_v51  ;;  %v6590_v37 = vrot.slane %v6589_v33, 4  ;;  %v6593_v15 = vsel %vm1849_vm7, %v6589_v33, %v6592_v57  ;;  %v6627_v38 = vperm.slane %v6619_v54, %v11774_v3 }
 0xdb9   : > { %v6538_v12 = vrot.slane %v6537_v46, 4  ;;  %v6541_v26 = vsel %vm1849_vm7, %v6537_v46, %v6540_v13  ;;  %v6617_v6 = vsel %vm1849_vm7, %v6616_v0, %v6610_v48  ;;  %v6575_v20 = vperm.slane %v6567_v16, %v11774_v3 }
 0xdba   : > { %v6601_v40 = vperm.slane %v6593_v15, %v11774_v3  ;;  %v6565_v44 = vsel %vm1849_vm7, %v6564_v22, %v6558_v31  ;;  %v6591_v56 = vsel %vm1849_vm7, %v6590_v37, %v6584_v36  ;;  %v6549_v30 = vperm.slane %v6541_v26, %v11774_v3 }
 0xdbb   : > { %v6623_v52 = vperm.slane %v6617_v6, %v11774_v3  ;;  %v6630_v24 = vrot.slane %v6627_v38, 4  ;;  %v6539_v25 = vsel %vm1849_vm7, %v6538_v12, %v6532_v53  ;;  %v6571_v47 = vperm.slane %v6565_v44, %v11774_v3 }
 0xdbc   : > { %v6578_v29 = vrot.slane %v6575_v20, 4  ;;  %v6597_v8 = vperm.slane %v6591_v56, %v11774_v3  ;;  %v6604_v35 = vrot.slane %v6601_v40, 4  ;;  %v6545_v32 = vperm.slane %v6539_v25, %v11774_v3 }
 0xdbd   : > { %v6552_v23 = vrot.slane %v6549_v30, 4  ;;  %v6628_v28 = vrot.slane %v6623_v52, 4  ;;  %v6631_v43 = vsel %vm1849_vm7, 0, %v6630_v24  ;;  %v6576_v18 = vrot.slane %v6571_v47, 4 }
 0xdbe   : > { %v6579_v19 = vsel %vm1849_vm7, 0, %v6578_v29  ;;  %v6602_v11 = vrot.slane %v6597_v8, 4  ;;  %v6605_v45 = vsel %vm1849_vm7, 0, %v6604_v35  ;;  %v6694_v39 = vrot.slane %v6631_v43, 4 }
 0xdbf   : > { %v6550_v34 = vrot.slane %v6545_v32, 4  ;;  %v6553_v7 = vsel %vm1849_vm7, 0, %v6552_v23  ;;  %v6629_v55 = vsel %vm1849_vm7, 0, %v6628_v28  ;;  %v6656_v10 = vrot.slane %v6579_v19, 4 }
 0xdc0   : > { %v6675_v21 = vrot.slane %v6605_v45, 4  ;;  %v6577_v5 = vsel %vm1849_vm7, 0, %v6576_v18  ;;  %v6603_v48 = vsel %vm1849_vm7, 0, %v6602_v11  ;;  %v6637_v31 = vrot.slane %v6553_v7, 4 }
 0xdc1   : > { %v6695_v14 = vsel %vm1849_vm7, %v6694_v39, %v6629_v55  ;;  %v6551_v27 = vsel %vm1849_vm7, 0, %v6550_v34  ;;  %v6657_v36 = vsel %vm1849_vm7, %v6656_v10, %v6577_v5  ;;  %v6689_v57 = vsel %vm1849_vm7, %v6630_v24, %v6623_v52 }
 0xdc2   : > { %v6676_v53 = vsel %vm1849_vm7, %v6675_v21, %v6603_v48  ;;  %v6699_v50 = vperm.slane %v6695_v14, %v11766_v41  ;;  %v6638_v2 = vsel %vm1849_vm7, %v6637_v31, %v6551_v27  ;;  %v6661_v51 = vperm.slane %v6657_v36, %v11766_v41 }
 0xdc3   : > { %v6680_v62 = vperm.slane %v6676_v53, %v11766_v41  ;;  %v6642_v46 = vperm.slane %v6638_v2, %v11766_v41  ;;  %v6651_v54 = vsel %vm1849_vm7, %v6578_v29, %v6571_v47  ;;  %v6670_v22 = vsel %vm1849_vm7, %v6604_v35, %v6597_v8 }
 0xdc4   : > { %v6700_v0 = vrot.slane %v6699_v50, 4  ;;  %v6662_v15 = vrot.slane %v6661_v51, 4  ;;  %v6693_v12 = vperm.slane %v6689_v57, %v11766_v41  ;;  %v6632_v26 = vsel %vm1849_vm7, %v6552_v23, %v6545_v32 }
 0xdc5   : > { %v6681_v38 = vrot.slane %v6680_v62, 4  ;;  %v6643_v20 = vrot.slane %v6642_v46, 4  ;;  %v6655_v40 = vperm.slane %v6651_v54, %v11766_v41  ;;  %v6674_v44 = vperm.slane %v6670_v22, %v11766_v41 }
 0xdc6   : > { %v6701_v56 = vsel %vm1849_vm7, %v6700_v0, %v6693_v12  ;;  %v6636_v30 = vperm.slane %v6632_v26, %v11766_v41 }
 0xdc7   : > { %v6663_v52 = vsel %vm1849_vm7, %v6662_v15, %v6655_v40  ;;  %v6682_v24 = vsel %vm1849_vm7, %v6681_v38, %v6674_v44  ;;  %v6705_v47 = vperm.slane %v6701_v56, %v11774_v3 }
 0xdc8   : > { %v6644_v29 = vsel %vm1849_vm7, %v6643_v20, %v6636_v30  ;;  %v6667_v35 = vperm.slane %v6663_v52, %v11774_v3  ;;  %v6686_v32 = vperm.slane %v6682_v24, %v11774_v3 }
 0xdc9   : > { %v6648_v28 = vperm.slane %v6644_v29, %v11774_v3  ;;  %v6706_v14 = vrot.slane %v6705_v47, 4  ;;  %v6724_v0 = vshrl.u32 %v6705_v47, 16 }
 0xdca   : > { %v6722_v43 = vpack.i.b16 %v6705_v47, %v6686_v32  ;;  %v6668_v51 = vrot.slane %v6667_v35, 4  ;;  %v6687_v62 = vrot.slane %v6686_v32, 4 }
 0xdcb   : > { %v6710_v19 = vpack.i.b16 %v6667_v35, %v6648_v28  ;;  %v6707_v46 = vsel %vm1849_vm7, 0, %v6706_v14  ;;  %v6711_v12 = vshrl.u32 %v6648_v28, 16 }
 0xdcc   : > { %v7217_v34 = vunpack.c.l.b16 %v6722_v43  ;;  %v6669_v54 = vsel %vm1849_vm7, 0, %v6668_v51  ;;  %v6688_v22 = vsel %vm1849_vm7, 0, %v6687_v62  ;;  %v6730_v15 = vshrl.u32 %v6707_v46, 16 }
 0xdcd   : > { %v7216_v48 = vunpack.c.l.b16 %v6710_v19  ;;  %v6729_v20 = vshrl.u32 %v6688_v22, 16  ;;  %v6728_v30 = vpack.i.b16 %v6707_v46, %v6688_v22 }
 0xdcf   : > { %v7218_v50 = vpack.c.b16 %v7217_v34, %v7216_v48  ;;  %v6731_v56 = vpack.i.b16 %v6730_v15, %v6729_v20 }
 0xdd1   : > { %v7295_v29 = vunpack.c.l.b16 %v6731_v56 }
 0xded   : > { %v6240_v4 = vpop.f32.mrf.mxu2 }
 0xdee   : > { %v6323_v49 = vpack.c.bf16 %v6240_v4, %v6240_v4 }
 0xdf0   : > { %v6350_v16 = vunpack.c.l.b16 %v6323_v49 }
 0xdf5   : > { %v6242_v33 = vpop.f32.mrf.mxu2 }
 0xdf6   : > { %v6324_v13 = vpack.c.bf16 %v6242_v33, %v6242_v33 }
 0xdf8   : > { %v6351_v37 = vunpack.c.l.b16 %v6324_v13  ;;  %v6649_v13 = vrot.slane %v6648_v28, 4 }
 0xdfa   : > { %v6352_v6 = vpack.c.b16 %v6351_v37, %v6350_v16  ;;  %v6712_v16 = vshrl.u32 %v6667_v35, 16  ;;  %v6723_v37 = vshrl.u32 %v6686_v32, 16  ;;  %v6650_v38 = vsel %vm1849_vm7, 0, %v6649_v13 }
 0xdfb   : > { %v6717_v44 = vshrl.u32 %v6650_v38, 16 }
 0xdfc   : > { %9693 = vmatmul.msk.bf16.vlgmr.msrb.gmra.mxu2 %vm2533_vm8, %v6352_v6  ;;  %v6725_v26 = vpack.i.b16 %v6724_v0, %v6723_v37  ;;  %v6718_v6 = vshrl.u32 %v6669_v54, 16  ;;  %v6713_v40 = vpack.i.b16 %v6712_v16, %v6711_v12 }
 0xdfd   : > { %v6266_v25 = vpop.f32.mrf.mxu3 }
 0xdfe   : > { %v6325_v18 = vpack.c.bf16 %v6266_v25, %v6266_v25  ;;  %v7243_v52 = vunpack.c.l.b16 %v6725_v26  ;;  %v6719_v24 = vpack.i.b16 %v6718_v6, %v6717_v44  ;;  %v6716_v25 = vpack.i.b16 %v6669_v54, %v6650_v38 }
 0xdff   : > { %v6318_v8 = vpop.f32.mrf.mxu1  ;;  %v7242_v47 = vunpack.c.l.b16 %v6713_v40  ;;  %v13565_v40 = vpop.permute.xlu0 %6976 }
 0xe00   : > { %v6292_v23 = vpop.f32.mrf.mxu0  ;;  %v6329_v45 = vpack.c.bf16 %v6318_v8, %v6318_v8  ;;  %v6384_v4 = vunpack.c.l.b16 %v6325_v18  ;;  %v7269_v8 = vunpack.c.l.b16 %v6728_v30  ;;  %v7294_v35 = vunpack.c.l.b16 %v6719_v24 }
 0xe01   : > { %v6327_v7 = vpack.c.bf16 %v6292_v23, %v6292_v23  ;;  %v7244_v23 = vpack.c.b16 %v7243_v52, %v7242_v47  ;;  %v7268_v32 = vunpack.c.l.b16 %v6716_v25 }
 0xe02   : > { %v6452_v27 = vunpack.c.l.b16 %v6329_v45  ;;  %v7296_v43 = vpack.c.b16 %v7295_v29, %v7294_v35 }
 0xe03   : > { %v6418_v2 = vunpack.c.l.b16 %v6327_v7  ;;  %v7270_v28 = vpack.c.b16 %v7269_v8, %v7268_v32 }
 0xe05   : > { %v6268_v11 = vpop.f32.mrf.mxu3 }
 0xe06   : > { %v6326_v39 = vpack.c.bf16 %v6268_v11, %v6268_v11 }
 0xe07   : > { %v6320_v55 = vpop.f32.mrf.mxu1 }
 0xe08   : > { %v6385_v10 = vunpack.c.l.b16 %v6326_v39  ;;  %v6294_v21 = vpop.f32.mrf.mxu0  ;;  %v6330_v5 = vpack.c.bf16 %v6320_v55, %v6320_v55 }
 0xe09   : > { %v6328_v31 = vpack.c.bf16 %v6294_v21, %v6294_v21 }
 0xe0a   : > { %v6386_v36 = vpack.c.b16 %v6385_v10, %v6384_v4  ;;  %v6453_v53 = vunpack.c.l.b16 %v6330_v5 }
 0xe0b   : > { %v6419_v49 = vunpack.c.l.b16 %v6328_v31 }
 0xe0c   : > { %v6454_v33 = vpack.c.b16 %v6453_v53, %v6452_v27  ;;  %9702 = vmatmul.msk.bf16.vlgmr.msra.gmra.mxu3 %vm2533_vm8, %v6386_v36  ;;  %9721 = vmatmul.msk.bf16.vlgmr.msra.gmra.mxu2 %vm2533_vm8, %v7218_v50 }
 0xe0d   : > { %v6420_v57 = vpack.c.b16 %v6419_v49, %v6418_v2 }
 0xe0e   : > { %9720 = vmatmul.msk.bf16.vlgmr.msra.gmra.mxu1 %vm2533_vm8, %v6454_v33 }
 0xe0f   : > { %9711 = vmatmul.msk.bf16.vlgmr.msrb.gmra.mxu0 %vm2533_vm8, %v6420_v57 }
 0xe1c   : > { %9722 = vmatmul.msk.bf16.vlgmr.msrb.gmra.mxu3 %vm2533_vm8, %v7244_v23 }
 0xe1e   : > { %9724 = vmatmul.msk.bf16.vlgmr.msrb.gmra.mxu1 %vm2533_vm8, %v7296_v43 }
 0xe1f   : > { %9723 = vmatmul.msk.bf16.vlgmr.msra.gmra.mxu0 %vm2533_vm8, %v7270_v28 }
 0xe7f   : > { %v6377_v18 = vpop.f32.mrf.mxu2 }
 0xe87   : > { %v6379_v19 = vpop.f32.mrf.mxu2 }
 0xe8b   : > { %v6479_v45 = vpop.f32.mrf.mxu1 }
 0xe8c   : > { %v6445_v11 = vpop.f32.mrf.mxu0 }
 0xe8f   : > { %v6411_v39 = vpop.f32.mrf.mxu3  ;;  %v7237_v34 = vpop.f32.mrf.mxu2 }
 0xe90   : > { %v6484_v7 = vadd.f32 %v6411_v39, %v6377_v18  ;;  %v7320_v55 = vsel %vm12356_vm3, -1e+09, %v7237_v34 }
 0xe91   : > { %v7328_v4 = vsel %vm2643_vm1, %v7320_v55, -inf }
 0xe92   : > { %v6486_v10 = vadd.f32 %v6484_v7, %v6445_v11  ;;  %7329 = vmax.xlane.f32.xlu1 %v7328_v4 }
 0xe93   : > { %v6481_v48 = vpop.f32.mrf.mxu1 }
 0xe94   : > { %v13530_v21 = vadd.f32 %v6486_v10, %v6479_v45  ;;  %v6447_v5 = vpop.f32.mrf.mxu0 }
 0xe97   : > { %v6413_v31 = vpop.f32.mrf.mxu3  ;;  %v7239_v14 = vpop.f32.mrf.mxu2 }
 0xe98   : > { %v6485_v27 = vadd.f32 %v6413_v31, %v6379_v19  ;;  %v7321_v36 = vsel %vm12356_vm3, -1e+09, %v7239_v14 }
 0xe99   : > { %v7331_v53 = vsel %vm2643_vm1, %v7321_v36, -inf }
 0xe9a   : > { %v6487_v50 = vadd.f32 %v6485_v27, %v6447_v5  ;;  %7332 = vmax.xlane.f32.xlu0 %v7331_v53 }
 0xe9b   : > { %v7315_v33 = vpop.f32.mrf.mxu1 }
 0xe9c   : > { %v13535_v2 = vadd.f32 %v6487_v50, %v6481_v48  ;;  %v7289_v49 = vpop.f32.mrf.mxu0  ;;  %v7326_v12 = vsel %vm12356_vm3, -1e+09, %v7315_v33 }
 0xe9d   : > { %v7324_v0 = vsel %vm12356_vm3, -1e+09, %v7289_v49  ;;  %v7346_v6 = vsel %vm2643_vm1, %v7326_v12, -inf  ;;  %v13584_v49 = vld [vmem:[%s14129_s26 + $0x1] ss:$0 sm:$0xff] }
 0xe9e   : > { %v7340_v37 = vsel %vm2643_vm1, %v7324_v0, -inf }
 0xe9f   : > { %v7263_v51 = vpop.f32.mrf.mxu3 }
 0xea0   : > { %v7322_v62 = vsel %vm12356_vm3, -1e+09, %v7263_v51 }
 0xea1   : > { %v7334_v57 = vsel %vm2643_vm1, %v7322_v62, -inf }
 0xea2   : > { %7335 = vmax.xlane.f32.xlu2 %v7334_v57 }
 0xea3   : > { %v7317_v38 = vpop.f32.mrf.mxu1 }
 0xea4   : > { %v7291_v13 = vpop.f32.mrf.mxu0  ;;  %v7327_v26 = vsel %vm12356_vm3, -1e+09, %v7317_v38 }
 0xea5   : > { %v7325_v46 = vsel %vm12356_vm3, -1e+09, %v7291_v13  ;;  %v7349_v20 = vsel %vm2643_vm1, %v7327_v26, -inf  ;;  %v7699_v13 = vadd.f32 %v13584_v49, %v13530_v21 }
 0xea6   : > { %v7343_v54 = vsel %vm2643_vm1, %v7325_v46, -inf }
 0xea7   : > { %7344 = vmax.xlane.f32.xlu0 %v7343_v54  ;;  %v7265_v22 = vpop.f32.mrf.mxu3  ;;  %v6990_v54 = vpack.i.b16 %v13565_v40, %v13364_v59 }
 0xea8   : > { %v7323_v16 = vsel %vm12356_vm3, -1e+09, %v7265_v22 }
 0xea9   : > { %v7337_v15 = vsel %vm2643_vm1, %v7323_v16, -inf }
 0xeaa   : > { %7338 = vmax.xlane.f32.xlu1 %v7337_v15  ;;  %7341 = vmax.xlane.f32.xlu2 %v7340_v37  ;;  %v13603_v37 = vadd.f32 %v7699_v13, %v12770_v58  ;;  %v7700_v58 = vadd.f32 %v13584_v49, %v13535_v2 }
 0xeb2   : > { %7347 = vmax.xlane.f32.xlu1 %v7346_v6  ;;  %7350 = vmax.xlane.f32.xlu2 %v7349_v20 }
 0xebb   : > { %6982 = vrot.lane.b32.xlu0 %v13371_v61, %s11152_s17 }
 0xec3   : > { %6984 = vrot.lane.b32.xlu0 %v13364_v59, %s11154_s24 }
 0xeca   : > { %6980 = vrot.lane.b32.xlu2 %v13364_v59, %s11152_s17  ;;  %s14139_s17 = sld [smem:[#allocation33_spill]] }
 0xecb   : > { %6986 = vrot.lane.b32.xlu1 %v13371_v61, %s11154_s24 }
 0xed0   : > { %s13716_s24 = scalar_lea.vmem %s14139_s17, %s9240_s29  ;;  %s14149_s17 = smov %s14148_s15 }
 0xed1   : > { %s9231_s29 = sshll.u32 %s1165_s22, 4 }
 0xed2   : > { %s1167_s1 = scalar_lea.vmem [#allocation22], %s9231_s29  ;;  %s11032_s29 = scalar_lea.hbm %s14149_s17, 32 }
 0xed3   : > { %s8958_s2 = sshll.u32 %s1167_s1, 4  ;;  %s8959_s2 = int_to_ptr.vmem [resolvable:$true] %s8958_s2 }
 0xf05   : > { %v7330_v44 = vpop.xlane.xlu1 %7329 }
 0xf06   : > { %v7352_v56 = vsub.f32 %v7320_v55, %v7330_v44 }
 0xf08   : > { %v7360_v30 = vmul.f32 1.442695, %v7352_v56 }
 0xf0a   : > { %10588 = vpow2.f32 %v7360_v30 }
 0xf0d   : > { %v7333_v52 = vpop.xlane.xlu0 %7332 }
 0xf0e   : > { %v7353_v24 = vsub.f32 %v7321_v36, %v7333_v52 }
 0xf10   : > { %v13567_v25 = vpop.eup %10588  ;;  %v7362_v47 = vmul.f32 1.442695, %v7353_v24  ;;  %v7003_v24 = vshrl.u32 %v13371_v61, 16 }
 0xf11   : > { %v7376_v29 = vsel %vm2643_vm1, %v13567_v25, 0.0 }
 0xf12   : > { %10590 = vpow2.f32 %v7362_v47  ;;  %7377 = vadd.xlane.f32.xlu2 %v7376_v29  ;;  %v7002_v47 = vpack.i.b16 %v13563_v63, %v13371_v61 }
 0xf15   : > { %v7336_v8 = vpop.xlane.xlu2 %7335 }
 0xf16   : > { %v7354_v23 = vsub.f32 %v7322_v62, %v7336_v8 }
 0xf18   : > { %v13571_v35 = vpop.eup %10590  ;;  %v7364_v32 = vmul.f32 1.442695, %v7354_v23  ;;  %v13622_v23 = vadd.f32 %v7700_v58, %v12768_v1 }
 0xf19   : > { %v7379_v43 = vsel %vm2643_vm1, %v13571_v35, 0.0 }
 0xf1a   : > { %10592 = vpow2.f32 %v7364_v32  ;;  %v7345_v28 = vpop.xlane.xlu0 %7344  ;;  %7380 = vadd.xlane.f32.xlu0 %v7379_v43 }
 0xf1b   : > { %v7357_v18 = vsub.f32 %v7325_v46, %v7345_v28 }
 0xf1d   : > { %v7370_v19 = vmul.f32 1.442695, %v7357_v18  ;;  %v7339_v11 = vpop.xlane.xlu1 %7338  ;;  %v7342_v45 = vpop.xlane.xlu2 %7341 }
 0xf1e   : > { %v7355_v39 = vsub.f32 %v7323_v16, %v7339_v11  ;;  %v7356_v34 = vsub.f32 %v7324_v0, %v7342_v45  ;;  %v6992_v0 = vshrl.u32 %v13565_v40, 16  ;;  %v6991_v16 = vshrl.u32 %v13364_v59, 16 }
 0xf1f   : > { %10594 = vpow2.f32 %v7370_v19  ;;  %v7004_v59 = vshrl.u32 %v13563_v63, 16  ;;  %v7068_v11 = vperm.slane %v7002_v47, %v11766_v41 }
 0xf20   : > { %v13575_v7 = vpop.eup %10592  ;;  %v7366_v55 = vmul.f32 1.442695, %v7355_v39  ;;  %v7368_v4 = vmul.f32 1.442695, %v7356_v34 }
 0xf21   : > { %v7382_v10 = vsel %vm2643_vm1, %v13575_v7, 0.0  ;;  %v7005_v2 = vpack.i.b16 %v7004_v59, %v7003_v24 }
 0xf22   : > { %10596 = vpow2.f32 %v7366_v55  ;;  %7383 = vadd.xlane.f32.xlu1 %v7382_v10 }
 0xf23   : > { %10598 = vpow2.f32 %v7368_v4  ;;  %v7094_v1 = vperm.slane %v7005_v2, %v11766_v41 }
 0xf25   : > { %v7348_v5 = vpop.xlane.xlu1 %7347  ;;  %v7351_v48 = vpop.xlane.xlu2 %7350 }
 0xf26   : > { %v13579_v31 = vpop.eup %10594  ;;  %v7358_v14 = vsub.f32 %v7326_v12, %v7348_v5  ;;  %v7359_v27 = vsub.f32 %v7327_v26, %v7351_v48  ;;  %v6993_v12 = vpack.i.b16 %v6992_v0, %v6991_v16  ;;  %v7016_v26 = vperm.slane %v6990_v54, %v11766_v41 }
 0xf27   : > { %v7391_v33 = vsel %vm2643_vm1, %v13579_v31, 0.0  ;;  %v7076_v0 = vrot.slane %v7068_v11, 4 }
 0xf28   : > { %v13581_v36 = vpop.eup %10596  ;;  %v7372_v53 = vmul.f32 1.442695, %v7358_v14  ;;  %v7374_v50 = vmul.f32 1.442695, %v7359_v27  ;;  %v7042_v40 = vperm.slane %v6993_v12, %v11766_v41  ;;  %v7024_v52 = vrot.slane %v7016_v26, 4 }
 0xf29   : > { %v13586_v51 = vpop.eup %10598  ;;  %v7385_v62 = vsel %vm2643_vm1, %v13581_v36, 0.0  ;;  %v7102_v12 = vrot.slane %v7094_v1, 4 }
 0xf2a   : > { %10600 = vpow2.f32 %v7372_v53  ;;  %7386 = vadd.xlane.f32.xlu2 %v7385_v62  ;;  %v7388_v57 = vsel %vm2643_vm1, %v13586_v51, 0.0  ;;  %7392 = vadd.xlane.f32.xlu1 %v7391_v33  ;;  %v7050_v32 = vrot.slane %v7042_v40, 4 }
 0xf2b   : > { %10602 = vpow2.f32 %v7374_v50  ;;  %7389 = vadd.xlane.f32.xlu0 %v7388_v57 }
 0xf2d   : > { %v6983_v46 = vpop.permute.xlu0 %6982  ;;  %v6981_v6 = vpop.permute.xlu2 %6980 }
 0xf2e   : > { %v6997_v44 = vshrl.u32 %v6981_v6, 16  ;;  %v7009_v10 = vshrl.u32 %v6983_v46, 16 }
 0xf30   : > { %v13599_v22 = vpop.eup %10600 }
 0xf31   : > { %v13605_v15 = vpop.eup %10602  ;;  %v7394_v38 = vsel %vm2643_vm1, %v13599_v22, 0.0 }
 0xf32   : > { %7395 = vadd.xlane.f32.xlu2 %v7394_v38  ;;  %v7397_v21 = vsel %vm2643_vm1, %v13605_v15, 0.0  ;;  %7711 = vadd.xlane.f32.xlu1 %v13603_v37 }
 0xf33   : > { %7398 = vadd.xlane.f32.xlu0 %v7397_v21 }
 0xf35   : > { %v6985_v20 = vpop.permute.xlu0 %6984 }
 0xf36   : > { %v6996_v56 = vpack.i.b16 %v6985_v20, %v6981_v6  ;;  %v6998_v30 = vshrl.u32 %v6985_v20, 16 }
 0xf38   : > { %v6999_v29 = vpack.i.b16 %v6998_v30, %v6997_v44  ;;  %v7021_v8 = vperm.slane %v6996_v56, %v11766_v41 }
 0xf3a   : > { %v7022_v43 = vrot.slane %v7021_v8, 4  ;;  %v7025_v28 = vsel %vm1849_vm7, %v7021_v8, %v7024_v52  ;;  %v7047_v18 = vperm.slane %v6999_v29, %v11766_v41  ;;  %7713 = vadd.xlane.f32.xlu2 %v13622_v23 }
 0xf3b   : > { %v7033_v19 = vperm.slane %v7025_v28, %v11774_v3 }
 0xf3c   : > { %v7023_v61 = vsel %vm1849_vm7, %v7022_v43, %v7016_v26  ;;  %v7048_v63 = vrot.slane %v7047_v18, 4  ;;  %v7051_v45 = vsel %vm1849_vm7, %v7047_v18, %v7050_v32 }
 0xf3d   : > { %v7029_v39 = vperm.slane %v7023_v61, %v11774_v3  ;;  %v7036_v34 = vrot.slane %v7033_v19, 4  ;;  %v7059_v55 = vperm.slane %v7051_v45, %v11774_v3  ;;  %v6987_v4 = vpop.permute.xlu1 %6986 }
 0xf3e   : > { %v7049_v5 = vsel %vm1849_vm7, %v7048_v63, %v7042_v40  ;;  %v7008_v48 = vpack.i.b16 %v6987_v4, %v6983_v46  ;;  %v7010_v14 = vshrl.u32 %v6987_v4, 16 }
 0xf3f   : > { %v7034_v27 = vrot.slane %v7029_v39, 4  ;;  %v7037_v53 = vsel %vm1849_vm7, 0, %v7036_v34  ;;  %v7055_v50 = vperm.slane %v7049_v5, %v11774_v3  ;;  %v7062_v62 = vrot.slane %v7059_v55, 4 }
 0xf40   : > { %v7121_v33 = vrot.slane %v7037_v53, 4  ;;  %v7011_v57 = vpack.i.b16 %v7010_v14, %v7009_v10  ;;  %v7073_v13 = vperm.slane %v7008_v48, %v11766_v41  ;;  %v7116_v58 = vsel %vm1849_vm7, %v7036_v34, %v7029_v39 }
 0xf41   : > { %v7035_v54 = vsel %vm1849_vm7, 0, %v7034_v27  ;;  %v7060_v16 = vrot.slane %v7055_v50, 4  ;;  %v7063_v38 = vsel %vm1849_vm7, 0, %v7062_v62  ;;  %v7135_v24 = vsel %vm1849_vm7, %v7062_v62, %v7055_v50 }
 0xf42   : > { %v7122_v46 = vsel %vm1849_vm7, %v7121_v33, %v7035_v54  ;;  %v7140_v21 = vrot.slane %v7063_v38, 4  ;;  %v7074_v26 = vrot.slane %v7073_v13, 4  ;;  %v7077_v20 = vsel %vm1849_vm7, %v7073_v13, %v7076_v0 }
 0xf43   : > { %v7061_v6 = vsel %vm1849_vm7, 0, %v7060_v16  ;;  %v7126_v59 = vperm.slane %v7122_v46, %v11766_v41  ;;  %v7085_v56 = vperm.slane %v7077_v20, %v11774_v3  ;;  %v7099_v30 = vperm.slane %v7011_v57, %v11766_v41 }
 0xf44   : > { %v7141_v40 = vsel %vm1849_vm7, %v7140_v21, %v7061_v6  ;;  %v7075_v44 = vsel %vm1849_vm7, %v7074_v26, %v7068_v11  ;;  %v7120_v43 = vperm.slane %v7116_v58, %v11766_v41  ;;  %v7139_v11 = vperm.slane %v7135_v24, %v11766_v41 }
 0xf45   : > { %v7127_v52 = vrot.slane %v7126_v59, 4  ;;  %v7145_v47 = vperm.slane %v7141_v40, %v11766_v41  ;;  %v7081_v29 = vperm.slane %v7075_v44, %v11774_v3  ;;  %v7088_v8 = vrot.slane %v7085_v56, 4 }
 0xf46   : > { %v7100_v2 = vrot.slane %v7099_v30, 4  ;;  %v7103_v32 = vsel %vm1849_vm7, %v7099_v30, %v7102_v12 }
 0xf47   : > { %v7086_v28 = vrot.slane %v7081_v29, 4  ;;  %v7111_v18 = vperm.slane %v7103_v32, %v11774_v3  ;;  %v7146_v19 = vrot.slane %v7145_v47, 4  ;;  %v7089_v61 = vsel %vm1849_vm7, 0, %v7088_v8 }
 0xf48   : > { %v7101_v63 = vsel %vm1849_vm7, %v7100_v2, %v7094_v1  ;;  %v7128_v55 = vsel %vm1849_vm7, %v7127_v52, %v7120_v43  ;;  %v7159_v4 = vrot.slane %v7089_v61, 4  ;;  %v7154_v27 = vsel %vm1849_vm7, %v7088_v8, %v7081_v29 }
 0xf49   : > { %v7087_v45 = vsel %vm1849_vm7, 0, %v7086_v28  ;;  %v7107_v39 = vperm.slane %v7101_v63, %v11774_v3  ;;  %v7114_v34 = vrot.slane %v7111_v18, 4  ;;  %v7147_v10 = vsel %vm1849_vm7, %v7146_v19, %v7139_v11 }
 0xf4a   : > { %v7151_v14 = vperm.slane %v7147_v10, %v11774_v3  ;;  %v7160_v53 = vsel %vm1849_vm7, %v7159_v4, %v7087_v45  ;;  %v7132_v50 = vperm.slane %v7128_v55, %v11774_v3  ;;  %v7158_v54 = vperm.slane %v7154_v27, %v11766_v41 }
 0xf4b   : > { %v7112_v5 = vrot.slane %v7107_v39, 4  ;;  %v7115_v48 = vsel %vm1849_vm7, 0, %v7114_v34  ;;  %v7164_v33 = vperm.slane %v7160_v53, %v11766_v41  ;;  %v7173_v57 = vsel %vm1849_vm7, %v7114_v34, %v7107_v39 }
 0xf4c   : > { %v7178_v1 = vrot.slane %v7115_v48, 4  ;;  %v7152_v0 = vrot.slane %v7151_v14, 4  ;;  %v7133_v12 = vrot.slane %v7132_v50, 4  ;;  %v7177_v46 = vperm.slane %v7173_v57, %v11766_v41 }
 0xf4d   : > { %v7113_v62 = vsel %vm1849_vm7, 0, %v7112_v5  ;;  %v7165_v16 = vrot.slane %v7164_v33, 4  ;;  %v7196_v6 = vshrl.u32 %v7151_v14, 16  ;;  %v7195_v40 = vshrl.u32 %v7132_v50, 16 }
 0xf4e   : > { %v7179_v13 = vsel %vm1849_vm7, %v7178_v1, %v7113_v62  ;;  %v7153_v59 = vsel %vm1849_vm7, 0, %v7152_v0  ;;  %v7194_v56 = vpack.i.b16 %v7151_v14, %v7132_v50  ;;  %v7134_v30 = vsel %vm1849_vm7, 0, %v7133_v12 }
 0xf4f   : > { %v7183_v38 = vperm.slane %v7179_v13, %v11766_v41  ;;  %v7166_v21 = vsel %vm1849_vm7, %v7165_v16, %v7158_v54  ;;  %v7197_v24 = vpack.i.b16 %v7196_v6, %v7195_v40  ;;  %v7202_v41 = vshrl.u32 %v7153_v59, 16 }
 0xf50   : > { %v7170_v58 = vperm.slane %v7166_v21, %v11774_v3  ;;  %v7200_v43 = vpack.i.b16 %v7153_v59, %v7134_v30  ;;  %v7201_v28 = vshrl.u32 %v7134_v30, 16  ;;  %v7429_v18 = vunpack.c.l.b16 %v7194_v56 }
 0xf51   : > { %v7184_v26 = vrot.slane %v7183_v38, 4  ;;  %v7455_v55 = vunpack.c.l.b16 %v7197_v24 }
 0xf52   : > { %v7171_v52 = vrot.slane %v7170_v58, 4  ;;  %v7207_v47 = vshrl.u32 %v7170_v58, 16  ;;  %v7203_v63 = vpack.i.b16 %v7202_v41, %v7201_v28  ;;  %v7481_v10 = vunpack.c.l.b16 %v7200_v43 }
 0xf53   : > { %v7185_v20 = vsel %vm1849_vm7, %v7184_v26, %v7177_v46 }
 0xf54   : > { %v7189_v44 = vperm.slane %v7185_v20, %v11774_v3  ;;  %v7172_v2 = vsel %vm1849_vm7, 0, %v7171_v52  ;;  %v7507_v53 = vunpack.c.l.b16 %v7203_v63 }
 0xf55   : > { %v7213_v45 = vshrl.u32 %v7172_v2, 16 }
 0xf56   : > { %v7206_v29 = vpack.i.b16 %v7189_v44, %v7170_v58  ;;  %v7208_v8 = vshrl.u32 %v7189_v44, 16  ;;  %v7190_v32 = vrot.slane %v7189_v44, 4 }
 0xf58   : > { %v7430_v19 = vunpack.c.l.b16 %v7206_v29  ;;  %v7209_v11 = vpack.i.b16 %v7208_v8, %v7207_v47  ;;  %v7191_v61 = vsel %vm1849_vm7, 0, %v7190_v32 }
 0xf59   : > { %v7212_v3 = vpack.i.b16 %v7191_v61, %v7172_v2  ;;  %v7214_v39 = vshrl.u32 %v7191_v61, 16 }
 0xf5a   : > { %v7431_v34 = vpack.c.b16 %v7430_v19, %v7429_v18  ;;  %v7456_v4 = vunpack.c.l.b16 %v7209_v11 }
 0xf5b   : > { %v7482_v5 = vunpack.c.l.b16 %v7212_v3  ;;  %v7215_v48 = vpack.i.b16 %v7214_v39, %v7213_v45 }
 0xf5c   : > { %7443 = vmatpush.bf16.msrb.mxu2 %v7431_v34  ;;  %v7457_v14 = vpack.c.b16 %v7456_v4, %v7455_v55 }
 0xf5d   : > { %v7483_v27 = vpack.c.b16 %v7482_v5, %v7481_v10  ;;  %v7508_v1 = vunpack.c.l.b16 %v7215_v48  ;;  %v10151_v10 = vld [vmem:[#allocation11 + $0x48] sm:$0xff]  ;;  %v10150_v48 = vld [vmem:[#allocation11 + $0x40] sm:$0xff] }
 0xf5e   : > { %7469 = vmatpush.bf16.msra.mxu3 %v7457_v14  ;;  %v10155_v5 = vld [vmem:[#allocation11 + $0x68] sm:$0xff]  ;;  %v10154_v14 = vld [vmem:[#allocation11 + $0x60] sm:$0xff] }
 0xf5f   : > { %7495 = vmatpush.bf16.msrb.mxu0 %v7483_v27  ;;  %v7509_v50 = vpack.c.b16 %v7508_v1, %v7507_v53  ;;  %v10152_v53 = vld [vmem:[#allocation11 + $0x50] sm:$0xff] }
 0xf60   : > { %7578 = vmatpush.bf16.msra.mxu2 %v10151_v10  ;;  %v10156_v1 = vld [vmem:[#allocation11 + $0x70] sm:$0xff] }
 0xf61   : > { %7521 = vmatpush.bf16.msra.mxu1 %v7509_v50 }
 0xf63   : > { %7646 = vmatpush.bf16.msra.mxu0 %v10155_v5  ;;  %v9827_v5 = vld [vmem:[#allocation13 + $0xf0] sm:$0xf] }
 0xf64   : > { %7579 = vmatpush.bf16.msra.mxu2 %v10150_v48  ;;  %v10173_v48 = vld [vmem:[#allocation13 + $0xf4] sm:$0xf0] }
 0xf67   : > { %7647 = vmatpush.bf16.msra.mxu0 %v10154_v14  ;;  %v9828_v14 = vor.u32 %v10173_v48, %v9827_v5  ;;  %v10160_v5 = vld [vmem:[#allocation13 + $0x94] sm:$0xf]  ;;  %v9781_v48 = vld [vmem:[#allocation13 + $0x98] sm:$0xf0] }
 0xf85   : > { %v7378_v62 = vpop.xlane.xlu2 %7377 }
 0xf86   : > { %10604 = vrcp.f32 %v7378_v62 }
 0xf8c   : > { %v10605_v57 = vpop.eup %10604 }
 0xf8d   : > { %v7381_v33 = vpop.xlane.xlu0 %7380  ;;  %v7408_v13 = vmul.f32 %v10605_v57, %v13567_v25 }
 0xf8e   : > { %10606 = vrcp.f32 %v7381_v33 }
 0xf8f   : > { %v7416_v54 = vpack.c.bf16 %v7408_v13, %v7408_v13 }
 0xf91   : > { %v7426_v46 = vunpack.c.l.b16 %v7416_v54 }
 0xf94   : > { %v10607_v0 = vpop.eup %10606 }
 0xf95   : > { %v7409_v16 = vmul.f32 %v10607_v0, %v13571_v35  ;;  %v7384_v38 = vpop.xlane.xlu1 %7383 }
 0xf96   : > { %10608 = vrcp.f32 %v7384_v38 }
 0xf97   : > { %v7417_v12 = vpack.c.bf16 %v7409_v16, %v7409_v16 }
 0xf99   : > { %v7427_v21 = vunpack.c.l.b16 %v7417_v12 }
 0xf9b   : > { %v7428_v26 = vpack.c.b16 %v7427_v21, %v7426_v46 }
 0xf9c   : > { %v10609_v59 = vpop.eup %10608 }
 0xf9d   : > { %v7387_v6 = vpop.xlane.xlu2 %7386  ;;  %v7393_v58 = vpop.xlane.xlu1 %7392  ;;  %9725 = vmatmul.msk.bf16.vlgmr.msrb.gmra.mxu2 %vm2643_vm1, %v7428_v26  ;;  %v7410_v25 = vmul.f32 %v10609_v59, %v13575_v7 }
 0xf9e   : > { %10610 = vrcp.f32 %v7387_v6  ;;  %v7390_v20 = vpop.xlane.xlu0 %7389  ;;  %7911 = vmatpush.bf16.msrb.mxu2 %v9828_v14 }
 0xf9f   : > { %10612 = vrcp.f32 %v7393_v58  ;;  %v7418_v35 = vpack.c.bf16 %v7410_v25, %v7410_v25 }
 0xfa0   : > { %10614 = vrcp.f32 %v7390_v20 }
 0xfa1   : > { %v7452_v43 = vunpack.c.l.b16 %v7418_v35 }
 0xfa4   : > { %v10611_v40 = vpop.eup %10610 }
 0xfa5   : > { %v10613_v44 = vpop.eup %10612  ;;  %v7411_v56 = vmul.f32 %v10611_v40, %v13581_v36  ;;  %v7396_v30 = vpop.xlane.xlu2 %7395 }
 0xfa6   : > { %v7712_v52 = vpop.xlane.xlu1 %7711  ;;  %v10615_v24 = vpop.eup %10614  ;;  %v7413_v47 = vmul.f32 %v10613_v44, %v13579_v31  ;;  %10616 = vrcp.f32 %v7396_v30 }
 0xfa7   : > { %v7719_v41 = vmul.f32 %v7712_v52, %v11635_v17  ;;  %v7399_v29 = vpop.xlane.xlu0 %7398  ;;  %v7419_v8 = vpack.c.bf16 %v7411_v56, %v7411_v56  ;;  %v7412_v2 = vmul.f32 %v10615_v24, %v13586_v51 }
 0xfa8   : > { %10618 = vrcp.f32 %v7399_v29  ;;  %v7421_v32 = vpack.c.bf16 %v7413_v47, %v7413_v47 }
 0xfa9   : > { %v13691_v7 = vsub.f32 %v13603_v37, %v7719_v41  ;;  %v7453_v28 = vunpack.c.l.b16 %v7419_v8  ;;  %v7420_v36 = vpack.c.bf16 %v7412_v2, %v7412_v2 }
 0xfaa   : > { %v7479_v18 = vunpack.c.l.b16 %v7421_v32 }
 0xfab   : > { %v7727_v19 = vmul.f32 %v13691_v7, %v13691_v7  ;;  %v7454_v31 = vpack.c.b16 %v7453_v28, %v7452_v43  ;;  %v7478_v11 = vunpack.c.l.b16 %v7420_v36 }
 0xfac   : > { %v10617_v61 = vpop.eup %10616 }
 0xfad   : > { %7731 = vadd.xlane.f32.xlu2 %v7727_v19  ;;  %v7480_v63 = vpack.c.b16 %v7479_v18, %v7478_v11  ;;  %v7414_v51 = vmul.f32 %v10617_v61, %v13599_v22  ;;  %9726 = vmatmul.msk.bf16.vlgmr.msra.gmra.mxu3 %vm2643_vm1, %v7454_v31  ;;  %v10153_v22 = vld [vmem:[#allocation11 + $0x58] sm:$0xff]  ;;  %v7714_v18 = vpop.xlane.xlu2 %7713 }
 0xfae   : > { %v10619_v3 = vpop.eup %10618  ;;  %7612 = vmatpush.bf16.msrb.mxu3 %v10153_v22  ;;  %v7720_v61 = vmul.f32 %v7714_v18, %v11635_v17  ;;  %v9829_v22 = vld [vmem:[#allocation13 + $0xf8] sm:$0xf0] }
 0xfaf   : > { %v7415_v37 = vmul.f32 %v10619_v3, %v13605_v15  ;;  %v7422_v45 = vpack.c.bf16 %v7414_v51, %v7414_v51  ;;  %9727 = vmatmul.msk.bf16.vlgmr.msrb.gmra.mxu0 %vm2643_vm1, %v7480_v63  ;;  %v10157_v15 = vld [vmem:[#allocation11 + $0x78] sm:$0xff] }
 0xfb0   : > { %7680 = vmatpush.bf16.msrb.mxu1 %v10157_v15 }
 0xfb1   : > { %v7423_v39 = vpack.c.bf16 %v7415_v37, %v7415_v37  ;;  %v7504_v34 = vunpack.c.l.b16 %v7422_v45 }
 0xfb2   : > { %7613 = vmatpush.bf16.msrb.mxu3 %v10152_v53 }
 0xfb3   : > { %v7505_v55 = vunpack.c.l.b16 %v7423_v39  ;;  %v13708_v39 = vsub.f32 %v13622_v23, %v7720_v61  ;;  %v10172_v23 = vld [vmem:[#allocation13 + $0xf4] sm:$0xf]  ;;  %v10163_v61 = vld [vmem:[#allocation13 + $0xa4] sm:$0xf0] }
 0xfb4   : > { %7681 = vmatpush.bf16.msrb.mxu1 %v10156_v1 }
 0xfb5   : > { %v7506_v4 = vpack.c.b16 %v7505_v55, %v7504_v34 }
 0xfb7   : > { %9728 = vmatmul.msk.bf16.vlgmr.msra.gmra.mxu1 %vm2643_vm1, %v7506_v4  ;;  %v7728_v4 = vmul.f32 %v13708_v39, %v13708_v39 }
0x1020   : > { %v7445_v27 = vpop.f32.mrf.mxu2 }
0x1021   : > { %v7528_v50 = vpack.c.bf16 %v7445_v27, %v7445_v27  ;;  %v9832_v27 = vor.u32 %v10172_v23, %v9829_v22  ;;  %v9784_v22 = vor.u32 %v10160_v5, %v9781_v48 }
0x1023   : > { %v7554_v57 = vunpack.c.l.b16 %v7528_v50  ;;  %7930 = vmatpush.bf16.msra.mxu3 %v9832_v27  ;;  %v9771_v27 = vld [vmem:[#allocation13 + $0x80] sm:$0xf] }
0x1028   : > { %v7447_v62 = vpop.f32.mrf.mxu2 }
0x1029   : > { %v7529_v33 = vpack.c.bf16 %v7447_v62, %v7447_v62 }
0x102b   : > { %v7555_v13 = vunpack.c.l.b16 %v7529_v33  ;;  %v9819_v33 = vld [vmem:[#allocation13 + $0xe0] sm:$0xf] }
0x102c   : > { %v7497_v0 = vpop.f32.mrf.mxu0 }
0x102d   : > { %v7556_v54 = vpack.c.b16 %v7555_v13, %v7554_v57  ;;  %v7532_v38 = vpack.c.bf16 %v7497_v0, %v7497_v0  ;;  %v10171_v57 = vld [vmem:[#allocation13 + $0xe4] sm:$0xf0]  ;;  %v10170_v13 = vld [vmem:[#allocation13 + $0xe4] sm:$0xf] }
0x102f   : > { %9737 = vmatmul.msk.bf16.vlgmr.msra.gmra.mxu2 %vm2533_vm8, %v7556_v54  ;;  %v7622_v26 = vunpack.c.l.b16 %v7532_v38  ;;  %v9820_v54 = vor.u32 %v10171_v57, %v9819_v33  ;;  %v9811_v38 = vld [vmem:[#allocation13 + $0xd0] sm:$0xf]  ;;  %v9773_v33 = vld [vmem:[#allocation13 + $0x88] sm:$0xf0] }
0x1030   : > { %v7471_v16 = vpop.f32.mrf.mxu3 }
0x1031   : > { %v7530_v6 = vpack.c.bf16 %v7471_v16, %v7471_v16  ;;  %v9821_v16 = vld [vmem:[#allocation13 + $0xe8] sm:$0xf0]  ;;  %7912 = vmatpush.bf16.msrb.mxu2 %v9820_v54 }
0x1033   : > { %v7588_v44 = vunpack.c.l.b16 %v7530_v6  ;;  %v9813_v6 = vld [vmem:[#allocation13 + $0xd8] sm:$0xf0] }
0x1034   : > { %v7523_v12 = vpop.f32.mrf.mxu1  ;;  %v7499_v46 = vpop.f32.mrf.mxu0 }
0x1035   : > { %v7533_v21 = vpack.c.bf16 %v7499_v46, %v7499_v46  ;;  %v7534_v40 = vpack.c.bf16 %v7523_v12, %v7523_v12  ;;  %v10169_v12 = vld [vmem:[#allocation13 + $0xd4] sm:$0xf0] }
0x1037   : > { %v7623_v58 = vunpack.c.l.b16 %v7533_v21  ;;  %v7656_v24 = vunpack.c.l.b16 %v7534_v40  ;;  %v9824_v21 = vor.u32 %v10170_v13, %v9821_v16  ;;  %v10450_v13 = vld [vmem:[%s14130_s10 + $0x1] ss:$0 sm:$0xff] }
0x1038   : > { %v7473_v59 = vpop.f32.mrf.mxu3 }
0x1039   : > { %v7624_v20 = vpack.c.b16 %v7623_v58, %v7622_v26  ;;  %v7531_v25 = vpack.c.bf16 %v7473_v59, %v7473_v59  ;;  %v10168_v26 = vld [vmem:[#allocation13 + $0xd4] sm:$0xf]  ;;  %v9812_v58 = vor.u32 %v10169_v12, %v9811_v38  ;;  %7931 = vmatpush.bf16.msra.mxu3 %v9824_v21 }
0x103a   : > { %v9816_v59 = vor.u32 %v10168_v26, %v9813_v6  ;;  %v8653_v38 = vld [vmem:[%s13716_s24 + $0x4] sm:$0xf] }
0x103b   : > { %v7589_v35 = vunpack.c.l.b16 %v7531_v25  ;;  %9755 = vmatmul.msk.bf16.vlgmr.msra.gmra.mxu0 %vm2533_vm8, %v7624_v20  ;;  %v9803_v20 = vld [vmem:[#allocation13 + $0xc0] sm:$0xf]  ;;  %v10167_v25 = vld [vmem:[#allocation13 + $0xc4] sm:$0xf0]  ;;  %7913 = vmatpush.bf16.msrb.mxu2 %v9812_v58 }
0x103c   : > { %v7525_v56 = vpop.f32.mrf.mxu1 }
0x103d   : > { %v7535_v30 = vpack.c.bf16 %v7525_v56, %v7525_v56  ;;  %v7590_v52 = vpack.c.b16 %v7589_v35, %v7588_v44  ;;  %v10166_v56 = vld [vmem:[#allocation13 + $0xc4] sm:$0xf]  ;;  %7932 = vmatpush.bf16.msra.mxu3 %v9816_v59 }
0x103f   : > { %v7657_v47 = vunpack.c.l.b16 %v7535_v30  ;;  %9746 = vmatmul.msk.bf16.vlgmr.msrb.gmra.mxu3 %vm2533_vm8, %v7590_v52  ;;  %v9805_v30 = vld [vmem:[#allocation13 + $0xc8] sm:$0xf0] }
0x1041   : > { %v7658_v41 = vpack.c.b16 %v7657_v47, %v7656_v24  ;;  %v9804_v47 = vor.u32 %v10167_v25, %v9803_v20 }
0x1043   : > { %9764 = vmatmul.msk.bf16.vlgmr.msrb.gmra.mxu1 %vm2533_vm8, %v7658_v41  ;;  %7914 = vmatpush.bf16.msrb.mxu2 %v9804_v47 }
0x10b2   : > { %v7581_v29 = vpop.f32.mrf.mxu2 }
0x10b8   : > { %v7649_v8 = vpop.f32.mrf.mxu0 }
0x10ba   : > { %v7583_v31 = vpop.f32.mrf.mxu2 }
0x10c0   : > { %v7683_v43 = vpop.f32.mrf.mxu1  ;;  %v7651_v51 = vpop.f32.mrf.mxu0 }
0x10c2   : > { %v7615_v2 = vpop.f32.mrf.mxu3 }
0x10c3   : > { %v7688_v32 = vadd.f32 %v7615_v2, %v7581_v29  ;;  %v9795_v2 = vld [vmem:[#allocation13 + $0xb0] sm:$0xf] }
0x10c5   : > { %v7690_v28 = vadd.f32 %v7688_v32, %v7649_v8  ;;  %v9808_v8 = vor.u32 %v10166_v56, %v9805_v30  ;;  %v10165_v32 = vld [vmem:[#allocation13 + $0xb4] sm:$0xf0] }
0x10c7   : > { %v7692_v36 = vadd.f32 %v7690_v28, %v7683_v43  ;;  %v10164_v28 = vld [vmem:[#allocation13 + $0xb4] sm:$0xf]  ;;  %7933 = vmatpush.bf16.msra.mxu3 %v9808_v8 }
0x10c8   : > { %v7685_v45 = vpop.f32.mrf.mxu1 }
0x10c9   : > { %v7701_v19 = vadd.f32 %v13584_v49, %v7692_v36  ;;  %v9797_v36 = vld [vmem:[#allocation13 + $0xb8] sm:$0xf0] }
0x10ca   : > { %v7617_v11 = vpop.f32.mrf.mxu3 }
0x10cb   : > { %v7689_v3 = vadd.f32 %v7617_v11, %v7583_v31  ;;  %v7705_v63 = vadd.f32 %v7701_v19, %v13157_v60  ;;  %v8652_v60 = vld [vmem:[%s13716_s24] sm:$0xf]  ;;  %v9796_v19 = vor.u32 %v10165_v32, %v9795_v2  ;;  %v9800_v31 = vor.u32 %v10164_v28, %v9797_v36  ;;  %v9787_v11 = vld [vmem:[#allocation13 + $0xa0] sm:$0xf]  ;;  %s10222_s24 = sshll.u32 %s11342_s0, 4  ;;  %s8946_s0 = scalar_lea.sflag [#allocation4], %s1165_s22 }
0x10cd   : > { %v7691_v37 = vadd.f32 %v7689_v3, %v7651_v51  ;;  %7715 = vadd.xlane.f32.xlu0 %v7705_v63  ;;  %v9789_v51 = vld [vmem:[#allocation13 + $0xa8] sm:$0xf0]  ;;  %7915 = vmatpush.bf16.msrb.mxu2 %v9796_v19 }
0x10ce   : > { %7934 = vmatpush.bf16.msra.mxu3 %v9800_v31 }
0x10cf   : > { %v7693_v34 = vadd.f32 %v7691_v37, %v7685_v45  ;;  %v9788_v37 = vor.u32 %v10163_v61, %v9787_v11 }
0x10d1   : > { %v7702_v55 = vadd.f32 %v13584_v49, %v7693_v34  ;;  %v7732_v49 = vpop.xlane.xlu2 %7731  ;;  %7916 = vmatpush.bf16.msrb.mxu2 %v9788_v37 }
0x10d2   : > { %v7739_v15 = vmul.f32 %v7732_v49, %v11635_v17  ;;  %v10159_v49 = vld [vmem:[#allocation13 + $0x84] sm:$0xf0] }
0x10d3   : > { %v7706_v10 = vadd.f32 %v7702_v55, %v13159_v9  ;;  %v9779_v55 = vld [vmem:[#allocation13 + $0x90] sm:$0xf] }
0x10d4   : > { %v13720_v9 = vadd.f32 1e-05, %v7739_v15 }
0x10d5   : > { %7733 = vadd.xlane.f32.xlu0 %v7728_v4  ;;  %7717 = vadd.xlane.f32.xlu1 %v7706_v10  ;;  %v10161_v4 = vld [vmem:[#allocation13 + $0x94] sm:$0xf0] }
0x10d6   : > { %10620 = vrsqrt.f32 %v13720_v9  ;;  %vm7753_vm8 = vweird.f32 %v13720_v9  ;;  %v9780_v14 = vor.u32 %v10161_v4, %v9779_v55 }
0x10d8   : > { %7917 = vmatpush.bf16.msrb.mxu2 %v9780_v14 }
0x10dc   : > { %v13723_v1 = vpop.eup %10620 }
0x10dd   : > { %v7748_v0 = vmul.f32 %v13723_v1, %v13720_v9  ;;  %vm7754_vm7 = vweird.f32 %v13723_v1  ;;  %v9772_v9 = vor.u32 %v10159_v49, %v9771_v27 }
0x10de   : > { %vm7755_vm0 = vmor %vm7753_vm8, %vm7754_vm7 }
0x10df   : > { %v7749_v40 = vmul.f32 %v13723_v1, %v7748_v0  ;;  %7918 = vmatpush.bf16.msrb.mxu2 %v9772_v9 }
0x10e1   : > { %v7750_v43 = vmul.f32 0.5, %v7749_v40 }
0x10e3   : > { %v7751_v3 = vsub.f32 1.5, %v7750_v43 }
0x10e9   : > { %8657 = vperm.xlu0 %10428, %v8652_v60  }
0x1140   : > { %v7716_v53 = vpop.xlane.xlu0 %7715 }
0x1141   : > { %v7721_v50 = vmul.f32 %v7716_v53, %v11635_v17 }
0x1143   : > { %v13726_v62 = vsub.f32 %v7705_v63, %v7721_v50  ;;  %v10162_v63 = vld [vmem:[#allocation13 + $0xa4] sm:$0xf] }
0x1144   : > { %v9792_v34 = vor.u32 %v10162_v63, %v9789_v51  ;;  %v10158_v50 = vld [vmem:[#allocation13 + $0x84] sm:$0xf]  ;;  %v9768_v51 = vld [vmem:[%s14132_s23 + $0x2] sm:$0x3] }
0x1145   : > { %v7729_v46 = vmul.f32 %v13726_v62, %v13726_v62  ;;  %v9776_v54 = vor.u32 %v10158_v50, %v9773_v33  ;;  %v13753_v37 = vperm.slane %v9768_v51, 0 }
0x1146   : > { %7935 = vmatpush.bf16.msra.mxu3 %v9792_v34 }
0x1147   : > { %7735 = vadd.xlane.f32.xlu1 %v7729_v46 }
0x1148   : > { %v7734_v44 = vpop.xlane.xlu0 %7733  ;;  %v7718_v35 = vpop.xlane.xlu1 %7717 }
0x1149   : > { %v7740_v52 = vmul.f32 %v7734_v44, %v11635_v17  ;;  %v7722_v24 = vmul.f32 %v7718_v35, %v11635_v17 }
0x114a   : > { %7936 = vmatpush.bf16.msra.mxu3 %v9784_v22 }
0x114b   : > { %v7744_v41 = vadd.f32 1e-05, %v7740_v52  ;;  %v13735_v29 = vsub.f32 %v7706_v10, %v7722_v24  ;;  %v7752_v10 = vmul.f32 %v13723_v1, %v7751_v3 }
0x114d   : > { %10622 = vrsqrt.f32 %v7744_v41  ;;  %v7730_v18 = vmul.f32 %v13735_v29, %v13735_v29  ;;  %v7756_v15 = vsel %vm7755_vm0, %v13723_v1, %v7752_v10  ;;  %vm7763_vm5 = vweird.f32 %v7744_v41  ;;  %v10451_v1 = vld [vmem:[%s14131_s11 + $0x1] ss:$0 sm:$0xff] }
0x114e   : > { %v7787_v0 = vmul.f32 %v7756_v15, %v13691_v7  ;;  %7937 = vmatpush.bf16.msra.mxu3 %v9776_v54 }
0x114f   : > { %7737 = vadd.xlane.f32.xlu2 %v7730_v18 }
0x1150   : > { %v7794_v46 = vmul.f32 %v10450_v13, %v7787_v0 }
0x1152   : > { %v7801_v6 = vadd.f32 %v10451_v1, %v7794_v46 }
0x1153   : > { %v10623_v45 = vpop.eup %10622 }
0x1154   : > { %v7758_v60 = vmul.f32 %v10623_v45, %v7744_v41  ;;  %vm7764_vm3 = vweird.f32 %v10623_v45 }
0x1155   : > { %vm7765_vm6 = vmor %vm7763_vm5, %vm7764_vm3 }
0x1156   : > { %v7759_v23 = vmul.f32 %v10623_v45, %v7758_v60 }
0x1158   : > { %v7760_v53 = vmul.f32 0.5, %v7759_v23 }
0x115a   : > { %v7761_v57 = vsub.f32 1.5, %v7760_v53 }
0x115c   : > { %v7762_v16 = vmul.f32 %v10623_v45, %v7761_v57 }
0x115e   : > { %v7766_v12 = vsel %vm7765_vm6, %v10623_v45, %v7762_v16  ;;  %v13755_v45 = vperm.slane %v9768_v51, 1 }
0x115f   : > { %v7788_v21 = vmul.f32 %v7766_v12, %v13708_v39 }
0x1160   : > { %8660 = vperm.xlu1 %10429, %v8653_v38  }
0x1161   : > { %v7795_v26 = vmul.f32 %v10450_v13, %v7788_v21 }
0x1163   : > { %v7802_v58 = vadd.f32 %v10451_v1, %v7795_v26 }
0x1165   : > { %v7805_v59 = vpack.c.bf16 %v7802_v58, %v7801_v6 }
0x1167   : > { %7919 = vmatmul.bf16.vlgmr.msrb.gmra.mxu2 %v7805_v59  ;;  %7938 = vmatmul.bf16.vlgmr.msra.gmra.mxu3 %v7805_v59 }
0x11ba   : > { %v7736_v7 = vpop.xlane.xlu1 %7735 }
0x11bb   : > { %v7741_v20 = vmul.f32 %v7736_v7, %v11635_v17 }
0x11bd   : > { %v7745_v25 = vadd.f32 1e-05, %v7741_v20 }
0x11bf   : > { %10624 = vrsqrt.f32 %v7745_v25  ;;  %vm7773_vm10 = vweird.f32 %v7745_v25 }
0x11c2   : > { %v7738_v40 = vpop.xlane.xlu2 %7737 }
0x11c3   : > { %v7742_v44 = vmul.f32 %v7738_v40, %v11635_v17 }
0x11c5   : > { %v10625_v35 = vpop.eup %10624  ;;  %v7746_v56 = vadd.f32 1e-05, %v7742_v44 }
0x11c6   : > { %v7768_v30 = vmul.f32 %v10625_v35, %v7745_v25  ;;  %vm7774_vm9 = vweird.f32 %v10625_v35 }
0x11c7   : > { %10626 = vrsqrt.f32 %v7746_v56  ;;  %vm7775_vm11 = vmor %vm7773_vm10, %vm7774_vm9  ;;  %vm7783_vm13 = vweird.f32 %v7746_v56 }
0x11c8   : > { %v7769_v39 = vmul.f32 %v10625_v35, %v7768_v30 }
0x11ca   : > { %v7770_v52 = vmul.f32 0.5, %v7769_v39 }
0x11cc   : > { %v7771_v24 = vsub.f32 1.5, %v7770_v52 }
0x11cd   : > { %v10627_v47 = vpop.eup %10626 }
0x11ce   : > { %v7772_v41 = vmul.f32 %v10625_v35, %v7771_v24  ;;  %v7778_v8 = vmul.f32 %v10627_v47, %v7746_v56  ;;  %vm7784_vm12 = vweird.f32 %v10627_v47 }
0x11cf   : > { %vm7785_vm14 = vmor %vm7783_vm13, %vm7784_vm12 }
0x11d0   : > { %v7779_v2 = vmul.f32 %v10627_v47, %v7778_v8  ;;  %v7776_v32 = vsel %vm7775_vm11, %v10625_v35, %v7772_v41 }
0x11d1   : > { %v7789_v17 = vmul.f32 %v7776_v32, %v13726_v62 }
0x11d2   : > { %v7780_v43 = vmul.f32 0.5, %v7779_v2 }
0x11d3   : > { %v7796_v31 = vmul.f32 %v10450_v13, %v7789_v17 }
0x11d4   : > { %v7781_v28 = vsub.f32 1.5, %v7780_v43 }
0x11d5   : > { %v7803_v61 = vadd.f32 %v10451_v1, %v7796_v31 }
0x11d6   : > { %v7782_v36 = vmul.f32 %v10627_v47, %v7781_v28 }
0x11d8   : > { %v7786_v18 = vsel %vm7785_vm14, %v10627_v47, %v7782_v36 }
0x11d9   : > { %v7790_v19 = vmul.f32 %v7786_v18, %v13735_v29 }
0x11db   : > { %v7797_v11 = vmul.f32 %v10450_v13, %v7790_v19 }
0x11dd   : > { %v7804_v3 = vadd.f32 %v10451_v1, %v7797_v11 }
0x11df   : > { %v7806_v63 = vpack.c.bf16 %v7804_v3, %v7803_v61 }
0x11e1   : > { %7924 = vmatmul.bf16.gmra.mxu2 %v7806_v63  ;;  %7943 = vmatmul.bf16.gmra.mxu3 %v7806_v63 }
0x11ea   : > { %v7920_v34 = vpop.f32.mrf.mxu2  ;;  %v7939_v62 = vpop.f32.mrf.mxu3 }
0x11eb   : > { %v13758_v55 = vadd.f32 %v7920_v34, %v13753_v37  ;;  %v13761_v4 = vadd.f32 %v7939_v62, %v13755_v45 }
0x11ed   : > { %v13765_v29 = vmul.f32 %v13758_v55, %v12601_v42  ;;  %v13769_v10 = vmul.f32 %v13761_v4, %v12601_v42 }
0x11ef   : > { %v7965_v60 = vmul.f32 %v13765_v29, %v13765_v29  ;;  %v8005_v5 = vmul.f32 %v13769_v10, %v13769_v10 }
0x11f1   : > { %v13775_v48 = vmin.f32 %v7965_v60, 16.0  ;;  %v13777_v23 = vmin.f32 %v8005_v5, 16.0 }
0x11f2   : > { %v7922_v14 = vpop.f32.mrf.mxu2  ;;  %v7941_v22 = vpop.f32.mrf.mxu3 }
0x11f3   : > { %v7967_v27 = vmul.f32 2.1237322e-06, %v13775_v48  ;;  %v7978_v49 = vmul.f32 3.8918573e-05, %v13775_v48  ;;  %v13782_v15 = vadd.f32 %v7922_v14, %v13753_v37  ;;  %v8018_v53 = vmul.f32 3.8918573e-05, %v13777_v23 }
0x11f4   : > { %v13786_v50 = vadd.f32 %v7941_v22, %v13755_v45  ;;  %v8007_v46 = vmul.f32 2.1237322e-06, %v13777_v23  ;;  %v10181_v22 = vld [vmem:[#allocation14 + $0xb8] sm:$0xff] }
0x11f5   : > { %v7979_v33 = vadd.f32 0.001143296, %v7978_v49  ;;  %v13790_v57 = vmul.f32 %v13782_v15, %v12601_v42  ;;  %v8019_v9 = vadd.f32 0.001143296, %v8018_v53  ;;  %v7968_v0 = vadd.f32 0.00028619796, %v7967_v27  ;;  %8439 = vmatpush.bf16.msrb.mxu0 %v10181_v22 }
0x11f6   : > { %v13794_v13 = vmul.f32 %v13786_v50, %v12601_v42  ;;  %v8008_v44 = vadd.f32 0.00028619796, %v8007_v46  ;;  %v10189_v27 = vld [vmem:[#allocation14 + $0xf8] sm:$0xff] }
0x11f7   : > { %v7980_v54 = vmul.f32 %v7979_v33, %v13775_v48  ;;  %v8045_v16 = vmul.f32 %v13790_v57, %v13790_v57  ;;  %v8020_v38 = vmul.f32 %v8019_v9, %v13777_v23  ;;  %v7969_v6 = vmul.f32 %v7968_v0, %v13775_v48  ;;  %8458 = vmatpush.bf16.msra.mxu1 %v10189_v27 }
0x11f8   : > { %v8085_v12 = vmul.f32 %v13794_v13, %v13794_v13  ;;  %v8009_v43 = vmul.f32 %v8008_v44, %v13777_v23 }
0x11f9   : > { %v7981_v1 = vadd.f32 0.014752088, %v7980_v54  ;;  %v8021_v21 = vadd.f32 0.014752088, %v8020_v38  ;;  %v13803_v26 = vmin.f32 %v8045_v16, 16.0  ;;  %v10180_v16 = vld [vmem:[#allocation14 + $0xb0] sm:$0xff] }
0x11fa   : > { %v13807_v59 = vmin.f32 %v8085_v12, 16.0  ;;  %v7970_v39 = vadd.f32 0.0036580483, %v7969_v6  ;;  %v8010_v51 = vadd.f32 0.0036580483, %v8009_v43  ;;  %v10188_v38 = vld [vmem:[#allocation14 + $0xf0] sm:$0xff]  ;;  %8440 = vmatpush.bf16.msrb.mxu0 %v10180_v16 }
0x11fb   : > { %v7982_v58 = vmul.f32 %v7981_v1, %v13775_v48  ;;  %v8022_v7 = vmul.f32 %v8021_v21, %v13777_v23  ;;  %v8047_v20 = vmul.f32 2.1237322e-06, %v13803_v26  ;;  %v8058_v25 = vmul.f32 3.8918573e-05, %v13803_v26  ;;  %8459 = vmatpush.bf16.msra.mxu1 %v10188_v38  ;;  %v10186_v43 = vld [vmem:[#allocation14 + $0xe0] sm:$0xff] }
0x11fc   : > { %v8087_v24 = vmul.f32 2.1237322e-06, %v13807_v59  ;;  %v8098_v2 = vmul.f32 3.8918573e-05, %v13807_v59  ;;  %v7971_v36 = vmul.f32 %v7970_v39, %v13775_v48  ;;  %v8011_v53 = vmul.f32 %v8010_v51, %v13777_v23  ;;  %v10185_v51 = vld [vmem:[#allocation14 + $0xd8] sm:$0xff] }
0x11fd   : > { %v7983_v40 = vadd.f32 0.112945676, %v7982_v58  ;;  %v8023_v35 = vadd.f32 0.112945676, %v8022_v7  ;;  %v8048_v56 = vadd.f32 0.00028619796, %v8047_v20 }
0x11fe   : > { %v8059_v30 = vadd.f32 0.001143296, %v8058_v25  ;;  %v8088_v19 = vadd.f32 0.00028619796, %v8087_v24  ;;  %v8099_v3 = vadd.f32 0.001143296, %v8098_v2 }
0x11ff   : > { %v7984_v52 = vmul.f32 %v7983_v40, %v13775_v48  ;;  %v8024_v47 = vmul.f32 %v8023_v35, %v13777_v23  ;;  %v8049_v41 = vmul.f32 %v8048_v56, %v13803_v26  ;;  %v7972_v5 = vadd.f32 0.05243302, %v7971_v36  ;;  %v10179_v56 = vld [vmem:[#allocation14 + $0xa8] sm:$0xff] }
0x1200   : > { %v8060_v8 = vmul.f32 %v8059_v30, %v13803_v26  ;;  %v8100_v60 = vmul.f32 %v8099_v3, %v13807_v59  ;;  %v8089_v14 = vmul.f32 %v8088_v19, %v13807_v59  ;;  %v8012_v7 = vadd.f32 0.05243302, %v8011_v53  ;;  %v10187_v30 = vld [vmem:[#allocation14 + $0xe8] sm:$0xff]  ;;  %8441 = vmatpush.bf16.msrb.mxu0 %v10179_v56  ;;  %v10177_v3 = vld [vmem:[#allocation14 + $0x98] sm:$0xff] }
0x1201   : > { %v7985_v32 = vadd.f32 0.4994258, %v7984_v52  ;;  %v8025_v28 = vadd.f32 0.4994258, %v8024_v47  ;;  %v8050_v11 = vadd.f32 0.0036580483, %v8049_v41  ;;  %v7973_v0 = vmul.f32 %v7972_v5, %v13775_v48  ;;  %8460 = vmatpush.bf16.msra.mxu1 %v10187_v30 }
0x1202   : > { %v8061_v17 = vadd.f32 0.014752088, %v8060_v8  ;;  %v8101_v9 = vadd.f32 0.014752088, %v8100_v60  ;;  %v8090_v54 = vadd.f32 0.0036580483, %v8089_v14  ;;  %v8013_v8 = vmul.f32 %v8012_v7, %v13777_v23 }
0x1203   : > { %v7986_v18 = vmul.f32 %v7985_v32, %v13775_v48  ;;  %v8026_v31 = vmul.f32 %v8025_v28, %v13777_v23  ;;  %v8051_v49 = vmul.f32 %v8050_v11, %v13803_v26  ;;  %v7974_v25 = vadd.f32 0.18741608, %v7973_v0  ;;  %v10178_v32 = vld [vmem:[#allocation14 + $0xa0] sm:$0xff]  ;;  %v10184_v0 = vld [vmem:[#allocation14 + $0xd0] sm:$0xff] }
0x1204   : > { %v8062_v61 = vmul.f32 %v8061_v17, %v13803_v26  ;;  %v8102_v46 = vmul.f32 %v8101_v9, %v13807_v59  ;;  %v8091_v44 = vmul.f32 %v8090_v54, %v13807_v59  ;;  %8442 = vmatpush.bf16.msrb.mxu0 %v10178_v32  ;;  %v10176_v9 = vld [vmem:[#allocation14 + $0x90] sm:$0xff] }
0x1205   : > { %v13823_v63 = vadd.f32 1.0, %v7986_v18  ;;  %v13825_v34 = vadd.f32 1.0, %v8026_v31  ;;  %v8052_v12 = vadd.f32 0.05243302, %v8051_v49  ;;  %v7975_v28 = vmul.f32 %v7974_v25, %v13775_v48  ;;  %8461 = vmatpush.bf16.msra.mxu1 %v10186_v43 }
0x1206   : > { %v8063_v62 = vadd.f32 0.112945676, %v8062_v61  ;;  %v8103_v35 = vadd.f32 0.112945676, %v8102_v46  ;;  %v8092_v17 = vadd.f32 0.05243302, %v8091_v44 }
0x1207   : > { %10628 = vrcp.f32 %v13823_v63  ;;  %v8053_v52 = vmul.f32 %v8052_v12, %v13803_v26  ;;  %v7999_v19 = vand.u32 2147483648, %v13823_v63  ;;  %vm7993_vm2 = vweird.f32 %v13823_v63  ;;  %v10183_v44 = vld [vmem:[#allocation14 + $0xc8] sm:$0xff] }
0x1208   : > { %10630 = vrcp.f32 %v13825_v34  ;;  %v8064_v33 = vmul.f32 %v8063_v62, %v13803_v26  ;;  %v8104_v47 = vmul.f32 %v8103_v35, %v13807_v59  ;;  %v7997_v11 = vand.u32 2147483647, %v13823_v63  ;;  %8443 = vmatpush.bf16.msrb.mxu0 %v10177_v3 }
0x1209   : > { %v8054_v31 = vadd.f32 0.18741608, %v8053_v52  ;;  %v8014_v48 = vadd.f32 0.18741608, %v8013_v8  ;;  %v7976_v5 = vadd.f32 1.1283791, %v7975_v28  ;;  %v8093_v22 = vmul.f32 %v8092_v17, %v13807_v59  ;;  %8462 = vmatpush.bf16.msra.mxu1 %v10185_v51 }
0x120a   : > { %v8065_v1 = vadd.f32 0.4994258, %v8064_v33  ;;  %v8105_v36 = vadd.f32 0.4994258, %v8104_v47  ;;  %v8000_v49 = vor.u32 1.1754944e-38, %v7999_v19  ;;  %vm7998_vm7 = vcmp.eq.f32.partialorder %v7997_v11, 8.507059e+37 }
0x120b   : > { %v8055_v53 = vmul.f32 %v8054_v31, %v13803_v26  ;;  %v8015_v16 = vmul.f32 %v8014_v48, %v13777_v23  ;;  %v7977_v12 = vmul.f32 %v7976_v5, %v13765_v29  ;;  %v8094_v46 = vadd.f32 0.18741608, %v8093_v22  ;;  %v10182_v28 = vld [vmem:[#allocation14 + $0xc0] sm:$0xff] }
0x120c   : > { %v8066_v20 = vmul.f32 %v8065_v1, %v13803_v26  ;;  %v8106_v61 = vmul.f32 %v8105_v36, %v13807_v59  ;;  %v8039_v26 = vand.u32 2147483648, %v13825_v34  ;;  %vm8033_vm0 = vweird.f32 %v13825_v34  ;;  %8444 = vmatpush.bf16.msrb.mxu0 %v10176_v9 }
0x120d   : > { %v10629_v21 = vpop.eup %10628  ;;  %8463 = vmatpush.bf16.msra.mxu1 %v10184_v0  ;;  %v8016_v35 = vadd.f32 1.1283791, %v8015_v16  ;;  %v8095_v52 = vmul.f32 %v8094_v46, %v13807_v59  ;;  %v7951_v62 = vmul.f32 0.5, %v13782_v15  ;;  %v7952_v15 = vmul.f32 0.5, %v13786_v50 }
0x120e   : > { %v13836_v6 = vpop.eup %10630  ;;  %v7989_v58 = vmul.f32 %v10629_v21, %v13823_v63  ;;  %v13844_v24 = vadd.f32 1.0, %v8066_v20  ;;  %vm7994_vm15 = vweird.f32 %v10629_v21  ;;  %v13862_v63 = vadd.f32 1.0, %v8106_v61 }
0x120f   : > { %v8029_v40 = vmul.f32 %v13836_v6, %v13825_v34  ;;  %vm13854_vm4 = vmor %vm7993_vm2, %vm7994_vm15  ;;  %vm8034_vm8 = vweird.f32 %v13836_v6  ;;  %v8040_v30 = vor.u32 1.1754944e-38, %v8039_v26 }
0x1210   : > { %v7990_v39 = vsub.f32 1.0, %v7989_v58  ;;  %10632 = vrcp.f32 %v13844_v24  ;;  %v8056_v58 = vadd.f32 1.1283791, %v8055_v53  ;;  %v8079_v7 = vand.u32 2147483648, %v13844_v24  ;;  %vm13875_vm3 = vmor %vm8033_vm0, %vm8034_vm8 }
0x1211   : > { %v8030_v2 = vsub.f32 1.0, %v8029_v40  ;;  %10634 = vrcp.f32 %v13862_v63  ;;  %v8077_v29 = vand.u32 2147483647, %v13844_v24  ;;  %v10175_v40 = vld [vmem:[#allocation14 + $0x88] sm:$0xff]  ;;  %vm8073_vm6 = vweird.f32 %v13844_v24  ;;  %8464 = vmatpush.bf16.msra.mxu1 %v10183_v44 }
0x1212   : > { %v7991_v41 = vmul.f32 %v10629_v21, %v7990_v39  ;;  %v8057_v47 = vmul.f32 %v8056_v58, %v13790_v57  ;;  %8445 = vmatpush.bf16.msrb.mxu0 %v10175_v40  ;;  %v8119_v57 = vand.u32 2147483648, %v13862_v63  ;;  %v8117_v11 = vand.u32 2147483647, %v13862_v63 }
0x1213   : > { %v8031_v60 = vmul.f32 %v13836_v6, %v8030_v2  ;;  %vm8078_vm11 = vcmp.eq.f32.partialorder %v8077_v29, 8.507059e+37  ;;  %vm8113_vm13 = vweird.f32 %v13862_v63 }
0x1214   : > { %v7992_v18 = vadd.f32 %v10629_v21, %v7991_v41  ;;  %v8080_v41 = vor.u32 1.1754944e-38, %v8079_v7  ;;  %vm8118_vm15 = vcmp.eq.f32.partialorder %v8117_v11, 8.507059e+37 }
0x1215   : > { %v8032_v38 = vadd.f32 %v13836_v6, %v8031_v60  ;;  %8465 = vmatpush.bf16.msra.mxu1 %v10182_v28  ;;  %v8120_v60 = vor.u32 1.1754944e-38, %v8119_v57 }
0x1216   : > { %v7996_v14 = vsel %vm13854_vm4, %v10629_v21, %v7992_v18  ;;  %v10633_v27 = vpop.eup %10632  ;;  %v8037_v21 = vand.u32 2147483647, %v13825_v34  ;;  %v8096_v18 = vadd.f32 1.1283791, %v8095_v52 }
0x1217   : > { %v8069_v33 = vmul.f32 %v10633_v27, %v13844_v24  ;;  %v8001_v54 = vsel %vm7998_vm7, %v8000_v49, %v7996_v14  ;;  %vm8074_vm5 = vweird.f32 %v10633_v27  ;;  %v8036_v34 = vsel %vm13875_vm3, %v13836_v6, %v8032_v38  ;;  %v10635_v56 = vpop.eup %10634  ;;  %v10174_v6 = vld [vmem:[#allocation14 + $0x80] sm:$0xff] }
0x1218   : > { %v8002_v20 = vmul.f32 %v8001_v54, %v7977_v12  ;;  %vm8038_vm9 = vcmp.eq.f32.partialorder %v8037_v21, 8.507059e+37  ;;  %vm8075_vm10 = vmor %vm8073_vm6, %vm8074_vm5  ;;  %v8109_v8 = vmul.f32 %v10635_v56, %v13862_v63  ;;  %v8017_v24 = vmul.f32 %v8016_v35, %v13769_v10  ;;  %8446 = vmatpush.bf16.msrb.mxu0 %v10174_v6 }
0x1219   : > { %v8070_v1 = vsub.f32 1.0, %v8069_v33  ;;  %v8041_v32 = vsel %vm8038_vm9, %v8040_v30, %v8036_v34  ;;  %vm8114_vm12 = vweird.f32 %v10635_v56  ;;  %v7949_v10 = vmul.f32 0.5, %v13758_v55 }
0x121a   : > { %v9833_v2 = vclamps-f32 %v8002_v20, 1.0  ;;  %v8110_v59 = vsub.f32 1.0, %v8109_v8  ;;  %v8042_v19 = vmul.f32 %v8041_v32, %v8017_v24  ;;  %vm8115_vm14 = vmor %vm8113_vm13, %vm8114_vm12  ;;  %v8097_v14 = vmul.f32 %v8096_v18, %v13794_v13 }
0x121b   : > { %v8071_v25 = vmul.f32 %v10633_v27, %v8070_v1  ;;  %v7950_v55 = vmul.f32 0.5, %v13761_v4 }
0x121c   : > { %v8111_v31 = vmul.f32 %v10635_v56, %v8110_v59  ;;  %v8285_v61 = vadd.f32 1.0, %v9833_v2  ;;  %v9834_v5 = vclamps-f32 %v8042_v19, 1.0 }
0x121d   : > { %v8072_v39 = vadd.f32 %v10633_v27, %v8071_v25 }
0x121e   : > { %v8112_v51 = vadd.f32 %v10635_v56, %v8111_v31  ;;  %v8286_v0 = vadd.f32 1.0, %v9834_v5 }
0x121f   : > { %v8076_v43 = vsel %vm8075_vm10, %v10633_v27, %v8072_v39  ;;  %v8293_v27 = vmul.f32 %v8285_v61, %v7949_v10 }
0x1220   : > { %v8081_v17 = vsel %vm8078_vm11, %v8080_v41, %v8076_v43  ;;  %v8116_v22 = vsel %vm8115_vm14, %v10635_v56, %v8112_v51  ;;  %v8294_v16 = vmul.f32 %v8286_v0, %v7950_v55 }
0x1221   : > { %v8082_v36 = vmul.f32 %v8081_v17, %v8057_v47  ;;  %v8121_v53 = vsel %vm8118_vm15, %v8120_v60, %v8116_v22 }
0x1222   : > { %v8122_v33 = vmul.f32 %v8121_v53, %v8097_v14 }
0x1223   : > { %v9835_v3 = vclamps-f32 %v8082_v36, 1.0 }
0x1224   : > { %v9836_v54 = vclamps-f32 %v8122_v33, 1.0 }
0x1225   : > { %v8287_v48 = vadd.f32 1.0, %v9835_v3 }
0x1226   : > { %v8288_v63 = vadd.f32 1.0, %v9836_v54 }
0x1227   : > { %v8295_v49 = vmul.f32 %v8287_v48, %v7951_v62 }
0x1228   : > { %v8296_v38 = vmul.f32 %v8288_v63, %v7952_v15 }
0x1229   : > { %v8301_v9 = vpack.c.bf16 %v8295_v49, %v8293_v27 }
0x122a   : > { %v8302_v12 = vpack.c.bf16 %v8296_v38, %v8294_v16 }
0x122b   : > { %8447 = vmatmul.bf16.vlgmr.msrb.gmra.mxu0 %v8301_v9 }
0x122c   : > { %8466 = vmatmul.bf16.vlgmr.msra.gmra.mxu1 %v8302_v12 }
0x1264   : > { %v7925_v13 = vpop.f32.mrf.mxu2  ;;  %v7944_v26 = vpop.f32.mrf.mxu3 }
0x1265   : > { %v13898_v1 = vadd.f32 %v7925_v13, %v13753_v37  ;;  %v13901_v46 = vadd.f32 %v7944_v26, %v13755_v45 }
0x1267   : > { %v13905_v21 = vmul.f32 %v13898_v1, %v12601_v42  ;;  %v13909_v4 = vmul.f32 %v13901_v46, %v12601_v42 }
0x1269   : > { %v8125_v50 = vmul.f32 %v13905_v21, %v13905_v21  ;;  %v8165_v58 = vmul.f32 %v13909_v4, %v13909_v4 }
0x126b   : > { %v13915_v7 = vmin.f32 %v8125_v50, 16.0  ;;  %v13917_v20 = vmin.f32 %v8165_v58, 16.0 }
0x126c   : > { %v7927_v23 = vpop.f32.mrf.mxu2  ;;  %v7946_v25 = vpop.f32.mrf.mxu3 }
0x126d   : > { %v8127_v29 = vmul.f32 2.1237322e-06, %v13915_v7  ;;  %v8138_v40 = vmul.f32 3.8918573e-05, %v13915_v7  ;;  %v13922_v44 = vadd.f32 %v7927_v23, %v13753_v37  ;;  %v8178_v35 = vmul.f32 3.8918573e-05, %v13917_v20 }
0x126e   : > { %v13926_v34 = vadd.f32 %v7946_v25, %v13755_v45  ;;  %v8167_v32 = vmul.f32 2.1237322e-06, %v13917_v20 }
0x126f   : > { %v8139_v56 = vadd.f32 0.001143296, %v8138_v40  ;;  %v13930_v30 = vmul.f32 %v13922_v44, %v12601_v42  ;;  %v8179_v39 = vadd.f32 0.001143296, %v8178_v35  ;;  %v8128_v47 = vadd.f32 0.00028619796, %v8127_v29 }
0x1270   : > { %v13934_v52 = vmul.f32 %v13926_v34, %v12601_v42  ;;  %v8168_v19 = vadd.f32 0.00028619796, %v8167_v32 }
0x1271   : > { %v8140_v41 = vmul.f32 %v8139_v56, %v13915_v7  ;;  %v8205_v37 = vmul.f32 %v13930_v30, %v13930_v30  ;;  %v8180_v8 = vmul.f32 %v8179_v39, %v13917_v20  ;;  %v8129_v28 = vmul.f32 %v8128_v47, %v13915_v7 }
0x1272   : > { %v8245_v45 = vmul.f32 %v13934_v52, %v13934_v52  ;;  %v8169_v22 = vmul.f32 %v8168_v19, %v13917_v20 }
0x1273   : > { %v8141_v2 = vadd.f32 0.014752088, %v8140_v41  ;;  %v8181_v43 = vadd.f32 0.014752088, %v8180_v8  ;;  %v13943_v6 = vmin.f32 %v8205_v37, 16.0 }
0x1274   : > { %v13947_v17 = vmin.f32 %v8245_v45, 16.0  ;;  %v8130_v3 = vadd.f32 0.0036580483, %v8129_v28  ;;  %v8170_v16 = vadd.f32 0.0036580483, %v8169_v22 }
0x1275   : > { %v8142_v24 = vmul.f32 %v8141_v2, %v13915_v7  ;;  %v8182_v59 = vmul.f32 %v8181_v43, %v13917_v20  ;;  %v8207_v36 = vmul.f32 2.1237322e-06, %v13943_v6  ;;  %v8218_v18 = vmul.f32 3.8918573e-05, %v13943_v6 }
0x1276   : > { %v8247_v10 = vmul.f32 2.1237322e-06, %v13947_v17  ;;  %v8258_v5 = vmul.f32 3.8918573e-05, %v13947_v17  ;;  %v8131_v53 = vmul.f32 %v8130_v3, %v13915_v7  ;;  %v8171_v23 = vmul.f32 %v8170_v16, %v13917_v20 }
0x1277   : > { %v8143_v57 = vadd.f32 0.112945676, %v8142_v24  ;;  %v8183_v31 = vadd.f32 0.112945676, %v8182_v59  ;;  %v8208_v11 = vadd.f32 0.00028619796, %v8207_v36 }
0x1278   : > { %v8219_v61 = vadd.f32 0.001143296, %v8218_v18  ;;  %v8248_v9 = vadd.f32 0.00028619796, %v8247_v10  ;;  %v8259_v15 = vadd.f32 0.001143296, %v8258_v5 }
0x1279   : > { %v8144_v51 = vmul.f32 %v8143_v57, %v13915_v7  ;;  %v8184_v62 = vmul.f32 %v8183_v31, %v13917_v20  ;;  %v8209_v48 = vmul.f32 %v8208_v11, %v13943_v6  ;;  %v8132_v26 = vadd.f32 0.05243302, %v8131_v53 }
0x127a   : > { %v8220_v60 = vmul.f32 %v8219_v61, %v13943_v6  ;;  %v8260_v13 = vmul.f32 %v8259_v15, %v13947_v17  ;;  %v8249_v50 = vmul.f32 %v8248_v9, %v13947_v17  ;;  %v8172_v45 = vadd.f32 0.05243302, %v8171_v23 }
0x127b   : > { %v8145_v14 = vadd.f32 0.4994258, %v8144_v51  ;;  %v8185_v27 = vadd.f32 0.4994258, %v8184_v62  ;;  %v8210_v54 = vadd.f32 0.0036580483, %v8209_v48  ;;  %v8133_v40 = vmul.f32 %v8132_v26, %v13915_v7 }
0x127c   : > { %v8221_v49 = vadd.f32 0.014752088, %v8220_v60  ;;  %v8261_v29 = vadd.f32 0.014752088, %v8260_v13  ;;  %v8250_v35 = vadd.f32 0.0036580483, %v8249_v50  ;;  %v8173_v31 = vmul.f32 %v8172_v45, %v13917_v20 }
0x127d   : > { %v8146_v33 = vmul.f32 %v8145_v14, %v13915_v7  ;;  %v8186_v0 = vmul.f32 %v8185_v27, %v13917_v20  ;;  %v8211_v58 = vmul.f32 %v8210_v54, %v13943_v6  ;;  %v8134_v32 = vadd.f32 0.18741608, %v8133_v40 }
0x127e   : > { %v8222_v55 = vmul.f32 %v8221_v49, %v13943_v6  ;;  %v8262_v47 = vmul.f32 %v8261_v29, %v13947_v17  ;;  %v8251_v28 = vmul.f32 %v8250_v35, %v13947_v17  ;;  %v8174_v14 = vadd.f32 0.18741608, %v8173_v31 }
0x127f   : > { %v8147_v63 = vadd.f32 1.0, %v8146_v33  ;;  %v13963_v38 = vadd.f32 1.0, %v8186_v0  ;;  %v8212_v56 = vadd.f32 0.05243302, %v8211_v58  ;;  %v8135_v61 = vmul.f32 %v8134_v32, %v13915_v7 }
0x1280   : > { %v8223_v12 = vadd.f32 0.112945676, %v8222_v55  ;;  %v8263_v24 = vadd.f32 0.112945676, %v8262_v47  ;;  %v8252_v3 = vadd.f32 0.05243302, %v8251_v28  ;;  %v8175_v15 = vmul.f32 %v8174_v14, %v13917_v20 }
0x1281   : > { %10636 = vrcp.f32 %v8147_v63  ;;  %v8213_v36 = vmul.f32 %v8212_v56, %v13943_v6  ;;  %v8159_v62 = vand.u32 2147483648, %v8147_v63  ;;  %vm8153_vm4 = vweird.f32 %v8147_v63 }
0x1282   : > { %10638 = vrcp.f32 %v13963_v38  ;;  %v8224_v25 = vmul.f32 %v8223_v12, %v13943_v6  ;;  %v8264_v57 = vmul.f32 %v8263_v24, %v13947_v17  ;;  %v8157_v60 = vand.u32 2147483647, %v8147_v63 }
0x1283   : > { %v8214_v48 = vadd.f32 0.18741608, %v8213_v36  ;;  %v8136_v27 = vadd.f32 1.1283791, %v8135_v61  ;;  %v8253_v53 = vmul.f32 %v8252_v3, %v13947_v17  ;;  %v8160_v9 = vor.u32 1.1754944e-38, %v8159_v62 }
0x1284   : > { %v8225_v39 = vadd.f32 0.4994258, %v8224_v25  ;;  %v8265_v51 = vadd.f32 0.4994258, %v8264_v57  ;;  %vm8158_vm8 = vcmp.eq.f32.partialorder %v8157_v60, 8.507059e+37  ;;  %v8199_v12 = vand.u32 2147483648, %v13963_v38 }
0x1285   : > { %v8215_v0 = vmul.f32 %v8214_v48, %v13943_v6  ;;  %v8137_v16 = vmul.f32 %v8136_v27, %v13905_v21  ;;  %v8254_v26 = vadd.f32 0.18741608, %v8253_v53  ;;  %vm8193_vm3 = vweird.f32 %v13963_v38  ;;  %v10197_v27 = vld [vmem:[#allocation16 + $0x38] sm:$0xff] }
0x1286   : > { %v8226_v2 = vmul.f32 %v8225_v39, %v13943_v6  ;;  %v8266_v5 = vmul.f32 %v8265_v51, %v13947_v17  ;;  %v8197_v6 = vand.u32 2147483647, %v13963_v38  ;;  %v8176_v40 = vadd.f32 1.1283791, %v8175_v15  ;;  %8556 = vmatpush.bf16.msra.mxu2 %v10197_v27  ;;  %v10452_v15 = vld [vmem:[%s14134_s7 + $0x1] ss:$0 sm:$0xff] }
0x1287   : > { %v10637_v41 = vpop.eup %10636  ;;  %v8216_v50 = vadd.f32 1.1283791, %v8215_v0  ;;  %v8200_v56 = vor.u32 1.1754944e-38, %v8199_v12 }
0x1288   : > { %v13973_v37 = vpop.eup %10638  ;;  %v8149_v8 = vmul.f32 %v10637_v41, %v8147_v63  ;;  %v8227_v18 = vadd.f32 1.0, %v8226_v2  ;;  %vm8154_vm2 = vweird.f32 %v10637_v41  ;;  %v13986_v33 = vadd.f32 1.0, %v8266_v5 }
0x1289   : > { %v8189_v43 = vmul.f32 %v13973_v37, %v13963_v38  ;;  %vm8155_vm7 = vmor %vm8153_vm4, %vm8154_vm2  ;;  %vm8194_vm0 = vweird.f32 %v13973_v37  ;;  %v8255_v38 = vmul.f32 %v8254_v26, %v13947_v17  ;;  %vm8198_vm10 = vcmp.eq.f32.partialorder %v8197_v6, 8.507059e+37  ;;  %v10193_v26 = vld [vmem:[#allocation16 + $0x18] sm:$0xff] }
0x128a   : > { %v8150_v59 = vsub.f32 1.0, %v8149_v8  ;;  %10640 = vrcp.f32 %v8227_v18  ;;  %v8239_v58 = vand.u32 2147483648, %v8227_v18  ;;  %vm13997_vm5 = vmor %vm8193_vm3, %vm8194_vm0  ;;  %v8237_v29 = vand.u32 2147483647, %v8227_v18 }
0x128b   : > { %v8190_v11 = vsub.f32 1.0, %v8189_v43  ;;  %10642 = vrcp.f32 %v13986_v33  ;;  %vm8233_vm9 = vweird.f32 %v8227_v18  ;;  %v8217_v47 = vmul.f32 %v8216_v50, %v13930_v30 }
0x128c   : > { %v8151_v19 = vmul.f32 %v10637_v41, %v8150_v59  ;;  %vm8238_vm12 = vcmp.eq.f32.partialorder %v8237_v29, 8.507059e+37  ;;  %v8177_v43 = vmul.f32 %v8176_v40, %v13909_v4  ;;  %v8256_v59 = vadd.f32 1.1283791, %v8255_v38 }
0x128d   : > { %v8191_v22 = vmul.f32 %v13973_v37, %v8190_v11  ;;  %v8279_v36 = vand.u32 2147483648, %v13986_v33  ;;  %v8277_v30 = vand.u32 2147483647, %v13986_v33  ;;  %vm8273_vm14 = vweird.f32 %v13986_v33 }
0x128e   : > { %v8152_v10 = vadd.f32 %v10637_v41, %v8151_v19  ;;  %v7953_v11 = vmul.f32 0.5, %v13898_v1  ;;  %v7955_v4 = vmul.f32 0.5, %v13922_v44  ;;  %v10196_v1 = vld [vmem:[#allocation16 + $0x30] sm:$0xff]  ;;  %v7954_v44 = vmul.f32 0.5, %v13901_v46 }
0x128f   : > { %v8192_v63 = vadd.f32 %v13973_v37, %v8191_v22  ;;  %v8280_v3 = vor.u32 1.1754944e-38, %v8279_v36  ;;  %vm8278_vm2 = vcmp.eq.f32.partialorder %v8277_v30, 8.507059e+37  ;;  %8557 = vmatpush.bf16.msra.mxu2 %v10196_v1  ;;  %v8654_v6 = vlaneseq }
0x1290   : > { %v8156_v49 = vsel %vm8155_vm7, %v10637_v41, %v8152_v10  ;;  %v10641_v7 = vpop.eup %10640  ;;  %v8240_v41 = vor.u32 1.1754944e-38, %v8239_v58  ;;  %v8257_v10 = vmul.f32 %v8256_v59, %v13934_v52  ;;  %v10212_v59 = vld [vmem:[#allocation19 + $0x30] sm:$0xff]  ;;  %vm8504_vm7 = vcmask 1041409  }
0x1291   : > { %v8229_v54 = vmul.f32 %v10641_v7, %v8227_v18  ;;  %v8161_v55 = vsel %vm8158_vm8, %v8160_v9, %v8156_v49  ;;  %vm8234_vm6 = vweird.f32 %v10641_v7  ;;  %v8196_v21 = vsel %vm13997_vm5, %v13973_v37, %v8192_v63  ;;  %v10643_v35 = vpop.eup %10642  ;;  %v10194_v63 = vld [vmem:[#allocation16 + $0x20] sm:$0xff] }
0x1292   : > { %v8162_v23 = vmul.f32 %v8161_v55, %v8137_v16  ;;  %vm8235_vm11 = vmor %vm8233_vm9, %vm8234_vm6  ;;  %v8269_v8 = vmul.f32 %v10643_v35, %v13986_v33  ;;  %v8201_v2 = vsel %vm8198_vm10, %v8200_v56, %v8196_v21  ;;  %vm8274_vm13 = vweird.f32 %v10643_v35 }
0x1293   : > { %v8230_v13 = vsub.f32 1.0, %v8229_v54  ;;  %v8202_v17 = vmul.f32 %v8201_v2, %v8177_v43  ;;  %vm8275_vm15 = vmor %vm8273_vm14, %vm8274_vm13  ;;  %v7956_v33 = vmul.f32 0.5, %v13926_v34  ;;  %v10195_v54 = vld [vmem:[#allocation16 + $0x28] sm:$0xff]  ;;  %v8655_v34 = vand.u32 127, %v8654_v6  ;;  %v10213_v43 = vld [vmem:[#allocation19 + $0x38] sm:$0xff] }
0x1294   : > { %v9837_v45 = vclamps-f32 %v8162_v23, 1.0  ;;  %v8270_v28 = vsub.f32 1.0, %v8269_v8  ;;  %8558 = vmatpush.bf16.msra.mxu2 %v10195_v54  ;;  %v8658_v23 = vpop.permute.xlu0 %8657  ;;  %v10190_v8 = vld [vmem:[#allocation16] sm:$0xff]  ;;  %v10453_v54 = vld [vmem:[%s14146_s18] ss:$0 sm:$0xff]  ;;  %s8957_s18 = scalar_lea.hbm %s14148_s15, %s10222_s24  ;;  %vm8937_vm6 = vcmask 1040384  }
0x1295   : > { %v8231_v20 = vmul.f32 %v10641_v7, %v8230_v13  ;;  %v9838_v51 = vclamps-f32 %v8202_v17, 1.0  ;;  %vm8662_vm4 = vcmp.eq.s32.totalorder %v8658_v23, %v8655_v34  ;;  %vm8940_vm9 = vcmask 1044480   ;;  %s8960_s3 = sshll.u32 %s8957_s18, 4  ;;  %s8961_s3 = int_to_ptr.hbm [resolvable:$true] %s8960_s3 }
0x1296   : > { %v8271_v18 = vmul.f32 %v10643_v35, %v8270_v28  ;;  %v8289_v57 = vadd.f32 1.0, %v9837_v45 }
0x1297   : > { %v8232_v39 = vadd.f32 %v10641_v7, %v8231_v20  ;;  %v8290_v49 = vadd.f32 1.0, %v9838_v51  ;;  %v10202_v51 = vld [vmem:[#allocation17 + $0x20] sm:$0xff] }
0x1298   : > { %v8272_v31 = vadd.f32 %v10643_v35, %v8271_v18  ;;  %v8297_v48 = vmul.f32 %v8289_v57, %v7953_v11  ;;  %8559 = vmatpush.bf16.msra.mxu2 %v10194_v63  ;;  %v10203_v57 = vld [vmem:[#allocation17 + $0x28] sm:$0xff] }
0x1299   : > { %v8236_v32 = vsel %vm8235_vm11, %v10641_v7, %v8232_v39  ;;  %v8298_v52 = vmul.f32 %v8290_v49, %v7954_v44  ;;  %v10200_v44 = vld [vmem:[#allocation17 + $0x10] sm:$0xff] }
0x129a   : > { %v8241_v37 = vsel %vm8238_vm12, %v8240_v41, %v8236_v32  ;;  %v8276_v62 = vsel %vm8275_vm15, %v10643_v35, %v8272_v31  ;;  %v11158_v35 = vmov 0.0   ;;  %v10191_v41 = vld [vmem:[#allocation16 + $0x8] sm:$0xff]  ;;  %v10205_v32 = vld [vmem:[#allocation17 + $0x38] sm:$0xff] }
0x129b   : > { %v8242_v24 = vmul.f32 %v8241_v37, %v8217_v47  ;;  %v8281_v5 = vsel %vm8278_vm2, %v8280_v3, %v8276_v62  ;;  %v9970_v56 = vsel %vm8662_vm4, 1.0, %v11158_v35  ;;  %v10192_v47 = vld [vmem:[#allocation16 + $0x10] sm:$0xff]  ;;  %8639 = vmatpush.bf16.msrb.mxu3 %v10205_v32 }
0x129c   : > { %v8282_v14 = vmul.f32 %v8281_v5, %v8257_v10  ;;  %8560 = vmatpush.bf16.msra.mxu2 %v10193_v26  ;;  %v8668_v38 = vpack.c.bf16 %v9970_v56, %v9970_v56  ;;  %v10210_v10 = vld [vmem:[#allocation19 + $0x20] sm:$0xff]  ;;  %v10201_v5 = vld [vmem:[#allocation17 + $0x18] sm:$0xff] }
0x129d   : > { %v9839_v19 = vclamps-f32 %v8242_v24, 1.0  ;;  %v10204_v24 = vld [vmem:[#allocation17 + $0x30] sm:$0xff] }
0x129e   : > { %v9840_v53 = vclamps-f32 %v8282_v14, 1.0  ;;  %v10209_v14 = vld [vmem:[#allocation19 + $0x18] sm:$0xff] }
0x129f   : > { %v8291_v61 = vadd.f32 1.0, %v9839_v19  ;;  %8640 = vmatpush.bf16.msrb.mxu3 %v10204_v24  ;;  %v10211_v19 = vld [vmem:[#allocation19 + $0x28] sm:$0xff] }
0x12a0   : > { %v8292_v7 = vadd.f32 1.0, %v9840_v53  ;;  %8561 = vmatpush.bf16.msra.mxu2 %v10192_v47  ;;  %v10219_v24 = vld [vmem:[#allocation20 + $0x28] sm:$0xff] }
0x12a1   : > { %v8299_v60 = vmul.f32 %v8291_v61, %v7955_v4  ;;  %v8661_v4 = vpop.permute.xlu1 %8660 }
0x12a2   : > { %v8300_v9 = vmul.f32 %v8292_v7, %v7956_v33  ;;  %vm8663_vm8 = vcmp.eq.s32.totalorder %v8661_v4, %v8655_v34  ;;  %v10208_v33 = vld [vmem:[#allocation19 + $0x10] sm:$0xff]  ;;  %v10199_v7 = vld [vmem:[#allocation17 + $0x8] sm:$0xff] }
0x12a3   : > { %v8303_v22 = vpack.c.bf16 %v8299_v60, %v8297_v48  ;;  %8641 = vmatpush.bf16.msrb.mxu3 %v10203_v57  ;;  %v10217_v57 = vld [vmem:[#allocation20 + $0x18] sm:$0xff] }
0x12a4   : > { %v8304_v55 = vpack.c.bf16 %v8300_v9, %v8298_v52  ;;  %8562 = vmatpush.bf16.msra.mxu2 %v10191_v41  ;;  %v10207_v52 = vld [vmem:[#allocation19 + $0x8] sm:$0xff]  ;;  %v10198_v9 = vld [vmem:[#allocation17] sm:$0xff] }
0x12a5   : > { %8452 = vmatmul.bf16.gmra.mxu0 %v8303_v22  ;;  %v9971_v22 = vsel %vm8663_vm8, 1.0, %v11158_v35 }
0x12a6   : > { %8471 = vmatmul.bf16.gmra.mxu1 %v8304_v55  ;;  %v8669_v49 = vpack.c.bf16 %v9971_v22, %v9971_v22 }
0x12a7   : > { %8642 = vmatpush.bf16.msrb.mxu3 %v10202_v51 }
0x12a8   : > { %v8448_v0 = vpop.f32.mrf.mxu0  ;;  %8563 = vmatpush.bf16.msra.mxu2 %v10190_v8  ;;  %v10221_v8 = vld [vmem:[#allocation20 + $0x38] sm:$0xff] }
0x12a9   : > { %v8467_v16 = vpop.f32.mrf.mxu1  ;;  %v8449_v12 = vadd.f32 %v10452_v15, %v8448_v0  ;;  %v10206_v0 = vld [vmem:[#allocation19] sm:$0xff] }
0x12ab   : > { %v8468_v46 = vadd.f32 %v8467_v16, %v8449_v12  ;;  %8643 = vmatpush.bf16.msrb.mxu3 %v10201_v5 }
0x12ac   : > { %8788 = vmatpush.bf16.msrb.mxu2 %v10213_v43  ;;  %v10220_v43 = vld [vmem:[#allocation20 + $0x30] sm:$0xff] }
0x12ad   : > { %v8477_v25 = vpack.c.bf16 %v8468_v46, %v8468_v46 }
0x12af   : > { %v8501_v40 = vunpack.c.l.b16 %v8477_v25  ;;  %8644 = vmatpush.bf16.msrb.mxu3 %v10200_v44 }
0x12b0   : > { %v8450_v13 = vpop.f32.mrf.mxu0  ;;  %8789 = vmatpush.bf16.msrb.mxu2 %v10212_v59 }
0x12b1   : > { %v8451_v50 = vadd.f32 %v10452_v15, %v8450_v13  ;;  %v8469_v58 = vpop.f32.mrf.mxu1 }
0x12b3   : > { %v8470_v20 = vadd.f32 %v8469_v58, %v8451_v50  ;;  %8645 = vmatpush.bf16.msrb.mxu3 %v10199_v7  ;;  %v10455_v50 = vld [vmem:[%s11309_s27] ss:$0 sm:$0xff] }
0x12b4   : > { %8790 = vmatpush.bf16.msrb.mxu2 %v10211_v19 }
0x12b5   : > { %v8670_v29 = vpack.c.bf16 %v8470_v20, %v8470_v20 }
0x12b7   : > { %v8673_v21 = vunpack.c.l.b16 %v8670_v29  ;;  %8646 = vmatpush.bf16.msrb.mxu3 %v10198_v9 }
0x12b8   : > { %8791 = vmatpush.bf16.msrb.mxu2 %v10210_v10 }
0x12b9   : > { %v8674_v39 = vpack.c.b16 %v8673_v21, %v8501_v40 }
0x12bb   : > { %8686 = vmatpush.bf16.msra.mxu0 %v8674_v39  ;;  %8910 = vmatpush.bf16.msra.mxu3 %v10221_v8 }
0x12bc   : > { %8792 = vmatpush.bf16.msrb.mxu2 %v10209_v14 }
0x12be   : > { %9972 = vmatmul.msk.bf16.vlgmr.msra.gmra.mxu0 %vm2643_vm1, %v8668_v38 }
0x12bf   : > { %8911 = vmatpush.bf16.msra.mxu3 %v10220_v43 }
0x12c0   : > { %8793 = vmatpush.bf16.msrb.mxu2 %v10208_v33 }
0x12c3   : > { %8912 = vmatpush.bf16.msra.mxu3 %v10219_v24 }
0x12c4   : > { %8794 = vmatpush.bf16.msrb.mxu2 %v10207_v52 }
0x12c8   : > { %8795 = vmatpush.bf16.msrb.mxu2 %v10206_v0 }
0x1322   : > { %v8453_v45 = vpop.f32.mrf.mxu0 }
0x1323   : > { %v8454_v2 = vadd.f32 %v10452_v15, %v8453_v45  ;;  %v8472_v37 = vpop.f32.mrf.mxu1 }
0x1325   : > { %v8473_v28 = vadd.f32 %v8472_v37, %v8454_v2 }
0x1327   : > { %v8478_v17 = vpack.c.bf16 %v8473_v28, %v8473_v28 }
0x1329   : > { %v8502_v18 = vunpack.c.l.b16 %v8478_v17 }
0x132a   : > { %v8455_v36 = vpop.f32.mrf.mxu0 }
0x132b   : > { %v8456_v30 = vadd.f32 %v10452_v15, %v8455_v36  ;;  %v8503_v31 = vrot.slane %v8502_v18, 7  ;;  %v8474_v11 = vpop.f32.mrf.mxu1  ;;  %v10218_v36 = vld [vmem:[#allocation20 + $0x20] sm:$0xff] }
0x132c   : > { %8913 = vmatpush.bf16.msra.mxu3 %v10218_v36 }
0x132d   : > { %v8505_v61 = vsel %vm8504_vm7, %v8503_v31, %v8501_v40  ;;  %v8475_v3 = vadd.f32 %v8474_v11, %v8456_v30  ;;  %v10216_v31 = vld [vmem:[#allocation20 + $0x10] sm:$0xff] }
0x132e   : > { %v8506_v62 = vpack.c.b16 %v8505_v61, %v8505_v61  ;;  %v10215_v61 = vld [vmem:[#allocation20 + $0x8] sm:$0xff] }
0x132f   : > { %v8671_v48 = vpack.c.bf16 %v8475_v3, %v8475_v3 }
0x1330   : > { %8564 = vmatmul.bf16.vlgmr.msra.gmra.mxu2 %v8506_v62  ;;  %8914 = vmatpush.bf16.msra.mxu3 %v10217_v57 }
0x1331   : > { %v8693_v60 = vunpack.c.l.b16 %v8671_v48  ;;  %v10214_v48 = vld [vmem:[#allocation20] sm:$0xff] }
0x1333   : > { %v8694_v27 = vpack.c.b16 %v8693_v60, %v8502_v18 }
0x1334   : > { %8915 = vmatpush.bf16.msra.mxu3 %v10216_v31 }
0x1335   : > { %8706 = vmatpush.bf16.msrb.mxu1 %v8694_v27 }
0x1338   : > { %9973 = vmatmul.msk.bf16.vlgmr.msrb.gmra.mxu1 %vm2643_vm1, %v8669_v49  ;;  %8916 = vmatpush.bf16.msra.mxu3 %v10215_v61 }
0x133b   : > { %v8688_v53 = vpop.f32.mrf.mxu0 }
0x133c   : > { %8714 = vst [vmem:[#allocation1] ss:$2 sm:$0xff] %v8688_v53  ;;  %8917 = vmatpush.bf16.msra.mxu3 %v10214_v48 }
0x1343   : > { %v8690_v1 = vpop.f32.mrf.mxu0 }
0x13b3   : > { %v8565_v55 = vpop.f32.mrf.mxu2 }
0x13b4   : > { %v8566_v15 = vadd.f32 %v10453_v54, %v8565_v55 }
0x13b5   : > { %v8708_v63 = vpop.f32.mrf.mxu1 }
0x13b6   : > { %10644 = vtanh.f32 %v8566_v15  ;;  %8716 = vst [vmem:[#allocation1 + $0x1] ss:$2 sm:$0xff] %v8708_v63  ;;  %v10454_v15 = vld [vmem:[%s14147_s28] ss:$0 sm:$0xff]  ;;  %s11026_s28 = sshra.s32 %s8961_s3, 4  ;;  %s11027_s28 = int_to_ptr.hbm [resolvable:$true] %s11026_s28 }
0x13b7   : > { %s11028_s15 = scalar_lea.hbm %s11027_s28, 16  ;;  %p11033_p4 = scmp.lt.s32.totalorder %s11027_s28, %s14149_s17 }
0x13b8   : > { %p11029_p9 = scmp.ne.s32.totalorder %s11027_s28, %s11028_s15  ;;  %p11034_p7 = scmp.lt.s32.totalorder %s11032_s29, %s11028_s15 }
0x13ba   : > { %p11030_p12 = pnand %p11029_p9, %p11359_p5  ;;  %p11035_p8 = por %p11034_p7, %p11033_p4 }
0x13bb   : > { %v8567_v16 = vpop.f32.mrf.mxu2 }
0x13bc   : > { %v10645_v12 = vpop.eup %10644  ;;  %p11031_p0 = pneg %p11030_p12 }
0x13bd   : > { %v8570_v13 = vpack.c.bf16 %v10645_v12, %v10645_v12  ;;  %v8710_v26 = vpop.f32.mrf.mxu1  ;;  %v8717_v6 = vld.sshfl [vmem:[#allocation1] sm:$0xff pattern:$0x75316420] }
0x13be   : > { %v8719_v46 = vpack.c.bf16 %v8717_v6, %v8717_v6  ;;  %p11036_p11 = pnand %p11035_p8, %p11031_p0 }
0x13bf   : > { %8647 = vmatmul.bf16.vlgmr.msrb.gmra.mxu3 %v8570_v13 }
0x13c0   : > { %8796 = vmatmul.bf16.vlgmr.msrb.gmra.mxu2 %v8719_v46 }
0x1442   : > { %v14021_v34 = vpop.f32.mrf.mxu3 }
0x1443   : > { %v8797_v58 = vpop.f32.mrf.mxu2  ;;  %v8649_v63 = vadd.f32 %v10454_v15, %v14021_v34 }
0x1444   : > { %v8798_v23 = vadd.f32 %v10455_v50, %v8797_v58 }
0x1445   : > { %v8926_v6 = vrot.slane %v8649_v63, 1 }
0x1446   : > { %v8802_v25 = vmul.f32 %v8798_v23, %v12601_v42  ;;  %v8801_v7 = vmul.f32 0.5, %v8798_v23 }
0x1448   : > { %v8803_v20 = vmul.f32 %v8802_v25, %v8802_v25 }
0x144a   : > { %v8804_v29 = vmin.f32 %v8803_v20, 16.0  ;;  %v8650_v40 = vpop.f32.mrf.mxu3 }
0x144b   : > { %v8799_v21 = vpop.f32.mrf.mxu2 }
0x144c   : > { %v8805_v35 = vmul.f32 2.1237322e-06, %v8804_v29  ;;  %v8816_v56 = vmul.f32 3.8918573e-05, %v8804_v29 }
0x144e   : > { %v8806_v39 = vadd.f32 0.00028619796, %v8805_v35  ;;  %v8817_v38 = vadd.f32 0.001143296, %v8816_v56 }
0x1450   : > { %v8807_v47 = vmul.f32 %v8806_v39, %v8804_v29  ;;  %v8818_v41 = vmul.f32 %v8817_v38, %v8804_v29 }
0x1452   : > { %v8819_v45 = vadd.f32 0.014752088, %v8818_v41  ;;  %v8808_v2 = vadd.f32 0.0036580483, %v8807_v47 }
0x1454   : > { %v8820_v32 = vmul.f32 %v8819_v45, %v8804_v29  ;;  %v8809_v28 = vmul.f32 %v8808_v2, %v8804_v29 }
0x1456   : > { %v8821_v37 = vadd.f32 0.112945676, %v8820_v32  ;;  %v8810_v17 = vadd.f32 0.05243302, %v8809_v28 }
0x1458   : > { %v8822_v42 = vmul.f32 %v8821_v37, %v8804_v29  ;;  %v8811_v19 = vmul.f32 %v8810_v17, %v8804_v29 }
0x145a   : > { %v8823_v59 = vadd.f32 0.4994258, %v8822_v42  ;;  %v8812_v11 = vadd.f32 0.18741608, %v8811_v19 }
0x145c   : > { %v8824_v18 = vmul.f32 %v8823_v59, %v8804_v29  ;;  %v8813_v3 = vmul.f32 %v8812_v11, %v8804_v29 }
0x145e   : > { %v8825_v30 = vadd.f32 1.0, %v8824_v18  ;;  %v8814_v60 = vadd.f32 1.1283791, %v8813_v3 }
0x1460   : > { %10646 = vrcp.f32 %v8825_v30  ;;  %v8837_v62 = vand.u32 2147483648, %v8825_v30  ;;  %v8835_v14 = vand.u32 2147483647, %v8825_v30  ;;  %vm8831_vm0 = vweird.f32 %v8825_v30 }
0x1461   : > { %v8815_v49 = vmul.f32 %v8814_v60, %v8802_v25 }
0x1462   : > { %v8838_v27 = vor.u32 1.1754944e-38, %v8837_v62  ;;  %vm8836_vm5 = vcmp.eq.f32.partialorder %v8835_v14, 8.507059e+37 }
0x1466   : > { %v10647_v4 = vpop.eup %10646 }
0x1467   : > { %v8827_v51 = vmul.f32 %v10647_v4, %v8825_v30  ;;  %vm8832_vm1 = vweird.f32 %v10647_v4 }
0x1468   : > { %vm8833_vm3 = vmor %vm8831_vm0, %vm8832_vm1 }
0x1469   : > { %v8828_v10 = vsub.f32 1.0, %v8827_v51 }
0x146b   : > { %v8829_v5 = vmul.f32 %v10647_v4, %v8828_v10 }
0x146d   : > { %v8830_v22 = vadd.f32 %v10647_v4, %v8829_v5 }
0x146f   : > { %v8834_v53 = vsel %vm8833_vm3, %v10647_v4, %v8830_v22 }
0x1470   : > { %v8839_v1 = vsel %vm8836_vm5, %v8838_v27, %v8834_v53 }
0x1471   : > { %v8840_v44 = vmul.f32 %v8839_v1, %v8815_v49 }
0x1473   : > { %v10006_v33 = vclamps-f32 %v8840_v44, 1.0 }
0x1475   : > { %v8843_v52 = vadd.f32 1.0, %v10006_v33 }
0x1477   : > { %v8844_v9 = vmul.f32 %v8843_v52, %v8801_v7 }
0x1479   : > { %v8845_v0 = vpack.c.bf16 %v8844_v9, %v8844_v9 }
0x147b   : > { %8918 = vmatmul.bf16.vlgmr.msra.gmra.mxu3 %v8845_v0 }
0x14fe   : > { %v8919_v54 = vpop.f32.mrf.mxu3 }
0x14ff   : > { %v8924_v55 = vrot.slane %v8919_v54, 4  ;;  %8928 = vst [vmem:[#allocation1] ss:$2 sm:$0xff] %v8919_v54 }
0x1501   : > { %8931 = vst [vmem:[#allocation1 + $0x10] ss:$2 sm:$0xff] %v8924_v55 }
0x1506   : > { %v8921_v16 = vpop.f32.mrf.mxu3  ;;  %v8929_v12 = vld.sshfl [vmem:[#allocation1] sm:$0xff pattern:$0x75316420] }
0x1507   : > { %v8933_v13 = vrot.slane %v8929_v12, 7 }
0x1508   : > { %v8932_v26 = vld.sshfl [vmem:[#allocation1 + $0x10] sm:$0xff pattern:$0x75316420] }
0x1509   : > { %v8934_v46 = vrot.slane %v8932_v26, 7  ;;  %v8938_v50 = vsel %vm8937_vm6, %v8649_v63, %v8933_v13 }
0x150a   : > { %v8941_v58 = vsel %vm8940_vm9, %v8938_v50, 0.0 }
0x150b   : > { %v8939_v23 = vsel %vm8937_vm6, %v8926_v6, %v8934_v46  ;;  %8943 = vst [vmem:[%s1167_s1] sm:$0xff] %v8941_v58 }
0x150c   : > { %v8942_v34 = vsel %vm8940_vm9, %v8939_v23, 0.0 }
0x150d   : > { %8944 = vst [vmem:[%s1167_s1 + $0x8] sm:$0xff] %v8942_v34 }
0x150e   : > { %11039 = shalt.err (!%p11036_p11)
}
0x150f   : > { %s11159_s24 = smov 128   ;;  %s11160_s18 = smov 8  }
0x1510   : > { %10271 = dma.vmem_to_hbm [thread:$0]  (%p11359_p5), %s8959_s2, 256, %s8961_s3, %s8946_s0, %s11159_s24, %s11159_s24, %s11160_s18  }
0x1511 PF: > { %s14151_s1 = sld [smem:[#allocation53_spill]] }
0x1512   : > { %s14152_s22 = sld [smem:[#allocation51_spill]] }
0x1517   : > { %p10338_p13 = scmp.ge.s32.totalorder %s14151_s1, 2 }
0x1518   : > { %s8975_s6 = sand.u32 1, %s14152_s22  }
0x1519   : > { %p10311_p1 = pnand %p10338_p13, %p11363_p6  ;;  %s8976_s7 = scalar_lea.sflag [#allocation4], %s8975_s6 }
0x151b   : > { %p10312_p3 = pneg %p10311_p1 }
0x151d   : > { %11085 = dma.done.wait (%p10312_p3), %s8976_s7, 256  }
0x151e   : > { %11087 = vsyncadd (%p10312_p3), %s8976_s7, 4294967040  ;;  %s14154_s22 = sld [smem:[#allocation54_spill]]  ;;  %s14157_s15 = smov %s11094_s16 }
0x151f   : > { %s14155_s28 = sld [smem:[#allocation52_spill]] }
0x1520   : > { %s14156_s18 = sld [smem:[#allocation55_spill]] }
0x1524   : > { %p78_p2 = scmp.ge.s32.totalorder %s14154_s22, 4  }
0x1525   : > { %s14158_s16 = smov %s14155_s28 }
0x1526   :  { %80 = sbr.rel (!%p78_p2) target bundleno = 71 (0x47), region = 280 }
0x152b   :  { %8982 = vsyncpa [#allocation3], 1 }
0x152c   :  { %8984 = vsyncpa [#allocation3 + $0x1], 1 }
0x152d   :  { %8985 = vsyncpa [#allocation6], 1 }
0x152e   :  { %8986 = vsyncpa [#allocation9], 1 }
0x152f   :  { %8987 = vsyncpa [#allocation12], 1 }
0x1530   :  { %8988 = vsyncpa [#allocation15], 1 }
0x1531   :  { %8989 = vsyncpa [#allocation18], 1 }
0x1532   :  { %8990 = vsyncpa [#allocation21], 1 }
0x1533   :  { %8991 = vsyncpa [#allocation4], 1 }
0x1534   :  { %8993 = vsyncpa [#allocation4 + $0x1], 1 }

</bundles_post_ra>
